<compile_context>
chip_gen: v7x
topology: tpu7x:2x2x1
jax: 0.10.0
libtpu: 0.0.40
codegen_flags: <defaults>
</compile_context>

<pallas_src>
import functools
import math

import jax
import jax.numpy as jnp
from jax.experimental import pallas as pl
from jax.experimental.pallas import tpu as pltpu


def fusion_kernel(mamba_ref, fast_ref, kg_qkv_ref,
                  wkvT_ref, bkv_ref, wqkvT_ref, bqkv_ref,
                  woT_ref, bo_scaled_ref, out_ref,
                  *, fast_scale, kg_scale):
    TB, E = out_ref.shape
    Sf = fast_ref.shape[1]
    inv_sf = 1.0 / Sf                       # hoisted constants
    inv_sqrt_e = 1.0 / math.sqrt(E)

    mamba_raw = mamba_ref[...]                                  # (TB, E) producer dtype
    mamba_f32 = mamba_raw.astype(jnp.float32)                   # residual path
    mamba_bf = mamba_raw.astype(jnp.bfloat16)                   # MXU operand (no-op if bf16)

    # ---- fast mean: strip-mined over the small sequence axis --------------
    # Avoids materializing the whole (TB, Sf, E) slab before the reduce (vreg
    # spill guard); accumulation in f32.
    fast_sum = fast_ref[:, 0, :].astype(jnp.float32)            # (TB, E) f32
    for s in range(1, Sf):
        fast_sum = fast_sum + fast_ref[:, s, :].astype(jnp.float32)
    fast_emb = fast_sum * inv_sf                                # (TB, E) f32
    fast_bf = fast_emb.astype(jnp.bfloat16)

    # ---- projections: dead q_m never computed, no token concat ------------
    proj_m = jnp.dot(mamba_bf, wkvT_ref[...],
                     preferred_element_type=jnp.float32) + bkv_ref[...]    # (TB, 2E)
    proj_f = jnp.dot(fast_bf, wqkvT_ref[...],
                     preferred_element_type=jnp.float32) + bqkv_ref[...]   # (TB, 3E)

    k_m = proj_m[:, 0:E]
    v_m = proj_m[:, E:2 * E]
    q_f = proj_f[:, 0:E]
    k_f = proj_f[:, E:2 * E]
    v_f = proj_f[:, 2 * E:3 * E]

    # batch-invariant KG token: Q/K/V precomputed in the wrapper (f32).
    q_g = kg_qkv_ref[:, 0:E]                                    # (1, E)
    k_g = kg_qkv_ref[:, E:2 * E]
    v_g = kg_qkv_ref[:, 2 * E:3 * E]

    # hoist the sublane broadcasts (JAX does not CSE broadcast_in_dim)
    q_gb = jnp.broadcast_to(q_g, (TB, E))
    k_gb = jnp.broadcast_to(k_g, (TB, E))
    v_gb = jnp.broadcast_to(v_g, (TB, E))

    # ---- scores: 2 live query rows x 3 keys, as lane reductions (VPU/XLU) --
    def rowdot(a, b):
        return jnp.sum(a * b, axis=-1, keepdims=True) * inv_sqrt_e

    s_fm = rowdot(q_f, k_m)        # (TB, 1)
    s_ff = rowdot(q_f, k_f)        # (TB, 1)
    s_fg = rowdot(q_f, k_gb)       # (TB, 1)
    s_gm = rowdot(q_gb, k_m)       # (TB, 1)
    s_gf = rowdot(q_gb, k_f)       # (TB, 1)
    s_gg = rowdot(q_g, k_g)        # (1, 1)  batch-invariant, broadcasts below

    def softmax3(a, b, c):
        m = jnp.maximum(jnp.maximum(a, b), c)
        ea = jnp.exp(a - m)
        eb = jnp.exp(b - m)
        ec = jnp.exp(c - m)
        inv = pl.reciprocal(ea + eb + ec, approx=True)   # EUP slot, ~free
        return ea * inv, eb * inv, ec * inv

    p_fm, p_ff, p_fg = softmax3(s_fm, s_ff, s_fg)
    p_gm, p_gf, p_gg = softmax3(s_gm, s_gf, s_gg)

    # attn rows via broadcast mul/add (no pathological K=3 matmul)
    attn_f = p_fm * v_m + p_ff * v_f + p_fg * v_gb              # (TB, E)
    attn_g = p_gm * v_m + p_gf * v_f + p_gg * v_gb              # (TB, E)

    # ---- linearity of the output projection --------------------------------
    # fs*(attn_f@Wo^T + bo) + ks*(attn_g@Wo^T + bo)
    #   == (fs*attn_f + ks*attn_g)@Wo^T + (fs+ks)*bo   (bias folded in wrapper)
    combined = fast_scale * attn_f + kg_scale * attn_g          # (TB, E) f32
    out_proj = jnp.dot(combined.astype(jnp.bfloat16), woT_ref[...],
                       preferred_element_type=jnp.float32)      # (TB, E) f32
    fused = mamba_f32 + out_proj + bo_scaled_ref[...]

    # TODO(synk): nn.Dropout(0.5) is identity in eval mode; training-mode dropout not applied.
    out_ref[...] = fused.astype(out_ref.dtype)


def _tensorcores_per_chip():
    """1 TC/chip on v2-v6e, 2 TCs/chip on v7x (generation-aware tiling)."""
    try:
        kind = jax.devices()[0].device_kind.lower()
    except Exception:
        return 1
    return 2 if ("v7" in kind or "7x" in kind) else 1


def _pick_block_b(B, num_cores):
    # Target >= 2 grid steps per TensorCore so the fast_x tile prefetch and the
    # output writeback are hidden by the software pipeline on every core
    # (v7x: grid >= 4 -> TB=64 at B=256; v5e/v6e: grid >= 2 -> TB=128).
    min_steps = 2 * max(1, num_cores)
    for tb in (256, 128, 64, 32, 16, 8):
        if B % tb == 0 and B // tb >= min_steps:
            return tb
    for tb in (256, 128, 64, 32, 16, 8):
        if B % tb == 0:
            return tb
    return B


def enhanced_fusion(mamba, fast_x, kg_x,
                    wq, wk, wv, b_in, wo, bo,
                    fast_scale, kg_scale):
    """mamba (B,E), fast_x (B,Sf,E), kg_x (1,Sk,E). Torch conventions:
       wq/wk/wv/wo are (E,E) applied as x @ W^T + b; b_in is the packed (3E,) bias.
       mamba/fast_x may arrive in bf16 (preferred) or f32; they are never cast
       in the wrapper."""
    B, E = mamba.shape
    Sf = fast_x.shape[1]
    tb = _pick_block_b(B, _tensorcores_per_chip())

    # ---- wrapper-side (once, outside the grid) -----------------------------
    # Fused weights, transposed for x @ W^T; weights in bf16 for the MXU.
    wqkvT_f32 = jnp.concatenate([wq.T, wk.T, wv.T], axis=1)          # (E, 3E)
    wqkvT = wqkvT_f32.astype(jnp.bfloat16)                           # (E, 3E) bf16
    wkvT = jnp.concatenate([wk.T, wv.T], axis=1).astype(jnp.bfloat16)  # (E, 2E) bf16
    bqkv = b_in.reshape(1, 3 * E).astype(jnp.float32)                # (1, 3E)
    bkv = b_in[E:3 * E].reshape(1, 2 * E).astype(jnp.float32)        # (1, 2E)

    # Batch-invariant KG branch: mean over its sequence + its Q/K/V projections.
    kg_emb = jnp.mean(kg_x[0].astype(jnp.float32), axis=0, keepdims=True)  # (1, E)
    kg_qkv = (kg_emb @ wqkvT_f32 + bqkv).astype(jnp.float32)               # (1, 3E)

    woT = wo.T.astype(jnp.bfloat16)                                  # (E, E)
    fs = float(fast_scale)
    ks = float(kg_scale)
    bo_scaled = ((fs + ks) * bo).reshape(1, E).astype(jnp.float32)   # (1, E)

    grid = (B // tb,)
    const2d = lambda shape: pl.BlockSpec(shape, lambda i: (0, 0))    # grid-invariant blocks

    kernel = functools.partial(fusion_kernel, fast_scale=fs, kg_scale=ks)

    return pl.pallas_call(
        kernel,
        out_shape=jax.ShapeDtypeStruct((B, E), jnp.float32),
        grid=grid,
        in_specs=[
            pl.BlockSpec((tb, E), lambda i: (i, 0)),           # mamba
            pl.BlockSpec((tb, Sf, E), lambda i: (i, 0, 0)),    # fast_x (dominant stream)
            const2d((1, 3 * E)),                               # kg q/k/v (invariant)
            const2d((E, 2 * E)),                               # Wkv^T   (bf16)
            const2d((1, 2 * E)),                               # bkv
            const2d((E, 3 * E)),                               # Wqkv^T  (bf16)
            const2d((1, 3 * E)),                               # bqkv
            const2d((E, E)),                                   # Wo^T    (bf16)
            const2d((1, E)),                                   # (fs+ks)*bo
        ],
        out_specs=pl.BlockSpec((tb, E), lambda i: (i, 0)),
        compiler_params=pltpu.CompilerParams(
            dimension_semantics=("parallel",),
            # explicit budget; per-step footprint is a few MiB, well under
            # v7x's 64 MiB physical VMEM.
            vmem_limit_bytes=32 * 1024 * 1024,
        ),
    )(mamba, fast_x, kg_qkv, wkvT, bkv, wqkvT, bqkv, woT, bo_scaled)


def reference(mamba, fast_x, kg_x, wq, wk, wv, b_in, wo, bo, fast_scale, kg_scale):
    """Pure-JAX f32 reference of EnhancedFusionModule.forward (eval mode)."""
    B, E = mamba.shape
    bq, bk, bv = b_in[:E], b_in[E:2 * E], b_in[2 * E:]
    fast_emb = fast_x.mean(axis=1, keepdims=True)
    kg_emb = jnp.broadcast_to(kg_x, (B,) + kg_x.shape[1:]).mean(axis=1, keepdims=True)
    c = jnp.concatenate([mamba[:, None, :], fast_emb, kg_emb], axis=1)   # (B,3,E)
    q = c @ wq.T + bq
    k = c @ wk.T + bk
    v = c @ wv.T + bv
    s = jnp.einsum('bqe,bke->bqk', q, k) / math.sqrt(E)
    p = jax.nn.softmax(s, axis=-1)
    out = jnp.einsum('bqk,bke->bqe', p, v) @ wo.T + bo
    return mamba + fast_scale * out[:, 1, :] + kg_scale * out[:, 2, :]


if __name__ == "__main__":
    # Small, lane-aligned embed dim; batch large enough to exercise batch-blocking
    # (grid of 2 programs with TB=128 on v5e/v6e, 4 programs with TB=64 on v7x).
    B, Sf, Sk, E = 256, 8, 8, 128

    key = jax.random.PRNGKey(0)
    ks = jax.random.split(key, 9)
    # Producer-side activations arrive in bf16 (halves the dominant fast_x HBM
    # stream); the KG side input and all parameters stay f32.
    mamba = jax.random.normal(ks[0], (B, E), dtype=jnp.float32).astype(jnp.bfloat16)
    fast_x = jax.random.normal(ks[1], (B, Sf, E), dtype=jnp.float32).astype(jnp.bfloat16)
    kg_x = jax.random.normal(ks[2], (1, Sk, E), dtype=jnp.float32)

    scale = 1.0 / math.sqrt(E)
    wq = jax.random.normal(ks[3], (E, E), dtype=jnp.float32) * scale
    wk = jax.random.normal(ks[4], (E, E), dtype=jnp.float32) * scale
    wv = jax.random.normal(ks[5], (E, E), dtype=jnp.float32) * scale
    b_in = jax.random.normal(ks[6], (3 * E,), dtype=jnp.float32) * 0.01
    wo = jax.random.normal(ks[7], (E, E), dtype=jnp.float32) * scale
    bo = jax.random.normal(ks[8], (E,), dtype=jnp.float32) * 0.01

    # Module __init__ sets these to 0.0 (which would make the attention path vanish);
    # use nonzero deterministic values so the kernel path is actually exercised.
    fast_scale, kg_scale = 0.5, 0.25

    out = enhanced_fusion(mamba, fast_x, kg_x, wq, wk, wv, b_in, wo, bo,
                          fast_scale, kg_scale)
    out = jax.block_until_ready(out)

    ref = reference(mamba.astype(jnp.float32), fast_x.astype(jnp.float32), kg_x,
                    wq, wk, wv, b_in, wo, bo, fast_scale, kg_scale)
    assert out.shape == (B, E)
    # Tolerance loosened vs a pure-f32 path: bf16 activations + bf16 MXU operands
    # (f32 accumulation) and approx-reciprocal softmax denominator.
    assert jnp.allclose(out, ref, atol=5e-2, rtol=5e-2), "mismatch vs reference"
    print("KERNEL_OK")
</pallas_src>

<mosaic_0001>
module attributes {stable_mosaic.version = 11 : i64} {
  func.func @fusion_kernel(%arg0: i32, %arg1: memref<128x128xbf16, #tpu.memory_space<vmem>>, %arg2: memref<128x8x128xbf16, #tpu.memory_space<vmem>>, %arg3: memref<1x384xf32, #tpu.memory_space<vmem>>, %arg4: memref<128x256xbf16, #tpu.memory_space<vmem>>, %arg5: memref<1x256xf32, #tpu.memory_space<vmem>>, %arg6: memref<128x384xbf16, #tpu.memory_space<vmem>>, %arg7: memref<1x384xf32, #tpu.memory_space<vmem>>, %arg8: memref<128x128xbf16, #tpu.memory_space<vmem>>, %arg9: memref<1x128xf32, #tpu.memory_space<vmem>>, %arg10: memref<128x128xf32, #tpu.memory_space<vmem>>) attributes {dimension_semantics = [#tpu.dimension_semantics<parallel>], iteration_bounds = array<i64: 2>, scalar_prefetch = 0 : i64, scratch_operands = 0 : i64, tpu.core_type = #tpu.core_type<tc>, window_params = [{transform_indices = @transform_0, window_bounds = array<i64: 128, 128>}, {transform_indices = @transform_1, window_bounds = array<i64: 128, 8, 128>}, {pipeline_mode = #tpu.pipeline_mode<synchronous>, transform_indices = @transform_2, window_bounds = array<i64: 1, 384>}, {pipeline_mode = #tpu.pipeline_mode<synchronous>, transform_indices = @transform_3, window_bounds = array<i64: 128, 256>}, {pipeline_mode = #tpu.pipeline_mode<synchronous>, transform_indices = @transform_4, window_bounds = array<i64: 1, 256>}, {pipeline_mode = #tpu.pipeline_mode<synchronous>, transform_indices = @transform_5, window_bounds = array<i64: 128, 384>}, {pipeline_mode = #tpu.pipeline_mode<synchronous>, transform_indices = @transform_6, window_bounds = array<i64: 1, 384>}, {pipeline_mode = #tpu.pipeline_mode<synchronous>, transform_indices = @transform_7, window_bounds = array<i64: 128, 128>}, {pipeline_mode = #tpu.pipeline_mode<synchronous>, transform_indices = @transform_8, window_bounds = array<i64: 1, 128>}, {transform_indices = @transform_9, window_bounds = array<i64: 128, 128>}]} {
    %c0 = arith.constant 0 : index
    %c0_0 = arith.constant 0 : index
    %0 = vector.load %arg1[%c0, %c0_0] : memref<128x128xbf16, #tpu.memory_space<vmem>>, vector<128x128xbf16>
    %1 = arith.extf %0 : vector<128x128xbf16> to vector<128x128xf32>
    %c0_1 = arith.constant 0 : index
    %c0_2 = arith.constant 0 : index
    %c0_3 = arith.constant 0 : index
    %2 = vector.load %arg2[%c0_1, %c0_2, %c0_3] : memref<128x8x128xbf16, #tpu.memory_space<vmem>>, vector<128x1x128xbf16>
    %3 = vector.shape_cast %2 : vector<128x1x128xbf16> to vector<128x128xbf16>
    %4 = arith.extf %3 : vector<128x128xbf16> to vector<128x128xf32>
    %c0_4 = arith.constant 0 : index
    %c1 = arith.constant 1 : index
    %c0_5 = arith.constant 0 : index
    %5 = vector.load %arg2[%c0_4, %c1, %c0_5] : memref<128x8x128xbf16, #tpu.memory_space<vmem>>, vector<128x1x128xbf16>
    %6 = vector.shape_cast %5 : vector<128x1x128xbf16> to vector<128x128xbf16>
    %7 = arith.extf %6 : vector<128x128xbf16> to vector<128x128xf32>
    %8 = arith.addf %4, %7 : vector<128x128xf32>
    %c0_6 = arith.constant 0 : index
    %c2 = arith.constant 2 : index
    %c0_7 = arith.constant 0 : index
    %9 = vector.load %arg2[%c0_6, %c2, %c0_7] : memref<128x8x128xbf16, #tpu.memory_space<vmem>>, vector<128x1x128xbf16>
    %10 = vector.shape_cast %9 : vector<128x1x128xbf16> to vector<128x128xbf16>
    %11 = arith.extf %10 : vector<128x128xbf16> to vector<128x128xf32>
    %12 = arith.addf %8, %11 : vector<128x128xf32>
    %c0_8 = arith.constant 0 : index
    %c3 = arith.constant 3 : index
    %c0_9 = arith.constant 0 : index
    %13 = vector.load %arg2[%c0_8, %c3, %c0_9] : memref<128x8x128xbf16, #tpu.memory_space<vmem>>, vector<128x1x128xbf16>
    %14 = vector.shape_cast %13 : vector<128x1x128xbf16> to vector<128x128xbf16>
    %15 = arith.extf %14 : vector<128x128xbf16> to vector<128x128xf32>
    %16 = arith.addf %12, %15 : vector<128x128xf32>
    %c0_10 = arith.constant 0 : index
    %c4 = arith.constant 4 : index
    %c0_11 = arith.constant 0 : index
    %17 = vector.load %arg2[%c0_10, %c4, %c0_11] : memref<128x8x128xbf16, #tpu.memory_space<vmem>>, vector<128x1x128xbf16>
    %18 = vector.shape_cast %17 : vector<128x1x128xbf16> to vector<128x128xbf16>
    %19 = arith.extf %18 : vector<128x128xbf16> to vector<128x128xf32>
    %20 = arith.addf %16, %19 : vector<128x128xf32>
    %c0_12 = arith.constant 0 : index
    %c5 = arith.constant 5 : index
    %c0_13 = arith.constant 0 : index
    %21 = vector.load %arg2[%c0_12, %c5, %c0_13] : memref<128x8x128xbf16, #tpu.memory_space<vmem>>, vector<128x1x128xbf16>
    %22 = vector.shape_cast %21 : vector<128x1x128xbf16> to vector<128x128xbf16>
    %23 = arith.extf %22 : vector<128x128xbf16> to vector<128x128xf32>
    %24 = arith.addf %20, %23 : vector<128x128xf32>
    %c0_14 = arith.constant 0 : index
    %c6 = arith.constant 6 : index
    %c0_15 = arith.constant 0 : index
    %25 = vector.load %arg2[%c0_14, %c6, %c0_15] : memref<128x8x128xbf16, #tpu.memory_space<vmem>>, vector<128x1x128xbf16>
    %26 = vector.shape_cast %25 : vector<128x1x128xbf16> to vector<128x128xbf16>
    %27 = arith.extf %26 : vector<128x128xbf16> to vector<128x128xf32>
    %28 = arith.addf %24, %27 : vector<128x128xf32>
    %c0_16 = arith.constant 0 : index
    %c7 = arith.constant 7 : index
    %c0_17 = arith.constant 0 : index
    %29 = vector.load %arg2[%c0_16, %c7, %c0_17] : memref<128x8x128xbf16, #tpu.memory_space<vmem>>, vector<128x1x128xbf16>
    %30 = vector.shape_cast %29 : vector<128x1x128xbf16> to vector<128x128xbf16>
    %31 = arith.extf %30 : vector<128x128xbf16> to vector<128x128xf32>
    %32 = arith.addf %28, %31 : vector<128x128xf32>
    %cst = arith.constant 1.250000e-01 : f32
    %33 = vector.broadcast %cst : f32 to vector<128x128xf32>
    %34 = arith.mulf %32, %33 : vector<128x128xf32>
    %35 = arith.truncf %34 : vector<128x128xf32> to vector<128x128xbf16>
    %c0_18 = arith.constant 0 : index
    %c0_19 = arith.constant 0 : index
    %36 = vector.load %arg4[%c0_18, %c0_19] : memref<128x256xbf16, #tpu.memory_space<vmem>>, vector<128x256xbf16>
    %cst_20 = arith.constant dense<0.000000e+00> : vector<128x256xf32>
    %37 = tpu.matmul %0, %36, %cst_20 {dimension_numbers = #tpu.dot_dimension_numbers<[1], [0], [0], [1], [0, 0, 1, 1], [], []>} : vector<128x128xbf16>, vector<128x256xbf16>, vector<128x256xf32> -> vector<128x256xf32>
    %c0_21 = arith.constant 0 : index
    %c0_22 = arith.constant 0 : index
    %38 = vector.load %arg5[%c0_21, %c0_22] : memref<1x256xf32, #tpu.memory_space<vmem>>, vector<1x256xf32>
    %39 = vector.broadcast %38 : vector<1x256xf32> to vector<128x256xf32>
    %40 = arith.addf %37, %39 : vector<128x256xf32>
    %c0_23 = arith.constant 0 : index
    %c0_24 = arith.constant 0 : index
    %41 = vector.load %arg6[%c0_23, %c0_24] : memref<128x384xbf16, #tpu.memory_space<vmem>>, vector<128x384xbf16>
    %cst_25 = arith.constant dense<0.000000e+00> : vector<128x384xf32>
    %42 = tpu.matmul %35, %41, %cst_25 {dimension_numbers = #tpu.dot_dimension_numbers<[1], [0], [0], [1], [0, 0, 1, 1], [], []>} : vector<128x128xbf16>, vector<128x384xbf16>, vector<128x384xf32> -> vector<128x384xf32>
    %c0_26 = arith.constant 0 : index
    %c0_27 = arith.constant 0 : index
    %43 = vector.load %arg7[%c0_26, %c0_27] : memref<1x384xf32, #tpu.memory_space<vmem>>, vector<1x384xf32>
    %44 = vector.broadcast %43 : vector<1x384xf32> to vector<128x384xf32>
    %45 = arith.addf %42, %44 : vector<128x384xf32>
    %46 = vector.extract_strided_slice %40 {offsets = [0, 0], sizes = [128, 128], strides = [1, 1]} : vector<128x256xf32> to vector<128x128xf32>
    %47 = vector.extract_strided_slice %40 {offsets = [0, 128], sizes = [128, 128], strides = [1, 1]} : vector<128x256xf32> to vector<128x128xf32>
    %48 = vector.extract_strided_slice %45 {offsets = [0, 0], sizes = [128, 128], strides = [1, 1]} : vector<128x384xf32> to vector<128x128xf32>
    %49 = vector.extract_strided_slice %45 {offsets = [0, 128], sizes = [128, 128], strides = [1, 1]} : vector<128x384xf32> to vector<128x128xf32>
    %50 = vector.extract_strided_slice %45 {offsets = [0, 256], sizes = [128, 128], strides = [1, 1]} : vector<128x384xf32> to vector<128x128xf32>
    %c0_28 = arith.constant 0 : index
    %c0_29 = arith.constant 0 : index
    %51 = vector.load %arg3[%c0_28, %c0_29] : memref<1x384xf32, #tpu.memory_space<vmem>>, vector<1x128xf32>
    %c0_30 = arith.constant 0 : index
    %c128 = arith.constant 128 : index
    %52 = vector.load %arg3[%c0_30, %c128] : memref<1x384xf32, #tpu.memory_space<vmem>>, vector<1x128xf32>
    %c0_31 = arith.constant 0 : index
    %c256 = arith.constant 256 : index
    %53 = vector.load %arg3[%c0_31, %c256] : memref<1x384xf32, #tpu.memory_space<vmem>>, vector<1x128xf32>
    %54 = vector.shape_cast %51 : vector<1x128xf32> to vector<1x128xf32>
    %55 = vector.broadcast %54 : vector<1x128xf32> to vector<128x128xf32>
    %56 = vector.shape_cast %52 : vector<1x128xf32> to vector<1x128xf32>
    %57 = vector.broadcast %56 : vector<1x128xf32> to vector<128x128xf32>
    %58 = vector.shape_cast %53 : vector<1x128xf32> to vector<1x128xf32>
    %59 = vector.broadcast %58 : vector<1x128xf32> to vector<128x128xf32>
    %60 = arith.mulf %48, %46 : vector<128x128xf32>
    %cst_32 = arith.constant dense<0.000000e+00> : vector<128xf32>
    %61 = vector.multi_reduction <add>, %60, %cst_32 [1] : vector<128x128xf32> to vector<128xf32>
    %62 = vector.shape_cast %61 : vector<128xf32> to vector<128x1xf32>
    %cst_33 = arith.constant 0.0883883461 : f32
    %63 = vector.broadcast %cst_33 : f32 to vector<128x1xf32>
    %64 = arith.mulf %62, %63 : vector<128x1xf32>
    %65 = arith.mulf %48, %49 : vector<128x128xf32>
    %cst_34 = arith.constant dense<0.000000e+00> : vector<128xf32>
    %66 = vector.multi_reduction <add>, %65, %cst_34 [1] : vector<128x128xf32> to vector<128xf32>
    %67 = vector.shape_cast %66 : vector<128xf32> to vector<128x1xf32>
    %cst_35 = arith.constant 0.0883883461 : f32
    %68 = vector.broadcast %cst_35 : f32 to vector<128x1xf32>
    %69 = arith.mulf %67, %68 : vector<128x1xf32>
    %70 = arith.mulf %48, %57 : vector<128x128xf32>
    %cst_36 = arith.constant dense<0.000000e+00> : vector<128xf32>
    %71 = vector.multi_reduction <add>, %70, %cst_36 [1] : vector<128x128xf32> to vector<128xf32>
    %72 = vector.shape_cast %71 : vector<128xf32> to vector<128x1xf32>
    %cst_37 = arith.constant 0.0883883461 : f32
    %73 = vector.broadcast %cst_37 : f32 to vector<128x1xf32>
    %74 = arith.mulf %72, %73 : vector<128x1xf32>
    %75 = arith.mulf %55, %46 : vector<128x128xf32>
    %cst_38 = arith.constant dense<0.000000e+00> : vector<128xf32>
    %76 = vector.multi_reduction <add>, %75, %cst_38 [1] : vector<128x128xf32> to vector<128xf32>
    %77 = vector.shape_cast %76 : vector<128xf32> to vector<128x1xf32>
    %cst_39 = arith.constant 0.0883883461 : f32
    %78 = vector.broadcast %cst_39 : f32 to vector<128x1xf32>
    %79 = arith.mulf %77, %78 : vector<128x1xf32>
    %80 = arith.mulf %55, %49 : vector<128x128xf32>
    %cst_40 = arith.constant dense<0.000000e+00> : vector<128xf32>
    %81 = vector.multi_reduction <add>, %80, %cst_40 [1] : vector<128x128xf32> to vector<128xf32>
    %82 = vector.shape_cast %81 : vector<128xf32> to vector<128x1xf32>
    %cst_41 = arith.constant 0.0883883461 : f32
    %83 = vector.broadcast %cst_41 : f32 to vector<128x1xf32>
    %84 = arith.mulf %82, %83 : vector<128x1xf32>
    %85 = arith.mulf %51, %52 : vector<1x128xf32>
    %cst_42 = arith.constant dense<0.000000e+00> : vector<1xf32>
    %86 = vector.multi_reduction <add>, %85, %cst_42 [1] : vector<1x128xf32> to vector<1xf32>
    %87 = vector.shape_cast %86 : vector<1xf32> to vector<1x1xf32>
    %cst_43 = arith.constant 0.0883883461 : f32
    %88 = vector.broadcast %cst_43 : f32 to vector<1x1xf32>
    %89 = arith.mulf %87, %88 : vector<1x1xf32>
    %90 = arith.maximumf %64, %69 : vector<128x1xf32>
    %91 = arith.maximumf %90, %74 : vector<128x1xf32>
    %92 = arith.subf %64, %91 : vector<128x1xf32>
    %93 = math.exp %92 : vector<128x1xf32>
    %94 = arith.subf %69, %91 : vector<128x1xf32>
    %95 = math.exp %94 : vector<128x1xf32>
    %96 = arith.subf %74, %91 : vector<128x1xf32>
    %97 = math.exp %96 : vector<128x1xf32>
    %98 = arith.addf %93, %95 : vector<128x1xf32>
    %99 = arith.addf %98, %97 : vector<128x1xf32>
    %100 = tpu.reciprocal %99 {approx = true} : vector<128x1xf32> -> vector<128x1xf32>
    %101 = arith.mulf %93, %100 : vector<128x1xf32>
    %102 = arith.mulf %95, %100 : vector<128x1xf32>
    %103 = arith.mulf %97, %100 : vector<128x1xf32>
    %104 = arith.maximumf %79, %84 : vector<128x1xf32>
    %105 = vector.broadcast %89 : vector<1x1xf32> to vector<128x1xf32>
    %106 = arith.maximumf %104, %105 : vector<128x1xf32>
    %107 = arith.subf %79, %106 : vector<128x1xf32>
    %108 = math.exp %107 : vector<128x1xf32>
    %109 = arith.subf %84, %106 : vector<128x1xf32>
    %110 = math.exp %109 : vector<128x1xf32>
    %111 = vector.broadcast %89 : vector<1x1xf32> to vector<128x1xf32>
    %112 = arith.subf %111, %106 : vector<128x1xf32>
    %113 = math.exp %112 : vector<128x1xf32>
    %114 = arith.addf %108, %110 : vector<128x1xf32>
    %115 = arith.addf %114, %113 : vector<128x1xf32>
    %116 = tpu.reciprocal %115 {approx = true} : vector<128x1xf32> -> vector<128x1xf32>
    %117 = arith.mulf %108, %116 : vector<128x1xf32>
    %118 = arith.mulf %110, %116 : vector<128x1xf32>
    %119 = arith.mulf %113, %116 : vector<128x1xf32>
    %120 = vector.broadcast %101 : vector<128x1xf32> to vector<128x128xf32>
    %121 = arith.mulf %120, %47 : vector<128x128xf32>
    %122 = vector.broadcast %102 : vector<128x1xf32> to vector<128x128xf32>
    %123 = arith.mulf %122, %50 : vector<128x128xf32>
    %124 = arith.addf %121, %123 : vector<128x128xf32>
    %125 = vector.broadcast %103 : vector<128x1xf32> to vector<128x128xf32>
    %126 = arith.mulf %125, %59 : vector<128x128xf32>
    %127 = arith.addf %124, %126 : vector<128x128xf32>
    %128 = vector.broadcast %117 : vector<128x1xf32> to vector<128x128xf32>
    %129 = arith.mulf %128, %47 : vector<128x128xf32>
    %130 = vector.broadcast %118 : vector<128x1xf32> to vector<128x128xf32>
    %131 = arith.mulf %130, %50 : vector<128x128xf32>
    %132 = arith.addf %129, %131 : vector<128x128xf32>
    %133 = vector.broadcast %119 : vector<128x1xf32> to vector<128x128xf32>
    %134 = arith.mulf %133, %59 : vector<128x128xf32>
    %135 = arith.addf %132, %134 : vector<128x128xf32>
    %cst_44 = arith.constant 5.000000e-01 : f32
    %136 = vector.broadcast %cst_44 : f32 to vector<128x128xf32>
    %137 = arith.mulf %136, %127 : vector<128x128xf32>
    %cst_45 = arith.constant 2.500000e-01 : f32
    %138 = vector.broadcast %cst_45 : f32 to vector<128x128xf32>
    %139 = arith.mulf %138, %135 : vector<128x128xf32>
    %140 = arith.addf %137, %139 : vector<128x128xf32>
    %141 = arith.truncf %140 : vector<128x128xf32> to vector<128x128xbf16>
    %c0_46 = arith.constant 0 : index
    %c0_47 = arith.constant 0 : index
    %142 = vector.load %arg8[%c0_46, %c0_47] : memref<128x128xbf16, #tpu.memory_space<vmem>>, vector<128x128xbf16>
    %cst_48 = arith.constant dense<0.000000e+00> : vector<128x128xf32>
    %143 = tpu.matmul %141, %142, %cst_48 {dimension_numbers = #tpu.dot_dimension_numbers<[1], [0], [0], [1], [0, 0, 1, 1], [], []>} : vector<128x128xbf16>, vector<128x128xbf16>, vector<128x128xf32> -> vector<128x128xf32>
    %144 = arith.addf %1, %143 : vector<128x128xf32>
    %c0_49 = arith.constant 0 : index
    %c0_50 = arith.constant 0 : index
    %145 = vector.load %arg9[%c0_49, %c0_50] : memref<1x128xf32, #tpu.memory_space<vmem>>, vector<1x128xf32>
    %146 = vector.broadcast %145 : vector<1x128xf32> to vector<128x128xf32>
    %147 = arith.addf %144, %146 : vector<128x128xf32>
    %c0_51 = arith.constant 0 : index
    %c0_52 = arith.constant 0 : index
    %148 = vector.load %arg10[%c0_51, %c0_52] : memref<128x128xf32, #tpu.memory_space<vmem>>, vector<128x128xf32>
    tpu.vector_store %arg10[%c0_51, %c0_52], %147 {strides = array<i32>} : memref<128x128xf32, #tpu.memory_space<vmem>>, vector<128x128xf32>,
    return
  }
  func.func @transform_0(%arg0: i32) -> (i32, i32) {
    %c0_i32 = arith.constant 0 : i32
    %c0_i32_0 = arith.constant 0 : i32
    return %arg0, %c0_i32 : i32, i32
  }
  func.func @transform_1(%arg0: i32) -> (i32, i32, i32) {
    %c0_i32 = arith.constant 0 : i32
    %c0_i32_0 = arith.constant 0 : i32
    %c0_i32_1 = arith.constant 0 : i32
    return %arg0, %c0_i32, %c0_i32_0 : i32, i32, i32
  }
  func.func @transform_2(%arg0: i32) -> (i32, i32) {
    %c0_i32 = arith.constant 0 : i32
    %c0_i32_0 = arith.constant 0 : i32
    %c0_i32_1 = arith.constant 0 : i32
    return %c0_i32, %c0_i32_0 : i32, i32
  }
  func.func @transform_3(%arg0: i32) -> (i32, i32) {
    %c0_i32 = arith.constant 0 : i32
    %c0_i32_0 = arith.constant 0 : i32
    %c0_i32_1 = arith.constant 0 : i32
    return %c0_i32, %c0_i32_0 : i32, i32
  }
  func.func @transform_4(%arg0: i32) -> (i32, i32) {
    %c0_i32 = arith.constant 0 : i32
    %c0_i32_0 = arith.constant 0 : i32
    %c0_i32_1 = arith.constant 0 : i32
    return %c0_i32, %c0_i32_0 : i32, i32
  }
  func.func @transform_5(%arg0: i32) -> (i32, i32) {
    %c0_i32 = arith.constant 0 : i32
    %c0_i32_0 = arith.constant 0 : i32
    %c0_i32_1 = arith.constant 0 : i32
    return %c0_i32, %c0_i32_0 : i32, i32
  }
  func.func @transform_6(%arg0: i32) -> (i32, i32) {
    %c0_i32 = arith.constant 0 : i32
    %c0_i32_0 = arith.constant 0 : i32
    %c0_i32_1 = arith.constant 0 : i32
    return %c0_i32, %c0_i32_0 : i32, i32
  }
  func.func @transform_7(%arg0: i32) -> (i32, i32) {
    %c0_i32 = arith.constant 0 : i32
    %c0_i32_0 = arith.constant 0 : i32
    %c0_i32_1 = arith.constant 0 : i32
    return %c0_i32, %c0_i32_0 : i32, i32
  }
  func.func @transform_8(%arg0: i32) -> (i32, i32) {
    %c0_i32 = arith.constant 0 : i32
    %c0_i32_0 = arith.constant 0 : i32
    %c0_i32_1 = arith.constant 0 : i32
    return %c0_i32, %c0_i32_0 : i32, i32
  }
  func.func @transform_9(%arg0: i32) -> (i32, i32) {
    %c0_i32 = arith.constant 0 : i32
    %c0_i32_0 = arith.constant 0 : i32
    return %arg0, %c0_i32 : i32, i32
  }
}

</mosaic_0001>

<bundles_post_ra>
// kernel: tpu_custom_call.1
= control target key start
LH: loop header
LB: loop body
LE: loop exit
PB: predicated region body
PF: predicated region fallthrough
CT: control target
= control target key end

     0   :  { %s12476_s0 = inlined_call_operand.hbm [shape: bf16[256,128], index: 0, kind: input, shape index: {}]   ;;  %s12477_s1 = inlined_call_operand.hbm [shape: bf16[256,8,128], index: 1, kind: input, shape index: {}]   ;;  %s12478_s2 = inlined_call_operand.vmem [shape: f32[1,384], index: 2, kind: input, shape index: {}]   ;;  %s12479_s3 = inlined_call_operand.hbm [shape: bf16[128,256], index: 3, kind: input, shape index: {}]   ;;  %s12480_s4 = inlined_call_operand.vmem [shape: f32[1,256], index: 4, kind: input, shape index: {}]   ;;  %s12481_s5 = inlined_call_operand.hbm [shape: bf16[128,384], index: 5, kind: input, shape index: {}]   ;;  %s12482_s6 = inlined_call_operand.vmem [shape: f32[1,384], index: 6, kind: input, shape index: {}]   ;;  %s12483_s7 = inlined_call_operand.hbm [shape: bf16[128,128], index: 7, kind: input, shape index: {}]   ;;  %s12484_s8 = inlined_call_operand.vmem [shape: f32[1,128], index: 8, kind: input, shape index: {}]   ;;  %s12485_s9 = inlined_call_operand.hbm [shape: f32[256,128], index: 9, kind: output, shape index: {}]  }
   0x1   :  { %12516 = sst [smem:[#allocation58_spill]] %s12476_s0 }
   0x2   :  { %12517 = sst [smem:[#allocation59_spill]] %s12479_s3 }
   0x3   :  { %12518 = sst [smem:[#allocation60_spill]] %s12481_s5 }
   0x4   :  { %12519 = sst [smem:[#allocation61_spill]] %s12483_s7 }
   0x5   :  { %14 = vsyncpa [#allocation3], 0 }
   0x6   :  { %16 = vsyncpa [#allocation3 + $0x1], 0 }
   0x7   :  { %17 = vsyncpa [#allocation6], 0 }
   0x8   :  { %19 = vsyncpa [#allocation6 + $0x1], 0 }
   0x9   :  { %20 = vsyncpa [#allocation9], 0 }
   0xa   :  { %21 = vsyncpa [#allocation4], 0 }
   0xb   :  { %23 = vsyncpa [#allocation4 + $0x1], 0  ;;  %s8480_s30 = smov 0   ;;  %s8482_s10 = smov 0  }
   0xc   :  { %s8484_s11 = smov 0   ;;  %s8486_s12 = smov 0  }
   0xd LB: > { %12520 = sst [smem:[#allocation17_spill]] %s8401_s30  ;;  %s8501_s13 = sadd.s32 4294967295, %s8413_s12   ;;  %s8413_s12 = sphi %s8486_s12, %s12680_s12   ;;  %s8409_s11 = sphi %s8484_s11, %s12679_s11   ;;  %s8405_s10 = sphi %s8482_s10, %s12678_s10   ;;  %s8401_s30 = sphi %s8480_s30, %s12677_s30  }
   0xe   : > { %s7574_s14 = sadd.s32 4294967294, %s8413_s12   ;;  %p49_p0 = scmp.ne.s32.totalorder %s8405_s10, %s8401_s30 }
   0xf   : > { %p12486_p1 = scmp.eq.s32.totalorder %s8501_s13, 0  ;;  %p252_p3 = scmp.eq.s32.totalorder %s7574_s14, 1 }
  0x10   : > { %p7575_p5 = scmp.ge.s32.totalorder %s8413_s12, 1  ;;  %p259_p7 = scmp.lt.s32.totalorder %s8413_s12, 3 }
  0x11   : > { %p8510_p4 = por %p12486_p1, %p49_p0  ;;  %p8515_p6 = por %p252_p3, %p49_p0 }
  0x12   : > { %p8520_p8 = pnand %p7575_p5, %p259_p7  ;;  %s8415_s18 = smov [#allocation7]  }
  0x13   : > { %s12521_s15 = scalar_select %p8510_p4, 1, 0 }
  0x14   : > { %s12522_s16 = scalar_select %p8515_p6, 1, 0 }
  0x15   : > { %s12524_s17 = scalar_select %p8520_p8, 1, 0 }
  0x16   : > { %12523 = sst [smem:[#allocation18_spill]] %s12522_s16  ;;  %s274_s19 = sshll.u32 %s8415_s18, 4  ;;  %s8524_s19 = int_to_ptr.vmem [resolvable:$true] %s274_s19 }
  0x17   : > { %p7773_p9 = pneg %p8520_p8  ;;  %s8416_s21 = smov [#allocation8]  }
  0x18   : > { %s290_s22 = sshll.u32 %s8416_s21, 4  ;;  %s12526_s3 = sld [smem:[#allocation59_spill]]  ;;  %s8535_s22 = int_to_ptr.vmem [resolvable:$true] %s290_s22 }
  0x19   : > { %p8531_p11 = pnand %p7773_p9, %p12486_p1 }
  0x1b   : > { %p8545_p13 = pneg %p8531_p11 }
  0x1e   : > { %s8191_s25 = scalar_lea.hbm %s12526_s3, 2048 }
  0x1f   : > { %p8192_p12 = scmp.ne.s32.totalorder %s12526_s3, %s8191_s25  ;;  %p8198_p5 = scmp.lt.u32.totalorder %s8191_s25, %s12526_s3 }
  0x21   : > { %p8194_p0 = pnand %p8545_p13, %p8192_p12 }
  0x23   : > { %p8195_p3 = pneg %p8194_p0 }
  0x25   : > { %p8200_p7 = pnand %p8198_p5, %p8195_p3 }
  0x27   : > { %8203 = shalt.err (!%p8200_p7)
}
  0x28   : > { %s8204_s18 = scalar_lea.vmem %s8524_s19, 2048  ;;  %p8212_p2 = scmp.lt.s32.totalorder %s8524_s19, %s8524_s19 }
  0x29   : > { %p8205_p9 = scmp.ne.s32.totalorder %s8524_s19, %s8204_s18  ;;  %p8213_p6 = scmp.lt.s32.totalorder %s8204_s18, %s8204_s18 }
  0x2b   : > { %p8207_p10 = pnand %p8205_p9, %p8545_p13  ;;  %p8214_p12 = por %p8213_p6, %p8212_p2 }
  0x2d   : > { %p8208_p1 = pneg %p8207_p10 }
  0x2f   : > { %p8215_p0 = pnand %p8214_p12, %p8208_p1 }
  0x31   : > { %8218 = shalt.err (!%p8215_p0)
}
  0x32   : > { %s8417_s21 = smov 128   ;;  %s8418_s23 = smov 8  }
  0x33   : > { %7776 = dma.hbm_to_vmem [thread:$0]  (!%p8531_p11), %s12526_s3, 2048, %s8524_s19, [#allocation6], %s8417_s21, %s8417_s21, %s8418_s23  }
  0x34   : > { %s12528_s5 = sld [smem:[#allocation60_spill]] }
  0x3a   : > { %s8219_s29 = scalar_lea.hbm %s12528_s5, 3072 }
  0x3b   : > { %p8220_p2 = scmp.ne.s32.totalorder %s12528_s5, %s8219_s29  ;;  %p8226_p10 = scmp.lt.u32.totalorder %s8219_s29, %s12528_s5 }
  0x3d   : > { %p8222_p1 = pnand %p8220_p2, %p8545_p13 }
  0x3f   : > { %p8223_p6 = pneg %p8222_p1 }
  0x41   : > { %p8228_p3 = pnand %p8226_p10, %p8223_p6 }
  0x43   : > { %8231 = shalt.err (!%p8228_p3)
}
  0x44   : > { %s8232_s19 = scalar_lea.vmem %s8535_s22, 3072  ;;  %p8240_p12 = scmp.lt.s32.totalorder %s8535_s22, %s8535_s22 }
  0x45   : > { %p8233_p5 = scmp.ne.s32.totalorder %s8535_s22, %s8232_s19  ;;  %p8241_p0 = scmp.lt.s32.totalorder %s8232_s19, %s8232_s19 }
  0x47   : > { %p8235_p7 = pnand %p8233_p5, %p8545_p13  ;;  %p8242_p2 = por %p8241_p0, %p8240_p12 }
  0x49   : > { %p8236_p9 = pneg %p8235_p7 }
  0x4b   : > { %p8243_p1 = pnand %p8242_p2, %p8236_p9 }
  0x4d   : > { %8246 = shalt.err (!%p8243_p1)
}
  0x4e   : > { %s8419_s16 = smov 192   ;;  %s8420_s30 = smov 12  }
  0x4f   : > { %7779 = dma.hbm_to_vmem [thread:$0]  (!%p8531_p11), %s12528_s5, 3072, %s8535_s22, [#allocation9], %s8419_s16, %s8419_s16, %s8420_s30  }
  0x50   : > { %s8421_s24 = smov [#allocation10]   ;;  %s12529_s7 = sld [smem:[#allocation61_spill]] }
  0x51   : > { %s306_s25 = sshll.u32 %s8421_s24, 4  ;;  %s307_s25 = int_to_ptr.vmem [resolvable:$true] %s306_s25 }
  0x56   : > { %s8247_s29 = scalar_lea.hbm %s12529_s7, 1024 }
  0x57   : > { %p8248_p6 = scmp.ne.s32.totalorder %s12529_s7, %s8247_s29  ;;  %p8254_p5 = scmp.lt.u32.totalorder %s8247_s29, %s12529_s7 }
  0x59   : > { %p8250_p10 = pnand %p8248_p6, %p8545_p13 }
  0x5b   : > { %p8251_p3 = pneg %p8250_p10 }
  0x5d   : > { %p8256_p7 = pnand %p8254_p5, %p8251_p3 }
  0x5f   : > { %8259 = shalt.err (!%p8256_p7)
}
  0x60   : > { %s8260_s22 = scalar_lea.vmem %s307_s25, 1024  ;;  %p8268_p2 = scmp.lt.s32.totalorder %s307_s25, %s307_s25 }
  0x61   : > { %p8261_p9 = scmp.ne.s32.totalorder %s307_s25, %s8260_s22  ;;  %p8269_p1 = scmp.lt.s32.totalorder %s8260_s22, %s8260_s22 }
  0x63   : > { %p8263_p12 = pnand %p8261_p9, %p8545_p13  ;;  %p8270_p4 = por %p8269_p1, %p8268_p2 }
  0x65   : > { %p8264_p0 = pneg %p8263_p12 }
  0x67   : > { %p8271_p8 = pnand %p8270_p4, %p8264_p0 }
  0x69   : > { %8274 = shalt.err (!%p8271_p8)
}
  0x6a   : > { %s12491_s16 = smov 64   ;;  %s8423_s3 = smov 4  }
  0x6b   : > { %7782 = dma.hbm_to_vmem [thread:$0]  (!%p8531_p11), %s12529_s7, 1024, %s307_s25, [#allocation9], %s12491_s16, %s12491_s16, %s8423_s3  }
  0x6c   : > { %s8611_s21 = sadd.s32 1, %s8413_s12   ;;  %s36_s24 = sadd.s32 1, %s8409_s11 }
  0x6d   : > { %s33_s23 = ssub.s32 %s8413_s12, %s8611_s21  ;;  %p43_p8 = scmp.ne.s32.totalorder %s8409_s11, %s8405_s10 }
  0x6e   : > { %p34_p4 = scmp.eq.s32.totalorder %s33_s23, 0  ;;  %p44_p13 = scmp.eq.s32.totalorder %s8413_s12, 0 }
  0x6f   : > { %p7797_p6 = scmp.lt.s32.totalorder %s8413_s12, 2  ;;  %p12531_p3 = scmp.eq.s32.totalorder %s8501_s13, 1 }
  0x70   : > { %s8621_s26 = scalar_select %p34_p4, %s8409_s11, %s36_s24  }
  0x71   : > { %p45_p10 = por %p44_p13, %p43_p8  ;;  %p8625_p5 = por %p12531_p3, %p43_p8 }
  0x72   : > { %12530 = sst [smem:[#allocation19_spill]] %s8621_s26  ;;  %s8630_s27 = sand.u32 1, %s8409_s11  }
  0x73   : > { %s7656_s25 = sshll.u32 %s8413_s12, 10  ;;  %s7580_s29 = sshll.u32 %s8630_s27, 6 }
  0x74   : > { %s12533_s0 = sld [smem:[#allocation58_spill]]  ;;  %s327_s22 = scalar_lea.vmem [#allocation2], %s7580_s29 }
  0x75   : > { %s334_s28 = sshll.u32 %s327_s22, 4  ;;  %p8639_p11 = pnand %p7797_p6, %p45_p10  ;;  %s8643_s28 = int_to_ptr.vmem [resolvable:$true] %s334_s28 }
  0x76   : > { %s324_s24 = scalar_lea.sflag [#allocation3], %s8630_s27 }
  0x77   : > { %p8277_p9 = pneg %p8639_p11 }
  0x7a   : > { %s8637_s19 = scalar_lea.hbm %s12533_s0, %s7656_s25  ;;  %s8280_s14 = scalar_lea.hbm %s12533_s0, 2048 }
  0x7b   : > { %s8275_s16 = scalar_lea.hbm %s8637_s19, 1024  ;;  %p8281_p2 = scmp.lt.u32.totalorder %s8637_s19, %s12533_s0 }
  0x7c   : > { %p8276_p7 = scmp.ne.s32.totalorder %s8637_s19, %s8275_s16  ;;  %p8282_p1 = scmp.lt.u32.totalorder %s8280_s14, %s8275_s16 }
  0x7d   : > { %p8284_p8 = scmp.lt.u32.totalorder %s8275_s16, %s8637_s19 }
  0x7e   : > { %p8278_p12 = pnand %p8277_p9, %p8276_p7  ;;  %p8283_p4 = por %p8282_p1, %p8281_p2 }
  0x80   : > { %p8279_p0 = pneg %p8278_p12  ;;  %p8285_p13 = por %p8284_p8, %p8283_p4 }
  0x82   : > { %p8286_p6 = pnand %p8285_p13, %p8279_p0 }
  0x84   : > { %8289 = shalt.err (!%p8286_p6)
}
  0x85   : > { %s8290_s23 = scalar_lea.vmem %s8643_s28, 1024  ;;  %s8424_s25 = smov [#allocation2]  }
  0x86   : > { %p8291_p10 = scmp.ne.s32.totalorder %s8643_s28, %s8290_s23  ;;  %s8295_s29 = sshll.u32 %s8424_s25, 4  ;;  %s8296_s29 = int_to_ptr.vmem [resolvable:$false] %s8295_s29 }
  0x87   : > { %s8297_s18 = scalar_lea.vmem %s8296_s29, 2048  ;;  %p8298_p12 = scmp.lt.s32.totalorder %s8643_s28, %s8296_s29 }
  0x88   : > { %p8293_p3 = pnand %p8291_p10, %p8277_p9  ;;  %p8299_p2 = scmp.lt.s32.totalorder %s8297_s18, %s8290_s23 }
  0x8a   : > { %p8294_p7 = pneg %p8293_p3  ;;  %p8300_p1 = por %p8299_p2, %p8298_p12 }
  0x8c   : > { %p8301_p4 = pnand %p8300_p1, %p8294_p7 }
  0x8e   : > { %8304 = shalt.err (!%p8301_p4)
}
  0x8f   : > { %s12535_s16 = smov 64   ;;  %s7583_s14 = sshll.u32 %s8630_s27, 9 }
  0x90   : > { %7786 = dma.hbm_to_vmem [thread:$0]  (!%p8639_p11), %s8637_s19, 1024, %s8643_s28, %s324_s24, %s12535_s16, %s12535_s16, %s8423_s3  }
  0x91   : > { %s7657_s22 = sshll.u32 %s8413_s12, 13  ;;  %s348_s18 = scalar_lea.vmem [#allocation5], %s7583_s14 }
  0x92   : > { %s8682_s29 = scalar_lea.hbm %s12477_s1, %s7657_s22  ;;  %s355_s0 = sshll.u32 %s348_s18, 4  ;;  %s8684_s0 = int_to_ptr.vmem [resolvable:$true] %s355_s0 }
  0x93   : > { %s12536_s5 = sand.u32 1, %s8413_s12   ;;  %s8305_s26 = scalar_lea.hbm %s8682_s29, 8192 }
  0x94   : > { %s8688_s7 = scalar_lea.sflag [#allocation6], %s12536_s5  ;;  %p8306_p0 = scmp.ne.s32.totalorder %s8682_s29, %s8305_s26 }
  0x95   : > { %s8310_s28 = scalar_lea.hbm %s12477_s1, 16384  ;;  %p8311_p6 = scmp.lt.u32.totalorder %s8682_s29, %s12477_s1 }
  0x96   : > { %p8308_p8 = pnand %p8306_p0, %p8277_p9  ;;  %p8312_p10 = scmp.lt.u32.totalorder %s8310_s28, %s8305_s26 }
  0x97   : > { %p8314_p7 = scmp.lt.u32.totalorder %s8305_s26, %s8682_s29 }
  0x98   : > { %p8309_p13 = pneg %p8308_p8  ;;  %p8313_p3 = por %p8312_p10, %p8311_p6 }
  0x9a   : > { %p8315_p12 = por %p8314_p7, %p8313_p3 }
  0x9c   : > { %p8316_p2 = pnand %p8315_p12, %p8309_p13 }
  0x9e   : > { %8319 = shalt.err (!%p8316_p2)
}
  0x9f   : > { %s8320_s5 = scalar_lea.vmem %s8684_s0, 8192  ;;  %s8425_s14 = smov [#allocation5]  }
  0xa0   : > { %p8321_p1 = scmp.ne.s32.totalorder %s8684_s0, %s8320_s5  ;;  %s8325_s23 = sshll.u32 %s8425_s14, 4  ;;  %s8326_s23 = int_to_ptr.vmem [resolvable:$false] %s8325_s23 }
  0xa1   : > { %s8327_s25 = scalar_lea.vmem %s8326_s23, 16384  ;;  %p8328_p8 = scmp.lt.s32.totalorder %s8684_s0, %s8326_s23 }
  0xa2   : > { %p8323_p4 = pnand %p8321_p1, %p8277_p9  ;;  %p8329_p6 = scmp.lt.s32.totalorder %s8327_s25, %s8320_s5 }
  0xa4   : > { %p8324_p0 = pneg %p8323_p4  ;;  %p8330_p10 = por %p8329_p6, %p8328_p8 }
  0xa6   : > { %p8331_p3 = pnand %p8330_p10, %p8324_p0 }
  0xa8   : > { %8334 = shalt.err (!%p8331_p3)
}
  0xa9   : > { %7789 = dma.hbm_to_vmem [thread:$0]  (!%p8639_p11), %s8682_s29, 8192, %s8684_s0, %s8688_s7, %s12535_s16, %s12535_s16, %s8423_s3  }
  0xaa   : > { %p12537_p9 = scmp.ne.s32.totalorder %s12524_s17, 0 }
  0xac   : > { %367 = sbr.rel (%p12537_p9) target bundleno = 1605 (0x645), region = 56 }
  0xb3   : > { %s8720_s26 = sand.u32 1, %s8405_s10   ;;  %p12538_p13 = scmp.ne.s32.totalorder %s12521_s15, 0 }
  0xb4   : > { %s7587_s18 = sshll.u32 %s8720_s26, 6  ;;  %s370_s27 = scalar_lea.sflag [#allocation3], %s8720_s26 }
  0xb5   : > { %s8724_s19 = scalar_lea.vmem [#allocation2], %s7587_s18 }
  0xb6   : > { %8380 = dma.done.wait (%p12538_p13), %s370_s27, 1024  }
  0xb7   : > { %8382 = vsyncadd (%p12538_p13), %s370_s27, 4294966272  ;;  %s378_s0 = sand.u32 1, %s8501_s13   ;;  %s7588_s7 = sshll.u32 %s8720_s26, 9 }
  0xb8   : > { %s379_s17 = scalar_lea.sflag [#allocation6], %s378_s0  ;;  %s8732_s3 = scalar_lea.vmem [#allocation5], %s7588_s7 }
  0xb9   : > { %8384 = dma.done.wait (%p12538_p13), %s379_s17, 8192  }
  0xba   : > { %8386 = vsyncadd (%p12538_p13), %s379_s17, 4294959104  ;;  %p12539_p11 = scmp.eq.s32.totalorder %s8501_s13, 0 }
  0xbc   : > { %8388 = dma.done.wait (%p12539_p11), [#allocation6], 2048   ;;  %p12540_p7 = pmov %p12539_p11 }
  0xbe   : > { %8390 = vsyncadd (%p12540_p7), [#allocation6], 4294965248  ;;  %p12541_p12 = pmov %p12540_p7 }
  0xbf   : > { %p12542_p2 = pmov %p12540_p7 }
  0xc0   : > { %8392 = dma.done.wait (%p12541_p12), [#allocation9], 4096  }
  0xc1   : > { %8394 = vsyncadd (%p12542_p2), [#allocation9], 4294963200  ;;  %v12493_v0 = vmov 0   ;;  %v7846_v1 = vld [vmem:[#allocation7 + $0x4] ss:$8 sps:$4 sm:$0xff]   ;;  %vm5525_vm0 = vcmask 1041409  }
  0xc2   : > { %5138 = vmatprep.mubr.bf16.mxu0 %v12493_v0  ;;  %5931 = vmatprep.mubr.bf16.mxu1 %v12493_v0  ;;  %v7848_v2 = vld [vmem:[#allocation7] ss:$8 sps:$4 sm:$0xff]   ;;  %v7849_v3 = vld [vmem:[#allocation8 + $0x4] ss:$12 sps:$4 sm:$0xff]   ;;  %v7852_v5 = vld [vmem:[#allocation7 + $0x14] ss:$8 sps:$4 sm:$0xff]  }
  0xc3   : > { %5106 = vmatprep.subr.bf16.mxu0 %v7846_v1  ;;  %v7851_v4 = vld [vmem:[#allocation8] ss:$12 sps:$4 sm:$0xff]   ;;  %v7854_v6 = vld [vmem:[#allocation7 + $0x10] ss:$8 sps:$4 sm:$0xff]   ;;  %5899 = vmatprep.subr.bf16.mxu1 %v7849_v3  ;;  %v7855_v7 = vld [vmem:[#allocation8 + $0x1c] ss:$12 sps:$4 sm:$0xff]  }
  0xc4   : > { %5107 = vmatpush1.bf16.msra.mxu0 %v7848_v2  ;;  %5900 = vmatpush1.bf16.msra.mxu1 %v7851_v4  ;;  %v7857_v8 = vld [vmem:[#allocation8 + $0x18] ss:$12 sps:$4 sm:$0xff]   ;;  %v7860_v10 = vld [vmem:[#allocation7 + $0x20] ss:$8 sps:$4 sm:$0xff]   ;;  %v7864_v12 = vld [vmem:[#allocation7 + $0x34] ss:$8 sps:$4 sm:$0xff]  }
  0xc5   : > { %5108 = vmatprep.subr.bf16.mxu0 %v7852_v5  ;;  %5901 = vmatprep.subr.bf16.mxu1 %v7855_v7  ;;  %v7858_v9 = vld [vmem:[#allocation7 + $0x24] ss:$8 sps:$4 sm:$0xff]   ;;  %v7861_v11 = vld [vmem:[#allocation8 + $0x34] ss:$12 sps:$4 sm:$0xff]   ;;  %v7863_v13 = vld [vmem:[#allocation8 + $0x30] ss:$12 sps:$4 sm:$0xff]  }
  0xc6   : > { %v7867_v14 = vld [vmem:[#allocation8 + $0x4c] ss:$12 sps:$4 sm:$0xff]   ;;  %v7869_v17 = vld [vmem:[#allocation8 + $0x48] ss:$12 sps:$4 sm:$0xff]   ;;  %v7873_v18 = vld [vmem:[#allocation8 + $0x64] ss:$12 sps:$4 sm:$0xff]  }
  0xc7   : > { %v7866_v15 = vld [vmem:[#allocation7 + $0x30] ss:$8 sps:$4 sm:$0xff]   ;;  %v7870_v16 = vld [vmem:[#allocation7 + $0x44] ss:$8 sps:$4 sm:$0xff]   ;;  %v7872_v19 = vld [vmem:[#allocation7 + $0x40] ss:$8 sps:$4 sm:$0xff]  }
  0xc8   : > { %5109 = vmatpush1.bf16.msra.mxu0 %v7854_v6  ;;  %5902 = vmatpush1.bf16.msra.mxu1 %v7857_v8  ;;  %v7876_v20 = vld [vmem:[#allocation7 + $0x54] ss:$8 sps:$4 sm:$0xff]   ;;  %v7875_v21 = vld [vmem:[#allocation8 + $0x60] ss:$12 sps:$4 sm:$0xff]   ;;  %v7878_v23 = vld [vmem:[#allocation7 + $0x50] ss:$8 sps:$4 sm:$0xff]  }
  0xc9   : > { %5110 = vmatprep.subr.bf16.mxu0 %v7858_v9  ;;  %5903 = vmatprep.subr.bf16.mxu1 %v7861_v11  ;;  %v7879_v22 = vld [vmem:[#allocation8 + $0x7c] ss:$12 sps:$4 sm:$0xff]   ;;  %v7881_v24 = vld [vmem:[#allocation8 + $0x78] ss:$12 sps:$4 sm:$0xff]   ;;  %v7885_v27 = vld [vmem:[#allocation8 + $0x94] ss:$12 sps:$4 sm:$0xff]  }
  0xca   : > { %v7882_v25 = vld [vmem:[#allocation7 + $0x64] ss:$8 sps:$4 sm:$0xff]   ;;  %v7884_v26 = vld [vmem:[#allocation7 + $0x60] ss:$8 sps:$4 sm:$0xff]   ;;  %v7888_v30 = vld [vmem:[#allocation7 + $0x74] ss:$8 sps:$4 sm:$0xff]  }
  0xcb   : > { %v8749_v28 = vld [vmem:[%s8724_s19] sm:$0xff]   ;;  %v8758_v32 = vld [vmem:[%s8732_s3 + $0x8] sm:$0x1]  ;;  %v8761_v33 = vld [vmem:[%s8732_s3 + $0xc] sm:$0x1]  ;;  %vm5528_vm1 = vcmask 1042434  }
  0xcc   : > { %5111 = vmatpush1.bf16.msra.mxu0 %v7860_v10  ;;  %5904 = vmatpush1.bf16.msra.mxu1 %v7863_v13  ;;  %v8752_v29 = vld [vmem:[%s8732_s3] sm:$0x1]  ;;  %v8755_v31 = vld [vmem:[%s8732_s3 + $0x4] sm:$0x1]  ;;  %v7887_v34 = vld [vmem:[#allocation8 + $0x90] ss:$12 sps:$4 sm:$0xff]   ;;  %v600_v44 = vunpack.c.l.bf16 %v8758_v32  ;;  %v601_v45 = vunpack.c.l.bf16 %v8761_v33 }
  0xcd   : > { %5112 = vmatprep.subr.bf16.mxu0 %v7864_v12  ;;  %5905 = vmatprep.subr.bf16.mxu1 %v7867_v14  ;;  %v8764_v35 = vld [vmem:[%s8732_s3 + $0x10] sm:$0x1]  ;;  %v8767_v36 = vld [vmem:[%s8732_s3 + $0x14] sm:$0x1]  ;;  %v8770_v37 = vld [vmem:[%s8732_s3 + $0x18] sm:$0x1]  ;;  %v598_v42 = vunpack.c.l.bf16 %v8752_v29  ;;  %v599_v43 = vunpack.c.l.bf16 %v8755_v31 }
  0xce   : > { %v7891_v38 = vld [vmem:[#allocation8 + $0xac] ss:$12 sps:$4 sm:$0xff]   ;;  %v8773_v39 = vld [vmem:[%s8732_s3 + $0x1c] sm:$0x1]  ;;  %v8776_v40 = vld [vmem:[%s8732_s3 + $0x20] sm:$0x1]  ;;  %v602_v49 = vunpack.c.l.bf16 %v8764_v35  ;;  %v603_v50 = vunpack.c.l.bf16 %v8767_v36  ;;  %v604_v51 = vunpack.c.l.bf16 %v8770_v37 }
  0xcf   : > { %v8779_v41 = vld [vmem:[%s8732_s3 + $0x24] sm:$0x1]  ;;  %v480_v46 = vld [vmem:[%s8732_s3 + $0x28] sm:$0x1]  ;;  %v481_v47 = vld [vmem:[%s8732_s3 + $0x2c] sm:$0x1]  ;;  %v605_v52 = vunpack.c.l.bf16 %v8773_v39  ;;  %v606_v56 = vunpack.c.l.bf16 %v8776_v40 }
  0xd0   : > { %5113 = vmatpush1.bf16.msra.mxu0 %v7866_v15  ;;  %5906 = vmatpush1.bf16.msra.mxu1 %v7869_v17  ;;  %v8788_v48 = vld [vmem:[%s8732_s3 + $0x30] sm:$0x1]  ;;  %v483_v53 = vld [vmem:[%s8732_s3 + $0x34] sm:$0x1]  ;;  %v484_v54 = vld [vmem:[%s8732_s3 + $0x38] sm:$0x1]  ;;  %v607_v57 = vunpack.c.l.bf16 %v8779_v41  ;;  %v608_v58 = vunpack.c.l.bf16 %v480_v46  ;;  %v609_v59 = vunpack.c.l.bf16 %v481_v47 }
  0xd1   : > { %5114 = vmatprep.subr.bf16.mxu0 %v7870_v16  ;;  %5907 = vmatprep.subr.bf16.mxu1 %v7873_v18  ;;  %v485_v55 = vld [vmem:[%s8732_s3 + $0x3c] sm:$0x1]  ;;  %v7890_v60 = vld [vmem:[#allocation7 + $0x70] ss:$8 sps:$4 sm:$0xff]   ;;  %v610_v61 = vunpack.c.l.bf16 %v8788_v48  ;;  %v611_v62 = vunpack.c.l.bf16 %v483_v53  ;;  %v612_v63 = vunpack.c.l.bf16 %v484_v54  ;;  %v854_v2 = vrot.slane %v598_v42, 1  ;;  %s7592_s27 = sshll.u32 %s8720_s26, 7 }
  0xd2   : > { %v613_v1 = vunpack.c.l.bf16 %v485_v55  ;;  %v855_v3 = vrot.slane %v599_v43, 1  ;;  %v856_v4 = vrot.slane %v600_v44, 1  ;;  %v857_v5 = vrot.slane %v601_v45, 1  ;;  %v7893_v6 = vld [vmem:[#allocation8 + $0xa8] ss:$12 sps:$4 sm:$0xff]   ;;  %s12387_s17 = scalar_lea.vmem [#allocation11], %s7592_s27 }
  0xd3   : > { %v858_v7 = vrot.slane %v602_v49, 1  ;;  %v859_v8 = vrot.slane %v603_v50, 1  ;;  %v860_v9 = vrot.slane %v604_v51, 1  ;;  %v861_v10 = vrot.slane %v605_v52, 1  ;;  %v8821_v32 = vld [vmem:[%s8732_s3 + $0x10] sm:$0x2] }
  0xd4   : > { %5115 = vmatpush1.bf16.msra.mxu0 %v7872_v19  ;;  %5908 = vmatpush1.bf16.msra.mxu1 %v7875_v21  ;;  %v862_v11 = vrot.slane %v606_v56, 1  ;;  %v863_v12 = vrot.slane %v607_v57, 1  ;;  %v864_v13 = vrot.slane %v608_v58, 1  ;;  %v865_v14 = vrot.slane %v609_v59, 1  ;;  %v8801_v19 = vld [vmem:[%s8732_s3] sm:$0x2] }
  0xd5   : > { %5116 = vmatprep.subr.bf16.mxu0 %v7876_v20  ;;  %5909 = vmatprep.subr.bf16.mxu1 %v7879_v22  ;;  %v866_v15 = vrot.slane %v610_v61, 1  ;;  %v867_v16 = vrot.slane %v611_v62, 1  ;;  %v868_v17 = vrot.slane %v612_v63, 1  ;;  %v869_v18 = vrot.slane %v613_v1, 1  ;;  %v8824_v33 = vld [vmem:[%s8732_s3 + $0x14] sm:$0x2] }
  0xd6   : > { %v8803_v20 = vadd.f32 %v854_v2, %v598_v42  ;;  %v8805_v21 = vadd.f32 %v855_v3, %v599_v43  ;;  %v8807_v22 = vadd.f32 %v856_v4, %v600_v44  ;;  %v1115_v29 = vadd.f32 %v859_v8, %v603_v50  ;;  %v8831_v39 = vld [vmem:[%s8732_s3 + $0x1c] sm:$0x2]  ;;  %v8834_v40 = vld [vmem:[%s8732_s3 + $0x20] sm:$0x2]  ;;  %v8837_v41 = vld [vmem:[%s8732_s3 + $0x24] sm:$0x2] }
  0xd7   : > { %v1117_v31 = vadd.f32 %v861_v10, %v605_v52  ;;  %v1118_v35 = vadd.f32 %v862_v11, %v606_v56  ;;  %v1119_v36 = vadd.f32 %v863_v12, %v607_v57  ;;  %v1120_v37 = vadd.f32 %v864_v13, %v608_v58  ;;  %v8840_v46 = vld [vmem:[%s8732_s3 + $0x28] sm:$0x2]  ;;  %v8846_v47 = vld [vmem:[%s8732_s3 + $0x30] sm:$0x2]  ;;  %v8850_v48 = vld [vmem:[%s8732_s3 + $0x34] sm:$0x2] }
  0xd8   : > { %5117 = vmatpush1.bf16.msra.mxu0 %v7878_v23  ;;  %5910 = vmatpush1.bf16.msra.mxu1 %v7881_v24  ;;  %v8809_v23 = vadd.f32 %v857_v5, %v601_v45  ;;  %v8812_v24 = vld [vmem:[%s8732_s3 + $0x4] sm:$0x2]  ;;  %v1122_v42 = vadd.f32 %v866_v15, %v610_v61  ;;  %v1123_v43 = vadd.f32 %v867_v16, %v611_v62  ;;  %v8856_v50 = vld [vmem:[%s8732_s3 + $0x3c] sm:$0x2]  ;;  %v1370_v55 = vunpack.c.l.bf16 %v8821_v32  ;;  %s7450_s15 = sshll.u32 %s12387_s17, 4  ;;  %s8427_s28 = smov [#allocation11]   ;;  %s12428_s15 = int_to_ptr.vmem [resolvable:$true] %s7450_s15 }
  0xd9   : > { %5118 = vmatprep.subr.bf16.mxu0 %v7882_v25  ;;  %5911 = vmatprep.subr.bf16.mxu1 %v7885_v27  ;;  %v8815_v25 = vld [vmem:[%s8732_s3 + $0x8] sm:$0x2]  ;;  %v1114_v27 = vadd.f32 %v858_v7, %v602_v49  ;;  %v1124_v44 = vadd.f32 %v868_v17, %v612_v63  ;;  %v1125_v45 = vadd.f32 %v869_v18, %v613_v1  ;;  %v8853_v49 = vld [vmem:[%s8732_s3 + $0x38] sm:$0x2]  ;;  %v1367_v52 = vunpack.c.l.bf16 %v8812_v24  ;;  %s8335_s29 = scalar_lea.vmem %s12428_s15, 2048  ;;  %s8339_s24 = sshll.u32 %s8427_s28, 4  ;;  %s8340_s24 = int_to_ptr.vmem [resolvable:$false] %s8339_s24 }
  0xda   : > { %v1368_v53 = vunpack.c.l.bf16 %v8815_v25  ;;  %v1371_v56 = vunpack.c.l.bf16 %v8824_v33  ;;  %v1373_v58 = vunpack.c.l.bf16 %v8831_v39  ;;  %v1376_v61 = vunpack.c.l.bf16 %v8840_v46  ;;  %p8336_p1 = scmp.ne.s32.totalorder %s12428_s15, %s8335_s29  ;;  %s8341_s22 = scalar_lea.vmem %s8340_s24, 4096 }
  0xdb   : > { %v1378_v63 = vunpack.c.l.bf16 %v8846_v47  ;;  %v1379_v1 = vunpack.c.l.bf16 %v8850_v48  ;;  %v1380_v2 = vunpack.c.l.bf16 %v8853_v49  ;;  %v1381_v3 = vunpack.c.l.bf16 %v8856_v50  ;;  %p8342_p8 = scmp.lt.s32.totalorder %s12428_s15, %s8340_s24  ;;  %p8343_p6 = scmp.lt.s32.totalorder %s8341_s22, %s8335_s29 }
  0xdc   : > { %5119 = vmatpush1.bf16.msra.mxu0 %v7884_v26  ;;  %5912 = vmatpush1.bf16.msra.mxu1 %v7887_v34  ;;  %v8818_v26 = vld [vmem:[%s8732_s3 + $0xc] sm:$0x2]  ;;  %v8827_v34 = vld [vmem:[%s8732_s3 + $0x18] sm:$0x2]  ;;  %v1623_v5 = vrot.slane %v1367_v52, 2  ;;  %v1626_v8 = vrot.slane %v1370_v55, 2  ;;  %p8337_p4 = pnand %p8336_p1, %p8625_p5 }
  0xdd   : > { %5120 = vmatprep.subr.bf16.mxu0 %v7888_v30  ;;  %5913 = vmatprep.subr.bf16.mxu1 %v7891_v38  ;;  %v1116_v30 = vadd.f32 %v860_v9, %v604_v51  ;;  %v1121_v38 = vadd.f32 %v865_v14, %v609_v59  ;;  %v1366_v51 = vunpack.c.l.bf16 %v8801_v19  ;;  %v1369_v54 = vunpack.c.l.bf16 %v8818_v26  ;;  %p8344_p10 = por %p8343_p6, %p8342_p8 }
  0xde   : > { %v1372_v57 = vunpack.c.l.bf16 %v8827_v34  ;;  %v1374_v59 = vunpack.c.l.bf16 %v8834_v40  ;;  %v1627_v9 = vrot.slane %v1371_v56, 2  ;;  %v1629_v11 = vrot.slane %v1373_v58, 2  ;;  %p8338_p0 = pneg %p8337_p4 }
  0xdf   : > { %v1622_v4 = vrot.slane %v1366_v51, 2  ;;  %v1625_v7 = vrot.slane %v1369_v54, 2  ;;  %v1632_v14 = vrot.slane %v1376_v61, 2  ;;  %v1634_v16 = vrot.slane %v1378_v63, 2 }
  0xe0   : > { %5121 = vmatpush1.bf16.msra.mxu0 %v7890_v60  ;;  %5914 = vmatpush1.bf16.msra.mxu1 %v7893_v6  ;;  %v1375_v60 = vunpack.c.l.bf16 %v8837_v41  ;;  %v1624_v6 = vrot.slane %v1368_v53, 2  ;;  %v1628_v10 = vrot.slane %v1372_v57, 2  ;;  %v1630_v12 = vrot.slane %v1374_v59, 2  ;;  %p8345_p3 = pnand %p8344_p10, %p8338_p0 }
  0xe1   : > { %v1635_v17 = vrot.slane %v1379_v1, 2  ;;  %v1636_v18 = vrot.slane %v1380_v2, 2  ;;  %v1637_v19 = vrot.slane %v1381_v3, 2  ;;  %v1878_v24 = vadd.f32 %v1622_v4, %v8803_v20 }
  0xe2   : > { %v1631_v13 = vrot.slane %v1375_v60, 2  ;;  %v1879_v25 = vadd.f32 %v1623_v5, %v8805_v21  ;;  %v1880_v26 = vadd.f32 %v1624_v6, %v8807_v22  ;;  %v1881_v32 = vadd.f32 %v1625_v7, %v8809_v23  ;;  %v8908_v7 = vld [vmem:[%s8732_s3 + $0x1c] sm:$0x4] }
  0xe3   : > { %5139 = vmatmul.mubr.bf16.vlgmr.msra.gmra.mrb[0].mxu0 %v8749_v28  ;;  %v8843_v28 = vld [vmem:[%s8732_s3 + $0x2c] sm:$0x2]  ;;  %v1882_v33 = vadd.f32 %v1626_v8, %v1114_v27  ;;  %v1883_v34 = vadd.f32 %v1627_v9, %v1115_v29  ;;  %v1884_v39 = vadd.f32 %v1628_v10, %v1116_v30  ;;  %v1885_v40 = vadd.f32 %v1629_v11, %v1117_v31  ;;  %v8911_v8 = vld [vmem:[%s8732_s3 + $0x20] sm:$0x4]  ;;  %v8914_v9 = vld [vmem:[%s8732_s3 + $0x24] sm:$0x4] }
  0xe4   : > { %5148 = vmatprep.mubr.bf16.mxu0 %v12493_v0  ;;  %v1377_v62 = vunpack.c.l.bf16 %v8843_v28  ;;  %v1886_v41 = vadd.f32 %v1630_v12, %v1118_v35  ;;  %v1887_v46 = vadd.f32 %v1631_v13, %v1119_v36  ;;  %v1888_v28 = vadd.f32 %v1632_v14, %v1120_v37  ;;  %v8917_v14 = vld [vmem:[%s8732_s3 + $0x28] sm:$0x4] }
  0xe5   : > { %v1890_v48 = vadd.f32 %v1634_v16, %v1122_v42  ;;  %v1891_v49 = vadd.f32 %v1635_v17, %v1123_v43  ;;  %v1892_v50 = vadd.f32 %v1636_v18, %v1124_v44  ;;  %v1893_v0 = vadd.f32 %v1637_v19, %v1125_v45  ;;  %v8879_v43 = vld [vmem:[%s8732_s3] sm:$0x4]  ;;  %v8923_v16 = vld [vmem:[%s8732_s3 + $0x30] sm:$0x4]  ;;  %v8926_v17 = vld [vmem:[%s8732_s3 + $0x34] sm:$0x4] }
  0xe6   : > { %v1633_v15 = vrot.slane %v1377_v62, 2  ;;  %v2006_v4 = vrot.slane %v1366_v51, 3  ;;  %v2007_v20 = vrot.slane %v1367_v52, 3  ;;  %v2008_v21 = vrot.slane %v1368_v53, 3  ;;  %v8890_v53 = vld [vmem:[%s8732_s3 + $0x4] sm:$0x4] }
  0xe7   : > { %v2009_v5 = vrot.slane %v1369_v54, 3  ;;  %v2010_v22 = vrot.slane %v1370_v55, 3  ;;  %v2011_v6 = vrot.slane %v1371_v56, 3  ;;  %v2012_v23 = vrot.slane %v1372_v57, 3  ;;  %v8893_v54 = vld [vmem:[%s8732_s3 + $0x8] sm:$0x4] }
  0xe8   : > { %v1889_v47 = vadd.f32 %v1633_v15, %v1121_v38  ;;  %v2013_v27 = vrot.slane %v1373_v58, 3  ;;  %v2014_v29 = vrot.slane %v1374_v59, 3  ;;  %v2015_v30 = vrot.slane %v1375_v60, 3  ;;  %v8896_v55 = vld [vmem:[%s8732_s3 + $0xc] sm:$0x4] }
  0xe9   : > { %v2016_v31 = vrot.slane %v1376_v61, 3  ;;  %v2017_v35 = vrot.slane %v1377_v62, 3  ;;  %v2018_v36 = vrot.slane %v1378_v63, 3  ;;  %v2019_v37 = vrot.slane %v1379_v1, 3  ;;  %v8899_v60 = vld [vmem:[%s8732_s3 + $0x10] sm:$0x4] }
  0xea   : > { %v2020_v38 = vrot.slane %v1380_v2, 3  ;;  %v2021_v42 = vrot.slane %v1381_v3, 3  ;;  %v8881_v44 = vadd.f32 %v2006_v4, %v1878_v24  ;;  %v8883_v45 = vadd.f32 %v2007_v20, %v1879_v25  ;;  %v8902_v61 = vld [vmem:[%s8732_s3 + $0x14] sm:$0x4]  ;;  %v8905_v62 = vld [vmem:[%s8732_s3 + $0x18] sm:$0x4] }
  0xeb   : > { %v8885_v51 = vadd.f32 %v2008_v21, %v1880_v26  ;;  %v8887_v52 = vadd.f32 %v2009_v5, %v1881_v32  ;;  %v2266_v56 = vadd.f32 %v2010_v22, %v1882_v33  ;;  %v2267_v57 = vadd.f32 %v2011_v6, %v1883_v34  ;;  %v8920_v15 = vld [vmem:[%s8732_s3 + $0x2c] sm:$0x4]  ;;  %v8929_v18 = vld [vmem:[%s8732_s3 + $0x38] sm:$0x4]  ;;  %v8932_v19 = vld [vmem:[%s8732_s3 + $0x3c] sm:$0x4] }
  0xec   : > { %v2268_v58 = vadd.f32 %v2012_v23, %v1884_v39  ;;  %v2269_v59 = vadd.f32 %v2013_v27, %v1885_v40  ;;  %v2270_v63 = vadd.f32 %v2014_v29, %v1886_v41  ;;  %v2271_v1 = vadd.f32 %v2015_v30, %v1887_v46 }
  0xed   : > { %v2272_v2 = vadd.f32 %v2016_v31, %v1888_v28  ;;  %v2273_v3 = vadd.f32 %v2017_v35, %v1889_v47  ;;  %v2274_v10 = vadd.f32 %v2018_v36, %v1890_v48  ;;  %v2275_v11 = vadd.f32 %v2019_v37, %v1891_v49 }
  0xee   : > { %v2276_v12 = vadd.f32 %v2020_v38, %v1892_v50  ;;  %v2277_v13 = vadd.f32 %v2021_v42, %v1893_v0  ;;  %v2518_v24 = vunpack.c.l.bf16 %v8879_v43  ;;  %v2519_v25 = vunpack.c.l.bf16 %v8890_v53 }
  0xef   : > { %v2520_v26 = vunpack.c.l.bf16 %v8893_v54  ;;  %v2521_v0 = vunpack.c.l.bf16 %v8896_v55  ;;  %v2522_v32 = vunpack.c.l.bf16 %v8899_v60  ;;  %v2523_v33 = vunpack.c.l.bf16 %v8902_v61 }
  0xf0   : > { %v2524_v34 = vunpack.c.l.bf16 %v8905_v62  ;;  %v2525_v39 = vunpack.c.l.bf16 %v8908_v7  ;;  %v2526_v40 = vunpack.c.l.bf16 %v8911_v8  ;;  %v2527_v41 = vunpack.c.l.bf16 %v8914_v9 }
  0xf1   : > { %v2528_v46 = vunpack.c.l.bf16 %v8917_v14  ;;  %v2529_v28 = vunpack.c.l.bf16 %v8920_v15  ;;  %v2530_v47 = vunpack.c.l.bf16 %v8923_v16  ;;  %v2531_v48 = vunpack.c.l.bf16 %v8926_v17 }
  0xf2   : > { %v2532_v49 = vunpack.c.l.bf16 %v8929_v18  ;;  %v2533_v50 = vunpack.c.l.bf16 %v8932_v19  ;;  %v2774_v4 = vrot.slane %v2518_v24, 4  ;;  %v2775_v20 = vrot.slane %v2519_v25, 4 }
  0xf3   : > { %v2776_v21 = vrot.slane %v2520_v26, 4  ;;  %v2777_v5 = vrot.slane %v2521_v0, 4  ;;  %v2778_v22 = vrot.slane %v2522_v32, 4  ;;  %v2779_v6 = vrot.slane %v2523_v33, 4 }
  0xf4   : > { %v2780_v23 = vrot.slane %v2524_v34, 4  ;;  %v2781_v27 = vrot.slane %v2525_v39, 4  ;;  %v2782_v29 = vrot.slane %v2526_v40, 4  ;;  %v2783_v30 = vrot.slane %v2527_v41, 4 }
  0xf5   : > { %v2784_v31 = vrot.slane %v2528_v46, 4  ;;  %v2785_v35 = vrot.slane %v2529_v28, 4  ;;  %v2786_v36 = vrot.slane %v2530_v47, 4  ;;  %v2787_v37 = vrot.slane %v2531_v48, 4 }
  0xf6   : > { %v2788_v38 = vrot.slane %v2532_v49, 4  ;;  %v2789_v42 = vrot.slane %v2533_v50, 4  ;;  %v3030_v43 = vadd.f32 %v2774_v4, %v8881_v44  ;;  %v3031_v53 = vadd.f32 %v2775_v20, %v8883_v45 }
  0xf7   : > { %v3032_v54 = vadd.f32 %v2776_v21, %v8885_v51  ;;  %v3033_v55 = vadd.f32 %v2777_v5, %v8887_v52  ;;  %v3034_v60 = vadd.f32 %v2778_v22, %v2266_v56  ;;  %v3035_v61 = vadd.f32 %v2779_v6, %v2267_v57  ;;  %v8984_v5 = vld [vmem:[%s8732_s3 + $0x1c] sm:$0x8]  ;;  %v8987_v22 = vld [vmem:[%s8732_s3 + $0x20] sm:$0x8]  ;;  %v8990_v6 = vld [vmem:[%s8732_s3 + $0x24] sm:$0x8] }
  0xf8   : > { %v3036_v62 = vadd.f32 %v2780_v23, %v2268_v58  ;;  %v3037_v7 = vadd.f32 %v2781_v27, %v2269_v59  ;;  %v3038_v8 = vadd.f32 %v2782_v29, %v2270_v63  ;;  %v3039_v9 = vadd.f32 %v2783_v30, %v2271_v1 }
  0xf9   : > { %v3040_v14 = vadd.f32 %v2784_v31, %v2272_v2  ;;  %v3041_v15 = vadd.f32 %v2785_v35, %v2273_v3  ;;  %v3042_v16 = vadd.f32 %v2786_v36, %v2274_v10  ;;  %v3043_v17 = vadd.f32 %v2787_v37, %v2275_v11  ;;  %v8955_v11 = vld [vmem:[%s8732_s3] sm:$0x8]  ;;  %v8993_v31 = vld [vmem:[%s8732_s3 + $0x28] sm:$0x8]  ;;  %v8996_v35 = vld [vmem:[%s8732_s3 + $0x2c] sm:$0x8] }
  0xfa   : > { %v3044_v18 = vadd.f32 %v2788_v38, %v2276_v12  ;;  %v3045_v19 = vadd.f32 %v2789_v42, %v2277_v13  ;;  %v3158_v4 = vrot.slane %v2518_v24, 5  ;;  %v3159_v44 = vrot.slane %v2519_v25, 5  ;;  %v8999_v36 = vld [vmem:[%s8732_s3 + $0x30] sm:$0x8]  ;;  %v9002_v37 = vld [vmem:[%s8732_s3 + $0x34] sm:$0x8] }
  0xfb   : > { %v3160_v45 = vrot.slane %v2520_v26, 5  ;;  %v3161_v20 = vrot.slane %v2521_v0, 5  ;;  %v3162_v51 = vrot.slane %v2522_v32, 5  ;;  %v3163_v21 = vrot.slane %v2523_v33, 5  ;;  %v8966_v26 = vld [vmem:[%s8732_s3 + $0x4] sm:$0x8] }
  0xfc   : > { %v3164_v52 = vrot.slane %v2524_v34, 5  ;;  %v3165_v56 = vrot.slane %v2525_v39, 5  ;;  %v3166_v57 = vrot.slane %v2526_v40, 5  ;;  %v3167_v58 = vrot.slane %v2527_v41, 5  ;;  %v8969_v0 = vld [vmem:[%s8732_s3 + $0x8] sm:$0x8] }
  0xfd   : > { %v3168_v59 = vrot.slane %v2528_v46, 5  ;;  %v3169_v63 = vrot.slane %v2529_v28, 5  ;;  %v3170_v1 = vrot.slane %v2530_v47, 5  ;;  %v3171_v2 = vrot.slane %v2531_v48, 5  ;;  %v8972_v32 = vld [vmem:[%s8732_s3 + $0xc] sm:$0x8] }
  0xfe   : > { %v3172_v3 = vrot.slane %v2532_v49, 5  ;;  %v3173_v10 = vrot.slane %v2533_v50, 5  ;;  %v8957_v12 = vadd.f32 %v3158_v4, %v3030_v43  ;;  %v8959_v13 = vadd.f32 %v3159_v44, %v3031_v53  ;;  %v8975_v41 = vld [vmem:[%s8732_s3 + $0x10] sm:$0x8]  ;;  %v8978_v46 = vld [vmem:[%s8732_s3 + $0x14] sm:$0x8] }
  0xff   : > { %v8961_v24 = vadd.f32 %v3160_v45, %v3032_v54  ;;  %v8963_v25 = vadd.f32 %v3161_v20, %v3033_v55  ;;  %v3418_v33 = vadd.f32 %v3162_v51, %v3034_v60  ;;  %v3419_v34 = vadd.f32 %v3163_v21, %v3035_v61  ;;  %v8981_v28 = vld [vmem:[%s8732_s3 + $0x18] sm:$0x8]  ;;  %v9008_v42 = vld [vmem:[%s8732_s3 + $0x3c] sm:$0x8] }
 0x100   : > { %v3420_v39 = vadd.f32 %v3164_v52, %v3036_v62  ;;  %v3421_v40 = vadd.f32 %v3165_v56, %v3037_v7  ;;  %v3422_v47 = vadd.f32 %v3166_v57, %v3038_v8  ;;  %v3423_v48 = vadd.f32 %v3167_v58, %v3039_v9  ;;  %v9005_v38 = vld [vmem:[%s8732_s3 + $0x38] sm:$0x8] }
 0x101   : > { %v3424_v49 = vadd.f32 %v3168_v59, %v3040_v14  ;;  %v3425_v50 = vadd.f32 %v3169_v63, %v3041_v15  ;;  %v3426_v23 = vadd.f32 %v3170_v1, %v3042_v16  ;;  %v3427_v27 = vadd.f32 %v3171_v2, %v3043_v17 }
 0x102   : > { %v3428_v29 = vadd.f32 %v3172_v3, %v3044_v18  ;;  %v3429_v30 = vadd.f32 %v3173_v10, %v3045_v19  ;;  %v3670_v43 = vunpack.c.l.bf16 %v8955_v11  ;;  %v3671_v53 = vunpack.c.l.bf16 %v8966_v26 }
 0x103   : > { %v3672_v54 = vunpack.c.l.bf16 %v8969_v0  ;;  %v3673_v55 = vunpack.c.l.bf16 %v8972_v32  ;;  %v3674_v60 = vunpack.c.l.bf16 %v8975_v41  ;;  %v3675_v61 = vunpack.c.l.bf16 %v8978_v46 }
 0x104   : > { %v3676_v62 = vunpack.c.l.bf16 %v8981_v28  ;;  %v3677_v7 = vunpack.c.l.bf16 %v8984_v5  ;;  %v3678_v8 = vunpack.c.l.bf16 %v8987_v22  ;;  %v3679_v9 = vunpack.c.l.bf16 %v8990_v6 }
 0x105   : > { %v3680_v14 = vunpack.c.l.bf16 %v8993_v31  ;;  %v3681_v15 = vunpack.c.l.bf16 %v8996_v35  ;;  %v3682_v16 = vunpack.c.l.bf16 %v8999_v36  ;;  %v3683_v17 = vunpack.c.l.bf16 %v9002_v37 }
 0x106   : > { %v3684_v18 = vunpack.c.l.bf16 %v9005_v38  ;;  %v3685_v19 = vunpack.c.l.bf16 %v9008_v42  ;;  %v3926_v4 = vrot.slane %v3670_v43, 6  ;;  %v3927_v44 = vrot.slane %v3671_v53, 6 }
 0x107   : > { %v3928_v45 = vrot.slane %v3672_v54, 6  ;;  %v3929_v20 = vrot.slane %v3673_v55, 6  ;;  %v3930_v51 = vrot.slane %v3674_v60, 6  ;;  %v3931_v21 = vrot.slane %v3675_v61, 6 }
 0x108   : > { %v3932_v52 = vrot.slane %v3676_v62, 6  ;;  %v3933_v56 = vrot.slane %v3677_v7, 6  ;;  %v3934_v57 = vrot.slane %v3678_v8, 6  ;;  %v3935_v58 = vrot.slane %v3679_v9, 6 }
 0x109   : > { %v3936_v59 = vrot.slane %v3680_v14, 6  ;;  %v3937_v63 = vrot.slane %v3681_v15, 6  ;;  %v3938_v1 = vrot.slane %v3682_v16, 6  ;;  %v3939_v2 = vrot.slane %v3683_v17, 6 }
 0x10a   : > { %v3940_v3 = vrot.slane %v3684_v18, 6  ;;  %v3941_v10 = vrot.slane %v3685_v19, 6  ;;  %v4182_v11 = vadd.f32 %v3926_v4, %v8957_v12  ;;  %v4183_v26 = vadd.f32 %v3927_v44, %v8959_v13 }
 0x10b   : > { %v4184_v0 = vadd.f32 %v3928_v45, %v8961_v24  ;;  %v4185_v32 = vadd.f32 %v3929_v20, %v8963_v25  ;;  %v4186_v41 = vadd.f32 %v3930_v51, %v3418_v33  ;;  %v4187_v46 = vadd.f32 %v3931_v21, %v3419_v34 }
 0x10c   : > { %v4188_v28 = vadd.f32 %v3932_v52, %v3420_v39  ;;  %v4189_v5 = vadd.f32 %v3933_v56, %v3421_v40  ;;  %v4190_v22 = vadd.f32 %v3934_v57, %v3422_v47  ;;  %v4191_v6 = vadd.f32 %v3935_v58, %v3423_v48 }
 0x10d   : > { %v4192_v31 = vadd.f32 %v3936_v59, %v3424_v49  ;;  %v4193_v35 = vadd.f32 %v3937_v63, %v3425_v50  ;;  %v4194_v36 = vadd.f32 %v3938_v1, %v3426_v23  ;;  %v4195_v37 = vadd.f32 %v3939_v2, %v3427_v27 }
 0x10e   : > { %v4196_v38 = vadd.f32 %v3940_v3, %v3428_v29  ;;  %v4197_v42 = vadd.f32 %v3941_v10, %v3429_v30  ;;  %v4311_v4 = vrot.slane %v3671_v53, 7  ;;  %v4312_v12 = vrot.slane %v3672_v54, 7 }
 0x10f   : > { %v4313_v13 = vrot.slane %v3673_v55, 7  ;;  %v4314_v44 = vrot.slane %v3674_v60, 7  ;;  %v4310_v24 = vrot.slane %v3670_v43, 7  ;;  %v4315_v45 = vrot.slane %v3675_v61, 7 }
 0x110   : > { %v4316_v20 = vrot.slane %v3676_v62, 7  ;;  %v4317_v25 = vrot.slane %v3677_v7, 7  ;;  %v4319_v33 = vrot.slane %v3679_v9, 7  ;;  %v4320_v34 = vrot.slane %v3680_v14, 7 }
 0x111   : > { %v4321_v39 = vrot.slane %v3681_v15, 7  ;;  %v4322_v40 = vrot.slane %v3682_v16, 7  ;;  %v4318_v47 = vrot.slane %v3678_v8, 7  ;;  %v4323_v48 = vrot.slane %v3683_v17, 7 }
 0x112   : > { %v4324_v49 = vrot.slane %v3684_v18, 7  ;;  %v4325_v50 = vrot.slane %v3685_v19, 7  ;;  %v4567_v23 = vadd.f32 %v4311_v4, %v4183_v26  ;;  %v4568_v27 = vadd.f32 %v4312_v12, %v4184_v0 }
 0x113   : > { %v4569_v29 = vadd.f32 %v4313_v13, %v4185_v32  ;;  %v4570_v30 = vadd.f32 %v4314_v44, %v4186_v41  ;;  %v4566_v53 = vadd.f32 %v4310_v24, %v4182_v11  ;;  %v4571_v54 = vadd.f32 %v4315_v45, %v4187_v46 }
 0x114   : > { %v4572_v55 = vadd.f32 %v4316_v20, %v4188_v28  ;;  %v4573_v60 = vadd.f32 %v4317_v25, %v4189_v5  ;;  %v4575_v43 = vadd.f32 %v4319_v33, %v4191_v6  ;;  %v4576_v61 = vadd.f32 %v4320_v34, %v4192_v31 }
 0x115   : > { %v4577_v62 = vadd.f32 %v4321_v39, %v4193_v35  ;;  %v4578_v7 = vadd.f32 %v4322_v40, %v4194_v36  ;;  %v4574_v9 = vadd.f32 %v4318_v47, %v4190_v22  ;;  %v4579_v14 = vadd.f32 %v4323_v48, %v4195_v37 }
 0x116   : > { %v4580_v15 = vadd.f32 %v4324_v49, %v4196_v38  ;;  %v4581_v16 = vadd.f32 %v4325_v50, %v4197_v42  ;;  %v4695_v8 = vmul.f32 0.125, %v4567_v23  ;;  %v4696_v17 = vmul.f32 0.125, %v4568_v27 }
 0x117   : > { %v4697_v18 = vmul.f32 0.125, %v4569_v29  ;;  %v4698_v19 = vmul.f32 0.125, %v4570_v30  ;;  %v4694_v51 = vmul.f32 0.125, %v4566_v53  ;;  %v4699_v21 = vmul.f32 0.125, %v4571_v54  ;;  %v9031_v53 = vld [vmem:[%s8732_s3 + $0x40] sm:$0x1] }
 0x118   : > { %v4700_v52 = vmul.f32 0.125, %v4572_v55  ;;  %v4701_v56 = vmul.f32 0.125, %v4573_v60  ;;  %v4703_v57 = vmul.f32 0.125, %v4575_v43  ;;  %v4704_v58 = vmul.f32 0.125, %v4576_v61  ;;  %v440_v61 = vld [vmem:[%s8724_s19 + $0x8] sm:$0xff]  }
 0x119   : > { %v4705_v59 = vmul.f32 0.125, %v4577_v62  ;;  %v4706_v63 = vmul.f32 0.125, %v4578_v7  ;;  %v4702_v1 = vmul.f32 0.125, %v4574_v9  ;;  %v4707_v2 = vmul.f32 0.125, %v4579_v14  ;;  %v9036_v62 = vld [vmem:[%s8732_s3 + $0x44] sm:$0x1]  ;;  %5149 = vmatmul.mubr.bf16.gmra.mrb[4].mxu0 %v440_v61 }
 0x11a   : > { %v4708_v3 = vmul.f32 0.125, %v4580_v15  ;;  %v4709_v10 = vmul.f32 0.125, %v4581_v16  ;;  %v4823_v11 = vpack.c.bf16 %v4695_v8, %v4695_v8  ;;  %v4824_v26 = vpack.c.bf16 %v4696_v17, %v4696_v17  ;;  %v9039_v7 = vld [vmem:[%s8732_s3 + $0x48] sm:$0x1]  ;;  %v9043_v8 = vld [vmem:[%s8732_s3 + $0x4c] sm:$0x1] }
 0x11b   : > { %v4825_v0 = vpack.c.bf16 %v4697_v18, %v4697_v18  ;;  %v4826_v32 = vpack.c.bf16 %v4698_v19, %v4698_v19  ;;  %vm5531_vm2 = vcmask 1043459   ;;  %v4822_v41 = vpack.c.bf16 %v4694_v51, %v4694_v51  ;;  %v9046_v17 = vld [vmem:[%s8732_s3 + $0x50] sm:$0x1] }
 0x11c   : > { %v4827_v46 = vpack.c.bf16 %v4699_v21, %v4699_v21  ;;  %v4828_v28 = vpack.c.bf16 %v4700_v52, %v4700_v52  ;;  %v4829_v5 = vpack.c.bf16 %v4701_v56, %v4701_v56  ;;  %vm5534_vm3 = vcmask 1044484   ;;  %v9051_v52 = vld [vmem:[%s8732_s3 + $0x54] sm:$0x1]  ;;  %v9054_v56 = vld [vmem:[%s8732_s3 + $0x58] sm:$0x1] }
 0x11d   : > { %v4831_v22 = vpack.c.bf16 %v4703_v57, %v4703_v57  ;;  %v4832_v6 = vpack.c.bf16 %v4704_v58, %v4704_v58  ;;  %v4833_v31 = vpack.c.bf16 %v4705_v59, %v4705_v59  ;;  %v4834_v35 = vpack.c.bf16 %v4706_v63, %v4706_v63  ;;  %v9057_v57 = vld [vmem:[%s8732_s3 + $0x5c] sm:$0x1] }
 0x11e   : > { %vm5537_vm4 = vcmask 1045509   ;;  %v4830_v36 = vpack.c.bf16 %v4702_v1, %v4702_v1  ;;  %v4835_v37 = vpack.c.bf16 %v4707_v2, %v4707_v2  ;;  %v4836_v38 = vpack.c.bf16 %v4708_v3, %v4708_v3  ;;  %v9062_v1 = vld [vmem:[%s8732_s3 + $0x60] sm:$0x1]  ;;  %v9065_v2 = vld [vmem:[%s8732_s3 + $0x64] sm:$0x1] }
 0x11f   : > { %v4837_v42 = vpack.c.bf16 %v4709_v10, %v4709_v10  ;;  %vm5540_vm5 = vcmask 1046534   ;;  %v5397_v4 = vunpack.c.l.b16 %v4823_v11  ;;  %v5398_v12 = vunpack.c.l.b16 %v4824_v26  ;;  %v9068_v3 = vld [vmem:[%s8732_s3 + $0x68] sm:$0x1] }
 0x120   : > { %v5399_v13 = vunpack.c.l.b16 %v4825_v0  ;;  %v5400_v44 = vunpack.c.l.b16 %v4826_v32  ;;  %vm5543_vm6 = vcmask 1047559   ;;  %v5396_v24 = vunpack.c.l.b16 %v4822_v41  ;;  %v9073_v0 = vld [vmem:[%s8732_s3 + $0x6c] sm:$0x1]  ;;  %v9076_v32 = vld [vmem:[%s8732_s3 + $0x70] sm:$0x1] }
 0x121   : > { %v5401_v45 = vunpack.c.l.b16 %v4827_v46  ;;  %v5402_v20 = vunpack.c.l.b16 %v4828_v28  ;;  %v5403_v25 = vunpack.c.l.b16 %v4829_v5  ;;  %v5405_v33 = vunpack.c.l.b16 %v4831_v22  ;;  %v9079_v41 = vld [vmem:[%s8732_s3 + $0x74] sm:$0x1]  ;;  %v9085_v22 = vld [vmem:[%s8732_s3 + $0x78] sm:$0x1] }
 0x122   : > { %v5406_v34 = vunpack.c.l.b16 %v4832_v6  ;;  %v5407_v39 = vunpack.c.l.b16 %v4833_v31  ;;  %v5408_v40 = vunpack.c.l.b16 %v4834_v35  ;;  %v5404_v47 = vunpack.c.l.b16 %v4830_v36  ;;  %v9088_v6 = vld [vmem:[%s8732_s3 + $0x7c] sm:$0x1] }
 0x123   : > { %v5409_v48 = vunpack.c.l.b16 %v4835_v37  ;;  %v5410_v49 = vunpack.c.l.b16 %v4836_v38  ;;  %v5524_v50 = vrot.slane %v5397_v4, 7  ;;  %v5411_v23 = vunpack.c.l.b16 %v4837_v42 }
 0x124   : > { %v5527_v27 = vrot.slane %v5398_v12, 6  ;;  %v5530_v29 = vrot.slane %v5399_v13, 5  ;;  %v5533_v30 = vrot.slane %v5400_v44, 4  ;;  %v5536_v55 = vrot.slane %v5401_v45, 3 }
 0x125   : > { %v5526_v54 = vsel %vm5525_vm0, %v5524_v50, %v5396_v24  ;;  %v5539_v60 = vrot.slane %v5402_v20, 2  ;;  %v5545_v43 = vrot.slane %v5405_v33, 7  ;;  %v5547_v14 = vrot.slane %v5406_v34, 6 }
 0x126   : > { %v5529_v9 = vsel %vm5528_vm1, %v5527_v27, %v5526_v54  ;;  %v5549_v15 = vrot.slane %v5407_v39, 5  ;;  %v5551_v16 = vrot.slane %v5408_v40, 4  ;;  %v5542_v19 = vrot.slane %v5403_v25, 1 }
 0x127   : > { %v5532_v18 = vsel %vm5531_vm2, %v5530_v29, %v5529_v9  ;;  %v5546_v51 = vsel %vm5525_vm0, %v5545_v43, %v5404_v47  ;;  %v5553_v21 = vrot.slane %v5409_v48, 3  ;;  %v5555_v63 = vrot.slane %v5410_v49, 2 }
 0x128   : > { %v5535_v58 = vsel %vm5534_vm3, %v5533_v30, %v5532_v18  ;;  %v5548_v59 = vsel %vm5528_vm1, %v5547_v14, %v5546_v51  ;;  %v5557_v26 = vrot.slane %v5411_v23, 1  ;;  %v614_v46 = vunpack.c.l.bf16 %v9031_v53  ;;  %v9122_v18 = vld [vmem:[%s8732_s3 + $0x44] sm:$0x2] }
 0x129   : > { %v5538_v10 = vsel %vm5537_vm4, %v5536_v55, %v5535_v58  ;;  %v5550_v11 = vsel %vm5531_vm2, %v5549_v15, %v5548_v59  ;;  %v615_v31 = vunpack.c.l.bf16 %v9036_v62  ;;  %v616_v35 = vunpack.c.l.bf16 %v9039_v7  ;;  %v9131_v58 = vld [vmem:[%s8732_s3 + $0x50] sm:$0x2] }
 0x12a   : > { %v5541_v28 = vsel %vm5540_vm5, %v5539_v60, %v5538_v10  ;;  %v5552_v5 = vsel %vm5534_vm3, %v5551_v16, %v5550_v11  ;;  %v617_v38 = vunpack.c.l.bf16 %v9043_v8  ;;  %v618_v42 = vunpack.c.l.bf16 %v9046_v17  ;;  %v9119_v17 = vld [vmem:[%s8732_s3 + $0x40] sm:$0x2]  ;;  %v9137_v10 = vld [vmem:[%s8732_s3 + $0x58] sm:$0x2]  ;;  %v9140_v11 = vld [vmem:[%s8732_s3 + $0x5c] sm:$0x2] }
 0x12b   : > { %v5544_v36 = vsel %vm5543_vm6, %v5542_v19, %v5541_v28  ;;  %v5554_v37 = vsel %vm5537_vm4, %v5553_v21, %v5552_v5  ;;  %v12543_v4 = vmov 0   ;;  %v619_v13 = vunpack.c.l.bf16 %v9051_v52  ;;  %v9146_v28 = vld [vmem:[%s8732_s3 + $0x64] sm:$0x2]  ;;  %v9149_v5 = vld [vmem:[%s8732_s3 + $0x68] sm:$0x2] }
 0x12c   : > { %5158 = vmatprep.mubr.bf16.mxu0 %v12543_v4  ;;  %v5556_v12 = vsel %vm5540_vm5, %v5555_v63, %v5554_v37  ;;  %v620_v44 = vunpack.c.l.bf16 %v9054_v56  ;;  %v621_v24 = vunpack.c.l.bf16 %v9057_v57  ;;  %v622_v20 = vunpack.c.l.bf16 %v9062_v1  ;;  %v9125_v56 = vld [vmem:[%s8732_s3 + $0x48] sm:$0x2]  ;;  %v9128_v57 = vld [vmem:[%s8732_s3 + $0x4c] sm:$0x2] }
 0x12d   : > { %v5558_v45 = vsel %vm5543_vm6, %v5557_v26, %v5556_v12  ;;  %v623_v25 = vunpack.c.l.bf16 %v9065_v2  ;;  %v624_v33 = vunpack.c.l.bf16 %v9068_v3  ;;  %v625_v39 = vunpack.c.l.bf16 %v9073_v0  ;;  %v9134_v3 = vld [vmem:[%s8732_s3 + $0x54] sm:$0x2]  ;;  %v1269_v12 = vld [vmem:[%s8732_s3 + $0x7c] sm:$0x2] }
 0x12e   : > { %v9105_v34 = vpack.c.b16 %v5558_v45, %v5544_v36  ;;  %v626_v40 = vunpack.c.l.bf16 %v9076_v32  ;;  %v627_v47 = vunpack.c.l.bf16 %v9079_v41  ;;  %v628_v48 = vunpack.c.l.bf16 %v9085_v22  ;;  %v9158_v36 = vld [vmem:[%s8732_s3 + $0x74] sm:$0x2] }
 0x12f   : > { %v629_v49 = vunpack.c.l.bf16 %v9088_v6  ;;  %v870_v50 = vrot.slane %v614_v46, 1  ;;  %v871_v23 = vrot.slane %v615_v31, 1  ;;  %v872_v27 = vrot.slane %v616_v35, 1 }
 0x130   : > { %12544 = vst [vmem:[#allocation20_spill] sm:$0xff] %v9105_v34  ;;  %5932 = vmatmul.mubr.bf16.vlgmr.msra.gmra.mrb[0].mxu1 %v9105_v34  ;;  %v873_v29 = vrot.slane %v617_v38, 1  ;;  %v874_v30 = vrot.slane %v618_v42, 1  ;;  %v875_v53 = vrot.slane %v619_v13, 1  ;;  %v876_v54 = vrot.slane %v620_v44, 1 }
 0x131   : > { %5941 = vmatprep.mubr.bf16.mxu1 %v12543_v4  ;;  %v877_v55 = vrot.slane %v621_v24, 1  ;;  %v878_v60 = vrot.slane %v622_v20, 1  ;;  %v879_v43 = vrot.slane %v623_v25, 1  ;;  %v880_v61 = vrot.slane %v624_v33, 1 }
 0x132   : > { %v881_v62 = vrot.slane %v625_v39, 1  ;;  %v882_v7 = vrot.slane %v626_v40, 1  ;;  %v883_v9 = vrot.slane %v627_v47, 1  ;;  %v884_v14 = vrot.slane %v628_v48, 1 }
 0x133   : > { %v885_v15 = vrot.slane %v629_v49, 1  ;;  %v9114_v16 = vadd.f32 %v870_v50, %v614_v46  ;;  %v9116_v8 = vadd.f32 %v871_v23, %v615_v31  ;;  %v1128_v19 = vadd.f32 %v872_v27, %v616_v35  ;;  %v9143_v46 = vld [vmem:[%s8732_s3 + $0x60] sm:$0x2]  ;;  %v9152_v31 = vld [vmem:[%s8732_s3 + $0x6c] sm:$0x2] }
 0x134   : > { %v1129_v51 = vadd.f32 %v873_v29, %v617_v38  ;;  %v1130_v21 = vadd.f32 %v874_v30, %v618_v42  ;;  %v1131_v52 = vadd.f32 %v875_v53, %v619_v13  ;;  %v1132_v59 = vadd.f32 %v876_v54, %v620_v44  ;;  %v9155_v35 = vld [vmem:[%s8732_s3 + $0x70] sm:$0x2]  ;;  %v1268_v42 = vld [vmem:[%s8732_s3 + $0x78] sm:$0x2] }
 0x135   : > { %v1133_v63 = vadd.f32 %v877_v55, %v621_v24  ;;  %v1134_v1 = vadd.f32 %v878_v60, %v622_v20  ;;  %v1135_v2 = vadd.f32 %v879_v43, %v623_v25  ;;  %v1136_v26 = vadd.f32 %v880_v61, %v624_v33 }
 0x136   : > { %v1137_v0 = vadd.f32 %v881_v62, %v625_v39  ;;  %v1138_v32 = vadd.f32 %v882_v7, %v626_v40  ;;  %v1139_v41 = vadd.f32 %v883_v9, %v627_v47  ;;  %v1140_v22 = vadd.f32 %v884_v14, %v628_v48 }
 0x137   : > { %v1141_v6 = vadd.f32 %v885_v15, %v629_v49  ;;  %v1382_v37 = vunpack.c.l.bf16 %v9119_v17  ;;  %v1383_v38 = vunpack.c.l.bf16 %v9122_v18  ;;  %v1384_v13 = vunpack.c.l.bf16 %v9125_v56 }
 0x138   : > { %v1385_v44 = vunpack.c.l.bf16 %v9128_v57  ;;  %v1386_v24 = vunpack.c.l.bf16 %v9131_v58  ;;  %v1387_v45 = vunpack.c.l.bf16 %v9134_v3  ;;  %v1388_v20 = vunpack.c.l.bf16 %v9137_v10 }
 0x139   : > { %v1389_v25 = vunpack.c.l.bf16 %v9140_v11  ;;  %v1390_v33 = vunpack.c.l.bf16 %v9143_v46  ;;  %v1391_v39 = vunpack.c.l.bf16 %v9146_v28  ;;  %v1392_v40 = vunpack.c.l.bf16 %v9149_v5 }
 0x13a   : > { %v1393_v47 = vunpack.c.l.bf16 %v9152_v31  ;;  %v1394_v48 = vunpack.c.l.bf16 %v9155_v35  ;;  %v1395_v49 = vunpack.c.l.bf16 %v9158_v36  ;;  %v1396_v50 = vunpack.c.l.bf16 %v1268_v42 }
 0x13b   : > { %v1397_v23 = vunpack.c.l.bf16 %v1269_v12  ;;  %v1638_v27 = vrot.slane %v1382_v37, 2  ;;  %v1639_v29 = vrot.slane %v1383_v38, 2  ;;  %v1640_v30 = vrot.slane %v1384_v13, 2 }
 0x13c   : > { %v1641_v53 = vrot.slane %v1385_v44, 2  ;;  %v1642_v54 = vrot.slane %v1386_v24, 2  ;;  %v1643_v55 = vrot.slane %v1387_v45, 2  ;;  %v1644_v60 = vrot.slane %v1388_v20, 2 }
 0x13d   : > { %v1645_v43 = vrot.slane %v1389_v25, 2  ;;  %v1646_v61 = vrot.slane %v1390_v33, 2  ;;  %v1647_v62 = vrot.slane %v1391_v39, 2  ;;  %v1648_v7 = vrot.slane %v1392_v40, 2 }
 0x13e   : > { %v1649_v9 = vrot.slane %v1393_v47, 2  ;;  %v1650_v14 = vrot.slane %v1394_v48, 2  ;;  %v1651_v15 = vrot.slane %v1395_v49, 2  ;;  %v1652_v17 = vrot.slane %v1396_v50, 2 }
 0x13f   : > { %v1653_v18 = vrot.slane %v1397_v23, 2  ;;  %v1894_v56 = vadd.f32 %v1638_v27, %v9114_v16  ;;  %v1895_v57 = vadd.f32 %v1639_v29, %v9116_v8  ;;  %v1896_v58 = vadd.f32 %v1640_v30, %v1128_v19 }
 0x140   : > { %v1897_v3 = vadd.f32 %v1641_v53, %v1129_v51  ;;  %v1898_v10 = vadd.f32 %v1642_v54, %v1130_v21  ;;  %v1899_v11 = vadd.f32 %v1643_v55, %v1131_v52  ;;  %v1900_v46 = vadd.f32 %v1644_v60, %v1132_v59  ;;  %v9207_v60 = vld [vmem:[%s8732_s3 + $0x60] sm:$0x4] }
 0x141   : > { %v1901_v28 = vadd.f32 %v1645_v43, %v1133_v63  ;;  %v1902_v5 = vadd.f32 %v1646_v61, %v1134_v1  ;;  %v1903_v31 = vadd.f32 %v1647_v62, %v1135_v2  ;;  %v1904_v35 = vadd.f32 %v1648_v7, %v1136_v26  ;;  %v9210_v43 = vld [vmem:[%s8732_s3 + $0x64] sm:$0x4]  ;;  %v9213_v61 = vld [vmem:[%s8732_s3 + $0x68] sm:$0x4] }
 0x142   : > { %v1905_v36 = vadd.f32 %v1649_v9, %v1137_v0  ;;  %v1906_v42 = vadd.f32 %v1650_v14, %v1138_v32  ;;  %v1907_v12 = vadd.f32 %v1651_v15, %v1139_v41  ;;  %v1908_v34 = vadd.f32 %v1652_v17, %v1140_v22  ;;  %v9216_v9 = vld [vmem:[%s8732_s3 + $0x6c] sm:$0x4]  ;;  %v9219_v14 = vld [vmem:[%s8732_s3 + $0x70] sm:$0x4]  ;;  %v9222_v15 = vld [vmem:[%s8732_s3 + $0x74] sm:$0x4] }
 0x143   : > { %v1909_v4 = vadd.f32 %v1653_v18, %v1141_v6  ;;  %v2022_v16 = vrot.slane %v1382_v37, 3  ;;  %v2023_v27 = vrot.slane %v1383_v38, 3  ;;  %v2024_v8 = vrot.slane %v1384_v13, 3  ;;  %v9183_v37 = vld [vmem:[%s8732_s3 + $0x40] sm:$0x4] }
 0x144   : > { %v2025_v29 = vrot.slane %v1385_v44, 3  ;;  %v2026_v19 = vrot.slane %v1386_v24, 3  ;;  %v2027_v51 = vrot.slane %v1387_v45, 3  ;;  %v2028_v21 = vrot.slane %v1388_v20, 3  ;;  %v9186_v38 = vld [vmem:[%s8732_s3 + $0x44] sm:$0x4] }
 0x145   : > { %v2029_v52 = vrot.slane %v1389_v25, 3  ;;  %v2030_v59 = vrot.slane %v1390_v33, 3  ;;  %v2031_v63 = vrot.slane %v1391_v39, 3  ;;  %v2032_v1 = vrot.slane %v1392_v40, 3  ;;  %v9189_v20 = vld [vmem:[%s8732_s3 + $0x48] sm:$0x4] }
 0x146   : > { %v2033_v2 = vrot.slane %v1393_v47, 3  ;;  %v2034_v26 = vrot.slane %v1394_v48, 3  ;;  %v2035_v0 = vrot.slane %v1395_v49, 3  ;;  %v2036_v32 = vrot.slane %v1396_v50, 3  ;;  %v9192_v25 = vld [vmem:[%s8732_s3 + $0x4c] sm:$0x4] }
 0x147   : > { %v2037_v41 = vrot.slane %v1397_v23, 3  ;;  %v9178_v22 = vadd.f32 %v2022_v16, %v1894_v56  ;;  %v9180_v6 = vadd.f32 %v2023_v27, %v1895_v57  ;;  %v2280_v13 = vadd.f32 %v2024_v8, %v1896_v58  ;;  %v9195_v33 = vld [vmem:[%s8732_s3 + $0x50] sm:$0x4]  ;;  %v9198_v49 = vld [vmem:[%s8732_s3 + $0x54] sm:$0x4] }
 0x148   : > { %v2281_v44 = vadd.f32 %v2025_v29, %v1897_v3  ;;  %v2282_v24 = vadd.f32 %v2026_v19, %v1898_v10  ;;  %v2283_v45 = vadd.f32 %v2027_v51, %v1899_v11  ;;  %v2284_v39 = vadd.f32 %v2028_v21, %v1900_v46  ;;  %v9201_v50 = vld [vmem:[%s8732_s3 + $0x58] sm:$0x4]  ;;  %v9204_v23 = vld [vmem:[%s8732_s3 + $0x5c] sm:$0x4] }
 0x149   : > { %v2285_v40 = vadd.f32 %v2029_v52, %v1901_v28  ;;  %v2286_v47 = vadd.f32 %v2030_v59, %v1902_v5  ;;  %v2287_v48 = vadd.f32 %v2031_v63, %v1903_v31  ;;  %v2288_v30 = vadd.f32 %v2032_v1, %v1904_v35  ;;  %v2420_v56 = vld [vmem:[%s8732_s3 + $0x78] sm:$0x4]  ;;  %v2421_v57 = vld [vmem:[%s8732_s3 + $0x7c] sm:$0x4] }
 0x14a   : > { %v2289_v53 = vadd.f32 %v2033_v2, %v1905_v36  ;;  %v2290_v54 = vadd.f32 %v2034_v26, %v1906_v42  ;;  %v2291_v55 = vadd.f32 %v2035_v0, %v1907_v12  ;;  %v2292_v62 = vadd.f32 %v2036_v32, %v1908_v34 }
 0x14b   : > { %v2293_v7 = vadd.f32 %v2037_v41, %v1909_v4  ;;  %v2534_v17 = vunpack.c.l.bf16 %v9183_v37  ;;  %v2535_v18 = vunpack.c.l.bf16 %v9186_v38  ;;  %v2536_v58 = vunpack.c.l.bf16 %v9189_v20 }
 0x14c   : > { %v2537_v3 = vunpack.c.l.bf16 %v9192_v25  ;;  %v2538_v10 = vunpack.c.l.bf16 %v9195_v33  ;;  %v2539_v4 = vunpack.c.l.bf16 %v9198_v49  ;;  %v2540_v34 = vunpack.c.l.bf16 %v9201_v50 }
 0x14d   : > { %v2541_v11 = vunpack.c.l.bf16 %v9204_v23  ;;  %v2542_v46 = vunpack.c.l.bf16 %v9207_v60  ;;  %v2543_v28 = vunpack.c.l.bf16 %v9210_v43  ;;  %v2544_v5 = vunpack.c.l.bf16 %v9213_v61 }
 0x14e   : > { %v2545_v31 = vunpack.c.l.bf16 %v9216_v9  ;;  %v2546_v35 = vunpack.c.l.bf16 %v9219_v14  ;;  %v2547_v36 = vunpack.c.l.bf16 %v9222_v15  ;;  %v2548_v42 = vunpack.c.l.bf16 %v2420_v56 }
 0x14f   : > { %v2549_v12 = vunpack.c.l.bf16 %v2421_v57  ;;  %v2790_v16 = vrot.slane %v2534_v17, 4  ;;  %v2791_v27 = vrot.slane %v2535_v18, 4  ;;  %v2792_v8 = vrot.slane %v2536_v58, 4 }
 0x150   : > { %v2793_v29 = vrot.slane %v2537_v3, 4  ;;  %v2794_v19 = vrot.slane %v2538_v10, 4  ;;  %v2795_v51 = vrot.slane %v2539_v4, 4  ;;  %v2796_v21 = vrot.slane %v2540_v34, 4 }
 0x151   : > { %v2797_v52 = vrot.slane %v2541_v11, 4  ;;  %v2798_v59 = vrot.slane %v2542_v46, 4  ;;  %v2799_v63 = vrot.slane %v2543_v28, 4  ;;  %v2800_v1 = vrot.slane %v2544_v5, 4 }
 0x152   : > { %v2801_v2 = vrot.slane %v2545_v31, 4  ;;  %v2802_v26 = vrot.slane %v2546_v35, 4  ;;  %v2803_v0 = vrot.slane %v2547_v36, 4  ;;  %v2804_v32 = vrot.slane %v2548_v42, 4 }
 0x153   : > { %v2805_v41 = vrot.slane %v2549_v12, 4  ;;  %v3046_v37 = vadd.f32 %v2790_v16, %v9178_v22  ;;  %v3047_v38 = vadd.f32 %v2791_v27, %v9180_v6  ;;  %v3048_v20 = vadd.f32 %v2792_v8, %v2280_v13 }
 0x154   : > { %v3049_v25 = vadd.f32 %v2793_v29, %v2281_v44  ;;  %v3050_v33 = vadd.f32 %v2794_v19, %v2282_v24  ;;  %v3051_v49 = vadd.f32 %v2795_v51, %v2283_v45  ;;  %v3052_v50 = vadd.f32 %v2796_v21, %v2284_v39  ;;  %v9271_v21 = vld [vmem:[%s8732_s3 + $0x60] sm:$0x8] }
 0x155   : > { %v3053_v23 = vadd.f32 %v2797_v52, %v2285_v40  ;;  %v3054_v60 = vadd.f32 %v2798_v59, %v2286_v47  ;;  %v3055_v43 = vadd.f32 %v2799_v63, %v2287_v48  ;;  %v3056_v61 = vadd.f32 %v2800_v1, %v2288_v30  ;;  %v9274_v52 = vld [vmem:[%s8732_s3 + $0x64] sm:$0x8]  ;;  %v9277_v59 = vld [vmem:[%s8732_s3 + $0x68] sm:$0x8] }
 0x156   : > { %v3057_v9 = vadd.f32 %v2801_v2, %v2289_v53  ;;  %v3058_v14 = vadd.f32 %v2802_v26, %v2290_v54  ;;  %v3059_v15 = vadd.f32 %v2803_v0, %v2291_v55  ;;  %v3060_v56 = vadd.f32 %v2804_v32, %v2292_v62  ;;  %v9280_v2 = vld [vmem:[%s8732_s3 + $0x6c] sm:$0x8]  ;;  %v9283_v26 = vld [vmem:[%s8732_s3 + $0x70] sm:$0x8]  ;;  %v9286_v0 = vld [vmem:[%s8732_s3 + $0x74] sm:$0x8] }
 0x157   : > { %v3061_v57 = vadd.f32 %v2805_v41, %v2293_v7  ;;  %v3174_v16 = vrot.slane %v2534_v17, 5  ;;  %v3175_v22 = vrot.slane %v2535_v18, 5  ;;  %v3176_v6 = vrot.slane %v2536_v58, 5  ;;  %v9247_v17 = vld [vmem:[%s8732_s3 + $0x40] sm:$0x8] }
 0x158   : > { %v3177_v27 = vrot.slane %v2537_v3, 5  ;;  %v3178_v13 = vrot.slane %v2538_v10, 5  ;;  %v3179_v44 = vrot.slane %v2539_v4, 5  ;;  %v3180_v24 = vrot.slane %v2540_v34, 5  ;;  %v9250_v18 = vld [vmem:[%s8732_s3 + $0x44] sm:$0x8] }
 0x159   : > { %v3181_v45 = vrot.slane %v2541_v11, 5  ;;  %v3182_v39 = vrot.slane %v2542_v46, 5  ;;  %v3183_v40 = vrot.slane %v2543_v28, 5  ;;  %v3184_v47 = vrot.slane %v2544_v5, 5  ;;  %v9253_v34 = vld [vmem:[%s8732_s3 + $0x48] sm:$0x8] }
 0x15a   : > { %v3185_v48 = vrot.slane %v2545_v31, 5  ;;  %v3186_v30 = vrot.slane %v2546_v35, 5  ;;  %v3187_v53 = vrot.slane %v2547_v36, 5  ;;  %v3188_v54 = vrot.slane %v2548_v42, 5  ;;  %v9256_v11 = vld [vmem:[%s8732_s3 + $0x4c] sm:$0x8] }
 0x15b   : > { %v3189_v55 = vrot.slane %v2549_v12, 5  ;;  %v9242_v62 = vadd.f32 %v3174_v16, %v3046_v37  ;;  %v9244_v7 = vadd.f32 %v3175_v22, %v3047_v38  ;;  %v3432_v58 = vadd.f32 %v3176_v6, %v3048_v20  ;;  %v9259_v46 = vld [vmem:[%s8732_s3 + $0x50] sm:$0x8]  ;;  %v9262_v36 = vld [vmem:[%s8732_s3 + $0x54] sm:$0x8] }
 0x15c   : > { %v3433_v3 = vadd.f32 %v3177_v27, %v3049_v25  ;;  %v3434_v10 = vadd.f32 %v3178_v13, %v3050_v33  ;;  %v3435_v4 = vadd.f32 %v3179_v44, %v3051_v49  ;;  %v3436_v28 = vadd.f32 %v3180_v24, %v3052_v50  ;;  %v9265_v42 = vld [vmem:[%s8732_s3 + $0x58] sm:$0x8]  ;;  %v9268_v12 = vld [vmem:[%s8732_s3 + $0x5c] sm:$0x8] }
 0x15d   : > { %v3437_v5 = vadd.f32 %v3181_v45, %v3053_v23  ;;  %v3438_v31 = vadd.f32 %v3182_v39, %v3054_v60  ;;  %v3439_v35 = vadd.f32 %v3183_v40, %v3055_v43  ;;  %v3440_v8 = vadd.f32 %v3184_v47, %v3056_v61  ;;  %v3572_v37 = vld [vmem:[%s8732_s3 + $0x78] sm:$0x8]  ;;  %v3573_v38 = vld [vmem:[%s8732_s3 + $0x7c] sm:$0x8] }
 0x15e   : > { %v3441_v29 = vadd.f32 %v3185_v48, %v3057_v9  ;;  %v3442_v19 = vadd.f32 %v3186_v30, %v3058_v14  ;;  %v3443_v51 = vadd.f32 %v3187_v53, %v3059_v15  ;;  %v3444_v63 = vadd.f32 %v3188_v54, %v3060_v56 }
 0x15f   : > { %v3445_v1 = vadd.f32 %v3189_v55, %v3061_v57  ;;  %v3686_v32 = vunpack.c.l.bf16 %v9247_v17  ;;  %v3687_v41 = vunpack.c.l.bf16 %v9250_v18  ;;  %v3688_v20 = vunpack.c.l.bf16 %v9253_v34 }
 0x160   : > { %v3689_v25 = vunpack.c.l.bf16 %v9256_v11  ;;  %v3690_v33 = vunpack.c.l.bf16 %v9259_v46  ;;  %v3691_v49 = vunpack.c.l.bf16 %v9262_v36  ;;  %v3692_v50 = vunpack.c.l.bf16 %v9265_v42 }
 0x161   : > { %v3693_v23 = vunpack.c.l.bf16 %v9268_v12  ;;  %v3694_v60 = vunpack.c.l.bf16 %v9271_v21  ;;  %v3695_v43 = vunpack.c.l.bf16 %v9274_v52  ;;  %v3696_v61 = vunpack.c.l.bf16 %v9277_v59 }
 0x162   : > { %v3697_v9 = vunpack.c.l.bf16 %v9280_v2  ;;  %v3698_v14 = vunpack.c.l.bf16 %v9283_v26  ;;  %v3699_v15 = vunpack.c.l.bf16 %v9286_v0  ;;  %v3700_v56 = vunpack.c.l.bf16 %v3572_v37 }
 0x163   : > { %v3701_v57 = vunpack.c.l.bf16 %v3573_v38  ;;  %v3942_v16 = vrot.slane %v3686_v32, 6  ;;  %v3943_v22 = vrot.slane %v3687_v41, 6  ;;  %v3944_v6 = vrot.slane %v3688_v20, 6 }
 0x164   : > { %v3945_v27 = vrot.slane %v3689_v25, 6  ;;  %v3946_v13 = vrot.slane %v3690_v33, 6  ;;  %v3947_v44 = vrot.slane %v3691_v49, 6  ;;  %v3948_v24 = vrot.slane %v3692_v50, 6 }
 0x165   : > { %v3949_v45 = vrot.slane %v3693_v23, 6  ;;  %v3950_v39 = vrot.slane %v3694_v60, 6  ;;  %v3951_v40 = vrot.slane %v3695_v43, 6  ;;  %v3952_v47 = vrot.slane %v3696_v61, 6 }
 0x166   : > { %v3953_v48 = vrot.slane %v3697_v9, 6  ;;  %v3954_v30 = vrot.slane %v3698_v14, 6  ;;  %v3955_v53 = vrot.slane %v3699_v15, 6  ;;  %v3956_v54 = vrot.slane %v3700_v56, 6 }
 0x167   : > { %v3957_v55 = vrot.slane %v3701_v57, 6  ;;  %v4198_v17 = vadd.f32 %v3942_v16, %v9242_v62  ;;  %v4199_v18 = vadd.f32 %v3943_v22, %v9244_v7  ;;  %v4200_v34 = vadd.f32 %v3944_v6, %v3432_v58 }
 0x168   : > { %v4201_v11 = vadd.f32 %v3945_v27, %v3433_v3  ;;  %v4202_v46 = vadd.f32 %v3946_v13, %v3434_v10  ;;  %v4203_v36 = vadd.f32 %v3947_v44, %v3435_v4  ;;  %v4204_v42 = vadd.f32 %v3948_v24, %v3436_v28 }
 0x169   : > { %v4205_v12 = vadd.f32 %v3949_v45, %v3437_v5  ;;  %v4206_v21 = vadd.f32 %v3950_v39, %v3438_v31  ;;  %v4207_v52 = vadd.f32 %v3951_v40, %v3439_v35  ;;  %v4208_v59 = vadd.f32 %v3952_v47, %v3440_v8 }
 0x16a   : > { %v4209_v2 = vadd.f32 %v3953_v48, %v3441_v29  ;;  %v4210_v26 = vadd.f32 %v3954_v30, %v3442_v19  ;;  %v4211_v0 = vadd.f32 %v3955_v53, %v3443_v51  ;;  %v4212_v37 = vadd.f32 %v3956_v54, %v3444_v63 }
 0x16b   : > { %v4213_v38 = vadd.f32 %v3957_v55, %v3445_v1  ;;  %v4327_v16 = vrot.slane %v3687_v41, 7  ;;  %v4328_v62 = vrot.slane %v3688_v20, 7  ;;  %v4329_v7 = vrot.slane %v3689_v25, 7 }
 0x16c   : > { %v4330_v22 = vrot.slane %v3690_v33, 7  ;;  %v4331_v6 = vrot.slane %v3691_v49, 7  ;;  %v4332_v58 = vrot.slane %v3692_v50, 7  ;;  %v4326_v3 = vrot.slane %v3686_v32, 7 }
 0x16d   : > { %v4333_v27 = vrot.slane %v3693_v23, 7  ;;  %v4335_v10 = vrot.slane %v3695_v43, 7  ;;  %v4336_v4 = vrot.slane %v3696_v61, 7  ;;  %v4334_v28 = vrot.slane %v3694_v60, 7 }
 0x16e   : > { %v4337_v5 = vrot.slane %v3697_v9, 7  ;;  %v4338_v31 = vrot.slane %v3698_v14, 7  ;;  %v4339_v35 = vrot.slane %v3699_v15, 7  ;;  %v4340_v8 = vrot.slane %v3700_v56, 7 }
 0x16f   : > { %v4341_v29 = vrot.slane %v3701_v57, 7  ;;  %v4583_v19 = vadd.f32 %v4327_v16, %v4199_v18  ;;  %v4584_v51 = vadd.f32 %v4328_v62, %v4200_v34  ;;  %v4585_v63 = vadd.f32 %v4329_v7, %v4201_v11 }
 0x170   : > { %v4586_v1 = vadd.f32 %v4330_v22, %v4202_v46  ;;  %v4587_v41 = vadd.f32 %v4331_v6, %v4203_v36  ;;  %v4588_v20 = vadd.f32 %v4332_v58, %v4204_v42  ;;  %v4582_v25 = vadd.f32 %v4326_v3, %v4198_v17 }
 0x171   : > { %v4589_v33 = vadd.f32 %v4333_v27, %v4205_v12  ;;  %v4591_v49 = vadd.f32 %v4335_v10, %v4207_v52  ;;  %v4592_v50 = vadd.f32 %v4336_v4, %v4208_v59  ;;  %v4590_v32 = vadd.f32 %v4334_v28, %v4206_v21 }
 0x172   : > { %v4593_v23 = vadd.f32 %v4337_v5, %v4209_v2  ;;  %v4594_v43 = vadd.f32 %v4338_v31, %v4210_v26  ;;  %v4595_v61 = vadd.f32 %v4339_v35, %v4211_v0  ;;  %v4596_v60 = vadd.f32 %v4340_v8, %v4212_v37 }
 0x173   : > { %v4597_v9 = vadd.f32 %v4341_v29, %v4213_v38  ;;  %v4711_v14 = vmul.f32 0.125, %v4583_v19  ;;  %v4712_v15 = vmul.f32 0.125, %v4584_v51  ;;  %v4713_v56 = vmul.f32 0.125, %v4585_v63 }
 0x174   : > { %v4714_v57 = vmul.f32 0.125, %v4586_v1  ;;  %v4715_v13 = vmul.f32 0.125, %v4587_v41  ;;  %v4716_v44 = vmul.f32 0.125, %v4588_v20  ;;  %v4710_v24 = vmul.f32 0.125, %v4582_v25  ;;  %v442_v25 = vld [vmem:[%s8724_s19 + $0x10] sm:$0xff]  }
 0x175   : > { %v4717_v45 = vmul.f32 0.125, %v4589_v33  ;;  %v4719_v39 = vmul.f32 0.125, %v4591_v49  ;;  %v4720_v40 = vmul.f32 0.125, %v4592_v50  ;;  %v4718_v47 = vmul.f32 0.125, %v4590_v32  ;;  %v9308_v33 = vld [vmem:[%s8732_s3 + $0x80] sm:$0x1]  ;;  %5159 = vmatmul.mubr.bf16.gmra.mrb[8].mxu0 %v442_v25 }
 0x176   : > { %v4721_v48 = vmul.f32 0.125, %v4593_v23  ;;  %v4722_v30 = vmul.f32 0.125, %v4594_v43  ;;  %v4723_v53 = vmul.f32 0.125, %v4595_v61  ;;  %v4724_v54 = vmul.f32 0.125, %v4596_v60  ;;  %v9312_v43 = vld [vmem:[%s8732_s3 + $0x84] sm:$0x1] }
 0x177   : > { %v4725_v55 = vmul.f32 0.125, %v4597_v9  ;;  %v4839_v17 = vpack.c.bf16 %v4711_v14, %v4711_v14  ;;  %v4840_v18 = vpack.c.bf16 %v4712_v15, %v4712_v15  ;;  %v4841_v34 = vpack.c.bf16 %v4713_v56, %v4713_v56  ;;  %v9316_v15 = vld [vmem:[%s8732_s3 + $0x88] sm:$0x1] }
 0x178   : > { %v4842_v11 = vpack.c.bf16 %v4714_v57, %v4714_v57  ;;  %v4843_v46 = vpack.c.bf16 %v4715_v13, %v4715_v13  ;;  %v4844_v36 = vpack.c.bf16 %v4716_v44, %v4716_v44  ;;  %v4838_v42 = vpack.c.bf16 %v4710_v24, %v4710_v24  ;;  %v9321_v44 = vld [vmem:[%s8732_s3 + $0x8c] sm:$0x1]  ;;  %v9324_v24 = vld [vmem:[%s8732_s3 + $0x90] sm:$0x1] }
 0x179   : > { %v4845_v12 = vpack.c.bf16 %v4717_v45, %v4717_v45  ;;  %v4847_v21 = vpack.c.bf16 %v4719_v39, %v4719_v39  ;;  %v4848_v52 = vpack.c.bf16 %v4720_v40, %v4720_v40  ;;  %v4846_v59 = vpack.c.bf16 %v4718_v47, %v4718_v47  ;;  %v9329_v47 = vld [vmem:[%s8732_s3 + $0x94] sm:$0x1] }
 0x17a   : > { %v4849_v2 = vpack.c.bf16 %v4721_v48, %v4721_v48  ;;  %v4850_v26 = vpack.c.bf16 %v4722_v30, %v4722_v30  ;;  %v4851_v0 = vpack.c.bf16 %v4723_v53, %v4723_v53  ;;  %v4852_v37 = vpack.c.bf16 %v4724_v54, %v4724_v54  ;;  %v9332_v48 = vld [vmem:[%s8732_s3 + $0x98] sm:$0x1] }
 0x17b   : > { %v4853_v38 = vpack.c.bf16 %v4725_v55, %v4725_v55  ;;  %v5413_v16 = vunpack.c.l.b16 %v4839_v17  ;;  %v5414_v62 = vunpack.c.l.b16 %v4840_v18  ;;  %v5415_v7 = vunpack.c.l.b16 %v4841_v34  ;;  %v509_v55 = vld [vmem:[%s8732_s3 + $0x9c] sm:$0x1]  ;;  %v9339_v17 = vld [vmem:[%s8732_s3 + $0xa0] sm:$0x1]  ;;  %v9342_v18 = vld [vmem:[%s8732_s3 + $0xa4] sm:$0x1] }
 0x17c   : > { %v5416_v22 = vunpack.c.l.b16 %v4842_v11  ;;  %v5417_v6 = vunpack.c.l.b16 %v4843_v46  ;;  %v5418_v58 = vunpack.c.l.b16 %v4844_v36  ;;  %v5412_v3 = vunpack.c.l.b16 %v4838_v42  ;;  %v512_v42 = vld [vmem:[%s8732_s3 + $0xa8] sm:$0x1] }
 0x17d   : > { %v5419_v27 = vunpack.c.l.b16 %v4845_v12  ;;  %v5421_v10 = vunpack.c.l.b16 %v4847_v21  ;;  %v5422_v4 = vunpack.c.l.b16 %v4848_v52  ;;  %v5420_v28 = vunpack.c.l.b16 %v4846_v59  ;;  %v513_v12 = vld [vmem:[%s8732_s3 + $0xac] sm:$0x1]  ;;  %v9351_v21 = vld [vmem:[%s8732_s3 + $0xb0] sm:$0x1] }
 0x17e   : > { %v5423_v5 = vunpack.c.l.b16 %v4849_v2  ;;  %v5424_v31 = vunpack.c.l.b16 %v4850_v26  ;;  %v5425_v35 = vunpack.c.l.b16 %v4851_v0  ;;  %v5426_v8 = vunpack.c.l.b16 %v4852_v37  ;;  %v515_v37 = vld [vmem:[%s8732_s3 + $0xb4] sm:$0x1] }
 0x17f   : > { %v5559_v29 = vrot.slane %v5413_v16, 7  ;;  %v5561_v19 = vrot.slane %v5414_v62, 6  ;;  %v5563_v51 = vrot.slane %v5415_v7, 5  ;;  %v5427_v63 = vunpack.c.l.b16 %v4853_v38  ;;  %v516_v38 = vld [vmem:[%s8732_s3 + $0xb8] sm:$0x1] }
 0x180   : > { %v5565_v1 = vrot.slane %v5416_v22, 4  ;;  %v5567_v41 = vrot.slane %v5417_v6, 3  ;;  %v5569_v20 = vrot.slane %v5418_v58, 2  ;;  %v5573_v50 = vrot.slane %v5421_v10, 7  ;;  %v517_v16 = vld [vmem:[%s8732_s3 + $0xbc] sm:$0x1] }
 0x181   : > { %v5560_v49 = vsel %vm5525_vm0, %v5559_v29, %v5412_v3  ;;  %v5575_v32 = vrot.slane %v5422_v4, 6  ;;  %v5577_v23 = vrot.slane %v5423_v5, 5  ;;  %v5571_v60 = vrot.slane %v5419_v27, 1 }
 0x182   : > { %v5562_v61 = vsel %vm5528_vm1, %v5561_v19, %v5560_v49  ;;  %v5579_v9 = vrot.slane %v5424_v31, 4  ;;  %v5581_v14 = vrot.slane %v5425_v35, 3  ;;  %v5574_v57 = vsel %vm5525_vm0, %v5573_v50, %v5420_v28 }
 0x183   : > { %v5564_v56 = vsel %vm5531_vm2, %v5563_v51, %v5562_v61  ;;  %v5583_v13 = vrot.slane %v5426_v8, 2  ;;  %v5576_v39 = vsel %vm5528_vm1, %v5575_v32, %v5574_v57  ;;  %v5585_v40 = vrot.slane %v5427_v63, 1 }
 0x184   : > { %v5566_v45 = vsel %vm5534_vm3, %v5565_v1, %v5564_v56  ;;  %v630_v30 = vunpack.c.l.bf16 %v9308_v33  ;;  %v5578_v54 = vsel %vm5531_vm2, %v5577_v23, %v5576_v39  ;;  %v631_v34 = vunpack.c.l.bf16 %v9312_v43 }
 0x185   : > { %v5568_v53 = vsel %vm5537_vm4, %v5567_v41, %v5566_v45  ;;  %v632_v11 = vunpack.c.l.bf16 %v9316_v15  ;;  %v5580_v36 = vsel %vm5534_vm3, %v5579_v9, %v5578_v54  ;;  %v633_v52 = vunpack.c.l.bf16 %v9321_v44  ;;  %v9373_v9 = vld [vmem:[%s8732_s3 + $0x80] sm:$0x2]  ;;  %v9387_v44 = vld [vmem:[%s8732_s3 + $0x88] sm:$0x2] }
 0x186   : > { %v5570_v46 = vsel %vm5540_vm5, %v5569_v20, %v5568_v53  ;;  %v634_v59 = vunpack.c.l.bf16 %v9324_v24  ;;  %v12545_v2 = vmov 0   ;;  %v5582_v0 = vsel %vm5537_vm4, %v5581_v14, %v5580_v36  ;;  %v9390_v24 = vld [vmem:[%s8732_s3 + $0x8c] sm:$0x2]  ;;  %v9399_v53 = vld [vmem:[%s8732_s3 + $0x98] sm:$0x2] }
 0x187   : > { %5168 = vmatprep.mubr.bf16.mxu0 %v12545_v2  ;;  %v5572_v26 = vsel %vm5543_vm6, %v5571_v60, %v5570_v46  ;;  %v635_v62 = vunpack.c.l.bf16 %v9329_v47  ;;  %v636_v7 = vunpack.c.l.bf16 %v9332_v48  ;;  %v5584_v22 = vsel %vm5540_vm5, %v5583_v13, %v5582_v0  ;;  %v9384_v13 = vld [vmem:[%s8732_s3 + $0x84] sm:$0x2]  ;;  %v9393_v48 = vld [vmem:[%s8732_s3 + $0x90] sm:$0x2]  ;;  %v9420_v0 = vld [vmem:[%s8732_s3 + $0xb4] sm:$0x2] }
 0x188   : > { %v637_v6 = vunpack.c.l.bf16 %v509_v55  ;;  %v638_v58 = vunpack.c.l.bf16 %v9339_v17  ;;  %v639_v3 = vunpack.c.l.bf16 %v9342_v18  ;;  %v5586_v27 = vsel %vm5543_vm6, %v5585_v40, %v5584_v22  ;;  %v9408_v46 = vld [vmem:[%s8732_s3 + $0xa4] sm:$0x2] }
 0x189   : > { %v640_v10 = vunpack.c.l.bf16 %v512_v42  ;;  %v641_v4 = vunpack.c.l.bf16 %v513_v12  ;;  %v642_v28 = vunpack.c.l.bf16 %v9351_v21  ;;  %v9368_v5 = vpack.c.b16 %v5586_v27, %v5572_v26  ;;  %v9417_v26 = vld [vmem:[%s8732_s3 + $0xb0] sm:$0x2] }
 0x18a   : > { %v643_v31 = vunpack.c.l.bf16 %v515_v37  ;;  %v644_v35 = vunpack.c.l.bf16 %v516_v38  ;;  %v645_v8 = vunpack.c.l.bf16 %v517_v16  ;;  %v886_v29 = vrot.slane %v630_v30, 1  ;;  %v9423_v37 = vld [vmem:[%s8732_s3 + $0xb8] sm:$0x2]  ;;  %v9426_v38 = vld [vmem:[%s8732_s3 + $0xbc] sm:$0x2] }
 0x18b   : > { %12546 = vst [vmem:[#allocation21_spill] sm:$0xff] %v9368_v5  ;;  %v887_v19 = vrot.slane %v631_v34, 1  ;;  %v888_v51 = vrot.slane %v632_v11, 1  ;;  %v889_v63 = vrot.slane %v633_v52, 1  ;;  %5942 = vmatmul.mubr.bf16.gmra.mrb[4].mxu1 %v9368_v5  ;;  %v890_v1 = vrot.slane %v634_v59, 1 }
 0x18c   : > { %v891_v41 = vrot.slane %v635_v62, 1  ;;  %v892_v20 = vrot.slane %v636_v7, 1  ;;  %v893_v25 = vrot.slane %v637_v6, 1  ;;  %5951 = vmatprep.mubr.bf16.mxu1 %v12545_v2  ;;  %v894_v33 = vrot.slane %v638_v58, 1 }
 0x18d   : > { %v895_v49 = vrot.slane %v639_v3, 1  ;;  %v896_v50 = vrot.slane %v640_v10, 1  ;;  %v897_v32 = vrot.slane %v641_v4, 1  ;;  %v898_v23 = vrot.slane %v642_v28, 1 }
 0x18e   : > { %v899_v43 = vrot.slane %v643_v31, 1  ;;  %v900_v61 = vrot.slane %v644_v35, 1  ;;  %v901_v60 = vrot.slane %v645_v8, 1  ;;  %v9375_v14 = vadd.f32 %v886_v29, %v630_v30  ;;  %v9396_v30 = vld [vmem:[%s8732_s3 + $0x94] sm:$0x2] }
 0x18f   : > { %v9377_v15 = vadd.f32 %v887_v19, %v631_v34  ;;  %v9379_v56 = vadd.f32 %v888_v51, %v632_v11  ;;  %v9381_v57 = vadd.f32 %v889_v63, %v633_v52  ;;  %v1146_v45 = vadd.f32 %v890_v1, %v634_v59  ;;  %v9402_v34 = vld [vmem:[%s8732_s3 + $0x9c] sm:$0x2]  ;;  %v9405_v11 = vld [vmem:[%s8732_s3 + $0xa0] sm:$0x2]  ;;  %v9411_v52 = vld [vmem:[%s8732_s3 + $0xa8] sm:$0x2] }
 0x190   : > { %v1147_v39 = vadd.f32 %v891_v41, %v635_v62  ;;  %v1148_v40 = vadd.f32 %v892_v20, %v636_v7  ;;  %v1149_v47 = vadd.f32 %v893_v25, %v637_v6  ;;  %v1150_v54 = vadd.f32 %v894_v33, %v638_v58  ;;  %v9414_v59 = vld [vmem:[%s8732_s3 + $0xac] sm:$0x2] }
 0x191   : > { %v1151_v55 = vadd.f32 %v895_v49, %v639_v3  ;;  %v1152_v17 = vadd.f32 %v896_v50, %v640_v10  ;;  %v1153_v18 = vadd.f32 %v897_v32, %v641_v4  ;;  %v1154_v36 = vadd.f32 %v898_v23, %v642_v28 }
 0x192   : > { %v1155_v42 = vadd.f32 %v899_v43, %v643_v31  ;;  %v1156_v12 = vadd.f32 %v900_v61, %v644_v35  ;;  %v1157_v21 = vadd.f32 %v901_v60, %v645_v8  ;;  %v1398_v16 = vunpack.c.l.bf16 %v9373_v9 }
 0x193   : > { %v1399_v62 = vunpack.c.l.bf16 %v9384_v13  ;;  %v1400_v7 = vunpack.c.l.bf16 %v9387_v44  ;;  %v1401_v22 = vunpack.c.l.bf16 %v9390_v24  ;;  %v1402_v6 = vunpack.c.l.bf16 %v9393_v48 }
 0x194   : > { %v1403_v58 = vunpack.c.l.bf16 %v9396_v30  ;;  %v1404_v3 = vunpack.c.l.bf16 %v9399_v53  ;;  %v1405_v27 = vunpack.c.l.bf16 %v9402_v34  ;;  %v1406_v10 = vunpack.c.l.bf16 %v9405_v11 }
 0x195   : > { %v1407_v4 = vunpack.c.l.bf16 %v9408_v46  ;;  %v1408_v28 = vunpack.c.l.bf16 %v9411_v52  ;;  %v1409_v31 = vunpack.c.l.bf16 %v9414_v59  ;;  %v1410_v35 = vunpack.c.l.bf16 %v9417_v26 }
 0x196   : > { %v1411_v8 = vunpack.c.l.bf16 %v9420_v0  ;;  %v1412_v29 = vunpack.c.l.bf16 %v9423_v37  ;;  %v1413_v19 = vunpack.c.l.bf16 %v9426_v38  ;;  %v1654_v51 = vrot.slane %v1398_v16, 2 }
 0x197   : > { %v1655_v63 = vrot.slane %v1399_v62, 2  ;;  %v1656_v1 = vrot.slane %v1400_v7, 2  ;;  %v1657_v41 = vrot.slane %v1401_v22, 2  ;;  %v1658_v20 = vrot.slane %v1402_v6, 2 }
 0x198   : > { %v1659_v25 = vrot.slane %v1403_v58, 2  ;;  %v1660_v33 = vrot.slane %v1404_v3, 2  ;;  %v1661_v49 = vrot.slane %v1405_v27, 2  ;;  %v1662_v50 = vrot.slane %v1406_v10, 2 }
 0x199   : > { %v1663_v32 = vrot.slane %v1407_v4, 2  ;;  %v1664_v23 = vrot.slane %v1408_v28, 2  ;;  %v1665_v43 = vrot.slane %v1409_v31, 2  ;;  %v1666_v61 = vrot.slane %v1410_v35, 2 }
 0x19a   : > { %v1667_v60 = vrot.slane %v1411_v8, 2  ;;  %v1668_v9 = vrot.slane %v1412_v29, 2  ;;  %v1669_v13 = vrot.slane %v1413_v19, 2  ;;  %v1910_v44 = vadd.f32 %v1654_v51, %v9375_v14 }
 0x19b   : > { %v1911_v24 = vadd.f32 %v1655_v63, %v9377_v15  ;;  %v1912_v48 = vadd.f32 %v1656_v1, %v9379_v56  ;;  %v1913_v30 = vadd.f32 %v1657_v41, %v9381_v57  ;;  %v1914_v53 = vadd.f32 %v1658_v20, %v1146_v45  ;;  %v9478_v41 = vld [vmem:[%s8732_s3 + $0x94] sm:$0x4]  ;;  %v9481_v20 = vld [vmem:[%s8732_s3 + $0x98] sm:$0x4] }
 0x19c   : > { %v1915_v34 = vadd.f32 %v1659_v25, %v1147_v39  ;;  %v1916_v11 = vadd.f32 %v1660_v33, %v1148_v40  ;;  %v1917_v46 = vadd.f32 %v1661_v49, %v1149_v47  ;;  %v1918_v52 = vadd.f32 %v1662_v50, %v1150_v54  ;;  %v9484_v25 = vld [vmem:[%s8732_s3 + $0x9c] sm:$0x4] }
 0x19d   : > { %v1919_v59 = vadd.f32 %v1663_v32, %v1151_v55  ;;  %v1920_v26 = vadd.f32 %v1664_v23, %v1152_v17  ;;  %v1921_v0 = vadd.f32 %v1665_v43, %v1153_v18  ;;  %v1922_v37 = vadd.f32 %v1666_v61, %v1154_v36  ;;  %v2430_v23 = vld [vmem:[%s8732_s3 + $0xa0] sm:$0x4]  ;;  %v9488_v43 = vld [vmem:[%s8732_s3 + $0xac] sm:$0x4]  ;;  %v9491_v61 = vld [vmem:[%s8732_s3 + $0xb0] sm:$0x4] }
 0x19e   : > { %v1923_v38 = vadd.f32 %v1667_v60, %v1155_v42  ;;  %v1924_v5 = vadd.f32 %v1668_v9, %v1156_v12  ;;  %v1925_v2 = vadd.f32 %v1669_v13, %v1157_v21  ;;  %v2038_v14 = vrot.slane %v1398_v16, 3  ;;  %v9494_v60 = vld [vmem:[%s8732_s3 + $0xb4] sm:$0x4]  ;;  %v9497_v9 = vld [vmem:[%s8732_s3 + $0xb8] sm:$0x4] }
 0x19f   : > { %v2039_v51 = vrot.slane %v1399_v62, 3  ;;  %v2040_v15 = vrot.slane %v1400_v7, 3  ;;  %v2041_v63 = vrot.slane %v1401_v22, 3  ;;  %v2042_v1 = vrot.slane %v1402_v6, 3  ;;  %v9457_v62 = vld [vmem:[%s8732_s3 + $0x84] sm:$0x4] }
 0x1a0   : > { %v2043_v56 = vrot.slane %v1403_v58, 3  ;;  %v2044_v57 = vrot.slane %v1404_v3, 3  ;;  %v2045_v45 = vrot.slane %v1405_v27, 3  ;;  %v2046_v39 = vrot.slane %v1406_v10, 3  ;;  %v9460_v7 = vld [vmem:[%s8732_s3 + $0x88] sm:$0x4] }
 0x1a1   : > { %v2047_v40 = vrot.slane %v1407_v4, 3  ;;  %v2048_v47 = vrot.slane %v1408_v28, 3  ;;  %v2049_v54 = vrot.slane %v1409_v31, 3  ;;  %v2050_v55 = vrot.slane %v1410_v35, 3  ;;  %v9463_v27 = vld [vmem:[%s8732_s3 + $0x80] sm:$0x4] }
 0x1a2   : > { %v2051_v17 = vrot.slane %v1411_v8, 3  ;;  %v2052_v18 = vrot.slane %v1412_v29, 3  ;;  %v2053_v36 = vrot.slane %v1413_v19, 3  ;;  %v9448_v42 = vadd.f32 %v2038_v14, %v1910_v44  ;;  %v9466_v10 = vld [vmem:[%s8732_s3 + $0x8c] sm:$0x4] }
 0x1a3   : > { %v9450_v12 = vadd.f32 %v2039_v51, %v1911_v24  ;;  %v9452_v21 = vadd.f32 %v2040_v15, %v1912_v48  ;;  %v9454_v16 = vadd.f32 %v2041_v63, %v1913_v30  ;;  %v2298_v22 = vadd.f32 %v2042_v1, %v1914_v53  ;;  %v9469_v4 = vld [vmem:[%s8732_s3 + $0x90] sm:$0x4]  ;;  %v9472_v28 = vld [vmem:[%s8732_s3 + $0xa4] sm:$0x4]  ;;  %v9475_v31 = vld [vmem:[%s8732_s3 + $0xa8] sm:$0x4] }
 0x1a4   : > { %v2299_v6 = vadd.f32 %v2043_v56, %v1915_v34  ;;  %v2300_v58 = vadd.f32 %v2044_v57, %v1916_v11  ;;  %v2301_v3 = vadd.f32 %v2045_v45, %v1917_v46  ;;  %v2302_v35 = vadd.f32 %v2046_v39, %v1918_v52  ;;  %v9500_v13 = vld [vmem:[%s8732_s3 + $0xbc] sm:$0x4] }
 0x1a5   : > { %v2303_v8 = vadd.f32 %v2047_v40, %v1919_v59  ;;  %v2304_v29 = vadd.f32 %v2048_v47, %v1920_v26  ;;  %v2305_v19 = vadd.f32 %v2049_v54, %v1921_v0  ;;  %v2306_v33 = vadd.f32 %v2050_v55, %v1922_v37 }
 0x1a6   : > { %v2307_v49 = vadd.f32 %v2051_v17, %v1923_v38  ;;  %v2308_v50 = vadd.f32 %v2052_v18, %v1924_v5  ;;  %v2309_v32 = vadd.f32 %v2053_v36, %v1925_v2  ;;  %v2550_v44 = vunpack.c.l.bf16 %v9463_v27 }
 0x1a7   : > { %v2551_v24 = vunpack.c.l.bf16 %v9457_v62  ;;  %v2552_v48 = vunpack.c.l.bf16 %v9460_v7  ;;  %v2553_v5 = vunpack.c.l.bf16 %v9466_v10  ;;  %v2554_v2 = vunpack.c.l.bf16 %v9469_v4 }
 0x1a8   : > { %v2555_v30 = vunpack.c.l.bf16 %v9478_v41  ;;  %v2556_v53 = vunpack.c.l.bf16 %v9481_v20  ;;  %v2557_v34 = vunpack.c.l.bf16 %v9484_v25  ;;  %v2558_v11 = vunpack.c.l.bf16 %v2430_v23 }
 0x1a9   : > { %v2559_v46 = vunpack.c.l.bf16 %v9472_v28  ;;  %v2560_v52 = vunpack.c.l.bf16 %v9475_v31  ;;  %v2561_v59 = vunpack.c.l.bf16 %v9488_v43  ;;  %v2562_v26 = vunpack.c.l.bf16 %v9491_v61 }
 0x1aa   : > { %v2563_v0 = vunpack.c.l.bf16 %v9494_v60  ;;  %v2564_v37 = vunpack.c.l.bf16 %v9497_v9  ;;  %v2565_v38 = vunpack.c.l.bf16 %v9500_v13  ;;  %v2806_v14 = vrot.slane %v2550_v44, 4 }
 0x1ab   : > { %v2807_v51 = vrot.slane %v2551_v24, 4  ;;  %v2808_v15 = vrot.slane %v2552_v48, 4  ;;  %v2809_v63 = vrot.slane %v2553_v5, 4  ;;  %v2810_v1 = vrot.slane %v2554_v2, 4 }
 0x1ac   : > { %v2811_v56 = vrot.slane %v2555_v30, 4  ;;  %v2812_v57 = vrot.slane %v2556_v53, 4  ;;  %v2813_v45 = vrot.slane %v2557_v34, 4  ;;  %v2814_v39 = vrot.slane %v2558_v11, 4 }
 0x1ad   : > { %v2815_v40 = vrot.slane %v2559_v46, 4  ;;  %v2816_v47 = vrot.slane %v2560_v52, 4  ;;  %v2817_v54 = vrot.slane %v2561_v59, 4  ;;  %v2818_v55 = vrot.slane %v2562_v26, 4 }
 0x1ae   : > { %v2819_v17 = vrot.slane %v2563_v0, 4  ;;  %v2820_v18 = vrot.slane %v2564_v37, 4  ;;  %v2821_v36 = vrot.slane %v2565_v38, 4  ;;  %v3062_v62 = vadd.f32 %v2806_v14, %v9448_v42 }
 0x1af   : > { %v3063_v7 = vadd.f32 %v2807_v51, %v9450_v12  ;;  %v3064_v27 = vadd.f32 %v2808_v15, %v9452_v21  ;;  %v3065_v10 = vadd.f32 %v2809_v63, %v9454_v16  ;;  %v3066_v4 = vadd.f32 %v2810_v1, %v2298_v22  ;;  %v9551_v63 = vld [vmem:[%s8732_s3 + $0x94] sm:$0x8]  ;;  %v9554_v1 = vld [vmem:[%s8732_s3 + $0x98] sm:$0x8] }
 0x1b0   : > { %v3067_v28 = vadd.f32 %v2811_v56, %v2299_v6  ;;  %v3068_v31 = vadd.f32 %v2812_v57, %v2300_v58  ;;  %v3069_v41 = vadd.f32 %v2813_v45, %v2301_v3  ;;  %v3070_v20 = vadd.f32 %v2814_v39, %v2302_v35  ;;  %v9557_v56 = vld [vmem:[%s8732_s3 + $0x9c] sm:$0x8] }
 0x1b1   : > { %v3071_v25 = vadd.f32 %v2815_v40, %v2303_v8  ;;  %v3072_v23 = vadd.f32 %v2816_v47, %v2304_v29  ;;  %v3073_v43 = vadd.f32 %v2817_v54, %v2305_v19  ;;  %v3074_v61 = vadd.f32 %v2818_v55, %v2306_v33  ;;  %v9560_v47 = vld [vmem:[%s8732_s3 + $0xa0] sm:$0x8]  ;;  %v9563_v54 = vld [vmem:[%s8732_s3 + $0xac] sm:$0x8]  ;;  %v9566_v55 = vld [vmem:[%s8732_s3 + $0xb0] sm:$0x8] }
 0x1b2   : > { %v3075_v60 = vadd.f32 %v2819_v17, %v2307_v49  ;;  %v3076_v9 = vadd.f32 %v2820_v18, %v2308_v50  ;;  %v3077_v13 = vadd.f32 %v2821_v36, %v2309_v32  ;;  %v3190_v14 = vrot.slane %v2550_v44, 5  ;;  %v9569_v17 = vld [vmem:[%s8732_s3 + $0xb4] sm:$0x8]  ;;  %v9572_v18 = vld [vmem:[%s8732_s3 + $0xb8] sm:$0x8] }
 0x1b3   : > { %v3191_v42 = vrot.slane %v2551_v24, 5  ;;  %v3192_v12 = vrot.slane %v2552_v48, 5  ;;  %v3193_v51 = vrot.slane %v2553_v5, 5  ;;  %v3194_v15 = vrot.slane %v2554_v2, 5  ;;  %v9530_v24 = vld [vmem:[%s8732_s3 + $0x84] sm:$0x8] }
 0x1b4   : > { %v3195_v21 = vrot.slane %v2555_v30, 5  ;;  %v3196_v16 = vrot.slane %v2556_v53, 5  ;;  %v3197_v22 = vrot.slane %v2557_v34, 5  ;;  %v3198_v6 = vrot.slane %v2558_v11, 5  ;;  %v9533_v48 = vld [vmem:[%s8732_s3 + $0x88] sm:$0x8] }
 0x1b5   : > { %v3199_v58 = vrot.slane %v2559_v46, 5  ;;  %v3200_v3 = vrot.slane %v2560_v52, 5  ;;  %v3201_v35 = vrot.slane %v2561_v59, 5  ;;  %v3202_v8 = vrot.slane %v2562_v26, 5  ;;  %v9536_v34 = vld [vmem:[%s8732_s3 + $0x80] sm:$0x8] }
 0x1b6   : > { %v3203_v29 = vrot.slane %v2563_v0, 5  ;;  %v3204_v19 = vrot.slane %v2564_v37, 5  ;;  %v3205_v33 = vrot.slane %v2565_v38, 5  ;;  %v9521_v49 = vadd.f32 %v3190_v14, %v3062_v62  ;;  %v9539_v11 = vld [vmem:[%s8732_s3 + $0x8c] sm:$0x8] }
 0x1b7   : > { %v9523_v50 = vadd.f32 %v3191_v42, %v3063_v7  ;;  %v9525_v32 = vadd.f32 %v3192_v12, %v3064_v27  ;;  %v9527_v44 = vadd.f32 %v3193_v51, %v3065_v10  ;;  %v3450_v5 = vadd.f32 %v3194_v15, %v3066_v4  ;;  %v9542_v46 = vld [vmem:[%s8732_s3 + $0x90] sm:$0x8]  ;;  %v9545_v52 = vld [vmem:[%s8732_s3 + $0xa4] sm:$0x8]  ;;  %v9548_v59 = vld [vmem:[%s8732_s3 + $0xa8] sm:$0x8] }
 0x1b8   : > { %v3451_v2 = vadd.f32 %v3195_v21, %v3067_v28  ;;  %v3452_v30 = vadd.f32 %v3196_v16, %v3068_v31  ;;  %v3453_v53 = vadd.f32 %v3197_v22, %v3069_v41  ;;  %v3454_v26 = vadd.f32 %v3198_v6, %v3070_v20  ;;  %v9575_v36 = vld [vmem:[%s8732_s3 + $0xbc] sm:$0x8] }
 0x1b9   : > { %v3455_v0 = vadd.f32 %v3199_v58, %v3071_v25  ;;  %v3456_v37 = vadd.f32 %v3200_v3, %v3072_v23  ;;  %v3457_v38 = vadd.f32 %v3201_v35, %v3073_v43  ;;  %v3458_v57 = vadd.f32 %v3202_v8, %v3074_v61 }
 0x1ba   : > { %v3459_v45 = vadd.f32 %v3203_v29, %v3075_v60  ;;  %v3460_v39 = vadd.f32 %v3204_v19, %v3076_v9  ;;  %v3461_v40 = vadd.f32 %v3205_v33, %v3077_v13  ;;  %v3702_v62 = vunpack.c.l.bf16 %v9536_v34 }
 0x1bb   : > { %v3703_v7 = vunpack.c.l.bf16 %v9530_v24  ;;  %v3704_v27 = vunpack.c.l.bf16 %v9533_v48  ;;  %v3705_v10 = vunpack.c.l.bf16 %v9539_v11  ;;  %v3706_v4 = vunpack.c.l.bf16 %v9542_v46 }
 0x1bc   : > { %v3707_v28 = vunpack.c.l.bf16 %v9551_v63  ;;  %v3708_v31 = vunpack.c.l.bf16 %v9554_v1  ;;  %v3709_v41 = vunpack.c.l.bf16 %v9557_v56  ;;  %v3710_v20 = vunpack.c.l.bf16 %v9560_v47 }
 0x1bd   : > { %v3711_v25 = vunpack.c.l.bf16 %v9545_v52  ;;  %v3712_v23 = vunpack.c.l.bf16 %v9548_v59  ;;  %v3713_v43 = vunpack.c.l.bf16 %v9563_v54  ;;  %v3714_v61 = vunpack.c.l.bf16 %v9566_v55 }
 0x1be   : > { %v3715_v60 = vunpack.c.l.bf16 %v9569_v17  ;;  %v3716_v9 = vunpack.c.l.bf16 %v9572_v18  ;;  %v3717_v13 = vunpack.c.l.bf16 %v9575_v36  ;;  %v3958_v14 = vrot.slane %v3702_v62, 6 }
 0x1bf   : > { %v3959_v42 = vrot.slane %v3703_v7, 6  ;;  %v3960_v12 = vrot.slane %v3704_v27, 6  ;;  %v3961_v51 = vrot.slane %v3705_v10, 6  ;;  %v3962_v15 = vrot.slane %v3706_v4, 6 }
 0x1c0   : > { %v3963_v21 = vrot.slane %v3707_v28, 6  ;;  %v3964_v16 = vrot.slane %v3708_v31, 6  ;;  %v3965_v22 = vrot.slane %v3709_v41, 6  ;;  %v3966_v6 = vrot.slane %v3710_v20, 6 }
 0x1c1   : > { %v3967_v58 = vrot.slane %v3711_v25, 6  ;;  %v3968_v3 = vrot.slane %v3712_v23, 6  ;;  %v3969_v35 = vrot.slane %v3713_v43, 6  ;;  %v3970_v8 = vrot.slane %v3714_v61, 6 }
 0x1c2   : > { %v3971_v29 = vrot.slane %v3715_v60, 6  ;;  %v3972_v19 = vrot.slane %v3716_v9, 6  ;;  %v3973_v33 = vrot.slane %v3717_v13, 6  ;;  %v4214_v24 = vadd.f32 %v3958_v14, %v9521_v49 }
 0x1c3   : > { %v4215_v48 = vadd.f32 %v3959_v42, %v9523_v50  ;;  %v4216_v34 = vadd.f32 %v3960_v12, %v9525_v32  ;;  %v4217_v11 = vadd.f32 %v3961_v51, %v9527_v44  ;;  %v4218_v46 = vadd.f32 %v3962_v15, %v3450_v5 }
 0x1c4   : > { %v4219_v52 = vadd.f32 %v3963_v21, %v3451_v2  ;;  %v4220_v59 = vadd.f32 %v3964_v16, %v3452_v30  ;;  %v4221_v63 = vadd.f32 %v3965_v22, %v3453_v53  ;;  %v4222_v1 = vadd.f32 %v3966_v6, %v3454_v26 }
 0x1c5   : > { %v4223_v56 = vadd.f32 %v3967_v58, %v3455_v0  ;;  %v4224_v47 = vadd.f32 %v3968_v3, %v3456_v37  ;;  %v4225_v54 = vadd.f32 %v3969_v35, %v3457_v38  ;;  %v4226_v55 = vadd.f32 %v3970_v8, %v3458_v57 }
 0x1c6   : > { %v4227_v17 = vadd.f32 %v3971_v29, %v3459_v45  ;;  %v4228_v18 = vadd.f32 %v3972_v19, %v3460_v39  ;;  %v4229_v36 = vadd.f32 %v3973_v33, %v3461_v40  ;;  %v4343_v14 = vrot.slane %v3703_v7, 7 }
 0x1c7   : > { %v4344_v49 = vrot.slane %v3704_v27, 7  ;;  %v4345_v42 = vrot.slane %v3705_v10, 7  ;;  %v4346_v50 = vrot.slane %v3706_v4, 7  ;;  %v4342_v12 = vrot.slane %v3702_v62, 7 }
 0x1c8   : > { %v4347_v32 = vrot.slane %v3707_v28, 7  ;;  %v4348_v44 = vrot.slane %v3708_v31, 7  ;;  %v4349_v51 = vrot.slane %v3709_v41, 7  ;;  %v4351_v5 = vrot.slane %v3711_v25, 7 }
 0x1c9   : > { %v4352_v2 = vrot.slane %v3712_v23, 7  ;;  %v4353_v30 = vrot.slane %v3713_v43, 7  ;;  %v4354_v53 = vrot.slane %v3714_v61, 7  ;;  %v4350_v26 = vrot.slane %v3710_v20, 7 }
 0x1ca   : > { %v4355_v0 = vrot.slane %v3715_v60, 7  ;;  %v4356_v37 = vrot.slane %v3716_v9, 7  ;;  %v4357_v38 = vrot.slane %v3717_v13, 7  ;;  %v4599_v57 = vadd.f32 %v4343_v14, %v4215_v48 }
 0x1cb   : > { %v4600_v45 = vadd.f32 %v4344_v49, %v4216_v34  ;;  %v4601_v39 = vadd.f32 %v4345_v42, %v4217_v11  ;;  %v4602_v40 = vadd.f32 %v4346_v50, %v4218_v46  ;;  %v4598_v7 = vadd.f32 %v4342_v12, %v4214_v24 }
 0x1cc   : > { %v4603_v27 = vadd.f32 %v4347_v32, %v4219_v52  ;;  %v4604_v10 = vadd.f32 %v4348_v44, %v4220_v59  ;;  %v4605_v4 = vadd.f32 %v4349_v51, %v4221_v63  ;;  %v4607_v62 = vadd.f32 %v4351_v5, %v4223_v56 }
 0x1cd   : > { %v4608_v28 = vadd.f32 %v4352_v2, %v4224_v47  ;;  %v4609_v31 = vadd.f32 %v4353_v30, %v4225_v54  ;;  %v4610_v41 = vadd.f32 %v4354_v53, %v4226_v55  ;;  %v4606_v25 = vadd.f32 %v4350_v26, %v4222_v1 }
 0x1ce   : > { %v4611_v23 = vadd.f32 %v4355_v0, %v4227_v17  ;;  %v4612_v43 = vadd.f32 %v4356_v37, %v4228_v18  ;;  %v4613_v61 = vadd.f32 %v4357_v38, %v4229_v36  ;;  %v4727_v20 = vmul.f32 0.125, %v4599_v57 }
 0x1cf   : > { %v4728_v60 = vmul.f32 0.125, %v4600_v45  ;;  %v4729_v9 = vmul.f32 0.125, %v4601_v39  ;;  %v4730_v13 = vmul.f32 0.125, %v4602_v40  ;;  %v4726_v15 = vmul.f32 0.125, %v4598_v7 }
 0x1d0   : > { %v4731_v21 = vmul.f32 0.125, %v4603_v27  ;;  %v4732_v16 = vmul.f32 0.125, %v4604_v10  ;;  %v4733_v22 = vmul.f32 0.125, %v4605_v4  ;;  %v4735_v6 = vmul.f32 0.125, %v4607_v62  ;;  %v444_v62 = vld [vmem:[%s8724_s19 + $0x18] sm:$0xff]  }
 0x1d1   : > { %v4736_v58 = vmul.f32 0.125, %v4608_v28  ;;  %v4737_v3 = vmul.f32 0.125, %v4609_v31  ;;  %v4738_v35 = vmul.f32 0.125, %v4610_v41  ;;  %v4734_v8 = vmul.f32 0.125, %v4606_v25  ;;  %v9600_v28 = vld [vmem:[%s8732_s3 + $0xc4] sm:$0x1]  ;;  %5169 = vmatmul.mubr.bf16.gmra.mrb[12].mxu0 %v444_v62 }
 0x1d2   : > { %v4739_v29 = vmul.f32 0.125, %v4611_v23  ;;  %v4740_v19 = vmul.f32 0.125, %v4612_v43  ;;  %v4741_v33 = vmul.f32 0.125, %v4613_v61  ;;  %v4855_v24 = vpack.c.bf16 %v4727_v20, %v4727_v20  ;;  %v9604_v43 = vld [vmem:[%s8732_s3 + $0xc0] sm:$0x1] }
 0x1d3   : > { %v4856_v48 = vpack.c.bf16 %v4728_v60, %v4728_v60  ;;  %v4857_v34 = vpack.c.bf16 %v4729_v9, %v4729_v9  ;;  %v4858_v11 = vpack.c.bf16 %v4730_v13, %v4730_v13  ;;  %v4854_v46 = vpack.c.bf16 %v4726_v15, %v4726_v15  ;;  %v9609_v13 = vld [vmem:[%s8732_s3 + $0xc8] sm:$0x1]  ;;  %v9612_v15 = vld [vmem:[%s8732_s3 + $0xcc] sm:$0x1] }
 0x1d4   : > { %v4859_v52 = vpack.c.bf16 %v4731_v21, %v4731_v21  ;;  %v4860_v59 = vpack.c.bf16 %v4732_v16, %v4732_v16  ;;  %v4861_v63 = vpack.c.bf16 %v4733_v22, %v4733_v22  ;;  %v4863_v1 = vpack.c.bf16 %v4735_v6, %v4735_v6  ;;  %v9617_v6 = vld [vmem:[%s8732_s3 + $0xd0] sm:$0x1] }
 0x1d5   : > { %v4864_v56 = vpack.c.bf16 %v4736_v58, %v4736_v58  ;;  %v4865_v47 = vpack.c.bf16 %v4737_v3, %v4737_v3  ;;  %v4866_v54 = vpack.c.bf16 %v4738_v35, %v4738_v35  ;;  %v4862_v55 = vpack.c.bf16 %v4734_v8, %v4734_v8  ;;  %v9620_v58 = vld [vmem:[%s8732_s3 + $0xd4] sm:$0x1] }
 0x1d6   : > { %v4867_v17 = vpack.c.bf16 %v4739_v29, %v4739_v29  ;;  %v4868_v18 = vpack.c.bf16 %v4740_v19, %v4740_v19  ;;  %v4869_v36 = vpack.c.bf16 %v4741_v33, %v4741_v33  ;;  %v5429_v14 = vunpack.c.l.b16 %v4855_v24  ;;  %v9625_v29 = vld [vmem:[%s8732_s3 + $0xd8] sm:$0x1]  ;;  %v9628_v19 = vld [vmem:[%s8732_s3 + $0xdc] sm:$0x1] }
 0x1d7   : > { %v5430_v49 = vunpack.c.l.b16 %v4856_v48  ;;  %v5431_v42 = vunpack.c.l.b16 %v4857_v34  ;;  %v5432_v50 = vunpack.c.l.b16 %v4858_v11  ;;  %v5428_v12 = vunpack.c.l.b16 %v4854_v46  ;;  %v526_v34 = vld [vmem:[%s8732_s3 + $0xe0] sm:$0x1]  ;;  %v527_v11 = vld [vmem:[%s8732_s3 + $0xe4] sm:$0x1]  ;;  %v9636_v46 = vld [vmem:[%s8732_s3 + $0xe8] sm:$0x1] }
 0x1d8   : > { %v5433_v32 = vunpack.c.l.b16 %v4859_v52  ;;  %v5434_v44 = vunpack.c.l.b16 %v4860_v59  ;;  %v5435_v51 = vunpack.c.l.b16 %v4861_v63  ;;  %v5437_v5 = vunpack.c.l.b16 %v4863_v1 }
 0x1d9   : > { %v5438_v2 = vunpack.c.l.b16 %v4864_v56  ;;  %v5439_v30 = vunpack.c.l.b16 %v4865_v47  ;;  %v5440_v53 = vunpack.c.l.b16 %v4866_v54  ;;  %v5436_v26 = vunpack.c.l.b16 %v4862_v55  ;;  %v529_v56 = vld [vmem:[%s8732_s3 + $0xec] sm:$0x1]  ;;  %v530_v47 = vld [vmem:[%s8732_s3 + $0xf0] sm:$0x1]  ;;  %v531_v54 = vld [vmem:[%s8732_s3 + $0xf4] sm:$0x1] }
 0x1da   : > { %v5441_v0 = vunpack.c.l.b16 %v4867_v17  ;;  %v5442_v37 = vunpack.c.l.b16 %v4868_v18  ;;  %v5587_v38 = vrot.slane %v5429_v14, 7  ;;  %v5443_v57 = vunpack.c.l.b16 %v4869_v36  ;;  %v532_v14 = vld [vmem:[%s8732_s3 + $0xf8] sm:$0x1] }
 0x1db   : > { %v5589_v45 = vrot.slane %v5430_v49, 6  ;;  %v5591_v39 = vrot.slane %v5431_v42, 5  ;;  %v5593_v40 = vrot.slane %v5432_v50, 4  ;;  %v5595_v27 = vrot.slane %v5433_v32, 3  ;;  %v533_v49 = vld [vmem:[%s8732_s3 + $0xfc] sm:$0x1] }
 0x1dc   : > { %v5588_v7 = vsel %vm5525_vm0, %v5587_v38, %v5428_v12  ;;  %v5597_v10 = vrot.slane %v5434_v44, 2  ;;  %v5601_v4 = vrot.slane %v5437_v5, 7  ;;  %v5603_v41 = vrot.slane %v5438_v2, 6 }
 0x1dd   : > { %v5590_v31 = vsel %vm5528_vm1, %v5589_v45, %v5588_v7  ;;  %v5605_v25 = vrot.slane %v5439_v30, 5  ;;  %v5607_v23 = vrot.slane %v5440_v53, 4  ;;  %v5599_v20 = vrot.slane %v5435_v51, 1 }
 0x1de   : > { %v5592_v61 = vsel %vm5531_vm2, %v5591_v39, %v5590_v31  ;;  %v5602_v60 = vsel %vm5525_vm0, %v5601_v4, %v5436_v26  ;;  %v5609_v9 = vrot.slane %v5441_v0, 3  ;;  %v5611_v22 = vrot.slane %v5442_v37, 2 }
 0x1df   : > { %v5594_v21 = vsel %vm5534_vm3, %v5593_v40, %v5592_v61  ;;  %v5604_v16 = vsel %vm5528_vm1, %v5603_v41, %v5602_v60  ;;  %v5613_v8 = vrot.slane %v5443_v57, 1  ;;  %v646_v33 = vunpack.c.l.bf16 %v9604_v43  ;;  %v9665_v60 = vld [vmem:[%s8732_s3 + $0xc4] sm:$0x2] }
 0x1e0   : > { %v5596_v3 = vsel %vm5537_vm4, %v5595_v27, %v5594_v21  ;;  %v5606_v35 = vsel %vm5531_vm2, %v5605_v25, %v5604_v16  ;;  %v647_v52 = vunpack.c.l.bf16 %v9600_v28  ;;  %v648_v59 = vunpack.c.l.bf16 %v9609_v13  ;;  %v9676_v16 = vld [vmem:[%s8732_s3 + $0xc0] sm:$0x2] }
 0x1e1   : > { %v5598_v24 = vsel %vm5540_vm5, %v5597_v10, %v5596_v3  ;;  %v5608_v48 = vsel %vm5534_vm3, %v5607_v23, %v5606_v35  ;;  %v649_v55 = vunpack.c.l.bf16 %v9612_v15  ;;  %v650_v17 = vunpack.c.l.bf16 %v9617_v6  ;;  %v9682_v6 = vld [vmem:[%s8732_s3 + $0xe4] sm:$0x2] }
 0x1e2   : > { %v5600_v63 = vsel %vm5543_vm6, %v5599_v20, %v5598_v24  ;;  %v5610_v1 = vsel %vm5537_vm4, %v5609_v9, %v5608_v48  ;;  %v12547_v18 = vmov 0   ;;  %v651_v42 = vunpack.c.l.bf16 %v9620_v58  ;;  %v9694_v24 = vld [vmem:[%s8732_s3 + $0xe8] sm:$0x2] }
 0x1e3   : > { %5178 = vmatprep.mubr.bf16.mxu0 %v12547_v18  ;;  %v5612_v36 = vsel %vm5540_vm5, %v5611_v22, %v5610_v1  ;;  %v652_v50 = vunpack.c.l.bf16 %v9625_v29  ;;  %v653_v12 = vunpack.c.l.bf16 %v9628_v19  ;;  %v654_v44 = vunpack.c.l.bf16 %v526_v34  ;;  %v9679_v22 = vld [vmem:[%s8732_s3 + $0xc8] sm:$0x2]  ;;  %v9685_v29 = vld [vmem:[%s8732_s3 + $0xcc] sm:$0x2]  ;;  %v9688_v19 = vld [vmem:[%s8732_s3 + $0xd0] sm:$0x2] }
 0x1e4   : > { %v5614_v32 = vsel %vm5543_vm6, %v5613_v8, %v5612_v36  ;;  %v655_v51 = vunpack.c.l.bf16 %v527_v11  ;;  %v656_v5 = vunpack.c.l.bf16 %v9636_v46  ;;  %v657_v30 = vunpack.c.l.bf16 %v529_v56 }
 0x1e5   : > { %v9656_v2 = vpack.c.b16 %v5614_v32, %v5600_v63  ;;  %v658_v53 = vunpack.c.l.bf16 %v530_v47  ;;  %v659_v26 = vunpack.c.l.bf16 %v531_v54  ;;  %v660_v0 = vunpack.c.l.bf16 %v532_v14  ;;  %v9703_v63 = vld [vmem:[%s8732_s3 + $0xe0] sm:$0x2]  ;;  %v9706_v47 = vld [vmem:[%s8732_s3 + $0xec] sm:$0x2]  ;;  %v9709_v54 = vld [vmem:[%s8732_s3 + $0xf0] sm:$0x2] }
 0x1e6   : > { %v661_v37 = vunpack.c.l.bf16 %v533_v49  ;;  %v902_v38 = vrot.slane %v646_v33, 1  ;;  %v903_v57 = vrot.slane %v647_v52, 1  ;;  %v904_v45 = vrot.slane %v648_v59, 1  ;;  %v1300_v14 = vld [vmem:[%s8732_s3 + $0xf8] sm:$0x2] }
 0x1e7   : > { %12548 = vst [vmem:[#allocation22_spill] sm:$0xff] %v9656_v2  ;;  %5952 = vmatmul.mubr.bf16.gmra.mrb[8].mxu1 %v9656_v2  ;;  %v905_v39 = vrot.slane %v649_v55, 1  ;;  %v906_v40 = vrot.slane %v650_v17, 1  ;;  %v907_v7 = vrot.slane %v651_v42, 1  ;;  %v908_v27 = vrot.slane %v652_v50, 1 }
 0x1e8   : > { %5961 = vmatprep.mubr.bf16.mxu1 %v12547_v18  ;;  %v909_v10 = vrot.slane %v653_v12, 1  ;;  %v910_v4 = vrot.slane %v654_v44, 1  ;;  %v911_v62 = vrot.slane %v655_v51, 1  ;;  %v912_v28 = vrot.slane %v656_v5, 1  ;;  %v1301_v49 = vld [vmem:[%s8732_s3 + $0xfc] sm:$0x2] }
 0x1e9   : > { %v913_v31 = vrot.slane %v657_v30, 1  ;;  %v914_v41 = vrot.slane %v658_v53, 1  ;;  %v915_v25 = vrot.slane %v659_v26, 1  ;;  %v916_v23 = vrot.slane %v660_v0, 1 }
 0x1ea   : > { %v917_v43 = vrot.slane %v661_v37, 1  ;;  %v9660_v61 = vadd.f32 %v902_v38, %v646_v33  ;;  %v9662_v20 = vadd.f32 %v903_v57, %v647_v52  ;;  %v9667_v9 = vadd.f32 %v904_v45, %v648_v59  ;;  %v9691_v33 = vld [vmem:[%s8732_s3 + $0xd4] sm:$0x2]  ;;  %v9697_v52 = vld [vmem:[%s8732_s3 + $0xd8] sm:$0x2] }
 0x1eb   : > { %v9669_v13 = vadd.f32 %v905_v39, %v649_v55  ;;  %v9671_v15 = vadd.f32 %v906_v40, %v650_v17  ;;  %v9673_v21 = vadd.f32 %v907_v7, %v651_v42  ;;  %v1164_v58 = vadd.f32 %v908_v27, %v652_v50  ;;  %v9700_v59 = vld [vmem:[%s8732_s3 + $0xdc] sm:$0x2]  ;;  %v9712_v55 = vld [vmem:[%s8732_s3 + $0xf4] sm:$0x2] }
 0x1ec   : > { %v1165_v3 = vadd.f32 %v909_v10, %v653_v12  ;;  %v1166_v35 = vadd.f32 %v910_v4, %v654_v44  ;;  %v1167_v8 = vadd.f32 %v911_v62, %v655_v51  ;;  %v1168_v48 = vadd.f32 %v912_v28, %v656_v5 }
 0x1ed   : > { %v1169_v34 = vadd.f32 %v913_v31, %v657_v30  ;;  %v1170_v11 = vadd.f32 %v914_v41, %v658_v53  ;;  %v1171_v46 = vadd.f32 %v915_v25, %v659_v26  ;;  %v1172_v1 = vadd.f32 %v916_v23, %v660_v0 }
 0x1ee   : > { %v1173_v56 = vadd.f32 %v917_v43, %v661_v37  ;;  %v1414_v17 = vunpack.c.l.bf16 %v9676_v16  ;;  %v1415_v36 = vunpack.c.l.bf16 %v9665_v60  ;;  %v1416_v42 = vunpack.c.l.bf16 %v9679_v22 }
 0x1ef   : > { %v1417_v50 = vunpack.c.l.bf16 %v9685_v29  ;;  %v1418_v12 = vunpack.c.l.bf16 %v9688_v19  ;;  %v1419_v32 = vunpack.c.l.bf16 %v9691_v33  ;;  %v1420_v44 = vunpack.c.l.bf16 %v9697_v52 }
 0x1f0   : > { %v1421_v51 = vunpack.c.l.bf16 %v9700_v59  ;;  %v1422_v5 = vunpack.c.l.bf16 %v9703_v63  ;;  %v1423_v30 = vunpack.c.l.bf16 %v9682_v6  ;;  %v1424_v53 = vunpack.c.l.bf16 %v9694_v24 }
 0x1f1   : > { %v1425_v26 = vunpack.c.l.bf16 %v9706_v47  ;;  %v1426_v0 = vunpack.c.l.bf16 %v9709_v54  ;;  %v1427_v37 = vunpack.c.l.bf16 %v9712_v55  ;;  %v1428_v38 = vunpack.c.l.bf16 %v1300_v14 }
 0x1f2   : > { %v1429_v57 = vunpack.c.l.bf16 %v1301_v49  ;;  %v1670_v45 = vrot.slane %v1414_v17, 2  ;;  %v1671_v39 = vrot.slane %v1415_v36, 2  ;;  %v1672_v40 = vrot.slane %v1416_v42, 2 }
 0x1f3   : > { %v1673_v7 = vrot.slane %v1417_v50, 2  ;;  %v1674_v27 = vrot.slane %v1418_v12, 2  ;;  %v1675_v10 = vrot.slane %v1419_v32, 2  ;;  %v1676_v4 = vrot.slane %v1420_v44, 2 }
 0x1f4   : > { %v1677_v62 = vrot.slane %v1421_v51, 2  ;;  %v1678_v28 = vrot.slane %v1422_v5, 2  ;;  %v1679_v31 = vrot.slane %v1423_v30, 2  ;;  %v1680_v41 = vrot.slane %v1424_v53, 2 }
 0x1f5   : > { %v1681_v25 = vrot.slane %v1425_v26, 2  ;;  %v1682_v23 = vrot.slane %v1426_v0, 2  ;;  %v1683_v43 = vrot.slane %v1427_v37, 2  ;;  %v1684_v60 = vrot.slane %v1428_v38, 2 }
 0x1f6   : > { %v1685_v16 = vrot.slane %v1429_v57, 2  ;;  %v1926_v22 = vadd.f32 %v1670_v45, %v9660_v61  ;;  %v1927_v6 = vadd.f32 %v1671_v39, %v9662_v20  ;;  %v1928_v29 = vadd.f32 %v1672_v40, %v9667_v9 }
 0x1f7   : > { %v1929_v19 = vadd.f32 %v1673_v7, %v9669_v13  ;;  %v1930_v33 = vadd.f32 %v1674_v27, %v9671_v15  ;;  %v1931_v24 = vadd.f32 %v1675_v10, %v9673_v21  ;;  %v1932_v52 = vadd.f32 %v1676_v4, %v1164_v58 }
 0x1f8   : > { %v1933_v59 = vadd.f32 %v1677_v62, %v1165_v3  ;;  %v1934_v63 = vadd.f32 %v1678_v28, %v1166_v35  ;;  %v1935_v47 = vadd.f32 %v1679_v31, %v1167_v8  ;;  %v1936_v54 = vadd.f32 %v1680_v41, %v1168_v48  ;;  %v9773_v62 = vld [vmem:[%s8732_s3 + $0xd8] sm:$0x4]  ;;  %v9776_v28 = vld [vmem:[%s8732_s3 + $0xdc] sm:$0x4]  ;;  %v9779_v31 = vld [vmem:[%s8732_s3 + $0xe0] sm:$0x4] }
 0x1f9   : > { %v1937_v55 = vadd.f32 %v1681_v25, %v1169_v34  ;;  %v1938_v14 = vadd.f32 %v1682_v23, %v1170_v11  ;;  %v1939_v49 = vadd.f32 %v1683_v43, %v1171_v46  ;;  %v1940_v2 = vadd.f32 %v1684_v60, %v1172_v1  ;;  %v9782_v23 = vld [vmem:[%s8732_s3 + $0xec] sm:$0x4]  ;;  %v9785_v43 = vld [vmem:[%s8732_s3 + $0xf0] sm:$0x4]  ;;  %v9788_v60 = vld [vmem:[%s8732_s3 + $0xf4] sm:$0x4] }
 0x1fa   : > { %v1941_v61 = vadd.f32 %v1685_v16, %v1173_v56  ;;  %v2054_v45 = vrot.slane %v1414_v17, 3  ;;  %v2055_v20 = vrot.slane %v1415_v36, 3  ;;  %v2056_v39 = vrot.slane %v1416_v42, 3  ;;  %v9741_v56 = vld [vmem:[%s8732_s3 + $0xc4] sm:$0x4] }
 0x1fb   : > { %v2057_v9 = vrot.slane %v1417_v50, 3  ;;  %v2058_v13 = vrot.slane %v1418_v12, 3  ;;  %v2059_v40 = vrot.slane %v1419_v32, 3  ;;  %v2060_v15 = vrot.slane %v1420_v44, 3  ;;  %v9752_v12 = vld [vmem:[%s8732_s3 + $0xc0] sm:$0x4] }
 0x1fc   : > { %v2061_v7 = vrot.slane %v1421_v51, 3  ;;  %v2062_v21 = vrot.slane %v1422_v5, 3  ;;  %v2063_v58 = vrot.slane %v1423_v30, 3  ;;  %v2064_v3 = vrot.slane %v1424_v53, 3  ;;  %v9755_v32 = vld [vmem:[%s8732_s3 + $0xc8] sm:$0x4] }
 0x1fd   : > { %v2065_v35 = vrot.slane %v1425_v26, 3  ;;  %v2066_v8 = vrot.slane %v1426_v0, 3  ;;  %v2067_v48 = vrot.slane %v1427_v37, 3  ;;  %v2068_v34 = vrot.slane %v1428_v38, 3  ;;  %v9758_v44 = vld [vmem:[%s8732_s3 + $0xe4] sm:$0x4] }
 0x1fe   : > { %v2069_v11 = vrot.slane %v1429_v57, 3  ;;  %v9736_v46 = vadd.f32 %v2054_v45, %v1926_v22  ;;  %v9738_v1 = vadd.f32 %v2055_v20, %v1927_v6  ;;  %v9743_v17 = vadd.f32 %v2056_v39, %v1928_v29  ;;  %v9761_v26 = vld [vmem:[%s8732_s3 + $0xcc] sm:$0x4]  ;;  %v9764_v0 = vld [vmem:[%s8732_s3 + $0xd0] sm:$0x4] }
 0x1ff   : > { %v9745_v36 = vadd.f32 %v2057_v9, %v1929_v19  ;;  %v9747_v42 = vadd.f32 %v2058_v13, %v1930_v33  ;;  %v9749_v50 = vadd.f32 %v2059_v40, %v1931_v24  ;;  %v2316_v51 = vadd.f32 %v2060_v15, %v1932_v52  ;;  %v9767_v37 = vld [vmem:[%s8732_s3 + $0xd4] sm:$0x4]  ;;  %v9770_v38 = vld [vmem:[%s8732_s3 + $0xe8] sm:$0x4]  ;;  %v2452_v6 = vld [vmem:[%s8732_s3 + $0xf8] sm:$0x4] }
 0x200   : > { %v2317_v5 = vadd.f32 %v2061_v7, %v1933_v59  ;;  %v2318_v30 = vadd.f32 %v2062_v21, %v1934_v63  ;;  %v2319_v53 = vadd.f32 %v2063_v58, %v1935_v47  ;;  %v2320_v57 = vadd.f32 %v2064_v3, %v1936_v54  ;;  %v2453_v29 = vld [vmem:[%s8732_s3 + $0xfc] sm:$0x4] }
 0x201   : > { %v2321_v27 = vadd.f32 %v2065_v35, %v1937_v55  ;;  %v2322_v10 = vadd.f32 %v2066_v8, %v1938_v14  ;;  %v2323_v4 = vadd.f32 %v2067_v48, %v1939_v49  ;;  %v2324_v41 = vadd.f32 %v2068_v34, %v1940_v2 }
 0x202   : > { %v2325_v25 = vadd.f32 %v2069_v11, %v1941_v61  ;;  %v2566_v16 = vunpack.c.l.bf16 %v9752_v12  ;;  %v2567_v22 = vunpack.c.l.bf16 %v9741_v56  ;;  %v2568_v19 = vunpack.c.l.bf16 %v9755_v32 }
 0x203   : > { %v2569_v33 = vunpack.c.l.bf16 %v9761_v26  ;;  %v2570_v24 = vunpack.c.l.bf16 %v9764_v0  ;;  %v2571_v2 = vunpack.c.l.bf16 %v9767_v37  ;;  %v2572_v52 = vunpack.c.l.bf16 %v9773_v62 }
 0x204   : > { %v2573_v59 = vunpack.c.l.bf16 %v9776_v28  ;;  %v2574_v63 = vunpack.c.l.bf16 %v9779_v31  ;;  %v2575_v47 = vunpack.c.l.bf16 %v9758_v44  ;;  %v2576_v54 = vunpack.c.l.bf16 %v9770_v38 }
 0x205   : > { %v2577_v55 = vunpack.c.l.bf16 %v9782_v23  ;;  %v2578_v14 = vunpack.c.l.bf16 %v9785_v43  ;;  %v2579_v49 = vunpack.c.l.bf16 %v9788_v60  ;;  %v2580_v61 = vunpack.c.l.bf16 %v2452_v6 }
 0x206   : > { %v2581_v45 = vunpack.c.l.bf16 %v2453_v29  ;;  %v2822_v20 = vrot.slane %v2566_v16, 4  ;;  %v2823_v39 = vrot.slane %v2567_v22, 4  ;;  %v2824_v9 = vrot.slane %v2568_v19, 4 }
 0x207   : > { %v2825_v13 = vrot.slane %v2569_v33, 4  ;;  %v2826_v40 = vrot.slane %v2570_v24, 4  ;;  %v2827_v15 = vrot.slane %v2571_v2, 4  ;;  %v2828_v7 = vrot.slane %v2572_v52, 4 }
 0x208   : > { %v2829_v21 = vrot.slane %v2573_v59, 4  ;;  %v2830_v58 = vrot.slane %v2574_v63, 4  ;;  %v2831_v3 = vrot.slane %v2575_v47, 4  ;;  %v2832_v35 = vrot.slane %v2576_v54, 4 }
 0x209   : > { %v2833_v8 = vrot.slane %v2577_v55, 4  ;;  %v2834_v48 = vrot.slane %v2578_v14, 4  ;;  %v2835_v34 = vrot.slane %v2579_v49, 4  ;;  %v2836_v11 = vrot.slane %v2580_v61, 4 }
 0x20a   : > { %v2837_v56 = vrot.slane %v2581_v45, 4  ;;  %v3078_v12 = vadd.f32 %v2822_v20, %v9736_v46  ;;  %v3079_v32 = vadd.f32 %v2823_v39, %v9738_v1  ;;  %v3080_v44 = vadd.f32 %v2824_v9, %v9743_v17 }
 0x20b   : > { %v3081_v26 = vadd.f32 %v2825_v13, %v9745_v36  ;;  %v3082_v0 = vadd.f32 %v2826_v40, %v9747_v42  ;;  %v3083_v37 = vadd.f32 %v2827_v15, %v9749_v50  ;;  %v3084_v38 = vadd.f32 %v2828_v7, %v2316_v51 }
 0x20c   : > { %v3085_v62 = vadd.f32 %v2829_v21, %v2317_v5  ;;  %v3086_v28 = vadd.f32 %v2830_v58, %v2318_v30  ;;  %v3087_v31 = vadd.f32 %v2831_v3, %v2319_v53  ;;  %v3088_v23 = vadd.f32 %v2832_v35, %v2320_v57  ;;  %v9849_v21 = vld [vmem:[%s8732_s3 + $0xd8] sm:$0x8]  ;;  %v9852_v58 = vld [vmem:[%s8732_s3 + $0xdc] sm:$0x8]  ;;  %v9855_v3 = vld [vmem:[%s8732_s3 + $0xe0] sm:$0x8] }
 0x20d   : > { %v3089_v43 = vadd.f32 %v2833_v8, %v2321_v27  ;;  %v3090_v60 = vadd.f32 %v2834_v48, %v2322_v10  ;;  %v3091_v6 = vadd.f32 %v2835_v34, %v2323_v4  ;;  %v3092_v29 = vadd.f32 %v2836_v11, %v2324_v41  ;;  %v9858_v48 = vld [vmem:[%s8732_s3 + $0xec] sm:$0x8]  ;;  %v9861_v34 = vld [vmem:[%s8732_s3 + $0xf0] sm:$0x8]  ;;  %v9864_v11 = vld [vmem:[%s8732_s3 + $0xf4] sm:$0x8] }
 0x20e   : > { %v3093_v46 = vadd.f32 %v2837_v56, %v2325_v25  ;;  %v3206_v20 = vrot.slane %v2566_v16, 5  ;;  %v3207_v1 = vrot.slane %v2567_v22, 5  ;;  %v3208_v39 = vrot.slane %v2568_v19, 5  ;;  %v9817_v25 = vld [vmem:[%s8732_s3 + $0xc4] sm:$0x8] }
 0x20f   : > { %v3209_v17 = vrot.slane %v2569_v33, 5  ;;  %v3210_v36 = vrot.slane %v2570_v24, 5  ;;  %v3211_v9 = vrot.slane %v2571_v2, 5  ;;  %v3212_v42 = vrot.slane %v2572_v52, 5  ;;  %v9828_v24 = vld [vmem:[%s8732_s3 + $0xc0] sm:$0x8] }
 0x210   : > { %v3213_v13 = vrot.slane %v2573_v59, 5  ;;  %v3214_v50 = vrot.slane %v2574_v63, 5  ;;  %v3215_v51 = vrot.slane %v2575_v47, 5  ;;  %v3216_v5 = vrot.slane %v2576_v54, 5  ;;  %v9831_v2 = vld [vmem:[%s8732_s3 + $0xc8] sm:$0x8] }
 0x211   : > { %v3217_v30 = vrot.slane %v2577_v55, 5  ;;  %v3218_v53 = vrot.slane %v2578_v14, 5  ;;  %v3219_v57 = vrot.slane %v2579_v49, 5  ;;  %v3220_v27 = vrot.slane %v2580_v61, 5  ;;  %v9834_v52 = vld [vmem:[%s8732_s3 + $0xe4] sm:$0x8] }
 0x212   : > { %v3221_v10 = vrot.slane %v2581_v45, 5  ;;  %v9812_v4 = vadd.f32 %v3206_v20, %v3078_v12  ;;  %v9814_v41 = vadd.f32 %v3207_v1, %v3079_v32  ;;  %v9819_v16 = vadd.f32 %v3208_v39, %v3080_v44  ;;  %v9837_v55 = vld [vmem:[%s8732_s3 + $0xcc] sm:$0x8]  ;;  %v9840_v14 = vld [vmem:[%s8732_s3 + $0xd0] sm:$0x8] }
 0x213   : > { %v9821_v22 = vadd.f32 %v3209_v17, %v3081_v26  ;;  %v9823_v19 = vadd.f32 %v3210_v36, %v3082_v0  ;;  %v9825_v33 = vadd.f32 %v3211_v9, %v3083_v37  ;;  %v3468_v59 = vadd.f32 %v3212_v42, %v3084_v38  ;;  %v9843_v49 = vld [vmem:[%s8732_s3 + $0xd4] sm:$0x8]  ;;  %v9846_v61 = vld [vmem:[%s8732_s3 + $0xe8] sm:$0x8]  ;;  %v3604_v32 = vld [vmem:[%s8732_s3 + $0xf8] sm:$0x8] }
 0x214   : > { %v3469_v63 = vadd.f32 %v3213_v13, %v3085_v62  ;;  %v3470_v47 = vadd.f32 %v3214_v50, %v3086_v28  ;;  %v3471_v54 = vadd.f32 %v3215_v51, %v3087_v31  ;;  %v3472_v45 = vadd.f32 %v3216_v5, %v3088_v23  ;;  %v3605_v44 = vld [vmem:[%s8732_s3 + $0xfc] sm:$0x8] }
 0x215   : > { %v3473_v40 = vadd.f32 %v3217_v30, %v3089_v43  ;;  %v3474_v15 = vadd.f32 %v3218_v53, %v3090_v60  ;;  %v3475_v7 = vadd.f32 %v3219_v57, %v3091_v6  ;;  %v3476_v35 = vadd.f32 %v3220_v27, %v3092_v29 }
 0x216   : > { %v3477_v8 = vadd.f32 %v3221_v10, %v3093_v46  ;;  %v3718_v56 = vunpack.c.l.bf16 %v9828_v24  ;;  %v3719_v12 = vunpack.c.l.bf16 %v9817_v25  ;;  %v3720_v26 = vunpack.c.l.bf16 %v9831_v2 }
 0x217   : > { %v3721_v0 = vunpack.c.l.bf16 %v9837_v55  ;;  %v3722_v37 = vunpack.c.l.bf16 %v9840_v14  ;;  %v3723_v38 = vunpack.c.l.bf16 %v9843_v49  ;;  %v3724_v62 = vunpack.c.l.bf16 %v9849_v21 }
 0x218   : > { %v3725_v28 = vunpack.c.l.bf16 %v9852_v58  ;;  %v3726_v31 = vunpack.c.l.bf16 %v9855_v3  ;;  %v3727_v23 = vunpack.c.l.bf16 %v9834_v52  ;;  %v3728_v43 = vunpack.c.l.bf16 %v9846_v61 }
 0x219   : > { %v3729_v60 = vunpack.c.l.bf16 %v9858_v48  ;;  %v3730_v6 = vunpack.c.l.bf16 %v9861_v34  ;;  %v3731_v29 = vunpack.c.l.bf16 %v9864_v11  ;;  %v3732_v46 = vunpack.c.l.bf16 %v3604_v32 }
 0x21a   : > { %v3733_v20 = vunpack.c.l.bf16 %v3605_v44  ;;  %v3974_v1 = vrot.slane %v3718_v56, 6  ;;  %v3975_v39 = vrot.slane %v3719_v12, 6  ;;  %v3976_v17 = vrot.slane %v3720_v26, 6 }
 0x21b   : > { %v3977_v36 = vrot.slane %v3721_v0, 6  ;;  %v3978_v9 = vrot.slane %v3722_v37, 6  ;;  %v3979_v42 = vrot.slane %v3723_v38, 6  ;;  %v3980_v13 = vrot.slane %v3724_v62, 6 }
 0x21c   : > { %v3981_v50 = vrot.slane %v3725_v28, 6  ;;  %v3982_v51 = vrot.slane %v3726_v31, 6  ;;  %v3983_v5 = vrot.slane %v3727_v23, 6  ;;  %v3984_v30 = vrot.slane %v3728_v43, 6 }
 0x21d   : > { %v3985_v53 = vrot.slane %v3729_v60, 6  ;;  %v3986_v57 = vrot.slane %v3730_v6, 6  ;;  %v3987_v27 = vrot.slane %v3731_v29, 6  ;;  %v3988_v10 = vrot.slane %v3732_v46, 6 }
 0x21e   : > { %v3989_v25 = vrot.slane %v3733_v20, 6  ;;  %v4230_v24 = vadd.f32 %v3974_v1, %v9812_v4  ;;  %v4231_v2 = vadd.f32 %v3975_v39, %v9814_v41  ;;  %v4232_v52 = vadd.f32 %v3976_v17, %v9819_v16 }
 0x21f   : > { %v4233_v55 = vadd.f32 %v3977_v36, %v9821_v22  ;;  %v4234_v14 = vadd.f32 %v3978_v9, %v9823_v19  ;;  %v4235_v49 = vadd.f32 %v3979_v42, %v9825_v33  ;;  %v4236_v61 = vadd.f32 %v3980_v13, %v3468_v59 }
 0x220   : > { %v4237_v21 = vadd.f32 %v3981_v50, %v3469_v63  ;;  %v4238_v58 = vadd.f32 %v3982_v51, %v3470_v47  ;;  %v4239_v3 = vadd.f32 %v3983_v5, %v3471_v54  ;;  %v4240_v48 = vadd.f32 %v3984_v30, %v3472_v45 }
 0x221   : > { %v4241_v34 = vadd.f32 %v3985_v53, %v3473_v40  ;;  %v4242_v11 = vadd.f32 %v3986_v57, %v3474_v15  ;;  %v4243_v32 = vadd.f32 %v3987_v27, %v3475_v7  ;;  %v4244_v44 = vadd.f32 %v3988_v10, %v3476_v35 }
 0x222   : > { %v4245_v4 = vadd.f32 %v3989_v25, %v3477_v8  ;;  %v4359_v1 = vrot.slane %v3719_v12, 7  ;;  %v4360_v41 = vrot.slane %v3720_v26, 7  ;;  %v4361_v39 = vrot.slane %v3721_v0, 7 }
 0x223   : > { %v4362_v16 = vrot.slane %v3722_v37, 7  ;;  %v4363_v17 = vrot.slane %v3723_v38, 7  ;;  %v4364_v22 = vrot.slane %v3724_v62, 7  ;;  %v4358_v36 = vrot.slane %v3718_v56, 7 }
 0x224   : > { %v4365_v19 = vrot.slane %v3725_v28, 7  ;;  %v4367_v9 = vrot.slane %v3727_v23, 7  ;;  %v4368_v33 = vrot.slane %v3728_v43, 7  ;;  %v4366_v59 = vrot.slane %v3726_v31, 7 }
 0x225   : > { %v4369_v63 = vrot.slane %v3729_v60, 7  ;;  %v4370_v47 = vrot.slane %v3730_v6, 7  ;;  %v4371_v54 = vrot.slane %v3731_v29, 7  ;;  %v4372_v45 = vrot.slane %v3732_v46, 7 }
 0x226   : > { %v4373_v40 = vrot.slane %v3733_v20, 7  ;;  %v4615_v15 = vadd.f32 %v4359_v1, %v4231_v2  ;;  %v4616_v7 = vadd.f32 %v4360_v41, %v4232_v52  ;;  %v4617_v35 = vadd.f32 %v4361_v39, %v4233_v55 }
 0x227   : > { %v4618_v8 = vadd.f32 %v4362_v16, %v4234_v14  ;;  %v4619_v12 = vadd.f32 %v4363_v17, %v4235_v49  ;;  %v4620_v26 = vadd.f32 %v4364_v22, %v4236_v61  ;;  %v4614_v0 = vadd.f32 %v4358_v36, %v4230_v24 }
 0x228   : > { %v4621_v37 = vadd.f32 %v4365_v19, %v4237_v21  ;;  %v4623_v38 = vadd.f32 %v4367_v9, %v4239_v3  ;;  %v4624_v62 = vadd.f32 %v4368_v33, %v4240_v48  ;;  %v4622_v56 = vadd.f32 %v4366_v59, %v4238_v58 }
 0x229   : > { %v4625_v28 = vadd.f32 %v4369_v63, %v4241_v34  ;;  %v4626_v23 = vadd.f32 %v4370_v47, %v4242_v11  ;;  %v4627_v43 = vadd.f32 %v4371_v54, %v4243_v32  ;;  %v4628_v31 = vadd.f32 %v4372_v45, %v4244_v44 }
 0x22a   : > { %v4629_v60 = vadd.f32 %v4373_v40, %v4245_v4  ;;  %v4743_v6 = vmul.f32 0.125, %v4615_v15  ;;  %v4744_v29 = vmul.f32 0.125, %v4616_v7  ;;  %v4745_v46 = vmul.f32 0.125, %v4617_v35 }
 0x22b   : > { %v4746_v20 = vmul.f32 0.125, %v4618_v8  ;;  %v4747_v42 = vmul.f32 0.125, %v4619_v12  ;;  %v4748_v13 = vmul.f32 0.125, %v4620_v26  ;;  %v4742_v50 = vmul.f32 0.125, %v4614_v0 }
 0x22c   : > { %v4749_v51 = vmul.f32 0.125, %v4621_v37  ;;  %v4751_v5 = vmul.f32 0.125, %v4623_v38  ;;  %v4752_v30 = vmul.f32 0.125, %v4624_v62  ;;  %v4750_v53 = vmul.f32 0.125, %v4622_v56  ;;  %v446_v37 = vld [vmem:[%s8724_s19 + $0x20] sm:$0xff]  }
 0x22d   : > { %v4753_v57 = vmul.f32 0.125, %v4625_v28  ;;  %v4754_v27 = vmul.f32 0.125, %v4626_v23  ;;  %v4755_v10 = vmul.f32 0.125, %v4627_v43  ;;  %v4756_v25 = vmul.f32 0.125, %v4628_v31  ;;  %v9890_v38 = vld [vmem:[%s8732_s3 + $0x104] sm:$0x1]  ;;  %5179 = vmatmul.mubr.bf16.gmra.mrb[16].mxu0 %v446_v37 }
 0x22e   : > { %v4757_v24 = vmul.f32 0.125, %v4629_v60  ;;  %v4871_v2 = vpack.c.bf16 %v4743_v6, %v4743_v6  ;;  %v4872_v52 = vpack.c.bf16 %v4744_v29, %v4744_v29  ;;  %v4873_v55 = vpack.c.bf16 %v4745_v46, %v4745_v46  ;;  %v9894_v43 = vld [vmem:[%s8732_s3 + $0x100] sm:$0x1]  ;;  %v9898_v46 = vld [vmem:[%s8732_s3 + $0x108] sm:$0x1]  ;;  %5188 = vmatprep.mubr.bf16.mxu0 %v12547_v18 }
 0x22f   : > { %v4874_v14 = vpack.c.bf16 %v4746_v20, %v4746_v20  ;;  %v4875_v49 = vpack.c.bf16 %v4747_v42, %v4747_v42  ;;  %v4876_v61 = vpack.c.bf16 %v4748_v13, %v4748_v13  ;;  %v4870_v21 = vpack.c.bf16 %v4742_v50, %v4742_v50  ;;  %v9903_v50 = vld [vmem:[%s8732_s3 + $0x10c] sm:$0x1] }
 0x230   : > { %v4877_v58 = vpack.c.bf16 %v4749_v51, %v4749_v51  ;;  %v4879_v3 = vpack.c.bf16 %v4751_v5, %v4751_v5  ;;  %v4880_v48 = vpack.c.bf16 %v4752_v30, %v4752_v30  ;;  %v4878_v34 = vpack.c.bf16 %v4750_v53, %v4750_v53  ;;  %v9906_v51 = vld [vmem:[%s8732_s3 + $0x110] sm:$0x1] }
 0x231   : > { %v4881_v11 = vpack.c.bf16 %v4753_v57, %v4753_v57  ;;  %v4882_v32 = vpack.c.bf16 %v4754_v27, %v4754_v27  ;;  %v4883_v44 = vpack.c.bf16 %v4755_v10, %v4755_v10  ;;  %v4884_v4 = vpack.c.bf16 %v4756_v25, %v4756_v25  ;;  %v9911_v57 = vld [vmem:[%s8732_s3 + $0x114] sm:$0x1]  ;;  %v9914_v27 = vld [vmem:[%s8732_s3 + $0x118] sm:$0x1] }
 0x232   : > { %v4885_v1 = vpack.c.bf16 %v4757_v24, %v4757_v24  ;;  %v5445_v41 = vunpack.c.l.b16 %v4871_v2  ;;  %v5446_v39 = vunpack.c.l.b16 %v4872_v52  ;;  %v5447_v16 = vunpack.c.l.b16 %v4873_v55  ;;  %v541_v2 = vld [vmem:[%s8732_s3 + $0x11c] sm:$0x1]  ;;  %v9921_v52 = vld [vmem:[%s8732_s3 + $0x120] sm:$0x1]  ;;  %v9924_v55 = vld [vmem:[%s8732_s3 + $0x124] sm:$0x1] }
 0x233   : > { %v5448_v17 = vunpack.c.l.b16 %v4874_v14  ;;  %v5449_v22 = vunpack.c.l.b16 %v4875_v49  ;;  %v5450_v36 = vunpack.c.l.b16 %v4876_v61  ;;  %v5444_v19 = vunpack.c.l.b16 %v4870_v21 }
 0x234   : > { %v5451_v9 = vunpack.c.l.b16 %v4877_v58  ;;  %v5453_v33 = vunpack.c.l.b16 %v4879_v3  ;;  %v5454_v59 = vunpack.c.l.b16 %v4880_v48  ;;  %v5452_v63 = vunpack.c.l.b16 %v4878_v34  ;;  %v544_v58 = vld [vmem:[%s8732_s3 + $0x128] sm:$0x1]  ;;  %v545_v3 = vld [vmem:[%s8732_s3 + $0x12c] sm:$0x1]  ;;  %v9933_v48 = vld [vmem:[%s8732_s3 + $0x130] sm:$0x1] }
 0x235   : > { %v5455_v47 = vunpack.c.l.b16 %v4881_v11  ;;  %v5456_v54 = vunpack.c.l.b16 %v4882_v32  ;;  %v5457_v45 = vunpack.c.l.b16 %v4883_v44  ;;  %v5458_v40 = vunpack.c.l.b16 %v4884_v4  ;;  %v547_v4 = vld [vmem:[%s8732_s3 + $0x134] sm:$0x1] }
 0x236   : > { %v5615_v15 = vrot.slane %v5445_v41, 7  ;;  %v5617_v7 = vrot.slane %v5446_v39, 6  ;;  %v5619_v35 = vrot.slane %v5447_v16, 5  ;;  %v5459_v8 = vunpack.c.l.b16 %v4885_v1  ;;  %v548_v1 = vld [vmem:[%s8732_s3 + $0x138] sm:$0x1] }
 0x237   : > { %v5621_v12 = vrot.slane %v5448_v17, 4  ;;  %v5623_v26 = vrot.slane %v5449_v22, 3  ;;  %v5625_v0 = vrot.slane %v5450_v36, 2  ;;  %v5629_v56 = vrot.slane %v5453_v33, 7  ;;  %v549_v41 = vld [vmem:[%s8732_s3 + $0x13c] sm:$0x1] }
 0x238   : > { %v5616_v62 = vsel %vm5525_vm0, %v5615_v15, %v5444_v19  ;;  %v5631_v28 = vrot.slane %v5454_v59, 6  ;;  %v5633_v23 = vrot.slane %v5455_v47, 5  ;;  %v5627_v60 = vrot.slane %v5451_v9, 1 }
 0x239   : > { %v5618_v31 = vsel %vm5528_vm1, %v5617_v7, %v5616_v62  ;;  %v5635_v6 = vrot.slane %v5456_v54, 4  ;;  %v5637_v29 = vrot.slane %v5457_v45, 3  ;;  %v5630_v42 = vsel %vm5525_vm0, %v5629_v56, %v5452_v63 }
 0x23a   : > { %v5620_v20 = vsel %vm5531_vm2, %v5619_v35, %v5618_v31  ;;  %v5639_v13 = vrot.slane %v5458_v40, 2  ;;  %v5632_v30 = vsel %vm5528_vm1, %v5631_v28, %v5630_v42  ;;  %v5641_v53 = vrot.slane %v5459_v8, 1  ;;  %v9963_v42 = vld [vmem:[%s8732_s3 + $0x104] sm:$0x2] }
 0x23b   : > { %v5622_v5 = vsel %vm5534_vm3, %v5621_v12, %v5620_v20  ;;  %v662_v10 = vunpack.c.l.bf16 %v9894_v43  ;;  %v5634_v24 = vsel %vm5531_vm2, %v5633_v23, %v5632_v30  ;;  %v663_v14 = vunpack.c.l.bf16 %v9890_v38 }
 0x23c   : > { %v5624_v25 = vsel %vm5537_vm4, %v5623_v26, %v5622_v5  ;;  %v664_v49 = vunpack.c.l.bf16 %v9898_v46  ;;  %v5636_v21 = vsel %vm5534_vm3, %v5635_v6, %v5634_v24  ;;  %v665_v34 = vunpack.c.l.bf16 %v9903_v50 }
 0x23d   : > { %v5626_v61 = vsel %vm5540_vm5, %v5625_v0, %v5624_v25  ;;  %v666_v11 = vunpack.c.l.bf16 %v9906_v51  ;;  %v5638_v44 = vsel %vm5537_vm4, %v5637_v29, %v5636_v21  ;;  %v667_v39 = vunpack.c.l.bf16 %v9911_v57  ;;  %v9972_v57 = vld [vmem:[%s8732_s3 + $0x10c] sm:$0x2]  ;;  %v9981_v25 = vld [vmem:[%s8732_s3 + $0x128] sm:$0x2] }
 0x23e   : > { %v5628_v32 = vsel %vm5543_vm6, %v5627_v60, %v5626_v61  ;;  %v668_v16 = vunpack.c.l.bf16 %v9914_v27  ;;  %v5640_v17 = vsel %vm5540_vm5, %v5639_v13, %v5638_v44  ;;  %v669_v22 = vunpack.c.l.bf16 %v541_v2  ;;  %v9966_v13 = vld [vmem:[%s8732_s3 + $0x108] sm:$0x2]  ;;  %v9975_v27 = vld [vmem:[%s8732_s3 + $0x110] sm:$0x2]  ;;  %v9990_v61 = vld [vmem:[%s8732_s3 + $0x11c] sm:$0x2] }
 0x23f   : > { %v670_v36 = vunpack.c.l.bf16 %v9921_v52  ;;  %v671_v19 = vunpack.c.l.bf16 %v9924_v55  ;;  %v5642_v9 = vsel %vm5543_vm6, %v5641_v53, %v5640_v17  ;;  %v672_v33 = vunpack.c.l.bf16 %v544_v58  ;;  %v9969_v53 = vld [vmem:[%s8732_s3 + $0x100] sm:$0x2]  ;;  %v10000_v44 = vld [vmem:[%s8732_s3 + $0x134] sm:$0x2] }
 0x240   : > { %v673_v59 = vunpack.c.l.bf16 %v545_v3  ;;  %v674_v63 = vunpack.c.l.bf16 %v9933_v48  ;;  %v9950_v47 = vpack.c.b16 %v5642_v9, %v5628_v32  ;;  %v675_v54 = vunpack.c.l.bf16 %v547_v4  ;;  %v9997_v32 = vld [vmem:[%s8732_s3 + $0x130] sm:$0x2]  ;;  %v10003_v4 = vld [vmem:[%s8732_s3 + $0x138] sm:$0x2] }
 0x241   : > { %v676_v45 = vunpack.c.l.bf16 %v548_v1  ;;  %v677_v40 = vunpack.c.l.bf16 %v549_v41  ;;  %v918_v15 = vrot.slane %v662_v10, 1  ;;  %v919_v7 = vrot.slane %v663_v14, 1  ;;  %v10006_v1 = vld [vmem:[%s8732_s3 + $0x13c] sm:$0x2] }
 0x242   : > { %12549 = vst [vmem:[#allocation23_spill] sm:$0xff] %v9950_v47  ;;  %v920_v35 = vrot.slane %v664_v49, 1  ;;  %v921_v8 = vrot.slane %v665_v34, 1  ;;  %5962 = vmatmul.mubr.bf16.gmra.mrb[12].mxu1 %v9950_v47  ;;  %v922_v12 = vrot.slane %v666_v11, 1  ;;  %v923_v26 = vrot.slane %v667_v39, 1 }
 0x243   : > { %v924_v0 = vrot.slane %v668_v16, 1  ;;  %v925_v37 = vrot.slane %v669_v22, 1  ;;  %5971 = vmatprep.mubr.bf16.mxu1 %v12547_v18  ;;  %v926_v38 = vrot.slane %v670_v36, 1  ;;  %v927_v62 = vrot.slane %v671_v19, 1 }
 0x244   : > { %v928_v56 = vrot.slane %v672_v33, 1  ;;  %v929_v28 = vrot.slane %v673_v59, 1  ;;  %v930_v23 = vrot.slane %v674_v63, 1  ;;  %v931_v43 = vrot.slane %v675_v54, 1 }
 0x245   : > { %v932_v31 = vrot.slane %v676_v45, 1  ;;  %v933_v60 = vrot.slane %v677_v40, 1  ;;  %v9954_v6 = vadd.f32 %v918_v15, %v662_v10  ;;  %v9956_v29 = vadd.f32 %v919_v7, %v663_v14  ;;  %v9978_v10 = vld [vmem:[%s8732_s3 + $0x124] sm:$0x2]  ;;  %v9984_v14 = vld [vmem:[%s8732_s3 + $0x114] sm:$0x2] }
 0x246   : > { %v9958_v46 = vadd.f32 %v920_v35, %v664_v49  ;;  %v9960_v20 = vadd.f32 %v921_v8, %v665_v34  ;;  %v1178_v50 = vadd.f32 %v922_v12, %v666_v11  ;;  %v1179_v51 = vadd.f32 %v923_v26, %v667_v39  ;;  %v9987_v49 = vld [vmem:[%s8732_s3 + $0x118] sm:$0x2]  ;;  %v1310_v34 = vld [vmem:[%s8732_s3 + $0x120] sm:$0x2]  ;;  %v9994_v11 = vld [vmem:[%s8732_s3 + $0x12c] sm:$0x2] }
 0x247   : > { %v1180_v5 = vadd.f32 %v924_v0, %v668_v16  ;;  %v1181_v30 = vadd.f32 %v925_v37, %v669_v22  ;;  %v1182_v24 = vadd.f32 %v926_v38, %v670_v36  ;;  %v1183_v2 = vadd.f32 %v927_v62, %v671_v19 }
 0x248   : > { %v1184_v52 = vadd.f32 %v928_v56, %v672_v33  ;;  %v1185_v55 = vadd.f32 %v929_v28, %v673_v59  ;;  %v1186_v21 = vadd.f32 %v930_v23, %v674_v63  ;;  %v1187_v58 = vadd.f32 %v931_v43, %v675_v54 }
 0x249   : > { %v1188_v3 = vadd.f32 %v932_v31, %v676_v45  ;;  %v1189_v48 = vadd.f32 %v933_v60, %v677_v40  ;;  %v1430_v41 = vunpack.c.l.bf16 %v9969_v53  ;;  %v1431_v39 = vunpack.c.l.bf16 %v9963_v42 }
 0x24a   : > { %v1432_v16 = vunpack.c.l.bf16 %v9966_v13  ;;  %v1433_v17 = vunpack.c.l.bf16 %v9972_v57  ;;  %v1434_v22 = vunpack.c.l.bf16 %v9975_v27  ;;  %v1435_v36 = vunpack.c.l.bf16 %v9984_v14 }
 0x24b   : > { %v1436_v19 = vunpack.c.l.bf16 %v9987_v49  ;;  %v1437_v9 = vunpack.c.l.bf16 %v9990_v61  ;;  %v1438_v33 = vunpack.c.l.bf16 %v1310_v34  ;;  %v1439_v59 = vunpack.c.l.bf16 %v9978_v10 }
 0x24c   : > { %v1440_v63 = vunpack.c.l.bf16 %v9981_v25  ;;  %v1441_v54 = vunpack.c.l.bf16 %v9994_v11  ;;  %v1442_v45 = vunpack.c.l.bf16 %v9997_v32  ;;  %v1443_v40 = vunpack.c.l.bf16 %v10000_v44 }
 0x24d   : > { %v1444_v15 = vunpack.c.l.bf16 %v10003_v4  ;;  %v1445_v7 = vunpack.c.l.bf16 %v10006_v1  ;;  %v1686_v35 = vrot.slane %v1430_v41, 2  ;;  %v1687_v8 = vrot.slane %v1431_v39, 2 }
 0x24e   : > { %v1688_v12 = vrot.slane %v1432_v16, 2  ;;  %v1689_v26 = vrot.slane %v1433_v17, 2  ;;  %v1690_v0 = vrot.slane %v1434_v22, 2  ;;  %v1691_v37 = vrot.slane %v1435_v36, 2 }
 0x24f   : > { %v1692_v38 = vrot.slane %v1436_v19, 2  ;;  %v1693_v62 = vrot.slane %v1437_v9, 2  ;;  %v1694_v56 = vrot.slane %v1438_v33, 2  ;;  %v1695_v28 = vrot.slane %v1439_v59, 2 }
 0x250   : > { %v1696_v23 = vrot.slane %v1440_v63, 2  ;;  %v1697_v43 = vrot.slane %v1441_v54, 2  ;;  %v1698_v31 = vrot.slane %v1442_v45, 2  ;;  %v1699_v60 = vrot.slane %v1443_v40, 2 }
 0x251   : > { %v1700_v42 = vrot.slane %v1444_v15, 2  ;;  %v1701_v13 = vrot.slane %v1445_v7, 2  ;;  %v1942_v53 = vadd.f32 %v1686_v35, %v9954_v6  ;;  %v1943_v57 = vadd.f32 %v1687_v8, %v9956_v29 }
 0x252   : > { %v1944_v27 = vadd.f32 %v1688_v12, %v9958_v46  ;;  %v1945_v10 = vadd.f32 %v1689_v26, %v9960_v20  ;;  %v1946_v25 = vadd.f32 %v1690_v0, %v1178_v50  ;;  %v1947_v14 = vadd.f32 %v1691_v37, %v1179_v51  ;;  %v10057_v26 = vld [vmem:[%s8732_s3 + $0x114] sm:$0x4]  ;;  %v10060_v0 = vld [vmem:[%s8732_s3 + $0x118] sm:$0x4]  ;;  %v10063_v37 = vld [vmem:[%s8732_s3 + $0x11c] sm:$0x4] }
 0x253   : > { %v1948_v49 = vadd.f32 %v1692_v38, %v1180_v5  ;;  %v1949_v61 = vadd.f32 %v1693_v62, %v1181_v30  ;;  %v1950_v34 = vadd.f32 %v1694_v56, %v1182_v24  ;;  %v1951_v11 = vadd.f32 %v1695_v28, %v1183_v2 }
 0x254   : > { %v1952_v32 = vadd.f32 %v1696_v23, %v1184_v52  ;;  %v1953_v44 = vadd.f32 %v1697_v43, %v1185_v55  ;;  %v1954_v4 = vadd.f32 %v1698_v31, %v1186_v21  ;;  %v1955_v1 = vadd.f32 %v1699_v60, %v1187_v58  ;;  %v2462_v23 = vld [vmem:[%s8732_s3 + $0x120] sm:$0x4]  ;;  %v10067_v43 = vld [vmem:[%s8732_s3 + $0x12c] sm:$0x4]  ;;  %v10070_v31 = vld [vmem:[%s8732_s3 + $0x130] sm:$0x4] }
 0x255   : > { %v1956_v47 = vadd.f32 %v1700_v42, %v1188_v3  ;;  %v1957_v18 = vadd.f32 %v1701_v13, %v1189_v48  ;;  %v2070_v6 = vrot.slane %v1430_v41, 3  ;;  %v2071_v35 = vrot.slane %v1431_v39, 3  ;;  %v10036_v39 = vld [vmem:[%s8732_s3 + $0x104] sm:$0x4]  ;;  %v10073_v60 = vld [vmem:[%s8732_s3 + $0x134] sm:$0x4] }
 0x256   : > { %v2072_v8 = vrot.slane %v1432_v16, 3  ;;  %v2073_v29 = vrot.slane %v1433_v17, 3  ;;  %v2074_v12 = vrot.slane %v1434_v22, 3  ;;  %v2075_v46 = vrot.slane %v1435_v36, 3  ;;  %v10039_v16 = vld [vmem:[%s8732_s3 + $0x108] sm:$0x4] }
 0x257   : > { %v2076_v20 = vrot.slane %v1436_v19, 3  ;;  %v2077_v50 = vrot.slane %v1437_v9, 3  ;;  %v2078_v51 = vrot.slane %v1438_v33, 3  ;;  %v2079_v5 = vrot.slane %v1439_v59, 3  ;;  %v10042_v9 = vld [vmem:[%s8732_s3 + $0x100] sm:$0x4] }
 0x258   : > { %v2080_v30 = vrot.slane %v1440_v63, 3  ;;  %v2081_v24 = vrot.slane %v1441_v54, 3  ;;  %v2082_v2 = vrot.slane %v1442_v45, 3  ;;  %v2083_v52 = vrot.slane %v1443_v40, 3  ;;  %v10045_v33 = vld [vmem:[%s8732_s3 + $0x10c] sm:$0x4] }
 0x259   : > { %v2084_v55 = vrot.slane %v1444_v15, 3  ;;  %v2085_v21 = vrot.slane %v1445_v7, 3  ;;  %v10027_v58 = vadd.f32 %v2070_v6, %v1942_v53  ;;  %v10029_v3 = vadd.f32 %v2071_v35, %v1943_v57  ;;  %v10048_v59 = vld [vmem:[%s8732_s3 + $0x110] sm:$0x4]  ;;  %v10051_v63 = vld [vmem:[%s8732_s3 + $0x124] sm:$0x4] }
 0x25a   : > { %v10031_v48 = vadd.f32 %v2072_v8, %v1944_v27  ;;  %v10033_v41 = vadd.f32 %v2073_v29, %v1945_v10  ;;  %v2330_v17 = vadd.f32 %v2074_v12, %v1946_v25  ;;  %v2331_v22 = vadd.f32 %v2075_v46, %v1947_v14  ;;  %v10054_v54 = vld [vmem:[%s8732_s3 + $0x128] sm:$0x4]  ;;  %v10076_v42 = vld [vmem:[%s8732_s3 + $0x138] sm:$0x4]  ;;  %v10079_v13 = vld [vmem:[%s8732_s3 + $0x13c] sm:$0x4] }
 0x25b   : > { %v2332_v36 = vadd.f32 %v2076_v20, %v1948_v49  ;;  %v2333_v19 = vadd.f32 %v2077_v50, %v1949_v61  ;;  %v2334_v45 = vadd.f32 %v2078_v51, %v1950_v34  ;;  %v2335_v40 = vadd.f32 %v2079_v5, %v1951_v11 }
 0x25c   : > { %v2336_v15 = vadd.f32 %v2080_v30, %v1952_v32  ;;  %v2337_v7 = vadd.f32 %v2081_v24, %v1953_v44  ;;  %v2338_v38 = vadd.f32 %v2082_v2, %v1954_v4  ;;  %v2339_v62 = vadd.f32 %v2083_v52, %v1955_v1 }
 0x25d   : > { %v2340_v56 = vadd.f32 %v2084_v55, %v1956_v47  ;;  %v2341_v28 = vadd.f32 %v2085_v21, %v1957_v18  ;;  %v2582_v53 = vunpack.c.l.bf16 %v10042_v9  ;;  %v2583_v57 = vunpack.c.l.bf16 %v10036_v39 }
 0x25e   : > { %v2584_v27 = vunpack.c.l.bf16 %v10039_v16  ;;  %v2585_v47 = vunpack.c.l.bf16 %v10045_v33  ;;  %v2586_v18 = vunpack.c.l.bf16 %v10048_v59  ;;  %v2587_v10 = vunpack.c.l.bf16 %v10057_v26 }
 0x25f   : > { %v2588_v25 = vunpack.c.l.bf16 %v10060_v0  ;;  %v2589_v14 = vunpack.c.l.bf16 %v10063_v37  ;;  %v2590_v49 = vunpack.c.l.bf16 %v2462_v23  ;;  %v2591_v61 = vunpack.c.l.bf16 %v10051_v63 }
 0x260   : > { %v2592_v34 = vunpack.c.l.bf16 %v10054_v54  ;;  %v2593_v11 = vunpack.c.l.bf16 %v10067_v43  ;;  %v2594_v32 = vunpack.c.l.bf16 %v10070_v31  ;;  %v2595_v44 = vunpack.c.l.bf16 %v10073_v60 }
 0x261   : > { %v2596_v4 = vunpack.c.l.bf16 %v10076_v42  ;;  %v2597_v1 = vunpack.c.l.bf16 %v10079_v13  ;;  %v2838_v6 = vrot.slane %v2582_v53, 4  ;;  %v2839_v35 = vrot.slane %v2583_v57, 4 }
 0x262   : > { %v2840_v8 = vrot.slane %v2584_v27, 4  ;;  %v2841_v29 = vrot.slane %v2585_v47, 4  ;;  %v2842_v12 = vrot.slane %v2586_v18, 4  ;;  %v2843_v46 = vrot.slane %v2587_v10, 4 }
 0x263   : > { %v2844_v20 = vrot.slane %v2588_v25, 4  ;;  %v2845_v50 = vrot.slane %v2589_v14, 4  ;;  %v2846_v51 = vrot.slane %v2590_v49, 4  ;;  %v2847_v5 = vrot.slane %v2591_v61, 4 }
 0x264   : > { %v2848_v30 = vrot.slane %v2592_v34, 4  ;;  %v2849_v24 = vrot.slane %v2593_v11, 4  ;;  %v2850_v2 = vrot.slane %v2594_v32, 4  ;;  %v2851_v52 = vrot.slane %v2595_v44, 4 }
 0x265   : > { %v2852_v55 = vrot.slane %v2596_v4, 4  ;;  %v2853_v21 = vrot.slane %v2597_v1, 4  ;;  %v3094_v39 = vadd.f32 %v2838_v6, %v10027_v58  ;;  %v3095_v16 = vadd.f32 %v2839_v35, %v10029_v3 }
 0x266   : > { %v3096_v9 = vadd.f32 %v2840_v8, %v10031_v48  ;;  %v3097_v33 = vadd.f32 %v2841_v29, %v10033_v41  ;;  %v3098_v59 = vadd.f32 %v2842_v12, %v2330_v17  ;;  %v3099_v63 = vadd.f32 %v2843_v46, %v2331_v22  ;;  %v10130_v29 = vld [vmem:[%s8732_s3 + $0x114] sm:$0x8]  ;;  %v10133_v12 = vld [vmem:[%s8732_s3 + $0x118] sm:$0x8]  ;;  %v10136_v46 = vld [vmem:[%s8732_s3 + $0x11c] sm:$0x8] }
 0x267   : > { %v3100_v54 = vadd.f32 %v2844_v20, %v2332_v36  ;;  %v3101_v26 = vadd.f32 %v2845_v50, %v2333_v19  ;;  %v3102_v0 = vadd.f32 %v2846_v51, %v2334_v45  ;;  %v3103_v37 = vadd.f32 %v2847_v5, %v2335_v40 }
 0x268   : > { %v3104_v23 = vadd.f32 %v2848_v30, %v2336_v15  ;;  %v3105_v43 = vadd.f32 %v2849_v24, %v2337_v7  ;;  %v3106_v31 = vadd.f32 %v2850_v2, %v2338_v38  ;;  %v3107_v60 = vadd.f32 %v2851_v52, %v2339_v62  ;;  %v10139_v30 = vld [vmem:[%s8732_s3 + $0x120] sm:$0x8]  ;;  %v10142_v24 = vld [vmem:[%s8732_s3 + $0x12c] sm:$0x8]  ;;  %v10145_v2 = vld [vmem:[%s8732_s3 + $0x130] sm:$0x8] }
 0x269   : > { %v3108_v42 = vadd.f32 %v2852_v55, %v2340_v56  ;;  %v3109_v13 = vadd.f32 %v2853_v21, %v2341_v28  ;;  %v3222_v6 = vrot.slane %v2582_v53, 5  ;;  %v3223_v58 = vrot.slane %v2583_v57, 5  ;;  %v10109_v57 = vld [vmem:[%s8732_s3 + $0x104] sm:$0x8]  ;;  %v10148_v52 = vld [vmem:[%s8732_s3 + $0x134] sm:$0x8] }
 0x26a   : > { %v3224_v3 = vrot.slane %v2584_v27, 5  ;;  %v3225_v35 = vrot.slane %v2585_v47, 5  ;;  %v3226_v8 = vrot.slane %v2586_v18, 5  ;;  %v3227_v48 = vrot.slane %v2587_v10, 5  ;;  %v10112_v27 = vld [vmem:[%s8732_s3 + $0x108] sm:$0x8] }
 0x26b   : > { %v3228_v41 = vrot.slane %v2588_v25, 5  ;;  %v3229_v17 = vrot.slane %v2589_v14, 5  ;;  %v3230_v22 = vrot.slane %v2590_v49, 5  ;;  %v3231_v36 = vrot.slane %v2591_v61, 5  ;;  %v10115_v14 = vld [vmem:[%s8732_s3 + $0x100] sm:$0x8] }
 0x26c   : > { %v3232_v19 = vrot.slane %v2592_v34, 5  ;;  %v3233_v45 = vrot.slane %v2593_v11, 5  ;;  %v3234_v40 = vrot.slane %v2594_v32, 5  ;;  %v3235_v15 = vrot.slane %v2595_v44, 5  ;;  %v10118_v49 = vld [vmem:[%s8732_s3 + $0x10c] sm:$0x8] }
 0x26d   : > { %v3236_v7 = vrot.slane %v2596_v4, 5  ;;  %v3237_v38 = vrot.slane %v2597_v1, 5  ;;  %v10100_v62 = vadd.f32 %v3222_v6, %v3094_v39  ;;  %v10102_v56 = vadd.f32 %v3223_v58, %v3095_v16  ;;  %v10121_v61 = vld [vmem:[%s8732_s3 + $0x110] sm:$0x8]  ;;  %v10124_v34 = vld [vmem:[%s8732_s3 + $0x124] sm:$0x8] }
 0x26e   : > { %v10104_v28 = vadd.f32 %v3224_v3, %v3096_v9  ;;  %v10106_v53 = vadd.f32 %v3225_v35, %v3097_v33  ;;  %v3482_v47 = vadd.f32 %v3226_v8, %v3098_v59  ;;  %v3483_v18 = vadd.f32 %v3227_v48, %v3099_v63  ;;  %v10127_v11 = vld [vmem:[%s8732_s3 + $0x128] sm:$0x8]  ;;  %v10151_v55 = vld [vmem:[%s8732_s3 + $0x138] sm:$0x8]  ;;  %v10154_v21 = vld [vmem:[%s8732_s3 + $0x13c] sm:$0x8] }
 0x26f   : > { %v3484_v10 = vadd.f32 %v3228_v41, %v3100_v54  ;;  %v3485_v25 = vadd.f32 %v3229_v17, %v3101_v26  ;;  %v3486_v32 = vadd.f32 %v3230_v22, %v3102_v0  ;;  %v3487_v44 = vadd.f32 %v3231_v36, %v3103_v37 }
 0x270   : > { %v3488_v4 = vadd.f32 %v3232_v19, %v3104_v23  ;;  %v3489_v1 = vadd.f32 %v3233_v45, %v3105_v43  ;;  %v3490_v20 = vadd.f32 %v3234_v40, %v3106_v31  ;;  %v3491_v50 = vadd.f32 %v3235_v15, %v3107_v60 }
 0x271   : > { %v3492_v51 = vadd.f32 %v3236_v7, %v3108_v42  ;;  %v3493_v5 = vadd.f32 %v3237_v38, %v3109_v13  ;;  %v3734_v39 = vunpack.c.l.bf16 %v10115_v14  ;;  %v3735_v16 = vunpack.c.l.bf16 %v10109_v57 }
 0x272   : > { %v3736_v9 = vunpack.c.l.bf16 %v10112_v27  ;;  %v3737_v33 = vunpack.c.l.bf16 %v10118_v49  ;;  %v3738_v59 = vunpack.c.l.bf16 %v10121_v61  ;;  %v3739_v63 = vunpack.c.l.bf16 %v10130_v29 }
 0x273   : > { %v3740_v54 = vunpack.c.l.bf16 %v10133_v12  ;;  %v3741_v26 = vunpack.c.l.bf16 %v10136_v46  ;;  %v3742_v0 = vunpack.c.l.bf16 %v10139_v30  ;;  %v3743_v37 = vunpack.c.l.bf16 %v10124_v34 }
 0x274   : > { %v3744_v23 = vunpack.c.l.bf16 %v10127_v11  ;;  %v3745_v43 = vunpack.c.l.bf16 %v10142_v24  ;;  %v3746_v31 = vunpack.c.l.bf16 %v10145_v2  ;;  %v3747_v60 = vunpack.c.l.bf16 %v10148_v52 }
 0x275   : > { %v3748_v42 = vunpack.c.l.bf16 %v10151_v55  ;;  %v3749_v13 = vunpack.c.l.bf16 %v10154_v21  ;;  %v3990_v6 = vrot.slane %v3734_v39, 6  ;;  %v3991_v58 = vrot.slane %v3735_v16, 6 }
 0x276   : > { %v3992_v3 = vrot.slane %v3736_v9, 6  ;;  %v3993_v35 = vrot.slane %v3737_v33, 6  ;;  %v3994_v8 = vrot.slane %v3738_v59, 6  ;;  %v3995_v48 = vrot.slane %v3739_v63, 6 }
 0x277   : > { %v3996_v41 = vrot.slane %v3740_v54, 6  ;;  %v3997_v17 = vrot.slane %v3741_v26, 6  ;;  %v3998_v22 = vrot.slane %v3742_v0, 6  ;;  %v3999_v36 = vrot.slane %v3743_v37, 6 }
 0x278   : > { %v4000_v19 = vrot.slane %v3744_v23, 6  ;;  %v4001_v45 = vrot.slane %v3745_v43, 6  ;;  %v4002_v40 = vrot.slane %v3746_v31, 6  ;;  %v4003_v15 = vrot.slane %v3747_v60, 6 }
 0x279   : > { %v4004_v7 = vrot.slane %v3748_v42, 6  ;;  %v4005_v38 = vrot.slane %v3749_v13, 6  ;;  %v4246_v57 = vadd.f32 %v3990_v6, %v10100_v62  ;;  %v4247_v27 = vadd.f32 %v3991_v58, %v10102_v56 }
 0x27a   : > { %v4248_v14 = vadd.f32 %v3992_v3, %v10104_v28  ;;  %v4249_v49 = vadd.f32 %v3993_v35, %v10106_v53  ;;  %v4250_v61 = vadd.f32 %v3994_v8, %v3482_v47  ;;  %v4251_v34 = vadd.f32 %v3995_v48, %v3483_v18 }
 0x27b   : > { %v4252_v11 = vadd.f32 %v3996_v41, %v3484_v10  ;;  %v4253_v29 = vadd.f32 %v3997_v17, %v3485_v25  ;;  %v4254_v12 = vadd.f32 %v3998_v22, %v3486_v32  ;;  %v4255_v46 = vadd.f32 %v3999_v36, %v3487_v44 }
 0x27c   : > { %v4256_v30 = vadd.f32 %v4000_v19, %v3488_v4  ;;  %v4257_v24 = vadd.f32 %v4001_v45, %v3489_v1  ;;  %v4258_v2 = vadd.f32 %v4002_v40, %v3490_v20  ;;  %v4259_v52 = vadd.f32 %v4003_v15, %v3491_v50 }
 0x27d   : > { %v4260_v55 = vadd.f32 %v4004_v7, %v3492_v51  ;;  %v4261_v21 = vadd.f32 %v4005_v38, %v3493_v5  ;;  %v4375_v6 = vrot.slane %v3735_v16, 7  ;;  %v4376_v62 = vrot.slane %v3736_v9, 7 }
 0x27e   : > { %v4377_v56 = vrot.slane %v3737_v33, 7  ;;  %v4378_v58 = vrot.slane %v3738_v59, 7  ;;  %v4374_v3 = vrot.slane %v3734_v39, 7  ;;  %v4379_v28 = vrot.slane %v3739_v63, 7 }
 0x27f   : > { %v4380_v35 = vrot.slane %v3740_v54, 7  ;;  %v4381_v53 = vrot.slane %v3741_v26, 7  ;;  %v4383_v47 = vrot.slane %v3743_v37, 7  ;;  %v4384_v18 = vrot.slane %v3744_v23, 7 }
 0x280   : > { %v4385_v10 = vrot.slane %v3745_v43, 7  ;;  %v4386_v25 = vrot.slane %v3746_v31, 7  ;;  %v4382_v32 = vrot.slane %v3742_v0, 7  ;;  %v4387_v44 = vrot.slane %v3747_v60, 7 }
 0x281   : > { %v4388_v4 = vrot.slane %v3748_v42, 7  ;;  %v4389_v1 = vrot.slane %v3749_v13, 7  ;;  %v4631_v20 = vadd.f32 %v4375_v6, %v4247_v27  ;;  %v4632_v50 = vadd.f32 %v4376_v62, %v4248_v14 }
 0x282   : > { %v4633_v51 = vadd.f32 %v4377_v56, %v4249_v49  ;;  %v4634_v5 = vadd.f32 %v4378_v58, %v4250_v61  ;;  %v4630_v16 = vadd.f32 %v4374_v3, %v4246_v57  ;;  %v4635_v9 = vadd.f32 %v4379_v28, %v4251_v34 }
 0x283   : > { %v4636_v33 = vadd.f32 %v4380_v35, %v4252_v11  ;;  %v4637_v59 = vadd.f32 %v4381_v53, %v4253_v29  ;;  %v4639_v39 = vadd.f32 %v4383_v47, %v4255_v46  ;;  %v4640_v63 = vadd.f32 %v4384_v18, %v4256_v30 }
 0x284   : > { %v4641_v54 = vadd.f32 %v4385_v10, %v4257_v24  ;;  %v4642_v26 = vadd.f32 %v4386_v25, %v4258_v2  ;;  %v4638_v37 = vadd.f32 %v4382_v32, %v4254_v12  ;;  %v4643_v23 = vadd.f32 %v4387_v44, %v4259_v52 }
 0x285   : > { %v4644_v43 = vadd.f32 %v4388_v4, %v4260_v55  ;;  %v4645_v31 = vadd.f32 %v4389_v1, %v4261_v21  ;;  %v4759_v0 = vmul.f32 0.125, %v4631_v20  ;;  %v4760_v60 = vmul.f32 0.125, %v4632_v50 }
 0x286   : > { %v4761_v42 = vmul.f32 0.125, %v4633_v51  ;;  %v4762_v13 = vmul.f32 0.125, %v4634_v5  ;;  %v4758_v8 = vmul.f32 0.125, %v4630_v16  ;;  %v4763_v48 = vmul.f32 0.125, %v4635_v9 }
 0x287   : > { %v4764_v41 = vmul.f32 0.125, %v4636_v33  ;;  %v4765_v17 = vmul.f32 0.125, %v4637_v59  ;;  %v4767_v22 = vmul.f32 0.125, %v4639_v39  ;;  %v4768_v36 = vmul.f32 0.125, %v4640_v63  ;;  %v448_v39 = vld [vmem:[%s8724_s19 + $0x28] sm:$0xff]  }
 0x288   : > { %v4769_v19 = vmul.f32 0.125, %v4641_v54  ;;  %v4770_v45 = vmul.f32 0.125, %v4642_v26  ;;  %v4766_v40 = vmul.f32 0.125, %v4638_v37  ;;  %v4771_v15 = vmul.f32 0.125, %v4643_v23  ;;  %v10179_v63 = vld [vmem:[%s8732_s3 + $0x144] sm:$0x1]  ;;  %5189 = vmatmul.mubr.bf16.gmra.mrb[20].mxu0 %v448_v39 }
 0x289   : > { %v4772_v7 = vmul.f32 0.125, %v4644_v43  ;;  %v4773_v38 = vmul.f32 0.125, %v4645_v31  ;;  %v4887_v57 = vpack.c.bf16 %v4759_v0, %v4759_v0  ;;  %v4888_v27 = vpack.c.bf16 %v4760_v60, %v4760_v60  ;;  %v10183_v43 = vld [vmem:[%s8732_s3 + $0x140] sm:$0x1] }
 0x28a   : > { %v4889_v14 = vpack.c.bf16 %v4761_v42, %v4761_v42  ;;  %v4890_v49 = vpack.c.bf16 %v4762_v13, %v4762_v13  ;;  %v4886_v61 = vpack.c.bf16 %v4758_v8, %v4758_v8  ;;  %v4891_v34 = vpack.c.bf16 %v4763_v48, %v4763_v48  ;;  %v10188_v13 = vld [vmem:[%s8732_s3 + $0x148] sm:$0x1]  ;;  %v10191_v8 = vld [vmem:[%s8732_s3 + $0x14c] sm:$0x1] }
 0x28b   : > { %v4892_v11 = vpack.c.bf16 %v4764_v41, %v4764_v41  ;;  %v4893_v29 = vpack.c.bf16 %v4765_v17, %v4765_v17  ;;  %v4895_v12 = vpack.c.bf16 %v4767_v22, %v4767_v22  ;;  %v4896_v46 = vpack.c.bf16 %v4768_v36, %v4768_v36  ;;  %v10196_v22 = vld [vmem:[%s8732_s3 + $0x150] sm:$0x1]  ;;  %v10199_v36 = vld [vmem:[%s8732_s3 + $0x154] sm:$0x1] }
 0x28c   : > { %v4897_v30 = vpack.c.bf16 %v4769_v19, %v4769_v19  ;;  %v4898_v24 = vpack.c.bf16 %v4770_v45, %v4770_v45  ;;  %v4894_v2 = vpack.c.bf16 %v4766_v40, %v4766_v40  ;;  %v4899_v52 = vpack.c.bf16 %v4771_v15, %v4771_v15  ;;  %v10204_v15 = vld [vmem:[%s8732_s3 + $0x158] sm:$0x1] }
 0x28d   : > { %v4900_v55 = vpack.c.bf16 %v4772_v7, %v4772_v7  ;;  %v4901_v21 = vpack.c.bf16 %v4773_v38, %v4773_v38  ;;  %v5461_v6 = vunpack.c.l.b16 %v4887_v57  ;;  %v5462_v62 = vunpack.c.l.b16 %v4888_v27  ;;  %v10207_v7 = vld [vmem:[%s8732_s3 + $0x15c] sm:$0x1] }
 0x28e   : > { %v5463_v56 = vunpack.c.l.b16 %v4889_v14  ;;  %v5464_v58 = vunpack.c.l.b16 %v4890_v49  ;;  %v5460_v3 = vunpack.c.l.b16 %v4886_v61  ;;  %v5465_v28 = vunpack.c.l.b16 %v4891_v34  ;;  %v558_v14 = vld [vmem:[%s8732_s3 + $0x160] sm:$0x1]  ;;  %v559_v49 = vld [vmem:[%s8732_s3 + $0x164] sm:$0x1]  ;;  %v10215_v61 = vld [vmem:[%s8732_s3 + $0x168] sm:$0x1] }
 0x28f   : > { %v5466_v35 = vunpack.c.l.b16 %v4892_v11  ;;  %v5467_v53 = vunpack.c.l.b16 %v4893_v29  ;;  %v5469_v47 = vunpack.c.l.b16 %v4895_v12  ;;  %v5470_v18 = vunpack.c.l.b16 %v4896_v46  ;;  %v561_v46 = vld [vmem:[%s8732_s3 + $0x16c] sm:$0x1] }
 0x290   : > { %v5471_v10 = vunpack.c.l.b16 %v4897_v30  ;;  %v5472_v25 = vunpack.c.l.b16 %v4898_v24  ;;  %v5468_v32 = vunpack.c.l.b16 %v4894_v2  ;;  %v5473_v44 = vunpack.c.l.b16 %v4899_v52  ;;  %v562_v30 = vld [vmem:[%s8732_s3 + $0x170] sm:$0x1]  ;;  %v563_v24 = vld [vmem:[%s8732_s3 + $0x174] sm:$0x1] }
 0x291   : > { %v5474_v4 = vunpack.c.l.b16 %v4900_v55  ;;  %v5643_v1 = vrot.slane %v5461_v6, 7  ;;  %v5475_v20 = vunpack.c.l.b16 %v4901_v21  ;;  %v5645_v50 = vrot.slane %v5462_v62, 6  ;;  %v564_v6 = vld [vmem:[%s8732_s3 + $0x178] sm:$0x1]  ;;  %v565_v62 = vld [vmem:[%s8732_s3 + $0x17c] sm:$0x1] }
 0x292   : > { %v5647_v51 = vrot.slane %v5463_v56, 5  ;;  %v5649_v5 = vrot.slane %v5464_v58, 4  ;;  %v5651_v9 = vrot.slane %v5465_v28, 3  ;;  %v5653_v33 = vrot.slane %v5466_v35, 2 }
 0x293   : > { %v5644_v16 = vsel %vm5525_vm0, %v5643_v1, %v5460_v3  ;;  %v5657_v59 = vrot.slane %v5469_v47, 7  ;;  %v5659_v26 = vrot.slane %v5470_v18, 6  ;;  %v5661_v37 = vrot.slane %v5471_v10, 5 }
 0x294   : > { %v5646_v54 = vsel %vm5528_vm1, %v5645_v50, %v5644_v16  ;;  %v5663_v23 = vrot.slane %v5472_v25, 4  ;;  %v5655_v0 = vrot.slane %v5467_v53, 1  ;;  %v5665_v42 = vrot.slane %v5473_v44, 3 }
 0x295   : > { %v5648_v31 = vsel %vm5531_vm2, %v5647_v51, %v5646_v54  ;;  %v5658_v60 = vsel %vm5525_vm0, %v5657_v59, %v5468_v32  ;;  %v5667_v17 = vrot.slane %v5474_v4, 2  ;;  %v5669_v40 = vrot.slane %v5475_v20, 1 }
 0x296   : > { %v5650_v48 = vsel %vm5534_vm3, %v5649_v5, %v5648_v31  ;;  %v5660_v41 = vsel %vm5528_vm1, %v5659_v26, %v5658_v60  ;;  %v678_v38 = vunpack.c.l.bf16 %v10183_v43  ;;  %v679_v34 = vunpack.c.l.bf16 %v10179_v63  ;;  %v10244_v60 = vld [vmem:[%s8732_s3 + $0x144] sm:$0x2] }
 0x297   : > { %v5652_v19 = vsel %vm5537_vm4, %v5651_v9, %v5650_v48  ;;  %v5662_v45 = vsel %vm5531_vm2, %v5661_v37, %v5660_v41  ;;  %v680_v11 = vunpack.c.l.bf16 %v10188_v13  ;;  %v681_v2 = vunpack.c.l.bf16 %v10191_v8  ;;  %v10255_v41 = vld [vmem:[%s8732_s3 + $0x140] sm:$0x2] }
 0x298   : > { %v5654_v57 = vsel %vm5540_vm5, %v5653_v33, %v5652_v19  ;;  %v5664_v27 = vsel %vm5534_vm3, %v5663_v23, %v5662_v45  ;;  %v682_v52 = vunpack.c.l.bf16 %v10196_v22  ;;  %v12550_v55 = vmov 0   ;;  %v10261_v22 = vld [vmem:[%s8732_s3 + $0x164] sm:$0x2] }
 0x299   : > { %v5656_v29 = vsel %vm5543_vm6, %v5655_v0, %v5654_v57  ;;  %v5666_v12 = vsel %vm5537_vm4, %v5665_v42, %v5664_v27  ;;  %5198 = vmatprep.mubr.bf16.mxu0 %v12550_v55  ;;  %v683_v56 = vunpack.c.l.bf16 %v10199_v36  ;;  %v684_v58 = vunpack.c.l.bf16 %v10204_v15  ;;  %v10264_v15 = vld [vmem:[%s8732_s3 + $0x14c] sm:$0x2]  ;;  %v10273_v57 = vld [vmem:[%s8732_s3 + $0x168] sm:$0x2] }
 0x29a   : > { %v5668_v21 = vsel %vm5540_vm5, %v5667_v17, %v5666_v12  ;;  %v685_v3 = vunpack.c.l.bf16 %v10207_v7  ;;  %v686_v35 = vunpack.c.l.bf16 %v558_v14  ;;  %v687_v53 = vunpack.c.l.bf16 %v559_v49  ;;  %v10258_v17 = vld [vmem:[%s8732_s3 + $0x148] sm:$0x2]  ;;  %v10267_v7 = vld [vmem:[%s8732_s3 + $0x150] sm:$0x2] }
 0x29b   : > { %v5670_v28 = vsel %vm5543_vm6, %v5669_v40, %v5668_v21  ;;  %v688_v47 = vunpack.c.l.bf16 %v10215_v61  ;;  %v689_v10 = vunpack.c.l.bf16 %v561_v46  ;;  %v690_v25 = vunpack.c.l.bf16 %v562_v30  ;;  %v10285_v30 = vld [vmem:[%s8732_s3 + $0x16c] sm:$0x2] }
 0x29c   : > { %v10235_v18 = vpack.c.b16 %v5670_v28, %v5656_v29  ;;  %v691_v32 = vunpack.c.l.bf16 %v563_v24  ;;  %v692_v44 = vunpack.c.l.bf16 %v564_v6  ;;  %v693_v4 = vunpack.c.l.bf16 %v565_v62  ;;  %v10282_v29 = vld [vmem:[%s8732_s3 + $0x160] sm:$0x2]  ;;  %v10288_v24 = vld [vmem:[%s8732_s3 + $0x170] sm:$0x2]  ;;  %v1332_v6 = vld [vmem:[%s8732_s3 + $0x178] sm:$0x2] }
 0x29d   : > { %v934_v1 = vrot.slane %v678_v38, 1  ;;  %v935_v20 = vrot.slane %v679_v34, 1  ;;  %v936_v50 = vrot.slane %v680_v11, 1  ;;  %v937_v51 = vrot.slane %v681_v2, 1  ;;  %v1333_v62 = vld [vmem:[%s8732_s3 + $0x17c] sm:$0x2] }
 0x29e   : > { %12551 = vst [vmem:[#allocation24_spill] sm:$0xff] %v10235_v18  ;;  %5972 = vmatmul.mubr.bf16.gmra.mrb[16].mxu1 %v10235_v18  ;;  %v938_v5 = vrot.slane %v682_v52, 1  ;;  %v939_v16 = vrot.slane %v683_v56, 1  ;;  %v940_v9 = vrot.slane %v684_v58, 1  ;;  %v941_v33 = vrot.slane %v685_v3, 1 }
 0x29f   : > { %5981 = vmatprep.mubr.bf16.mxu1 %v12550_v55  ;;  %v942_v59 = vrot.slane %v686_v35, 1  ;;  %v943_v39 = vrot.slane %v687_v53, 1  ;;  %v944_v63 = vrot.slane %v688_v47, 1  ;;  %v945_v54 = vrot.slane %v689_v10, 1 }
 0x2a0   : > { %v946_v26 = vrot.slane %v690_v25, 1  ;;  %v947_v37 = vrot.slane %v691_v32, 1  ;;  %v948_v23 = vrot.slane %v692_v44, 1  ;;  %v949_v43 = vrot.slane %v693_v4, 1 }
 0x2a1   : > { %v10239_v31 = vadd.f32 %v934_v1, %v678_v38  ;;  %v10241_v0 = vadd.f32 %v935_v20, %v679_v34  ;;  %v10246_v42 = vadd.f32 %v936_v50, %v680_v11  ;;  %v10248_v13 = vadd.f32 %v937_v51, %v681_v2  ;;  %v10270_v38 = vld [vmem:[%s8732_s3 + $0x154] sm:$0x2]  ;;  %v10276_v34 = vld [vmem:[%s8732_s3 + $0x158] sm:$0x2]  ;;  %v10279_v11 = vld [vmem:[%s8732_s3 + $0x15c] sm:$0x2] }
 0x2a2   : > { %v10250_v8 = vadd.f32 %v938_v5, %v682_v52  ;;  %v10252_v48 = vadd.f32 %v939_v16, %v683_v56  ;;  %v1196_v36 = vadd.f32 %v940_v9, %v684_v58  ;;  %v1197_v19 = vadd.f32 %v941_v33, %v685_v3  ;;  %v10291_v2 = vld [vmem:[%s8732_s3 + $0x174] sm:$0x2] }
 0x2a3   : > { %v1198_v45 = vadd.f32 %v942_v59, %v686_v35  ;;  %v1199_v40 = vadd.f32 %v943_v39, %v687_v53  ;;  %v1200_v27 = vadd.f32 %v944_v63, %v688_v47  ;;  %v1201_v14 = vadd.f32 %v945_v54, %v689_v10 }
 0x2a4   : > { %v1202_v49 = vadd.f32 %v946_v26, %v690_v25  ;;  %v1203_v61 = vadd.f32 %v947_v37, %v691_v32  ;;  %v1204_v12 = vadd.f32 %v948_v23, %v692_v44  ;;  %v1205_v46 = vadd.f32 %v949_v43, %v693_v4 }
 0x2a5   : > { %v1446_v52 = vunpack.c.l.bf16 %v10255_v41  ;;  %v1447_v21 = vunpack.c.l.bf16 %v10244_v60  ;;  %v1448_v56 = vunpack.c.l.bf16 %v10258_v17  ;;  %v1449_v58 = vunpack.c.l.bf16 %v10264_v15 }
 0x2a6   : > { %v1450_v3 = vunpack.c.l.bf16 %v10267_v7  ;;  %v1451_v28 = vunpack.c.l.bf16 %v10270_v38  ;;  %v1452_v35 = vunpack.c.l.bf16 %v10276_v34  ;;  %v1453_v53 = vunpack.c.l.bf16 %v10279_v11 }
 0x2a7   : > { %v1454_v47 = vunpack.c.l.bf16 %v10282_v29  ;;  %v1455_v10 = vunpack.c.l.bf16 %v10261_v22  ;;  %v1456_v25 = vunpack.c.l.bf16 %v10273_v57  ;;  %v1457_v32 = vunpack.c.l.bf16 %v10285_v30 }
 0x2a8   : > { %v1458_v44 = vunpack.c.l.bf16 %v10288_v24  ;;  %v1459_v4 = vunpack.c.l.bf16 %v10291_v2  ;;  %v1460_v1 = vunpack.c.l.bf16 %v1332_v6  ;;  %v1461_v20 = vunpack.c.l.bf16 %v1333_v62 }
 0x2a9   : > { %v1702_v50 = vrot.slane %v1446_v52, 2  ;;  %v1703_v51 = vrot.slane %v1447_v21, 2  ;;  %v1704_v5 = vrot.slane %v1448_v56, 2  ;;  %v1705_v16 = vrot.slane %v1449_v58, 2 }
 0x2aa   : > { %v1706_v9 = vrot.slane %v1450_v3, 2  ;;  %v1707_v33 = vrot.slane %v1451_v28, 2  ;;  %v1708_v59 = vrot.slane %v1452_v35, 2  ;;  %v1709_v39 = vrot.slane %v1453_v53, 2 }
 0x2ab   : > { %v1710_v63 = vrot.slane %v1454_v47, 2  ;;  %v1711_v54 = vrot.slane %v1455_v10, 2  ;;  %v1712_v26 = vrot.slane %v1456_v25, 2  ;;  %v1713_v37 = vrot.slane %v1457_v32, 2 }
 0x2ac   : > { %v1714_v23 = vrot.slane %v1458_v44, 2  ;;  %v1715_v43 = vrot.slane %v1459_v4, 2  ;;  %v1716_v60 = vrot.slane %v1460_v1, 2  ;;  %v1717_v41 = vrot.slane %v1461_v20, 2 }
 0x2ad   : > { %v1958_v17 = vadd.f32 %v1702_v50, %v10239_v31  ;;  %v1959_v22 = vadd.f32 %v1703_v51, %v10241_v0  ;;  %v1960_v15 = vadd.f32 %v1704_v5, %v10246_v42  ;;  %v1961_v7 = vadd.f32 %v1705_v16, %v10248_v13 }
 0x2ae   : > { %v1962_v38 = vadd.f32 %v1706_v9, %v10250_v8  ;;  %v1963_v57 = vadd.f32 %v1707_v33, %v10252_v48  ;;  %v1964_v34 = vadd.f32 %v1708_v59, %v1196_v36  ;;  %v1965_v11 = vadd.f32 %v1709_v39, %v1197_v19  ;;  %v10352_v39 = vld [vmem:[%s8732_s3 + $0x158] sm:$0x4] }
 0x2af   : > { %v1966_v29 = vadd.f32 %v1710_v63, %v1198_v45  ;;  %v1967_v30 = vadd.f32 %v1711_v54, %v1199_v40  ;;  %v1968_v24 = vadd.f32 %v1712_v26, %v1200_v27  ;;  %v1969_v2 = vadd.f32 %v1713_v37, %v1201_v14  ;;  %v10355_v63 = vld [vmem:[%s8732_s3 + $0x15c] sm:$0x4]  ;;  %v10358_v54 = vld [vmem:[%s8732_s3 + $0x160] sm:$0x4] }
 0x2b0   : > { %v1970_v6 = vadd.f32 %v1714_v23, %v1202_v49  ;;  %v1971_v62 = vadd.f32 %v1715_v43, %v1203_v61  ;;  %v1972_v18 = vadd.f32 %v1716_v60, %v1204_v12  ;;  %v1973_v31 = vadd.f32 %v1717_v41, %v1205_v46  ;;  %v10320_v46 = vld [vmem:[%s8732_s3 + $0x144] sm:$0x4]  ;;  %v10361_v23 = vld [vmem:[%s8732_s3 + $0x16c] sm:$0x4]  ;;  %v10364_v43 = vld [vmem:[%s8732_s3 + $0x170] sm:$0x4] }
 0x2b1   : > { %v2086_v50 = vrot.slane %v1446_v52, 3  ;;  %v2087_v0 = vrot.slane %v1447_v21, 3  ;;  %v2088_v51 = vrot.slane %v1448_v56, 3  ;;  %v2089_v42 = vrot.slane %v1449_v58, 3  ;;  %v10367_v60 = vld [vmem:[%s8732_s3 + $0x174] sm:$0x4] }
 0x2b2   : > { %v2090_v13 = vrot.slane %v1450_v3, 3  ;;  %v2091_v5 = vrot.slane %v1451_v28, 3  ;;  %v2092_v8 = vrot.slane %v1452_v35, 3  ;;  %v2093_v16 = vrot.slane %v1453_v53, 3  ;;  %v10331_v3 = vld [vmem:[%s8732_s3 + $0x140] sm:$0x4] }
 0x2b3   : > { %v2094_v48 = vrot.slane %v1454_v47, 3  ;;  %v2095_v36 = vrot.slane %v1455_v10, 3  ;;  %v2096_v19 = vrot.slane %v1456_v25, 3  ;;  %v2097_v45 = vrot.slane %v1457_v32, 3  ;;  %v10334_v28 = vld [vmem:[%s8732_s3 + $0x148] sm:$0x4] }
 0x2b4   : > { %v2098_v40 = vrot.slane %v1458_v44, 3  ;;  %v2099_v27 = vrot.slane %v1459_v4, 3  ;;  %v2100_v14 = vrot.slane %v1460_v1, 3  ;;  %v2101_v49 = vrot.slane %v1461_v20, 3  ;;  %v10337_v35 = vld [vmem:[%s8732_s3 + $0x164] sm:$0x4] }
 0x2b5   : > { %v10315_v61 = vadd.f32 %v2086_v50, %v1958_v17  ;;  %v10317_v12 = vadd.f32 %v2087_v0, %v1959_v22  ;;  %v10322_v52 = vadd.f32 %v2088_v51, %v1960_v15  ;;  %v10324_v21 = vadd.f32 %v2089_v42, %v1961_v7  ;;  %v10340_v32 = vld [vmem:[%s8732_s3 + $0x14c] sm:$0x4]  ;;  %v10343_v44 = vld [vmem:[%s8732_s3 + $0x150] sm:$0x4]  ;;  %v10346_v4 = vld [vmem:[%s8732_s3 + $0x154] sm:$0x4] }
 0x2b6   : > { %v10326_v56 = vadd.f32 %v2090_v13, %v1962_v38  ;;  %v10328_v58 = vadd.f32 %v2091_v5, %v1963_v57  ;;  %v2348_v53 = vadd.f32 %v2092_v8, %v1964_v34  ;;  %v2349_v47 = vadd.f32 %v2093_v16, %v1965_v11  ;;  %v10349_v1 = vld [vmem:[%s8732_s3 + $0x168] sm:$0x4]  ;;  %v2484_v22 = vld [vmem:[%s8732_s3 + $0x178] sm:$0x4]  ;;  %v2485_v15 = vld [vmem:[%s8732_s3 + $0x17c] sm:$0x4] }
 0x2b7   : > { %v2350_v10 = vadd.f32 %v2094_v48, %v1966_v29  ;;  %v2351_v25 = vadd.f32 %v2095_v36, %v1967_v30  ;;  %v2352_v20 = vadd.f32 %v2096_v19, %v1968_v24  ;;  %v2353_v9 = vadd.f32 %v2097_v45, %v1969_v2 }
 0x2b8   : > { %v2354_v33 = vadd.f32 %v2098_v40, %v1970_v6  ;;  %v2355_v59 = vadd.f32 %v2099_v27, %v1971_v62  ;;  %v2356_v26 = vadd.f32 %v2100_v14, %v1972_v18  ;;  %v2357_v37 = vadd.f32 %v2101_v49, %v1973_v31 }
 0x2b9   : > { %v2598_v41 = vunpack.c.l.bf16 %v10331_v3  ;;  %v2599_v17 = vunpack.c.l.bf16 %v10320_v46  ;;  %v2600_v7 = vunpack.c.l.bf16 %v10334_v28  ;;  %v2601_v38 = vunpack.c.l.bf16 %v10340_v32 }
 0x2ba   : > { %v2602_v57 = vunpack.c.l.bf16 %v10343_v44  ;;  %v2603_v18 = vunpack.c.l.bf16 %v10346_v4  ;;  %v2604_v34 = vunpack.c.l.bf16 %v10352_v39  ;;  %v2605_v11 = vunpack.c.l.bf16 %v10355_v63 }
 0x2bb   : > { %v2606_v29 = vunpack.c.l.bf16 %v10358_v54  ;;  %v2607_v30 = vunpack.c.l.bf16 %v10337_v35  ;;  %v2608_v24 = vunpack.c.l.bf16 %v10349_v1  ;;  %v2609_v2 = vunpack.c.l.bf16 %v10361_v23 }
 0x2bc   : > { %v2610_v6 = vunpack.c.l.bf16 %v10364_v43  ;;  %v2611_v62 = vunpack.c.l.bf16 %v10367_v60  ;;  %v2612_v31 = vunpack.c.l.bf16 %v2484_v22  ;;  %v2613_v50 = vunpack.c.l.bf16 %v2485_v15 }
 0x2bd   : > { %v2854_v0 = vrot.slane %v2598_v41, 4  ;;  %v2855_v51 = vrot.slane %v2599_v17, 4  ;;  %v2856_v42 = vrot.slane %v2600_v7, 4  ;;  %v2857_v13 = vrot.slane %v2601_v38, 4 }
 0x2be   : > { %v2858_v5 = vrot.slane %v2602_v57, 4  ;;  %v2859_v8 = vrot.slane %v2603_v18, 4  ;;  %v2860_v16 = vrot.slane %v2604_v34, 4  ;;  %v2861_v48 = vrot.slane %v2605_v11, 4 }
 0x2bf   : > { %v2862_v36 = vrot.slane %v2606_v29, 4  ;;  %v2863_v19 = vrot.slane %v2607_v30, 4  ;;  %v2864_v45 = vrot.slane %v2608_v24, 4  ;;  %v2865_v40 = vrot.slane %v2609_v2, 4 }
 0x2c0   : > { %v2866_v27 = vrot.slane %v2610_v6, 4  ;;  %v2867_v14 = vrot.slane %v2611_v62, 4  ;;  %v2868_v49 = vrot.slane %v2612_v31, 4  ;;  %v2869_v46 = vrot.slane %v2613_v50, 4 }
 0x2c1   : > { %v3110_v3 = vadd.f32 %v2854_v0, %v10315_v61  ;;  %v3111_v28 = vadd.f32 %v2855_v51, %v10317_v12  ;;  %v3112_v35 = vadd.f32 %v2856_v42, %v10322_v52  ;;  %v3113_v32 = vadd.f32 %v2857_v13, %v10324_v21 }
 0x2c2   : > { %v3114_v44 = vadd.f32 %v2858_v5, %v10326_v56  ;;  %v3115_v4 = vadd.f32 %v2859_v8, %v10328_v58  ;;  %v3116_v1 = vadd.f32 %v2860_v16, %v2348_v53  ;;  %v3117_v39 = vadd.f32 %v2861_v48, %v2349_v47  ;;  %v10428_v48 = vld [vmem:[%s8732_s3 + $0x158] sm:$0x8] }
 0x2c3   : > { %v3118_v63 = vadd.f32 %v2862_v36, %v2350_v10  ;;  %v3119_v54 = vadd.f32 %v2863_v19, %v2351_v25  ;;  %v3120_v23 = vadd.f32 %v2864_v45, %v2352_v20  ;;  %v3121_v43 = vadd.f32 %v2865_v40, %v2353_v9  ;;  %v10431_v36 = vld [vmem:[%s8732_s3 + $0x15c] sm:$0x8]  ;;  %v10434_v19 = vld [vmem:[%s8732_s3 + $0x160] sm:$0x8] }
 0x2c4   : > { %v3122_v60 = vadd.f32 %v2866_v27, %v2354_v33  ;;  %v3123_v22 = vadd.f32 %v2867_v14, %v2355_v59  ;;  %v3124_v15 = vadd.f32 %v2868_v49, %v2356_v26  ;;  %v3125_v61 = vadd.f32 %v2869_v46, %v2357_v37  ;;  %v10396_v37 = vld [vmem:[%s8732_s3 + $0x144] sm:$0x8]  ;;  %v10437_v27 = vld [vmem:[%s8732_s3 + $0x16c] sm:$0x8]  ;;  %v10440_v14 = vld [vmem:[%s8732_s3 + $0x170] sm:$0x8] }
 0x2c5   : > { %v3238_v0 = vrot.slane %v2598_v41, 5  ;;  %v3239_v12 = vrot.slane %v2599_v17, 5  ;;  %v3240_v51 = vrot.slane %v2600_v7, 5  ;;  %v3241_v52 = vrot.slane %v2601_v38, 5  ;;  %v10443_v49 = vld [vmem:[%s8732_s3 + $0x174] sm:$0x8] }
 0x2c6   : > { %v3242_v21 = vrot.slane %v2602_v57, 5  ;;  %v3243_v42 = vrot.slane %v2603_v18, 5  ;;  %v3244_v56 = vrot.slane %v2604_v34, 5  ;;  %v3245_v13 = vrot.slane %v2605_v11, 5  ;;  %v10407_v57 = vld [vmem:[%s8732_s3 + $0x140] sm:$0x8] }
 0x2c7   : > { %v3246_v58 = vrot.slane %v2606_v29, 5  ;;  %v3247_v53 = vrot.slane %v2607_v30, 5  ;;  %v3248_v47 = vrot.slane %v2608_v24, 5  ;;  %v3249_v10 = vrot.slane %v2609_v2, 5  ;;  %v10410_v18 = vld [vmem:[%s8732_s3 + $0x148] sm:$0x8] }
 0x2c8   : > { %v3250_v25 = vrot.slane %v2610_v6, 5  ;;  %v3251_v20 = vrot.slane %v2611_v62, 5  ;;  %v3252_v9 = vrot.slane %v2612_v31, 5  ;;  %v3253_v33 = vrot.slane %v2613_v50, 5  ;;  %v10413_v34 = vld [vmem:[%s8732_s3 + $0x164] sm:$0x8] }
 0x2c9   : > { %v10391_v59 = vadd.f32 %v3238_v0, %v3110_v3  ;;  %v10393_v26 = vadd.f32 %v3239_v12, %v3111_v28  ;;  %v10398_v41 = vadd.f32 %v3240_v51, %v3112_v35  ;;  %v10400_v17 = vadd.f32 %v3241_v52, %v3113_v32  ;;  %v10416_v2 = vld [vmem:[%s8732_s3 + $0x14c] sm:$0x8]  ;;  %v10419_v6 = vld [vmem:[%s8732_s3 + $0x150] sm:$0x8]  ;;  %v10422_v62 = vld [vmem:[%s8732_s3 + $0x154] sm:$0x8] }
 0x2ca   : > { %v10402_v7 = vadd.f32 %v3242_v21, %v3114_v44  ;;  %v10404_v38 = vadd.f32 %v3243_v42, %v3115_v4  ;;  %v3500_v11 = vadd.f32 %v3244_v56, %v3116_v1  ;;  %v3501_v29 = vadd.f32 %v3245_v13, %v3117_v39  ;;  %v10425_v31 = vld [vmem:[%s8732_s3 + $0x168] sm:$0x8]  ;;  %v3636_v28 = vld [vmem:[%s8732_s3 + $0x178] sm:$0x8]  ;;  %v3637_v35 = vld [vmem:[%s8732_s3 + $0x17c] sm:$0x8] }
 0x2cb   : > { %v3502_v30 = vadd.f32 %v3246_v58, %v3118_v63  ;;  %v3503_v24 = vadd.f32 %v3247_v53, %v3119_v54  ;;  %v3504_v50 = vadd.f32 %v3248_v47, %v3120_v23  ;;  %v3505_v5 = vadd.f32 %v3249_v10, %v3121_v43 }
 0x2cc   : > { %v3506_v8 = vadd.f32 %v3250_v25, %v3122_v60  ;;  %v3507_v16 = vadd.f32 %v3251_v20, %v3123_v22  ;;  %v3508_v45 = vadd.f32 %v3252_v9, %v3124_v15  ;;  %v3509_v40 = vadd.f32 %v3253_v33, %v3125_v61 }
 0x2cd   : > { %v3750_v46 = vunpack.c.l.bf16 %v10407_v57  ;;  %v3751_v3 = vunpack.c.l.bf16 %v10396_v37  ;;  %v3752_v32 = vunpack.c.l.bf16 %v10410_v18  ;;  %v3753_v44 = vunpack.c.l.bf16 %v10416_v2 }
 0x2ce   : > { %v3754_v4 = vunpack.c.l.bf16 %v10419_v6  ;;  %v3755_v1 = vunpack.c.l.bf16 %v10422_v62  ;;  %v3756_v39 = vunpack.c.l.bf16 %v10428_v48  ;;  %v3757_v63 = vunpack.c.l.bf16 %v10431_v36 }
 0x2cf   : > { %v3758_v54 = vunpack.c.l.bf16 %v10434_v19  ;;  %v3759_v23 = vunpack.c.l.bf16 %v10413_v34  ;;  %v3760_v43 = vunpack.c.l.bf16 %v10425_v31  ;;  %v3761_v60 = vunpack.c.l.bf16 %v10437_v27 }
 0x2d0   : > { %v3762_v22 = vunpack.c.l.bf16 %v10440_v14  ;;  %v3763_v15 = vunpack.c.l.bf16 %v10443_v49  ;;  %v3764_v61 = vunpack.c.l.bf16 %v3636_v28  ;;  %v3765_v0 = vunpack.c.l.bf16 %v3637_v35 }
 0x2d1   : > { %v4006_v12 = vrot.slane %v3750_v46, 6  ;;  %v4007_v51 = vrot.slane %v3751_v3, 6  ;;  %v4008_v52 = vrot.slane %v3752_v32, 6  ;;  %v4009_v21 = vrot.slane %v3753_v44, 6 }
 0x2d2   : > { %v4010_v42 = vrot.slane %v3754_v4, 6  ;;  %v4011_v56 = vrot.slane %v3755_v1, 6  ;;  %v4012_v13 = vrot.slane %v3756_v39, 6  ;;  %v4013_v58 = vrot.slane %v3757_v63, 6 }
 0x2d3   : > { %v4014_v53 = vrot.slane %v3758_v54, 6  ;;  %v4015_v47 = vrot.slane %v3759_v23, 6  ;;  %v4016_v10 = vrot.slane %v3760_v43, 6  ;;  %v4017_v25 = vrot.slane %v3761_v60, 6 }
 0x2d4   : > { %v4018_v20 = vrot.slane %v3762_v22, 6  ;;  %v4019_v9 = vrot.slane %v3763_v15, 6  ;;  %v4020_v33 = vrot.slane %v3764_v61, 6  ;;  %v4021_v37 = vrot.slane %v3765_v0, 6 }
 0x2d5   : > { %v4262_v57 = vadd.f32 %v4006_v12, %v10391_v59  ;;  %v4263_v18 = vadd.f32 %v4007_v51, %v10393_v26  ;;  %v4264_v34 = vadd.f32 %v4008_v52, %v10398_v41  ;;  %v4265_v2 = vadd.f32 %v4009_v21, %v10400_v17 }
 0x2d6   : > { %v4266_v6 = vadd.f32 %v4010_v42, %v10402_v7  ;;  %v4267_v62 = vadd.f32 %v4011_v56, %v10404_v38  ;;  %v4268_v31 = vadd.f32 %v4012_v13, %v3500_v11  ;;  %v4269_v48 = vadd.f32 %v4013_v58, %v3501_v29 }
 0x2d7   : > { %v4270_v36 = vadd.f32 %v4014_v53, %v3502_v30  ;;  %v4271_v19 = vadd.f32 %v4015_v47, %v3503_v24  ;;  %v4272_v27 = vadd.f32 %v4016_v10, %v3504_v50  ;;  %v4273_v14 = vadd.f32 %v4017_v25, %v3505_v5 }
 0x2d8   : > { %v4274_v49 = vadd.f32 %v4018_v20, %v3506_v8  ;;  %v4275_v28 = vadd.f32 %v4019_v9, %v3507_v16  ;;  %v4276_v35 = vadd.f32 %v4020_v33, %v3508_v45  ;;  %v4277_v59 = vadd.f32 %v4021_v37, %v3509_v40 }
 0x2d9   : > { %v4391_v12 = vrot.slane %v3751_v3, 7  ;;  %v4392_v26 = vrot.slane %v3752_v32, 7  ;;  %v4393_v51 = vrot.slane %v3753_v44, 7  ;;  %v4394_v41 = vrot.slane %v3754_v4, 7 }
 0x2da   : > { %v4395_v52 = vrot.slane %v3755_v1, 7  ;;  %v4396_v17 = vrot.slane %v3756_v39, 7  ;;  %v4390_v21 = vrot.slane %v3750_v46, 7  ;;  %v4397_v7 = vrot.slane %v3757_v63, 7 }
 0x2db   : > { %v4399_v42 = vrot.slane %v3759_v23, 7  ;;  %v4400_v38 = vrot.slane %v3760_v43, 7  ;;  %v4398_v11 = vrot.slane %v3758_v54, 7  ;;  %v4401_v29 = vrot.slane %v3761_v60, 7 }
 0x2dc   : > { %v4402_v30 = vrot.slane %v3762_v22, 7  ;;  %v4403_v24 = vrot.slane %v3763_v15, 7  ;;  %v4404_v50 = vrot.slane %v3764_v61, 7  ;;  %v4405_v5 = vrot.slane %v3765_v0, 7 }
 0x2dd   : > { %v4647_v8 = vadd.f32 %v4391_v12, %v4263_v18  ;;  %v4648_v16 = vadd.f32 %v4392_v26, %v4264_v34  ;;  %v4649_v45 = vadd.f32 %v4393_v51, %v4265_v2  ;;  %v4650_v40 = vadd.f32 %v4394_v41, %v4266_v6 }
 0x2de   : > { %v4651_v3 = vadd.f32 %v4395_v52, %v4267_v62  ;;  %v4652_v32 = vadd.f32 %v4396_v17, %v4268_v31  ;;  %v4646_v44 = vadd.f32 %v4390_v21, %v4262_v57  ;;  %v4653_v4 = vadd.f32 %v4397_v7, %v4269_v48 }
 0x2df   : > { %v4655_v1 = vadd.f32 %v4399_v42, %v4271_v19  ;;  %v4656_v39 = vadd.f32 %v4400_v38, %v4272_v27  ;;  %v4654_v46 = vadd.f32 %v4398_v11, %v4270_v36  ;;  %v4657_v63 = vadd.f32 %v4401_v29, %v4273_v14 }
 0x2e0   : > { %v4658_v23 = vadd.f32 %v4402_v30, %v4274_v49  ;;  %v4659_v43 = vadd.f32 %v4403_v24, %v4275_v28  ;;  %v4660_v54 = vadd.f32 %v4404_v50, %v4276_v35  ;;  %v4661_v60 = vadd.f32 %v4405_v5, %v4277_v59 }
 0x2e1   : > { %v4775_v22 = vmul.f32 0.125, %v4647_v8  ;;  %v4776_v15 = vmul.f32 0.125, %v4648_v16  ;;  %v4777_v61 = vmul.f32 0.125, %v4649_v45  ;;  %v4778_v0 = vmul.f32 0.125, %v4650_v40 }
 0x2e2   : > { %v4779_v56 = vmul.f32 0.125, %v4651_v3  ;;  %v4780_v13 = vmul.f32 0.125, %v4652_v32  ;;  %v4774_v58 = vmul.f32 0.125, %v4646_v44  ;;  %v4781_v53 = vmul.f32 0.125, %v4653_v4  ;;  %v450_v4 = vld [vmem:[%s8724_s19 + $0x30] sm:$0xff]  }
 0x2e3   : > { %v4783_v47 = vmul.f32 0.125, %v4655_v1  ;;  %v4784_v10 = vmul.f32 0.125, %v4656_v39  ;;  %v4782_v25 = vmul.f32 0.125, %v4654_v46  ;;  %v4785_v20 = vmul.f32 0.125, %v4657_v63  ;;  %v10469_v1 = vld [vmem:[%s8732_s3 + $0x184] sm:$0x1]  ;;  %5199 = vmatmul.mubr.bf16.gmra.mrb[24].mxu0 %v450_v4 }
 0x2e4   : > { %v4786_v9 = vmul.f32 0.125, %v4658_v23  ;;  %v4787_v33 = vmul.f32 0.125, %v4659_v43  ;;  %v4788_v37 = vmul.f32 0.125, %v4660_v54  ;;  %v4789_v57 = vmul.f32 0.125, %v4661_v60  ;;  %v10473_v43 = vld [vmem:[%s8732_s3 + $0x180] sm:$0x1]  ;;  %5208 = vmatprep.mubr.bf16.mxu0 %v12550_v55 }
 0x2e5   : > { %v4903_v18 = vpack.c.bf16 %v4775_v22, %v4775_v22  ;;  %v4904_v34 = vpack.c.bf16 %v4776_v15, %v4776_v15  ;;  %v4905_v2 = vpack.c.bf16 %v4777_v61, %v4777_v61  ;;  %v4906_v6 = vpack.c.bf16 %v4778_v0, %v4778_v0  ;;  %v10477_v61 = vld [vmem:[%s8732_s3 + $0x188] sm:$0x1] }
 0x2e6   : > { %v4907_v62 = vpack.c.bf16 %v4779_v56, %v4779_v56  ;;  %v4908_v31 = vpack.c.bf16 %v4780_v13, %v4780_v13  ;;  %v4902_v48 = vpack.c.bf16 %v4774_v58, %v4774_v58  ;;  %v4909_v36 = vpack.c.bf16 %v4781_v53, %v4781_v53  ;;  %v10482_v58 = vld [vmem:[%s8732_s3 + $0x18c] sm:$0x1]  ;;  %v10485_v53 = vld [vmem:[%s8732_s3 + $0x190] sm:$0x1] }
 0x2e7   : > { %v4911_v19 = vpack.c.bf16 %v4783_v47, %v4783_v47  ;;  %v4912_v27 = vpack.c.bf16 %v4784_v10, %v4784_v10  ;;  %v4910_v14 = vpack.c.bf16 %v4782_v25, %v4782_v25  ;;  %v4913_v49 = vpack.c.bf16 %v4785_v20, %v4785_v20  ;;  %v10490_v20 = vld [vmem:[%s8732_s3 + $0x194] sm:$0x1] }
 0x2e8   : > { %v4914_v28 = vpack.c.bf16 %v4786_v9, %v4786_v9  ;;  %v4915_v35 = vpack.c.bf16 %v4787_v33, %v4787_v33  ;;  %v4916_v59 = vpack.c.bf16 %v4788_v37, %v4788_v37  ;;  %v4917_v12 = vpack.c.bf16 %v4789_v57, %v4789_v57  ;;  %v10493_v9 = vld [vmem:[%s8732_s3 + $0x198] sm:$0x1] }
 0x2e9   : > { %v5477_v26 = vunpack.c.l.b16 %v4903_v18  ;;  %v5478_v51 = vunpack.c.l.b16 %v4904_v34  ;;  %v5479_v41 = vunpack.c.l.b16 %v4905_v2  ;;  %v5480_v52 = vunpack.c.l.b16 %v4906_v6  ;;  %v573_v18 = vld [vmem:[%s8732_s3 + $0x19c] sm:$0x1]  ;;  %v10500_v34 = vld [vmem:[%s8732_s3 + $0x1a0] sm:$0x1]  ;;  %v10503_v2 = vld [vmem:[%s8732_s3 + $0x1a4] sm:$0x1] }
 0x2ea   : > { %v5481_v17 = vunpack.c.l.b16 %v4907_v62  ;;  %v5482_v21 = vunpack.c.l.b16 %v4908_v31  ;;  %v5476_v7 = vunpack.c.l.b16 %v4902_v48  ;;  %v5483_v42 = vunpack.c.l.b16 %v4909_v36  ;;  %v576_v36 = vld [vmem:[%s8732_s3 + $0x1a8] sm:$0x1] }
 0x2eb   : > { %v5485_v38 = vunpack.c.l.b16 %v4911_v19  ;;  %v5486_v11 = vunpack.c.l.b16 %v4912_v27  ;;  %v5484_v29 = vunpack.c.l.b16 %v4910_v14  ;;  %v5487_v30 = vunpack.c.l.b16 %v4913_v49  ;;  %v577_v19 = vld [vmem:[%s8732_s3 + $0x1ac] sm:$0x1]  ;;  %v10512_v27 = vld [vmem:[%s8732_s3 + $0x1b0] sm:$0x1] }
 0x2ec   : > { %v5488_v24 = vunpack.c.l.b16 %v4914_v28  ;;  %v5489_v50 = vunpack.c.l.b16 %v4915_v35  ;;  %v5490_v5 = vunpack.c.l.b16 %v4916_v59  ;;  %v5671_v8 = vrot.slane %v5477_v26, 7  ;;  %v579_v59 = vld [vmem:[%s8732_s3 + $0x1b4] sm:$0x1]  ;;  %v581_v26 = vld [vmem:[%s8732_s3 + $0x1bc] sm:$0x1] }
 0x2ed   : > { %v5673_v16 = vrot.slane %v5478_v51, 6  ;;  %v5675_v45 = vrot.slane %v5479_v41, 5  ;;  %v5491_v40 = vunpack.c.l.b16 %v4917_v12  ;;  %v5677_v3 = vrot.slane %v5480_v52, 4  ;;  %v580_v12 = vld [vmem:[%s8732_s3 + $0x1b8] sm:$0x1] }
 0x2ee   : > { %v5679_v32 = vrot.slane %v5481_v17, 3  ;;  %v5681_v44 = vrot.slane %v5482_v21, 2  ;;  %v5672_v39 = vsel %vm5525_vm0, %v5671_v8, %v5476_v7  ;;  %v5685_v46 = vrot.slane %v5485_v38, 7 }
 0x2ef   : > { %v5687_v63 = vrot.slane %v5486_v11, 6  ;;  %v5689_v23 = vrot.slane %v5487_v30, 5  ;;  %v5674_v54 = vsel %vm5528_vm1, %v5673_v16, %v5672_v39  ;;  %v5683_v60 = vrot.slane %v5483_v42, 1 }
 0x2f0   : > { %v5691_v22 = vrot.slane %v5488_v24, 4  ;;  %v5693_v15 = vrot.slane %v5489_v50, 3  ;;  %v5676_v0 = vsel %vm5531_vm2, %v5675_v45, %v5674_v54  ;;  %v5686_v56 = vsel %vm5525_vm0, %v5685_v46, %v5484_v29 }
 0x2f1   : > { %v5695_v13 = vrot.slane %v5490_v5, 2  ;;  %v5678_v47 = vsel %vm5534_vm3, %v5677_v3, %v5676_v0  ;;  %v5688_v10 = vsel %vm5528_vm1, %v5687_v63, %v5686_v56  ;;  %v5697_v25 = vrot.slane %v5491_v40, 1  ;;  %v10542_v56 = vld [vmem:[%s8732_s3 + $0x184] sm:$0x2] }
 0x2f2   : > { %v694_v33 = vunpack.c.l.bf16 %v10473_v43  ;;  %v5680_v37 = vsel %vm5537_vm4, %v5679_v32, %v5678_v47  ;;  %v5690_v57 = vsel %vm5531_vm2, %v5689_v23, %v5688_v10  ;;  %v695_v6 = vunpack.c.l.bf16 %v10469_v1 }
 0x2f3   : > { %v696_v62 = vunpack.c.l.bf16 %v10477_v61  ;;  %v5682_v31 = vsel %vm5540_vm5, %v5681_v44, %v5680_v37  ;;  %v5692_v48 = vsel %vm5534_vm3, %v5691_v22, %v5690_v57  ;;  %v697_v14 = vunpack.c.l.bf16 %v10482_v58  ;;  %v10560_v37 = vld [vmem:[%s8732_s3 + $0x1a8] sm:$0x2] }
 0x2f4   : > { %v698_v49 = vunpack.c.l.bf16 %v10485_v53  ;;  %v5684_v28 = vsel %vm5543_vm6, %v5683_v60, %v5682_v31  ;;  %v5694_v35 = vsel %vm5537_vm4, %v5693_v15, %v5692_v48  ;;  %v699_v51 = vunpack.c.l.bf16 %v10490_v20  ;;  %v10551_v20 = vld [vmem:[%s8732_s3 + $0x18c] sm:$0x2]  ;;  %v10569_v31 = vld [vmem:[%s8732_s3 + $0x19c] sm:$0x2] }
 0x2f5   : > { %v700_v41 = vunpack.c.l.bf16 %v10493_v9  ;;  %v5696_v52 = vsel %vm5540_vm5, %v5695_v13, %v5694_v35  ;;  %v701_v17 = vunpack.c.l.bf16 %v573_v18  ;;  %v702_v21 = vunpack.c.l.bf16 %v10500_v34  ;;  %v10545_v13 = vld [vmem:[%s8732_s3 + $0x188] sm:$0x2]  ;;  %v10554_v9 = vld [vmem:[%s8732_s3 + $0x190] sm:$0x2]  ;;  %v10579_v35 = vld [vmem:[%s8732_s3 + $0x1b4] sm:$0x2] }
 0x2f6   : > { %v703_v7 = vunpack.c.l.bf16 %v10503_v2  ;;  %v5698_v42 = vsel %vm5543_vm6, %v5697_v25, %v5696_v52  ;;  %v704_v38 = vunpack.c.l.bf16 %v576_v36  ;;  %v705_v11 = vunpack.c.l.bf16 %v577_v19  ;;  %v10548_v25 = vld [vmem:[%s8732_s3 + $0x180] sm:$0x2] }
 0x2f7   : > { %v706_v29 = vunpack.c.l.bf16 %v10512_v27  ;;  %v10529_v30 = vpack.c.b16 %v5698_v42, %v5684_v28  ;;  %v707_v24 = vunpack.c.l.bf16 %v579_v59  ;;  %v708_v50 = vunpack.c.l.bf16 %v580_v12  ;;  %v10576_v28 = vld [vmem:[%s8732_s3 + $0x1b0] sm:$0x2]  ;;  %v10582_v59 = vld [vmem:[%s8732_s3 + $0x1b8] sm:$0x2]  ;;  %v10585_v12 = vld [vmem:[%s8732_s3 + $0x1bc] sm:$0x2] }
 0x2f8   : > { %v709_v5 = vunpack.c.l.bf16 %v581_v26  ;;  %v950_v8 = vrot.slane %v694_v33, 1  ;;  %v951_v16 = vrot.slane %v695_v6, 1  ;;  %v952_v45 = vrot.slane %v696_v62, 1 }
 0x2f9   : > { %12552 = vst [vmem:[#allocation25_spill] sm:$0xff] %v10529_v30  ;;  %v953_v40 = vrot.slane %v697_v14, 1  ;;  %5982 = vmatmul.mubr.bf16.gmra.mrb[20].mxu1 %v10529_v30  ;;  %v954_v3 = vrot.slane %v698_v49, 1  ;;  %v955_v32 = vrot.slane %v699_v51, 1  ;;  %v956_v44 = vrot.slane %v700_v41, 1 }
 0x2fa   : > { %v957_v4 = vrot.slane %v701_v17, 1  ;;  %5991 = vmatprep.mubr.bf16.mxu1 %v12550_v55  ;;  %v958_v1 = vrot.slane %v702_v21, 1  ;;  %v959_v39 = vrot.slane %v703_v7, 1  ;;  %v960_v46 = vrot.slane %v704_v38, 1 }
 0x2fb   : > { %v961_v63 = vrot.slane %v705_v11, 1  ;;  %v962_v23 = vrot.slane %v706_v29, 1  ;;  %v963_v43 = vrot.slane %v707_v24, 1  ;;  %v964_v54 = vrot.slane %v708_v50, 1 }
 0x2fc   : > { %v965_v60 = vrot.slane %v709_v5, 1  ;;  %v10533_v22 = vadd.f32 %v950_v8, %v694_v33  ;;  %v10535_v15 = vadd.f32 %v951_v16, %v695_v6  ;;  %v10537_v61 = vadd.f32 %v952_v45, %v696_v62  ;;  %v10557_v33 = vld [vmem:[%s8732_s3 + $0x1a4] sm:$0x2]  ;;  %v10563_v6 = vld [vmem:[%s8732_s3 + $0x194] sm:$0x2] }
 0x2fd   : > { %v10539_v0 = vadd.f32 %v953_v40, %v697_v14  ;;  %v1210_v58 = vadd.f32 %v954_v3, %v698_v49  ;;  %v1211_v53 = vadd.f32 %v955_v32, %v699_v51  ;;  %v1212_v47 = vadd.f32 %v956_v44, %v700_v41  ;;  %v10566_v62 = vld [vmem:[%s8732_s3 + $0x198] sm:$0x2]  ;;  %v1342_v14 = vld [vmem:[%s8732_s3 + $0x1a0] sm:$0x2]  ;;  %v10573_v49 = vld [vmem:[%s8732_s3 + $0x1ac] sm:$0x2] }
 0x2fe   : > { %v1213_v10 = vadd.f32 %v957_v4, %v701_v17  ;;  %v1214_v57 = vadd.f32 %v958_v1, %v702_v21  ;;  %v1215_v18 = vadd.f32 %v959_v39, %v703_v7  ;;  %v1216_v34 = vadd.f32 %v960_v46, %v704_v38 }
 0x2ff   : > { %v1217_v2 = vadd.f32 %v961_v63, %v705_v11  ;;  %v1218_v48 = vadd.f32 %v962_v23, %v706_v29  ;;  %v1219_v36 = vadd.f32 %v963_v43, %v707_v24  ;;  %v1220_v19 = vadd.f32 %v964_v54, %v708_v50 }
 0x300   : > { %v1221_v27 = vadd.f32 %v965_v60, %v709_v5  ;;  %v1462_v26 = vunpack.c.l.bf16 %v10548_v25  ;;  %v1463_v51 = vunpack.c.l.bf16 %v10542_v56  ;;  %v1464_v41 = vunpack.c.l.bf16 %v10545_v13 }
 0x301   : > { %v1465_v52 = vunpack.c.l.bf16 %v10551_v20  ;;  %v1466_v17 = vunpack.c.l.bf16 %v10554_v9  ;;  %v1467_v21 = vunpack.c.l.bf16 %v10563_v6  ;;  %v1468_v7 = vunpack.c.l.bf16 %v10566_v62 }
 0x302   : > { %v1469_v42 = vunpack.c.l.bf16 %v10569_v31  ;;  %v1470_v38 = vunpack.c.l.bf16 %v1342_v14  ;;  %v1471_v11 = vunpack.c.l.bf16 %v10557_v33  ;;  %v1472_v29 = vunpack.c.l.bf16 %v10560_v37 }
 0x303   : > { %v1473_v24 = vunpack.c.l.bf16 %v10573_v49  ;;  %v1474_v50 = vunpack.c.l.bf16 %v10576_v28  ;;  %v1475_v5 = vunpack.c.l.bf16 %v10579_v35  ;;  %v1476_v8 = vunpack.c.l.bf16 %v10582_v59 }
 0x304   : > { %v1477_v16 = vunpack.c.l.bf16 %v10585_v12  ;;  %v1718_v45 = vrot.slane %v1462_v26, 2  ;;  %v1719_v40 = vrot.slane %v1463_v51, 2  ;;  %v1720_v3 = vrot.slane %v1464_v41, 2 }
 0x305   : > { %v1721_v32 = vrot.slane %v1465_v52, 2  ;;  %v1722_v44 = vrot.slane %v1466_v17, 2  ;;  %v1723_v4 = vrot.slane %v1467_v21, 2  ;;  %v1724_v1 = vrot.slane %v1468_v7, 2 }
 0x306   : > { %v1725_v39 = vrot.slane %v1469_v42, 2  ;;  %v1726_v46 = vrot.slane %v1470_v38, 2  ;;  %v1727_v63 = vrot.slane %v1471_v11, 2  ;;  %v1728_v23 = vrot.slane %v1472_v29, 2 }
 0x307   : > { %v1729_v43 = vrot.slane %v1473_v24, 2  ;;  %v1730_v54 = vrot.slane %v1474_v50, 2  ;;  %v1731_v60 = vrot.slane %v1475_v5, 2  ;;  %v1732_v56 = vrot.slane %v1476_v8, 2 }
 0x308   : > { %v1733_v13 = vrot.slane %v1477_v16, 2  ;;  %v1974_v25 = vadd.f32 %v1718_v45, %v10533_v22  ;;  %v1975_v20 = vadd.f32 %v1719_v40, %v10535_v15  ;;  %v1976_v9 = vadd.f32 %v1720_v3, %v10537_v61 }
 0x309   : > { %v1977_v33 = vadd.f32 %v1721_v32, %v10539_v0  ;;  %v1978_v37 = vadd.f32 %v1722_v44, %v1210_v58  ;;  %v1979_v6 = vadd.f32 %v1723_v4, %v1211_v53  ;;  %v1980_v62 = vadd.f32 %v1724_v1, %v1212_v47  ;;  %v10636_v32 = vld [vmem:[%s8732_s3 + $0x194] sm:$0x4]  ;;  %v10639_v44 = vld [vmem:[%s8732_s3 + $0x198] sm:$0x4]  ;;  %v10642_v4 = vld [vmem:[%s8732_s3 + $0x19c] sm:$0x4] }
 0x30a   : > { %v1981_v31 = vadd.f32 %v1725_v39, %v1213_v10  ;;  %v1982_v14 = vadd.f32 %v1726_v46, %v1214_v57  ;;  %v1983_v49 = vadd.f32 %v1727_v63, %v1215_v18  ;;  %v1984_v28 = vadd.f32 %v1728_v23, %v1216_v34  ;;  %v2494_v23 = vld [vmem:[%s8732_s3 + $0x1a0] sm:$0x4] }
 0x30b   : > { %v1985_v35 = vadd.f32 %v1729_v43, %v1217_v2  ;;  %v1986_v59 = vadd.f32 %v1730_v54, %v1218_v48  ;;  %v1987_v12 = vadd.f32 %v1731_v60, %v1219_v36  ;;  %v1988_v30 = vadd.f32 %v1732_v56, %v1220_v19  ;;  %v10646_v43 = vld [vmem:[%s8732_s3 + $0x1ac] sm:$0x4]  ;;  %v10649_v54 = vld [vmem:[%s8732_s3 + $0x1b0] sm:$0x4]  ;;  %v10652_v60 = vld [vmem:[%s8732_s3 + $0x1b4] sm:$0x4] }
 0x30c   : > { %v1989_v55 = vadd.f32 %v1733_v13, %v1221_v27  ;;  %v2102_v22 = vrot.slane %v1462_v26, 3  ;;  %v2103_v45 = vrot.slane %v1463_v51, 3  ;;  %v2104_v15 = vrot.slane %v1464_v41, 3  ;;  %v10615_v51 = vld [vmem:[%s8732_s3 + $0x184] sm:$0x4] }
 0x30d   : > { %v2105_v40 = vrot.slane %v1465_v52, 3  ;;  %v2106_v3 = vrot.slane %v1466_v17, 3  ;;  %v2107_v61 = vrot.slane %v1467_v21, 3  ;;  %v2108_v0 = vrot.slane %v1468_v7, 3  ;;  %v10618_v41 = vld [vmem:[%s8732_s3 + $0x188] sm:$0x4] }
 0x30e   : > { %v2109_v58 = vrot.slane %v1469_v42, 3  ;;  %v2110_v53 = vrot.slane %v1470_v38, 3  ;;  %v2111_v47 = vrot.slane %v1471_v11, 3  ;;  %v2112_v10 = vrot.slane %v1472_v29, 3  ;;  %v10621_v42 = vld [vmem:[%s8732_s3 + $0x180] sm:$0x4] }
 0x30f   : > { %v2113_v57 = vrot.slane %v1473_v24, 3  ;;  %v2114_v18 = vrot.slane %v1474_v50, 3  ;;  %v2115_v34 = vrot.slane %v1475_v5, 3  ;;  %v2116_v2 = vrot.slane %v1476_v8, 3  ;;  %v10624_v38 = vld [vmem:[%s8732_s3 + $0x18c] sm:$0x4] }
 0x310   : > { %v2117_v48 = vrot.slane %v1477_v16, 3  ;;  %v10606_v36 = vadd.f32 %v2102_v22, %v1974_v25  ;;  %v10608_v19 = vadd.f32 %v2103_v45, %v1975_v20  ;;  %v10610_v27 = vadd.f32 %v2104_v15, %v1976_v9  ;;  %v10627_v11 = vld [vmem:[%s8732_s3 + $0x190] sm:$0x4]  ;;  %v10630_v29 = vld [vmem:[%s8732_s3 + $0x1a4] sm:$0x4] }
 0x311   : > { %v10612_v26 = vadd.f32 %v2105_v40, %v1977_v33  ;;  %v2362_v52 = vadd.f32 %v2106_v3, %v1978_v37  ;;  %v2363_v17 = vadd.f32 %v2107_v61, %v1979_v6  ;;  %v2364_v21 = vadd.f32 %v2108_v0, %v1980_v62  ;;  %v10633_v24 = vld [vmem:[%s8732_s3 + $0x1a8] sm:$0x4]  ;;  %v10655_v56 = vld [vmem:[%s8732_s3 + $0x1b8] sm:$0x4]  ;;  %v10658_v13 = vld [vmem:[%s8732_s3 + $0x1bc] sm:$0x4] }
 0x312   : > { %v2365_v7 = vadd.f32 %v2109_v58, %v1981_v31  ;;  %v2366_v50 = vadd.f32 %v2110_v53, %v1982_v14  ;;  %v2367_v5 = vadd.f32 %v2111_v47, %v1983_v49  ;;  %v2368_v8 = vadd.f32 %v2112_v10, %v1984_v28 }
 0x313   : > { %v2369_v16 = vadd.f32 %v2113_v57, %v1985_v35  ;;  %v2370_v1 = vadd.f32 %v2114_v18, %v1986_v59  ;;  %v2371_v39 = vadd.f32 %v2115_v34, %v1987_v12  ;;  %v2372_v46 = vadd.f32 %v2116_v2, %v1988_v30 }
 0x314   : > { %v2373_v63 = vadd.f32 %v2117_v48, %v1989_v55  ;;  %v2614_v25 = vunpack.c.l.bf16 %v10621_v42  ;;  %v2615_v20 = vunpack.c.l.bf16 %v10615_v51  ;;  %v2616_v9 = vunpack.c.l.bf16 %v10618_v41 }
 0x315   : > { %v2617_v30 = vunpack.c.l.bf16 %v10624_v38  ;;  %v2618_v55 = vunpack.c.l.bf16 %v10627_v11  ;;  %v2619_v33 = vunpack.c.l.bf16 %v10636_v32  ;;  %v2620_v37 = vunpack.c.l.bf16 %v10639_v44 }
 0x316   : > { %v2621_v6 = vunpack.c.l.bf16 %v10642_v4  ;;  %v2622_v62 = vunpack.c.l.bf16 %v2494_v23  ;;  %v2623_v31 = vunpack.c.l.bf16 %v10630_v29  ;;  %v2624_v14 = vunpack.c.l.bf16 %v10633_v24 }
 0x317   : > { %v2625_v49 = vunpack.c.l.bf16 %v10646_v43  ;;  %v2626_v28 = vunpack.c.l.bf16 %v10649_v54  ;;  %v2627_v35 = vunpack.c.l.bf16 %v10652_v60  ;;  %v2628_v59 = vunpack.c.l.bf16 %v10655_v56 }
 0x318   : > { %v2629_v12 = vunpack.c.l.bf16 %v10658_v13  ;;  %v2870_v22 = vrot.slane %v2614_v25, 4  ;;  %v2871_v45 = vrot.slane %v2615_v20, 4  ;;  %v2872_v15 = vrot.slane %v2616_v9, 4 }
 0x319   : > { %v2873_v40 = vrot.slane %v2617_v30, 4  ;;  %v2874_v3 = vrot.slane %v2618_v55, 4  ;;  %v2875_v61 = vrot.slane %v2619_v33, 4  ;;  %v2876_v0 = vrot.slane %v2620_v37, 4 }
 0x31a   : > { %v2877_v58 = vrot.slane %v2621_v6, 4  ;;  %v2878_v53 = vrot.slane %v2622_v62, 4  ;;  %v2879_v47 = vrot.slane %v2623_v31, 4  ;;  %v2880_v10 = vrot.slane %v2624_v14, 4 }
 0x31b   : > { %v2881_v57 = vrot.slane %v2625_v49, 4  ;;  %v2882_v18 = vrot.slane %v2626_v28, 4  ;;  %v2883_v34 = vrot.slane %v2627_v35, 4  ;;  %v2884_v2 = vrot.slane %v2628_v59, 4 }
 0x31c   : > { %v2885_v48 = vrot.slane %v2629_v12, 4  ;;  %v3126_v51 = vadd.f32 %v2870_v22, %v10606_v36  ;;  %v3127_v41 = vadd.f32 %v2871_v45, %v10608_v19  ;;  %v3128_v42 = vadd.f32 %v2872_v15, %v10610_v27 }
 0x31d   : > { %v3129_v38 = vadd.f32 %v2873_v40, %v10612_v26  ;;  %v3130_v11 = vadd.f32 %v2874_v3, %v2362_v52  ;;  %v3131_v29 = vadd.f32 %v2875_v61, %v2363_v17  ;;  %v3132_v24 = vadd.f32 %v2876_v0, %v2364_v21  ;;  %v10717_v40 = vld [vmem:[%s8732_s3 + $0x194] sm:$0x8]  ;;  %v10720_v3 = vld [vmem:[%s8732_s3 + $0x198] sm:$0x8]  ;;  %v10723_v61 = vld [vmem:[%s8732_s3 + $0x19c] sm:$0x8] }
 0x31e   : > { %v3133_v32 = vadd.f32 %v2877_v58, %v2365_v7  ;;  %v3134_v44 = vadd.f32 %v2878_v53, %v2366_v50  ;;  %v3135_v4 = vadd.f32 %v2879_v47, %v2367_v5  ;;  %v3136_v23 = vadd.f32 %v2880_v10, %v2368_v8  ;;  %v10726_v10 = vld [vmem:[%s8732_s3 + $0x1a0] sm:$0x8] }
 0x31f   : > { %v3137_v43 = vadd.f32 %v2881_v57, %v2369_v16  ;;  %v3138_v54 = vadd.f32 %v2882_v18, %v2370_v1  ;;  %v3139_v60 = vadd.f32 %v2883_v34, %v2371_v39  ;;  %v3140_v56 = vadd.f32 %v2884_v2, %v2372_v46  ;;  %v10729_v57 = vld [vmem:[%s8732_s3 + $0x1ac] sm:$0x8]  ;;  %v10732_v18 = vld [vmem:[%s8732_s3 + $0x1b0] sm:$0x8]  ;;  %v10735_v34 = vld [vmem:[%s8732_s3 + $0x1b4] sm:$0x8] }
 0x320   : > { %v3141_v13 = vadd.f32 %v2885_v48, %v2373_v63  ;;  %v3254_v22 = vrot.slane %v2614_v25, 5  ;;  %v3255_v36 = vrot.slane %v2615_v20, 5  ;;  %v3256_v19 = vrot.slane %v2616_v9, 5  ;;  %v10688_v20 = vld [vmem:[%s8732_s3 + $0x184] sm:$0x8] }
 0x321   : > { %v3257_v45 = vrot.slane %v2617_v30, 5  ;;  %v3258_v15 = vrot.slane %v2618_v55, 5  ;;  %v3259_v27 = vrot.slane %v2619_v33, 5  ;;  %v3260_v26 = vrot.slane %v2620_v37, 5  ;;  %v10691_v9 = vld [vmem:[%s8732_s3 + $0x188] sm:$0x8] }
 0x322   : > { %v3261_v52 = vrot.slane %v2621_v6, 5  ;;  %v3262_v17 = vrot.slane %v2622_v62, 5  ;;  %v3263_v21 = vrot.slane %v2623_v31, 5  ;;  %v3264_v7 = vrot.slane %v2624_v14, 5  ;;  %v10702_v6 = vld [vmem:[%s8732_s3 + $0x180] sm:$0x8] }
 0x323   : > { %v3265_v50 = vrot.slane %v2625_v49, 5  ;;  %v3266_v5 = vrot.slane %v2626_v28, 5  ;;  %v3267_v8 = vrot.slane %v2627_v35, 5  ;;  %v3268_v16 = vrot.slane %v2628_v59, 5  ;;  %v10705_v62 = vld [vmem:[%s8732_s3 + $0x18c] sm:$0x8] }
 0x324   : > { %v3269_v1 = vrot.slane %v2629_v12, 5  ;;  %v10679_v39 = vadd.f32 %v3254_v22, %v3126_v51  ;;  %v10681_v46 = vadd.f32 %v3255_v36, %v3127_v41  ;;  %v10683_v63 = vadd.f32 %v3256_v19, %v3128_v42  ;;  %v10708_v31 = vld [vmem:[%s8732_s3 + $0x190] sm:$0x8]  ;;  %v10711_v14 = vld [vmem:[%s8732_s3 + $0x1a4] sm:$0x8] }
 0x325   : > { %v10685_v25 = vadd.f32 %v3257_v45, %v3129_v38  ;;  %v10693_v30 = vadd.f32 %v3258_v15, %v3130_v11  ;;  %v10695_v55 = vadd.f32 %v3259_v27, %v3131_v29  ;;  %v10697_v33 = vadd.f32 %v3260_v26, %v3132_v24  ;;  %v10714_v49 = vld [vmem:[%s8732_s3 + $0x1a8] sm:$0x8]  ;;  %v10738_v2 = vld [vmem:[%s8732_s3 + $0x1b8] sm:$0x8]  ;;  %v10741_v48 = vld [vmem:[%s8732_s3 + $0x1bc] sm:$0x8] }
 0x326   : > { %v10699_v37 = vadd.f32 %v3261_v52, %v3133_v32  ;;  %v3518_v28 = vadd.f32 %v3262_v17, %v3134_v44  ;;  %v3519_v35 = vadd.f32 %v3263_v21, %v3135_v4  ;;  %v3520_v59 = vadd.f32 %v3264_v7, %v3136_v23 }
 0x327   : > { %v3521_v12 = vadd.f32 %v3265_v50, %v3137_v43  ;;  %v3522_v0 = vadd.f32 %v3266_v5, %v3138_v54  ;;  %v3523_v58 = vadd.f32 %v3267_v8, %v3139_v60  ;;  %v3524_v53 = vadd.f32 %v3268_v16, %v3140_v56 }
 0x328   : > { %v3525_v47 = vadd.f32 %v3269_v1, %v3141_v13  ;;  %v3766_v51 = vunpack.c.l.bf16 %v10702_v6  ;;  %v3767_v41 = vunpack.c.l.bf16 %v10688_v20  ;;  %v3768_v42 = vunpack.c.l.bf16 %v10691_v9 }
 0x329   : > { %v3769_v38 = vunpack.c.l.bf16 %v10705_v62  ;;  %v3770_v11 = vunpack.c.l.bf16 %v10708_v31  ;;  %v3771_v29 = vunpack.c.l.bf16 %v10717_v40  ;;  %v3772_v24 = vunpack.c.l.bf16 %v10720_v3  ;;  %v7902_v31 = vld [vmem:[#allocation8 + $0x8] ss:$12 sps:$4 sm:$0xff]  }
 0x32a   : > { %v3773_v32 = vunpack.c.l.bf16 %v10723_v61  ;;  %v3774_v44 = vunpack.c.l.bf16 %v10726_v10  ;;  %v3775_v4 = vunpack.c.l.bf16 %v10711_v14  ;;  %v3776_v23 = vunpack.c.l.bf16 %v10714_v49  ;;  %v7903_v14 = vld [vmem:[#allocation8 + $0x20] ss:$12 sps:$4 sm:$0xff]   ;;  %7691 = vmatprep.subr.bf16.mxu0 %v7902_v31 }
 0x32b   : > { %v3777_v43 = vunpack.c.l.bf16 %v10729_v57  ;;  %v3778_v54 = vunpack.c.l.bf16 %v10732_v18  ;;  %v3779_v60 = vunpack.c.l.bf16 %v10735_v34  ;;  %v3780_v56 = vunpack.c.l.bf16 %v10738_v2  ;;  %7692 = vmatpush3.bf16.msra.mxu0 %v7902_v31 }
 0x32c   : > { %v3781_v13 = vunpack.c.l.bf16 %v10741_v48  ;;  %v4022_v22 = vrot.slane %v3766_v51, 6  ;;  %v4023_v36 = vrot.slane %v3767_v41, 6  ;;  %v4024_v19 = vrot.slane %v3768_v42, 6  ;;  %7693 = vmatprep.subr.bf16.mxu0 %v7903_v14 }
 0x32d   : > { %v4025_v45 = vrot.slane %v3769_v38, 6  ;;  %v4026_v15 = vrot.slane %v3770_v11, 6  ;;  %v4027_v27 = vrot.slane %v3771_v29, 6  ;;  %v4028_v26 = vrot.slane %v3772_v24, 6 }
 0x32e   : > { %v4029_v52 = vrot.slane %v3773_v32, 6  ;;  %v4030_v17 = vrot.slane %v3774_v44, 6  ;;  %v4031_v21 = vrot.slane %v3775_v4, 6  ;;  %v4032_v7 = vrot.slane %v3776_v23, 6 }
 0x32f   : > { %v4033_v50 = vrot.slane %v3777_v43, 6  ;;  %v4034_v5 = vrot.slane %v3778_v54, 6  ;;  %v4035_v8 = vrot.slane %v3779_v60, 6  ;;  %v4036_v16 = vrot.slane %v3780_v56, 6  ;;  %7694 = vmatpush3.bf16.msra.mxu0 %v7903_v14 }
 0x330   : > { %v4037_v1 = vrot.slane %v3781_v13, 6  ;;  %v4278_v20 = vadd.f32 %v4022_v22, %v10679_v39  ;;  %v4279_v9 = vadd.f32 %v4023_v36, %v10681_v46  ;;  %v4280_v6 = vadd.f32 %v4024_v19, %v10683_v63 }
 0x331   : > { %v4281_v62 = vadd.f32 %v4025_v45, %v10685_v25  ;;  %v4282_v49 = vadd.f32 %v4026_v15, %v10693_v30  ;;  %v4283_v40 = vadd.f32 %v4027_v27, %v10695_v55  ;;  %v4284_v3 = vadd.f32 %v4028_v26, %v10697_v33  ;;  %v10767_v25 = vpop.f32.mrb[0].mxu0  ;;  %v7904_v33 = vld [vmem:[#allocation8 + $0x38] ss:$12 sps:$4 sm:$0xff]  }
 0x332   : > { %v4285_v61 = vadd.f32 %v4029_v52, %v10699_v37  ;;  %v4286_v10 = vadd.f32 %v4030_v17, %v3518_v28  ;;  %v4287_v57 = vadd.f32 %v4031_v21, %v3519_v35  ;;  %v4288_v18 = vadd.f32 %v4032_v7, %v3520_v59  ;;  %v10769_v59 = vpop.f32.mrb[1].mxu0  ;;  %7695 = vmatprep.subr.bf16.mxu0 %v7904_v33 }
 0x333   : > { %v4289_v39 = vadd.f32 %v4033_v50, %v3521_v12  ;;  %v4290_v46 = vadd.f32 %v4034_v5, %v3522_v0  ;;  %v4291_v34 = vadd.f32 %v4035_v8, %v3523_v58  ;;  %v4292_v63 = vadd.f32 %v4036_v16, %v3524_v53  ;;  %12553 = vst [vmem:[#allocation26_spill] sm:$0xff] %v10769_v59  ;;  %v10771_v12 = vpop.f32.mrb[0].mxu1  ;;  %v10773_v19 = vpop.f32.mrb[2].mxu0  ;;  %v7906_v5 = vld [vmem:[#allocation8 + $0x68] ss:$12 sps:$4 sm:$0xff]  }
 0x334   : > { %v4293_v2 = vadd.f32 %v4037_v1, %v3525_v47  ;;  %v4407_v48 = vrot.slane %v3767_v41, 7  ;;  %v4408_v30 = vrot.slane %v3768_v42, 7  ;;  %v4409_v22 = vrot.slane %v3769_v38, 7  ;;  %12554 = vst [vmem:[#allocation27_spill] sm:$0xff] %v10773_v19  ;;  %v10775_v41 = vpop.f32.mrb[1].mxu1  ;;  %7696 = vmatpush3.bf16.msra.mxu0 %v7904_v33 }
 0x335   : > { %v4410_v55 = vrot.slane %v3770_v11, 7  ;;  %v4406_v36 = vrot.slane %v3766_v51, 7  ;;  %v4411_v37 = vrot.slane %v3771_v29, 7  ;;  %v4412_v28 = vrot.slane %v3772_v24, 7  ;;  %v10777_v51 = vpop.f32.mrb[3].mxu0  ;;  %v10779_v29 = vpop.f32.mrb[2].mxu1 }
 0x336   : > { %v4413_v35 = vrot.slane %v3773_v32, 7  ;;  %v4415_v0 = vrot.slane %v3775_v4, 7  ;;  %v4416_v58 = vrot.slane %v3776_v23, 7  ;;  %v4417_v53 = vrot.slane %v3777_v43, 7  ;;  %12555 = vst [vmem:[#allocation28_spill] sm:$0xff] %v10777_v51  ;;  %12556 = vst [vmem:[#allocation29_spill] sm:$0xff] %v10779_v29 }
 0x337   : > { %v4418_v47 = vrot.slane %v3778_v54, 7  ;;  %v4414_v42 = vrot.slane %v3774_v44, 7  ;;  %v4419_v38 = vrot.slane %v3779_v60, 7  ;;  %v4420_v11 = vrot.slane %v3780_v56, 7  ;;  %v7905_v23 = vld [vmem:[#allocation8 + $0x50] ss:$12 sps:$4 sm:$0xff]  }
 0x338   : > { %v4421_v45 = vrot.slane %v3781_v13, 7  ;;  %v4663_v24 = vadd.f32 %v4407_v48, %v4279_v9  ;;  %v4664_v32 = vadd.f32 %v4408_v30, %v4280_v6  ;;  %v4665_v15 = vadd.f32 %v4409_v22, %v4281_v62  ;;  %v10781_v43 = vpop.f32.mrb[3].mxu1  ;;  %7697 = vmatprep.subr.bf16.mxu0 %v7905_v23  ;;  %v10783_v6 = vpop.f32.mrb[4].mxu0  ;;  %v7907_v33 = vld [vmem:[#allocation8 + $0x80] ss:$12 sps:$4 sm:$0xff]  }
 0x339   : > { %v4666_v4 = vadd.f32 %v4410_v55, %v4282_v49  ;;  %12557 = vst [vmem:[#allocation30_spill] sm:$0xff] %v10781_v43  ;;  %v4662_v54 = vadd.f32 %v4406_v36, %v4278_v20  ;;  %v4667_v27 = vadd.f32 %v4411_v37, %v4283_v40  ;;  %v4668_v26 = vadd.f32 %v4412_v28, %v4284_v3  ;;  %v10785_v20 = vpop.f32.mrb[4].mxu1  ;;  %v10787_v40 = vpop.f32.mrb[5].mxu0  ;;  %v12579_v51 = vld [vmem:[#allocation24_spill] sm:$0xff] }
 0x33a   : > { %v4669_v44 = vadd.f32 %v4413_v35, %v4285_v61  ;;  %v4671_v60 = vadd.f32 %v4415_v0, %v4287_v57  ;;  %v4672_v56 = vadd.f32 %v4416_v58, %v4288_v18  ;;  %v4673_v13 = vadd.f32 %v4417_v53, %v4289_v39  ;;  %12558 = vst [vmem:[#allocation31_spill] sm:$0xff] %v10783_v6 }
 0x33b   : > { %v4674_v52 = vadd.f32 %v4418_v47, %v4290_v46  ;;  %v4670_v17 = vadd.f32 %v4414_v42, %v4286_v10  ;;  %v4675_v21 = vadd.f32 %v4419_v38, %v4291_v34  ;;  %v4676_v7 = vadd.f32 %v4420_v11, %v4292_v63  ;;  %12559 = vst [vmem:[#allocation32_spill] sm:$0xff] %v10785_v20  ;;  %v10789_v63 = vpop.f32.mrb[6].mxu0 }
 0x33c   : > { %v4677_v50 = vadd.f32 %v4421_v45, %v4293_v2  ;;  %v4791_v8 = vmul.f32 0.125, %v4663_v24  ;;  %v4792_v16 = vmul.f32 0.125, %v4664_v32  ;;  %v4793_v1 = vmul.f32 0.125, %v4665_v15  ;;  %12560 = vst [vmem:[#allocation33_spill] sm:$0xff] %v10787_v40  ;;  %7698 = vmatpush3.bf16.msra.mxu0 %v7905_v23  ;;  %12561 = vst [vmem:[#allocation34_spill] sm:$0xff] %v10789_v63  ;;  %v10791_v2 = vpop.f32.mrb[5].mxu1 }
 0x33d   : > { %v4794_v9 = vmul.f32 0.125, %v4666_v4  ;;  %v4790_v62 = vmul.f32 0.125, %v4662_v54  ;;  %v4795_v31 = vmul.f32 0.125, %v4667_v27  ;;  %v4796_v14 = vmul.f32 0.125, %v4668_v26  ;;  %12562 = vst [vmem:[#allocation35_spill] sm:$0xff] %v10791_v2  ;;  %7699 = vmatprep.subr.bf16.mxu0 %v7906_v5  ;;  %v10793_v36 = vpop.f32.mrb[7].mxu0 }
 0x33e   : > { %v4797_v49 = vmul.f32 0.125, %v4669_v44  ;;  %v4799_v3 = vmul.f32 0.125, %v4671_v60  ;;  %v4800_v61 = vmul.f32 0.125, %v4672_v56  ;;  %v4801_v10 = vmul.f32 0.125, %v4673_v13  ;;  %12563 = vst [vmem:[#allocation36_spill] sm:$0xff] %v10793_v36  ;;  %v10795_v37 = vpop.f32.mrb[6].mxu1 }
 0x33f   : > { %v4802_v57 = vmul.f32 0.125, %v4674_v52  ;;  %v4798_v18 = vmul.f32 0.125, %v4670_v17  ;;  %v4803_v39 = vmul.f32 0.125, %v4675_v21  ;;  %v4804_v46 = vmul.f32 0.125, %v4676_v7  ;;  %12564 = vst [vmem:[#allocation37_spill] sm:$0xff] %v10795_v37  ;;  %v10797_v26 = vpop.f32.mrb[7].mxu1 }
 0x340   : > { %v4805_v34 = vmul.f32 0.125, %v4677_v50  ;;  %v4919_v48 = vpack.c.bf16 %v4791_v8, %v4791_v8  ;;  %v4920_v30 = vpack.c.bf16 %v4792_v16, %v4792_v16  ;;  %v4921_v22 = vpack.c.bf16 %v4793_v1, %v4793_v1  ;;  %7700 = vmatpush3.bf16.msra.mxu0 %v7906_v5  ;;  %v7908_v27 = vld [vmem:[#allocation8 + $0x98] ss:$12 sps:$4 sm:$0xff]   ;;  %12565 = vst [vmem:[#allocation38_spill] sm:$0xff] %v10797_v26  ;;  %v10964_v36 = vld [vmem:[%s8732_s3 + $0x1f4] sm:$0x2] }
 0x341   : > { %v4922_v55 = vpack.c.bf16 %v4794_v9, %v4794_v9  ;;  %v4918_v28 = vpack.c.bf16 %v4790_v62, %v4790_v62  ;;  %v4923_v35 = vpack.c.bf16 %v4795_v31, %v4795_v31  ;;  %v4924_v0 = vpack.c.bf16 %v4796_v14, %v4796_v14  ;;  %7701 = vmatprep.subr.bf16.mxu0 %v7907_v33  ;;  %v7909_v14 = vld [vmem:[#allocation8 + $0xb0] ss:$12 sps:$4 sm:$0xff]  }
 0x342   : > { %v4925_v58 = vpack.c.bf16 %v4797_v49, %v4797_v49  ;;  %v4927_v53 = vpack.c.bf16 %v4799_v3, %v4799_v3  ;;  %v4928_v47 = vpack.c.bf16 %v4800_v61, %v4800_v61  ;;  %v4929_v42 = vpack.c.bf16 %v4801_v10, %v4801_v10 }
 0x343   : > { %v4930_v38 = vpack.c.bf16 %v4802_v57, %v4802_v57  ;;  %v4926_v11 = vpack.c.bf16 %v4798_v18, %v4798_v18  ;;  %v4931_v45 = vpack.c.bf16 %v4803_v39, %v4803_v39  ;;  %v4932_v24 = vpack.c.bf16 %v4804_v46, %v4804_v46  ;;  %v452_v57 = vld [vmem:[%s8724_s19 + $0x38] sm:$0xff]   ;;  %v10804_v18 = vld [vmem:[%s8732_s3 + $0x1c4] sm:$0x1] }
 0x344   : > { %v4933_v32 = vpack.c.bf16 %v4805_v34, %v4805_v34  ;;  %v5493_v15 = vunpack.c.l.b16 %v4919_v48  ;;  %v5494_v4 = vunpack.c.l.b16 %v4920_v30  ;;  %v5495_v23 = vunpack.c.l.b16 %v4921_v22  ;;  %7702 = vmatpush3.bf16.msra.mxu0 %v7907_v33  ;;  %v10808_v30 = vld [vmem:[%s8732_s3 + $0x1c0] sm:$0x1] }
 0x345   : > { %v5496_v54 = vunpack.c.l.b16 %v4922_v55  ;;  %v5492_v44 = vunpack.c.l.b16 %v4918_v28  ;;  %v5497_v60 = vunpack.c.l.b16 %v4923_v35  ;;  %v5498_v56 = vunpack.c.l.b16 %v4924_v0  ;;  %7703 = vmatprep.subr.bf16.mxu0 %v7908_v27  ;;  %v10813_v35 = vld [vmem:[%s8732_s3 + $0x1c8] sm:$0x1]  ;;  %v10816_v0 = vld [vmem:[%s8732_s3 + $0x1cc] sm:$0x1]  ;;  %5209 = vmatmul.mubr.bf16.gmra.mrb[28].mxu0 %v452_v57 }
 0x346   : > { %v5499_v13 = vunpack.c.l.b16 %v4925_v58  ;;  %v5501_v52 = vunpack.c.l.b16 %v4927_v53  ;;  %v5502_v17 = vunpack.c.l.b16 %v4928_v47  ;;  %v5503_v21 = vunpack.c.l.b16 %v4929_v42  ;;  %v10821_v42 = vld [vmem:[%s8732_s3 + $0x1d0] sm:$0x1] }
 0x347   : > { %v5504_v7 = vunpack.c.l.b16 %v4930_v38  ;;  %v5500_v50 = vunpack.c.l.b16 %v4926_v11  ;;  %v5505_v5 = vunpack.c.l.b16 %v4931_v45  ;;  %v5506_v8 = vunpack.c.l.b16 %v4932_v24  ;;  %v10824_v38 = vld [vmem:[%s8732_s3 + $0x1d4] sm:$0x1] }
 0x348   : > { %v5699_v16 = vrot.slane %v5493_v15, 7  ;;  %v10799_v1 = vunpack.c.l.b16 %v4933_v32  ;;  %v5701_v9 = vrot.slane %v5494_v4, 6  ;;  %v5703_v62 = vrot.slane %v5495_v23, 5  ;;  %7704 = vmatpush3.bf16.msra.mxu0 %v7908_v27  ;;  %v10830_v32 = vld [vmem:[%s8732_s3 + $0x1d8] sm:$0x1] }
 0x349   : > { %v5705_v31 = vrot.slane %v5496_v54, 4  ;;  %v5707_v3 = vrot.slane %v5497_v60, 3  ;;  %v5709_v61 = vrot.slane %v5498_v56, 2  ;;  %v5713_v10 = vrot.slane %v5501_v52, 7  ;;  %7705 = vmatprep.subr.bf16.mxu0 %v7909_v14  ;;  %v10833_v15 = vld [vmem:[%s8732_s3 + $0x1dc] sm:$0x1] }
 0x34a   : > { %v5700_v49 = vsel %vm5525_vm0, %v5699_v16, %v5492_v44  ;;  %v5715_v46 = vrot.slane %v5502_v17, 6  ;;  %v5717_v34 = vrot.slane %v5503_v21, 5  ;;  %v5719_v48 = vrot.slane %v5504_v7, 4  ;;  %v10839_v27 = vld [vmem:[%s8732_s3 + $0x1e0] sm:$0x1] }
 0x34b   : > { %v5702_v39 = vsel %vm5528_vm1, %v5701_v9, %v5700_v49  ;;  %v5711_v55 = vrot.slane %v5499_v13, 1  ;;  %v5714_v33 = vsel %vm5525_vm0, %v5713_v10, %v5500_v50  ;;  %v5721_v28 = vrot.slane %v5505_v5, 3  ;;  %v10842_v44 = vld [vmem:[%s8732_s3 + $0x1e4] sm:$0x1]  ;;  %v10845_v60 = vld [vmem:[%s8732_s3 + $0x1e8] sm:$0x1] }
 0x34c   : > { %v5704_v22 = vsel %vm5531_vm2, %v5703_v62, %v5702_v39  ;;  %v5716_v53 = vsel %vm5528_vm1, %v5715_v46, %v5714_v33  ;;  %v5723_v47 = vrot.slane %v5506_v8, 2  ;;  %v5725_v24 = vrot.slane %v10799_v1, 1  ;;  %v10852_v21 = vld [vmem:[%s8732_s3 + $0x1ec] sm:$0x1]  ;;  %v10855_v7 = vld [vmem:[%s8732_s3 + $0x1f0] sm:$0x1]  ;;  %7706 = vmatpush3.bf16.msra.mxu0 %v7909_v14 }
 0x34d   : > { %v5706_v58 = vsel %vm5534_vm3, %v5705_v31, %v5704_v22  ;;  %v5718_v45 = vsel %vm5531_vm2, %v5717_v34, %v5716_v53  ;;  %v710_v4 = vunpack.c.l.bf16 %v10808_v30  ;;  %v711_v56 = vunpack.c.l.bf16 %v10804_v18  ;;  %v10858_v50 = vld [vmem:[%s8732_s3 + $0x1f4] sm:$0x1]  ;;  %v12566_v16 = vld [vmem:[#allocation20_spill] sm:$0xff]  ;;  %v10865_v9 = vld [vmem:[%s8732_s3 + $0x1f8] sm:$0x1]  ;;  %v10875_v10 = vpop.f32.mrb[8].mxu1 }
 0x34e   : > { %v5708_v11 = vsel %vm5537_vm4, %v5707_v3, %v5706_v58  ;;  %v5720_v54 = vsel %vm5534_vm3, %v5719_v48, %v5718_v45  ;;  %v712_v13 = vunpack.c.l.bf16 %v10813_v35  ;;  %v713_v5 = vunpack.c.l.bf16 %v10816_v0  ;;  %7707 = vmatprep.mubr.bf16.mxu0 %v12566_v16  ;;  %v10868_v62 = vld [vmem:[%s8732_s3 + $0x1fc] sm:$0x1]  ;;  %12568 = vst [vmem:[#allocation39_spill] sm:$0xff] %v10875_v10  ;;  %v10892_v58 = vpop.f32.mrb[9].mxu1 }
 0x34f   : > { %v5710_v23 = vsel %vm5540_vm5, %v5709_v61, %v5708_v11  ;;  %v5722_v17 = vsel %vm5537_vm4, %v5721_v28, %v5720_v54  ;;  %v714_v8 = vunpack.c.l.bf16 %v10821_v42  ;;  %v715_v31 = vunpack.c.l.bf16 %v10824_v38  ;;  %v10873_v61 = vpop.f32.mrb[8].mxu0  ;;  %12571 = vst [vmem:[#allocation42_spill] sm:$0xff] %v10892_v58  ;;  %v10897_v45 = vpop.f32.mrb[10].mxu1 }
 0x350   : > { %v5712_v52 = vsel %vm5543_vm6, %v5711_v55, %v5710_v23  ;;  %v5724_v1 = vsel %vm5540_vm5, %v5723_v47, %v5722_v17  ;;  %v716_v49 = vunpack.c.l.bf16 %v10830_v32  ;;  %v717_v3 = vunpack.c.l.bf16 %v10833_v15  ;;  %12567 = vst [vmem:[#allocation20_spill] sm:$0xff] %v10873_v61  ;;  %v10881_v46 = vpop.f32.mrb[9].mxu0  ;;  %12573 = vst [vmem:[#allocation44_spill] sm:$0xff] %v10897_v45  ;;  %v12575_v17 = vld [vmem:[#allocation21_spill] sm:$0xff] }
 0x351   : > { %v5726_v14 = vsel %vm5543_vm6, %v5725_v24, %v5724_v1  ;;  %v718_v57 = vunpack.c.l.bf16 %v10839_v27  ;;  %v719_v18 = vunpack.c.l.bf16 %v10842_v44  ;;  %v720_v39 = vunpack.c.l.bf16 %v10845_v60  ;;  %12569 = vst [vmem:[#allocation40_spill] sm:$0xff] %v10881_v46  ;;  %v10890_v0 = vpop.f32.mrb[10].mxu0  ;;  %7708 = vmatmul.mubr.bf16.vlgmr.msra.gmra.mrb[32].mxu0 %v12575_v17  ;;  %v10906_v1 = vld [vmem:[%s8732_s3 + $0x1c4] sm:$0x2]  ;;  %v10961_v46 = vld [vmem:[%s8732_s3 + $0x1f0] sm:$0x2] }
 0x352   : > { %v10883_v34 = vpack.c.b16 %v5726_v14, %v5712_v52  ;;  %v721_v48 = vunpack.c.l.bf16 %v10852_v21  ;;  %v722_v30 = vunpack.c.l.bf16 %v10855_v7  ;;  %v723_v22 = vunpack.c.l.bf16 %v10858_v50  ;;  %12570 = vst [vmem:[#allocation41_spill] sm:$0xff] %v10890_v0  ;;  %v10895_v11 = vpop.f32.mrb[11].mxu0 }
 0x353   : > { %v724_v55 = vunpack.c.l.bf16 %v10865_v9  ;;  %v725_v33 = vunpack.c.l.bf16 %v10868_v62  ;;  %v966_v28 = vrot.slane %v710_v4, 1  ;;  %v967_v35 = vrot.slane %v711_v56, 1  ;;  %12572 = vst [vmem:[#allocation43_spill] sm:$0xff] %v10895_v11  ;;  %v12576_v9 = vld [vmem:[#allocation22_spill] sm:$0xff]  ;;  %v10958_v11 = vld [vmem:[%s8732_s3 + $0x1ec] sm:$0x2] }
 0x354   : > { %5992 = vmatmul.mubr.bf16.gmra.mrb[24].mxu1 %v10883_v34  ;;  %v968_v53 = vrot.slane %v712_v13, 1  ;;  %v969_v47 = vrot.slane %v713_v5, 1  ;;  %v970_v42 = vrot.slane %v714_v8, 1  ;;  %v971_v38 = vrot.slane %v715_v31, 1  ;;  %7711 = vmatprep.mubr.bf16.mxu0 %v12576_v9  ;;  %v10996_v63 = vpop.f32.mrb[12].mxu0 }
 0x355   : > { %v12574_v24 = vmov 0   ;;  %v972_v32 = vrot.slane %v716_v49, 1  ;;  %v973_v15 = vrot.slane %v717_v3, 1  ;;  %v974_v23 = vrot.slane %v718_v57, 1  ;;  %12580 = vst [vmem:[#allocation22_spill] sm:$0xff] %v10996_v63 }
 0x356   : > { %6001 = vmatprep.mubr.bf16.mxu1 %v12574_v24  ;;  %v975_v54 = vrot.slane %v719_v18, 1  ;;  %v976_v27 = vrot.slane %v720_v39, 1  ;;  %v977_v44 = vrot.slane %v721_v48, 1  ;;  %v978_v60 = vrot.slane %v722_v30, 1 }
 0x357   : > { %v979_v52 = vrot.slane %v723_v22, 1  ;;  %v980_v21 = vrot.slane %v724_v55, 1  ;;  %v981_v7 = vrot.slane %v725_v33, 1  ;;  %v10901_v50 = vadd.f32 %v966_v28, %v710_v4  ;;  %v10918_v4 = vld [vmem:[%s8732_s3 + $0x1c0] sm:$0x2] }
 0x358   : > { %v10903_v16 = vadd.f32 %v967_v35, %v711_v56  ;;  %v10909_v62 = vadd.f32 %v968_v53, %v712_v13  ;;  %v10911_v14 = vadd.f32 %v969_v47, %v713_v5  ;;  %v10913_v24 = vadd.f32 %v970_v42, %v714_v8  ;;  %v10921_v56 = vld [vmem:[%s8732_s3 + $0x1c8] sm:$0x2]  ;;  %v10924_v28 = vld [vmem:[%s8732_s3 + $0x1e4] sm:$0x2]  ;;  %v10926_v35 = vpop.f32.mrb[11].mxu1 }
 0x359   : > { %v10915_v17 = vadd.f32 %v971_v38, %v715_v31  ;;  %12577 = vst [vmem:[#allocation21_spill] sm:$0xff] %v10926_v35  ;;  %v10928_v9 = vadd.f32 %v972_v32, %v716_v49  ;;  %v10930_v13 = vadd.f32 %v973_v15, %v717_v3  ;;  %v10932_v5 = vadd.f32 %v974_v23, %v718_v57  ;;  %v10937_v31 = vld [vmem:[%s8732_s3 + $0x1cc] sm:$0x2]  ;;  %v10940_v53 = vld [vmem:[%s8732_s3 + $0x1d0] sm:$0x2]  ;;  %v10998_v20 = vpop.f32.mrb[12].mxu1 }
 0x35a   : > { %v10934_v8 = vadd.f32 %v975_v54, %v719_v18  ;;  %v10943_v47 = vld [vmem:[%s8732_s3 + $0x1d4] sm:$0x2]  ;;  %v10946_v42 = vld [vmem:[%s8732_s3 + $0x1e8] sm:$0x2]  ;;  %v1232_v49 = vadd.f32 %v976_v27, %v720_v39  ;;  %v1233_v3 = vadd.f32 %v977_v44, %v721_v48  ;;  %v1234_v38 = vadd.f32 %v978_v60, %v722_v30  ;;  %v10949_v57 = vld [vmem:[%s8732_s3 + $0x1d8] sm:$0x2] }
 0x35b   : > { %v1235_v32 = vadd.f32 %v979_v52, %v723_v22  ;;  %v10952_v15 = vld [vmem:[%s8732_s3 + $0x1dc] sm:$0x2]  ;;  %v10955_v18 = vld [vmem:[%s8732_s3 + $0x1e0] sm:$0x2]  ;;  %v1236_v23 = vadd.f32 %v980_v21, %v724_v55  ;;  %v1237_v54 = vadd.f32 %v981_v7, %v725_v33  ;;  %v1478_v40 = vunpack.c.l.bf16 %v10918_v4  ;;  %v10969_v48 = vld [vmem:[%s8732_s3 + $0x1f8] sm:$0x2] }
 0x35c   : > { %v1479_v39 = vunpack.c.l.bf16 %v10906_v1  ;;  %v10972_v30 = vld [vmem:[%s8732_s3 + $0x1fc] sm:$0x2]  ;;  %v1480_v22 = vunpack.c.l.bf16 %v10921_v56  ;;  %v1481_v27 = vunpack.c.l.bf16 %v10937_v31  ;;  %v1482_v55 = vunpack.c.l.bf16 %v10940_v53 }
 0x35d   : > { %v1483_v33 = vunpack.c.l.bf16 %v10943_v47  ;;  %v1484_v44 = vunpack.c.l.bf16 %v10949_v57  ;;  %v1485_v60 = vunpack.c.l.bf16 %v10952_v15  ;;  %v1486_v52 = vunpack.c.l.bf16 %v10955_v18  ;;  %v12578_v31 = vld [vmem:[#allocation23_spill] sm:$0xff] }
 0x35e   : > { %v1487_v21 = vunpack.c.l.bf16 %v10924_v28  ;;  %v1488_v7 = vunpack.c.l.bf16 %v10946_v42  ;;  %v1489_v1 = vunpack.c.l.bf16 %v10958_v11  ;;  %v1490_v4 = vunpack.c.l.bf16 %v10961_v46  ;;  %7712 = vmatmul.mubr.bf16.gmra.mrb[36].mxu0 %v12578_v31  ;;  %12581 = vst [vmem:[#allocation23_spill] sm:$0xff] %v10998_v20 }
 0x35f   : > { %v1491_v56 = vunpack.c.l.bf16 %v10964_v36  ;;  %v1492_v53 = vunpack.c.l.bf16 %v10969_v48  ;;  %v1493_v47 = vunpack.c.l.bf16 %v10972_v30  ;;  %v1734_v57 = vrot.slane %v1478_v40, 2  ;;  %7715 = vmatprep.mubr.bf16.mxu0 %v12579_v51 }
 0x360   : > { %v1735_v15 = vrot.slane %v1479_v39, 2  ;;  %v1736_v18 = vrot.slane %v1480_v22, 2  ;;  %v1737_v28 = vrot.slane %v1481_v27, 2  ;;  %v1738_v59 = vrot.slane %v1482_v55, 2 }
 0x361   : > { %v1739_v42 = vrot.slane %v1483_v33, 2  ;;  %v1740_v35 = vrot.slane %v1484_v44, 2  ;;  %v1741_v11 = vrot.slane %v1485_v60, 2  ;;  %v1742_v45 = vrot.slane %v1486_v52, 2 }
 0x362   : > { %v1743_v46 = vrot.slane %v1487_v21, 2  ;;  %v1744_v58 = vrot.slane %v1488_v7, 2  ;;  %v1745_v36 = vrot.slane %v1489_v1, 2  ;;  %v1746_v0 = vrot.slane %v1490_v4, 2 }
 0x363   : > { %v1747_v31 = vrot.slane %v1491_v56, 2  ;;  %v1748_v10 = vrot.slane %v1492_v53, 2  ;;  %v1749_v48 = vrot.slane %v1493_v47, 2  ;;  %v1990_v30 = vadd.f32 %v1734_v57, %v10901_v50  ;;  %v11004_v57 = vpop.f32.mrb[13].mxu0 }
 0x364   : > { %v1991_v61 = vadd.f32 %v1735_v15, %v10903_v16  ;;  %v1992_v51 = vadd.f32 %v1736_v18, %v10909_v62  ;;  %v1993_v26 = vadd.f32 %v1737_v28, %v10911_v14  ;;  %v1994_v37 = vadd.f32 %v1738_v59, %v10913_v24  ;;  %12582 = vst [vmem:[#allocation24_spill] sm:$0xff] %v11004_v57  ;;  %v12583_v24 = vld [vmem:[#allocation25_spill] sm:$0xff]  ;;  %v11007_v20 = vpop.f32.mrb[14].mxu0 }
 0x365   : > { %v1995_v2 = vadd.f32 %v1739_v42, %v10915_v17  ;;  %v1996_v6 = vadd.f32 %v1740_v35, %v10928_v9  ;;  %v1997_v43 = vadd.f32 %v1741_v11, %v10930_v13  ;;  %v1998_v50 = vadd.f32 %v1742_v45, %v10932_v5  ;;  %12584 = vst [vmem:[#allocation25_spill] sm:$0xff] %v11007_v20  ;;  %v11009_v35 = vpop.f32.mrb[13].mxu1  ;;  %v11012_v5 = vpop.f32.mrb[15].mxu0 }
 0x366   : > { %v1999_v16 = vadd.f32 %v1743_v46, %v10934_v8  ;;  %v2000_v62 = vadd.f32 %v1744_v58, %v1232_v49  ;;  %v2001_v14 = vadd.f32 %v1745_v36, %v1233_v3  ;;  %v2002_v15 = vadd.f32 %v1746_v0, %v1234_v38  ;;  %7716 = vmatmul.mubr.bf16.gmra.mrb[40].mxu0 %v12583_v24  ;;  %v11014_v0 = vpop.f32.mrb[14].mxu1  ;;  %v11070_v24 = vld [vmem:[%s8732_s3 + $0x1f4] sm:$0x4] }
 0x367   : > { %v2003_v59 = vadd.f32 %v1747_v31, %v1235_v32  ;;  %v2004_v17 = vadd.f32 %v1748_v10, %v1236_v23  ;;  %v2005_v18 = vadd.f32 %v1749_v48, %v1237_v54  ;;  %v2118_v28 = vrot.slane %v1478_v40, 3  ;;  %12585 = vst [vmem:[#allocation45_spill] sm:$0xff] %v11009_v35  ;;  %7719 = vmatprep.mubr.bf16.mxu0 %v10883_v34  ;;  %v11058_v31 = vld [vmem:[%s8732_s3 + $0x1dc] sm:$0x4]  ;;  %v11061_v48 = vld [vmem:[%s8732_s3 + $0x1e0] sm:$0x4] }
 0x368   : > { %v2119_v42 = vrot.slane %v1479_v39, 3  ;;  %v2120_v45 = vrot.slane %v1480_v22, 3  ;;  %v2121_v9 = vrot.slane %v1481_v27, 3  ;;  %v2122_v13 = vrot.slane %v1482_v55, 3  ;;  %12586 = vst [vmem:[#allocation46_spill] sm:$0xff] %v11012_v5  ;;  %12587 = vst [vmem:[#allocation47_spill] sm:$0xff] %v11014_v0 }
 0x369   : > { %v2123_v58 = vrot.slane %v1483_v33, 3  ;;  %v2124_v8 = vrot.slane %v1484_v44, 3  ;;  %v2125_v10 = vrot.slane %v1485_v60, 3  ;;  %v2126_v40 = vrot.slane %v1486_v52, 3  ;;  %v11021_v27 = vld [vmem:[%s8732_s3 + $0x1c4] sm:$0x4] }
 0x36a   : > { %v2127_v49 = vrot.slane %v1487_v21, 3  ;;  %v2128_v3 = vrot.slane %v1488_v7, 3  ;;  %v2129_v38 = vrot.slane %v1489_v1, 3  ;;  %v2130_v32 = vrot.slane %v1490_v4, 3  ;;  %v11032_v52 = vld [vmem:[%s8732_s3 + $0x1c0] sm:$0x4] }
 0x36b   : > { %v2131_v34 = vrot.slane %v1491_v56, 3  ;;  %v2132_v23 = vrot.slane %v1492_v53, 3  ;;  %v2133_v54 = vrot.slane %v1493_v47, 3  ;;  %v11016_v39 = vadd.f32 %v2118_v28, %v1990_v30  ;;  %v11035_v21 = vld [vmem:[%s8732_s3 + $0x1c8] sm:$0x4]  ;;  %v11040_v7 = vpop.f32.mrb[15].mxu1 }
 0x36c   : > { %v11018_v22 = vadd.f32 %v2119_v42, %v1991_v61  ;;  %v11023_v55 = vadd.f32 %v2120_v45, %v1992_v51  ;;  %v11025_v33 = vadd.f32 %v2121_v9, %v1993_v26  ;;  %v11027_v44 = vadd.f32 %v2122_v13, %v1994_v37  ;;  %v11038_v61 = vld [vmem:[%s8732_s3 + $0x1e4] sm:$0x4]  ;;  %12588 = vst [vmem:[#allocation48_spill] sm:$0xff] %v11040_v7  ;;  %v11046_v56 = vld [vmem:[%s8732_s3 + $0x1d0] sm:$0x4]  ;;  %v11100_v7 = vpop.f32.mrb[16].mxu0 }
 0x36d   : > { %v11029_v60 = vadd.f32 %v2123_v58, %v1995_v2  ;;  %v2380_v1 = vadd.f32 %v2124_v8, %v1996_v6  ;;  %v2381_v4 = vadd.f32 %v2125_v10, %v1997_v43  ;;  %v2382_v26 = vadd.f32 %v2126_v40, %v1998_v50  ;;  %v11043_v2 = vld [vmem:[%s8732_s3 + $0x1cc] sm:$0x4]  ;;  %v11049_v53 = vld [vmem:[%s8732_s3 + $0x1d4] sm:$0x4]  ;;  %v11052_v47 = vld [vmem:[%s8732_s3 + $0x1e8] sm:$0x4] }
 0x36e   : > { %v2383_v37 = vadd.f32 %v2127_v49, %v1999_v16  ;;  %v2384_v11 = vadd.f32 %v2128_v3, %v2000_v62  ;;  %v2385_v46 = vadd.f32 %v2129_v38, %v2001_v14  ;;  %v2386_v36 = vadd.f32 %v2130_v32, %v2002_v15  ;;  %v11055_v43 = vld [vmem:[%s8732_s3 + $0x1d8] sm:$0x4]  ;;  %v11064_v50 = vld [vmem:[%s8732_s3 + $0x1ec] sm:$0x4]  ;;  %v11067_v16 = vld [vmem:[%s8732_s3 + $0x1f0] sm:$0x4] }
 0x36f   : > { %v2387_v6 = vadd.f32 %v2131_v34, %v2003_v59  ;;  %v2388_v30 = vadd.f32 %v2132_v23, %v2004_v17  ;;  %v2389_v51 = vadd.f32 %v2133_v54, %v2005_v18  ;;  %v2630_v28 = vunpack.c.l.bf16 %v11032_v52  ;;  %v11075_v14 = vld [vmem:[%s8732_s3 + $0x1f8] sm:$0x4]  ;;  %v11078_v15 = vld [vmem:[%s8732_s3 + $0x1fc] sm:$0x4]  ;;  %12589 = vst [vmem:[#allocation49_spill] sm:$0xff] %v11100_v7  ;;  %v11104_v29 = vpop.f32.mrb[17].mxu0 }
 0x370   : > { %v2631_v62 = vunpack.c.l.bf16 %v11021_v27  ;;  %v2632_v59 = vunpack.c.l.bf16 %v11035_v21  ;;  %v2633_v42 = vunpack.c.l.bf16 %v11043_v2  ;;  %v2634_v17 = vunpack.c.l.bf16 %v11046_v56  ;;  %12591 = vst [vmem:[#allocation51_spill] sm:$0xff] %v11104_v29 }
 0x371   : > { %v2635_v18 = vunpack.c.l.bf16 %v11049_v53  ;;  %v2636_v45 = vunpack.c.l.bf16 %v11055_v43  ;;  %v2637_v9 = vunpack.c.l.bf16 %v11058_v31  ;;  %v2638_v13 = vunpack.c.l.bf16 %v11061_v48  ;;  %v11102_v0 = vpop.f32.mrb[16].mxu1 }
 0x372   : > { %v2639_v58 = vunpack.c.l.bf16 %v11038_v61  ;;  %v2640_v8 = vunpack.c.l.bf16 %v11052_v47  ;;  %v2641_v10 = vunpack.c.l.bf16 %v11064_v50  ;;  %v2642_v40 = vunpack.c.l.bf16 %v11067_v16  ;;  %12590 = vst [vmem:[#allocation50_spill] sm:$0xff] %v11102_v0 }
 0x373   : > { %v2643_v49 = vunpack.c.l.bf16 %v11070_v24  ;;  %v2644_v3 = vunpack.c.l.bf16 %v11075_v14  ;;  %v2645_v38 = vunpack.c.l.bf16 %v11078_v15  ;;  %v2886_v32 = vrot.slane %v2630_v28, 4 }
 0x374   : > { %v2887_v34 = vrot.slane %v2631_v62, 4  ;;  %v2888_v23 = vrot.slane %v2632_v59, 4  ;;  %v2889_v54 = vrot.slane %v2633_v42, 4  ;;  %v2890_v27 = vrot.slane %v2634_v17, 4 }
 0x375   : > { %v2891_v52 = vrot.slane %v2635_v18, 4  ;;  %v2892_v21 = vrot.slane %v2636_v45, 4  ;;  %v2893_v61 = vrot.slane %v2637_v9, 4  ;;  %v2894_v2 = vrot.slane %v2638_v13, 4 }
 0x376   : > { %v2895_v56 = vrot.slane %v2639_v58, 4  ;;  %v2896_v53 = vrot.slane %v2640_v8, 4  ;;  %v2897_v47 = vrot.slane %v2641_v10, 4  ;;  %v2898_v43 = vrot.slane %v2642_v40, 4 }
 0x377   : > { %v2899_v31 = vrot.slane %v2643_v49, 4  ;;  %v2900_v48 = vrot.slane %v2644_v3, 4  ;;  %v2901_v50 = vrot.slane %v2645_v38, 4  ;;  %v3142_v16 = vadd.f32 %v2886_v32, %v11016_v39 }
 0x378   : > { %v3143_v24 = vadd.f32 %v2887_v34, %v11018_v22  ;;  %v3144_v14 = vadd.f32 %v2888_v23, %v11023_v55  ;;  %v3145_v15 = vadd.f32 %v2889_v54, %v11025_v33  ;;  %v3146_v5 = vadd.f32 %v2890_v27, %v11027_v44  ;;  %v11106_v54 = vpop.f32.mrb[18].mxu0 }
 0x379   : > { %v3147_v57 = vadd.f32 %v2891_v52, %v11029_v60  ;;  %v3148_v35 = vadd.f32 %v2892_v21, %v2380_v1  ;;  %v3149_v20 = vadd.f32 %v2893_v61, %v2381_v4  ;;  %v3150_v63 = vadd.f32 %v2894_v2, %v2382_v26  ;;  %12592 = vst [vmem:[#allocation52_spill] sm:$0xff] %v11106_v54  ;;  %v11108_v60 = vpop.f32.mrb[17].mxu1  ;;  %v11110_v26 = vpop.f32.mrb[19].mxu0  ;;  %v11144_v2 = vld [vmem:[%s8732_s3 + $0x1d0] sm:$0x8] }
 0x37a   : > { %v3151_v19 = vadd.f32 %v2895_v56, %v2383_v37  ;;  %v3152_v39 = vadd.f32 %v2896_v53, %v2384_v11  ;;  %v3153_v22 = vadd.f32 %v2897_v47, %v2385_v46  ;;  %v3154_v32 = vadd.f32 %v2898_v43, %v2386_v36  ;;  %12593 = vst [vmem:[#allocation53_spill] sm:$0xff] %v11108_v60  ;;  %v11112_v37 = vpop.f32.mrb[18].mxu1  ;;  %v11147_v56 = vld [vmem:[%s8732_s3 + $0x1d4] sm:$0x8]  ;;  %v11150_v53 = vld [vmem:[%s8732_s3 + $0x1e8] sm:$0x8] }
 0x37b   : > { %v3155_v55 = vadd.f32 %v2899_v31, %v2387_v6  ;;  %v3156_v34 = vadd.f32 %v2900_v48, %v2388_v30  ;;  %v3157_v33 = vadd.f32 %v2901_v50, %v2389_v51  ;;  %v3270_v23 = vrot.slane %v2630_v28, 5  ;;  %12594 = vst [vmem:[#allocation54_spill] sm:$0xff] %v11110_v26  ;;  %12595 = vst [vmem:[#allocation55_spill] sm:$0xff] %v11112_v37  ;;  %v11198_v29 = vpop.f32.mrb[20].mxu0 }
 0x37c   : > { %v3271_v44 = vrot.slane %v2631_v62, 5  ;;  %v3272_v27 = vrot.slane %v2632_v59, 5  ;;  %v3273_v52 = vrot.slane %v2633_v42, 5  ;;  %v3274_v1 = vrot.slane %v2634_v17, 5  ;;  %v11200_v0 = vpop.f32.mrb[21].mxu0 }
 0x37d   : > { %v3275_v4 = vrot.slane %v2635_v18, 5  ;;  %v3276_v11 = vrot.slane %v2636_v45, 5  ;;  %v3277_v46 = vrot.slane %v2637_v9, 5  ;;  %v3278_v36 = vrot.slane %v2638_v13, 5  ;;  %v11119_v45 = vld [vmem:[%s8732_s3 + $0x1c4] sm:$0x8] }
 0x37e   : > { %v3279_v6 = vrot.slane %v2639_v58, 5  ;;  %v3280_v30 = vrot.slane %v2640_v8, 5  ;;  %v3281_v51 = vrot.slane %v2641_v10, 5  ;;  %v3282_v28 = vrot.slane %v2642_v40, 5  ;;  %v11130_v10 = vld [vmem:[%s8732_s3 + $0x1c0] sm:$0x8] }
 0x37f   : > { %v3283_v62 = vrot.slane %v2643_v49, 5  ;;  %v3284_v59 = vrot.slane %v2644_v3, 5  ;;  %v3285_v42 = vrot.slane %v2645_v38, 5  ;;  %v11114_v17 = vadd.f32 %v3270_v23, %v3142_v16  ;;  %v11133_v40 = vld [vmem:[%s8732_s3 + $0x1c8] sm:$0x8]  ;;  %v11138_v3 = vpop.f32.mrb[19].mxu1 }
 0x380   : > { %v11116_v18 = vadd.f32 %v3271_v44, %v3143_v24  ;;  %v11121_v9 = vadd.f32 %v3272_v27, %v3144_v14  ;;  %v11123_v13 = vadd.f32 %v3273_v52, %v3145_v15  ;;  %v11125_v58 = vadd.f32 %v3274_v1, %v3146_v5  ;;  %v11136_v49 = vld [vmem:[%s8732_s3 + $0x1e4] sm:$0x8]  ;;  %12596 = vst [vmem:[#allocation56_spill] sm:$0xff] %v11138_v3  ;;  %v11162_v16 = vld [vmem:[%s8732_s3 + $0x1ec] sm:$0x8] }
 0x381   : > { %v11127_v8 = vadd.f32 %v3275_v4, %v3147_v57  ;;  %v3532_v38 = vadd.f32 %v3276_v11, %v3148_v35  ;;  %v3533_v21 = vadd.f32 %v3277_v46, %v3149_v20  ;;  %v3534_v61 = vadd.f32 %v3278_v36, %v3150_v63  ;;  %v11141_v57 = vld [vmem:[%s8732_s3 + $0x1cc] sm:$0x8]  ;;  %v11153_v20 = vld [vmem:[%s8732_s3 + $0x1d8] sm:$0x8]  ;;  %v11156_v63 = vld [vmem:[%s8732_s3 + $0x1dc] sm:$0x8] }
 0x382   : > { %v3535_v5 = vadd.f32 %v3279_v6, %v3151_v19  ;;  %v3536_v47 = vadd.f32 %v3280_v30, %v3152_v39  ;;  %v3537_v43 = vadd.f32 %v3281_v51, %v3153_v22  ;;  %v3538_v31 = vadd.f32 %v3282_v28, %v3154_v32  ;;  %v11159_v19 = vld [vmem:[%s8732_s3 + $0x1e0] sm:$0x8]  ;;  %v11165_v24 = vld [vmem:[%s8732_s3 + $0x1f0] sm:$0x8]  ;;  %v11168_v14 = vld [vmem:[%s8732_s3 + $0x1f4] sm:$0x8] }
 0x383   : > { %v3539_v35 = vadd.f32 %v3283_v62, %v3155_v55  ;;  %v3540_v48 = vadd.f32 %v3284_v59, %v3156_v34  ;;  %v3541_v50 = vadd.f32 %v3285_v42, %v3157_v33  ;;  %v3782_v15 = vunpack.c.l.bf16 %v11130_v10  ;;  %v11173_v22 = vld [vmem:[%s8732_s3 + $0x1f8] sm:$0x8]  ;;  %v11176_v32 = vld [vmem:[%s8732_s3 + $0x1fc] sm:$0x8]  ;;  %s7658_s3 = sshll.u32 %s8501_s13, 11  ;;  %s7437_s13 = scalar_lea.sflag [#allocation4], %s8720_s26 }
 0x384   : > { %v3783_v39 = vunpack.c.l.bf16 %v11119_v45  ;;  %v3784_v55 = vunpack.c.l.bf16 %v11133_v40  ;;  %v3785_v23 = vunpack.c.l.bf16 %v11141_v57  ;;  %v3786_v34 = vunpack.c.l.bf16 %v11144_v2  ;;  %s12426_s16 = scalar_lea.hbm %s12485_s9, %s7658_s3 }
 0x385   : > { %v3787_v33 = vunpack.c.l.bf16 %v11147_v56  ;;  %v3788_v44 = vunpack.c.l.bf16 %v11153_v20  ;;  %v3789_v27 = vunpack.c.l.bf16 %v11156_v63  ;;  %v3790_v52 = vunpack.c.l.bf16 %v11159_v19 }
 0x386   : > { %v3791_v1 = vunpack.c.l.bf16 %v11136_v49  ;;  %v3792_v4 = vunpack.c.l.bf16 %v11150_v53  ;;  %v3793_v11 = vunpack.c.l.bf16 %v11162_v16  ;;  %v3794_v46 = vunpack.c.l.bf16 %v11165_v24 }
 0x387   : > { %v3795_v36 = vunpack.c.l.bf16 %v11168_v14  ;;  %v3796_v6 = vunpack.c.l.bf16 %v11173_v22  ;;  %v3797_v30 = vunpack.c.l.bf16 %v11176_v32  ;;  %v4038_v51 = vrot.slane %v3782_v15, 6 }
 0x388   : > { %v4039_v28 = vrot.slane %v3783_v39, 6  ;;  %v4040_v62 = vrot.slane %v3784_v55, 6  ;;  %v4041_v59 = vrot.slane %v3785_v23, 6  ;;  %v4042_v42 = vrot.slane %v3786_v34, 6 }
 0x389   : > { %v4043_v45 = vrot.slane %v3787_v33, 6  ;;  %v4044_v10 = vrot.slane %v3788_v44, 6  ;;  %v4045_v40 = vrot.slane %v3789_v27, 6  ;;  %v4046_v49 = vrot.slane %v3790_v52, 6 }
 0x38a   : > { %v4047_v57 = vrot.slane %v3791_v1, 6  ;;  %v4048_v2 = vrot.slane %v3792_v4, 6  ;;  %v4049_v56 = vrot.slane %v3793_v11, 6  ;;  %v4050_v53 = vrot.slane %v3794_v46, 6 }
 0x38b   : > { %v4051_v20 = vrot.slane %v3795_v36, 6  ;;  %v4052_v63 = vrot.slane %v3796_v6, 6  ;;  %v4053_v19 = vrot.slane %v3797_v30, 6  ;;  %v4294_v16 = vadd.f32 %v4038_v51, %v11114_v17 }
 0x38c   : > { %v4295_v24 = vadd.f32 %v4039_v28, %v11116_v18  ;;  %v4296_v14 = vadd.f32 %v4040_v62, %v11121_v9  ;;  %v4297_v22 = vadd.f32 %v4041_v59, %v11123_v13  ;;  %v4298_v32 = vadd.f32 %v4042_v42, %v11125_v58  ;;  %v11202_v59 = vpop.f32.mrb[22].mxu0 }
 0x38d   : > { %v4299_v26 = vadd.f32 %v4043_v45, %v11127_v8  ;;  %v4300_v3 = vadd.f32 %v4044_v10, %v3532_v38  ;;  %v4301_v37 = vadd.f32 %v4045_v40, %v3533_v21  ;;  %v4302_v60 = vadd.f32 %v4046_v49, %v3534_v61  ;;  %v11204_v38 = vpop.f32.mrb[23].mxu0 }
 0x38e   : > { %v4303_v54 = vadd.f32 %v4047_v57, %v3535_v5  ;;  %v4304_v7 = vadd.f32 %v4048_v2, %v3536_v47  ;;  %v4305_v17 = vadd.f32 %v4049_v56, %v3537_v43  ;;  %v4306_v51 = vadd.f32 %v4050_v53, %v3538_v31 }
 0x38f   : > { %v4307_v18 = vadd.f32 %v4051_v20, %v3539_v35  ;;  %v4308_v28 = vadd.f32 %v4052_v63, %v3540_v48  ;;  %v4309_v9 = vadd.f32 %v4053_v19, %v3541_v50  ;;  %v4423_v62 = vrot.slane %v3783_v39, 7 }
 0x390   : > { %v4424_v13 = vrot.slane %v3784_v55, 7  ;;  %v4425_v58 = vrot.slane %v3785_v23, 7  ;;  %v4426_v8 = vrot.slane %v3786_v34, 7  ;;  %v4427_v42 = vrot.slane %v3787_v33, 7 }
 0x391   : > { %v4428_v45 = vrot.slane %v3788_v44, 7  ;;  %v4422_v21 = vrot.slane %v3782_v15, 7  ;;  %v4429_v61 = vrot.slane %v3789_v27, 7  ;;  %v4431_v5 = vrot.slane %v3791_v1, 7 }
 0x392   : > { %v4432_v10 = vrot.slane %v3792_v4, 7  ;;  %v4430_v47 = vrot.slane %v3790_v52, 7  ;;  %v4433_v43 = vrot.slane %v3793_v11, 7  ;;  %v4434_v31 = vrot.slane %v3794_v46, 7 }
 0x393   : > { %v4435_v35 = vrot.slane %v3795_v36, 7  ;;  %v4436_v48 = vrot.slane %v3796_v6, 7  ;;  %v4437_v50 = vrot.slane %v3797_v30, 7  ;;  %v4679_v39 = vadd.f32 %v4423_v62, %v4295_v24 }
 0x394   : > { %v4680_v55 = vadd.f32 %v4424_v13, %v4296_v14  ;;  %v4681_v40 = vadd.f32 %v4425_v58, %v4297_v22  ;;  %v4682_v49 = vadd.f32 %v4426_v8, %v4298_v32  ;;  %v4683_v23 = vadd.f32 %v4427_v42, %v4299_v26 }
 0x395   : > { %v4684_v34 = vadd.f32 %v4428_v45, %v4300_v3  ;;  %v4678_v33 = vadd.f32 %v4422_v21, %v4294_v16  ;;  %v4685_v44 = vadd.f32 %v4429_v61, %v4301_v37  ;;  %v4687_v57 = vadd.f32 %v4431_v5, %v4303_v54 }
 0x396   : > { %v4688_v2 = vadd.f32 %v4432_v10, %v4304_v7  ;;  %v4686_v15 = vadd.f32 %v4430_v47, %v4302_v60  ;;  %v4689_v27 = vadd.f32 %v4433_v43, %v4305_v17  ;;  %v4690_v1 = vadd.f32 %v4434_v31, %v4306_v51 }
 0x397   : > { %v4691_v4 = vadd.f32 %v4435_v35, %v4307_v18  ;;  %v4692_v52 = vadd.f32 %v4436_v48, %v4308_v28  ;;  %v4693_v11 = vadd.f32 %v4437_v50, %v4309_v9  ;;  %v4807_v46 = vmul.f32 0.125, %v4679_v39 }
 0x398   : > { %v4808_v36 = vmul.f32 0.125, %v4680_v55  ;;  %v4809_v6 = vmul.f32 0.125, %v4681_v40  ;;  %v4810_v30 = vmul.f32 0.125, %v4682_v49  ;;  %v4811_v56 = vmul.f32 0.125, %v4683_v23 }
 0x399   : > { %v4812_v53 = vmul.f32 0.125, %v4684_v34  ;;  %v4806_v20 = vmul.f32 0.125, %v4678_v33  ;;  %v4813_v63 = vmul.f32 0.125, %v4685_v44  ;;  %v4815_v26 = vmul.f32 0.125, %v4687_v57 }
 0x39a   : > { %v4816_v3 = vmul.f32 0.125, %v4688_v2  ;;  %v4814_v19 = vmul.f32 0.125, %v4686_v15  ;;  %v4817_v37 = vmul.f32 0.125, %v4689_v27  ;;  %v4818_v54 = vmul.f32 0.125, %v4690_v1 }
 0x39b   : > { %v4819_v7 = vmul.f32 0.125, %v4691_v4  ;;  %v4820_v60 = vmul.f32 0.125, %v4692_v52  ;;  %v4821_v16 = vmul.f32 0.125, %v4693_v11  ;;  %v4935_v24 = vpack.c.bf16 %v4807_v46, %v4807_v46  ;;  %v6109_v4 = vld [vmem:[%s12478_s2] sm:$0x1] }
 0x39c   : > { %v4936_v14 = vpack.c.bf16 %v4808_v36, %v4808_v36  ;;  %v4937_v22 = vpack.c.bf16 %v4809_v6, %v4809_v6  ;;  %v4938_v32 = vpack.c.bf16 %v4810_v30, %v4810_v30  ;;  %v4939_v17 = vpack.c.bf16 %v4811_v56, %v4811_v56  ;;  %v6110_v6 = vld [vmem:[%s12478_s2 + $0x1] sm:$0x1] }
 0x39d   : > { %v4940_v51 = vpack.c.bf16 %v4812_v53, %v4812_v53  ;;  %v4934_v18 = vpack.c.bf16 %v4806_v20, %v4806_v20  ;;  %v4941_v28 = vpack.c.bf16 %v4813_v63, %v4813_v63  ;;  %v4943_v9 = vpack.c.bf16 %v4815_v26, %v4815_v26 }
 0x39e   : > { %v4944_v62 = vpack.c.bf16 %v4816_v3, %v4816_v3  ;;  %v4942_v13 = vpack.c.bf16 %v4814_v19, %v4814_v19  ;;  %v4945_v58 = vpack.c.bf16 %v4817_v37, %v4817_v37  ;;  %v4946_v8 = vpack.c.bf16 %v4818_v54, %v4818_v54 }
 0x39f   : > { %v4947_v42 = vpack.c.bf16 %v4819_v7, %v4819_v7  ;;  %v4948_v45 = vpack.c.bf16 %v4820_v60, %v4820_v60  ;;  %v4949_v21 = vpack.c.bf16 %v4821_v16, %v4821_v16  ;;  %v5509_v61 = vunpack.c.l.b16 %v4935_v24 }
 0x3a0   : > { %v5510_v5 = vunpack.c.l.b16 %v4936_v14  ;;  %v5511_v10 = vunpack.c.l.b16 %v4937_v22  ;;  %v5512_v47 = vunpack.c.l.b16 %v4938_v32  ;;  %v5513_v43 = vunpack.c.l.b16 %v4939_v17  ;;  %v4966_v17 = vld [vmem:[%s12480_s4] sm:$0x3] }
 0x3a1   : > { %v5514_v31 = vunpack.c.l.b16 %v4940_v51  ;;  %v5508_v35 = vunpack.c.l.b16 %v4934_v18  ;;  %v5515_v48 = vunpack.c.l.b16 %v4941_v28  ;;  %v5517_v50 = vunpack.c.l.b16 %v4943_v9 }
 0x3a2   : > { %v5518_v39 = vunpack.c.l.b16 %v4944_v62  ;;  %v5516_v55 = vunpack.c.l.b16 %v4942_v13  ;;  %v5519_v40 = vunpack.c.l.b16 %v4945_v58  ;;  %v5520_v49 = vunpack.c.l.b16 %v4946_v8  ;;  %v5251_v13 = vld [vmem:[%s12482_s6] sm:$0x7] }
 0x3a3   : > { %v5521_v23 = vunpack.c.l.b16 %v4947_v42  ;;  %v5522_v34 = vunpack.c.l.b16 %v4948_v45  ;;  %v5727_v33 = vrot.slane %v5509_v61, 7  ;;  %v5729_v44 = vrot.slane %v5510_v5, 6 }
 0x3a4   : > { %v5731_v57 = vrot.slane %v5511_v10, 5  ;;  %v5523_v2 = vunpack.c.l.b16 %v4949_v21  ;;  %v5733_v15 = vrot.slane %v5512_v47, 4  ;;  %v5735_v27 = vrot.slane %v5513_v43, 3 }
 0x3a5   : > { %v5737_v1 = vrot.slane %v5514_v31, 2  ;;  %v5728_v52 = vsel %vm5525_vm0, %v5727_v33, %v5508_v35  ;;  %v5741_v11 = vrot.slane %v5517_v50, 7  ;;  %v5743_v46 = vrot.slane %v5518_v39, 6  ;;  %v12598_v39 = vld [vmem:[#allocation29_spill] sm:$0xff] }
 0x3a6   : > { %v5745_v36 = vrot.slane %v5519_v40, 5  ;;  %v5730_v30 = vsel %vm5528_vm1, %v5729_v44, %v5728_v52  ;;  %v5739_v56 = vrot.slane %v5515_v48, 1  ;;  %v5747_v53 = vrot.slane %v5520_v49, 4  ;;  %v12599_v40 = vld [vmem:[#allocation27_spill] sm:$0xff] }
 0x3a7   : > { %v5749_v20 = vrot.slane %v5521_v23, 3  ;;  %v5732_v63 = vsel %vm5531_vm2, %v5731_v57, %v5730_v30  ;;  %v5742_v26 = vsel %vm5525_vm0, %v5741_v11, %v5516_v55  ;;  %v5751_v3 = vrot.slane %v5522_v34, 2  ;;  %v12600_v23 = vld [vmem:[#allocation30_spill] sm:$0xff]  ;;  %v12604_v52 = vld [vmem:[#allocation35_spill] sm:$0xff] }
 0x3a8   : > { %v4968_v19 = vlaneseq  ;;  %v5734_v37 = vsel %vm5534_vm3, %v5733_v15, %v5732_v63  ;;  %v5744_v54 = vsel %vm5528_vm1, %v5743_v46, %v5742_v26  ;;  %v6450_v7 = vmul.f32 %v6110_v6, %v6109_v4  ;;  %v12606_v30 = vld [vmem:[#allocation38_spill] sm:$0xff]  ;;  %v12607_v63 = vld [vmem:[#allocation20_spill] sm:$0xff] }
 0x3a9   : > { %vm6451_vm7 = vcmask 1040384   ;;  %v5736_v60 = vsel %vm5537_vm4, %v5735_v27, %v5734_v37  ;;  %v5746_v16 = vsel %vm5531_vm2, %v5745_v36, %v5744_v54  ;;  %v5753_v24 = vrot.slane %v5523_v2, 1  ;;  %v12605_v36 = vld [vmem:[#allocation37_spill] sm:$0xff] }
 0x3aa   : > { %v4969_v14 = vshrl.u32 %v4968_v19, 7  ;;  %v5738_v22 = vsel %vm5540_vm5, %v5737_v1, %v5736_v60  ;;  %v5748_v32 = vsel %vm5534_vm3, %v5747_v53, %v5746_v16  ;;  %v6452_v51 = vsel %vm6451_vm7, %v6450_v7, 0.0  ;;  %v12603_v1 = vld [vmem:[#allocation34_spill] sm:$0xff]  ;;  %v12609_v54 = vld [vmem:[#allocation41_spill] sm:$0xff] }
 0x3ab   : > { %v5740_v18 = vsel %vm5543_vm6, %v5739_v56, %v5738_v22  ;;  %v5750_v28 = vsel %vm5537_vm4, %v5749_v20, %v5748_v32  ;;  %6453 = vadd.xlane.f32.xlu0 %v6452_v51  ;;  %v12611_v22 = vld [vmem:[#allocation44_spill] sm:$0xff]  ;;  %v12612_v51 = vld [vmem:[#allocation21_spill] sm:$0xff] }
 0x3ac   : > { %v11227_v9 = vsub.s32 0, %v4969_v14  ;;  %v4974_v62 = vsub.s32 1, %v4969_v14  ;;  %v5752_v58 = vsel %vm5540_vm5, %v5751_v3, %v5750_v28  ;;  %v5263_v8 = vsub.s32 2, %v4969_v14  ;;  %v12608_v3 = vld [vmem:[#allocation39_spill] sm:$0xff] }
 0x3ad   : > { %v5754_v42 = vsel %vm5543_vm6, %v5753_v24, %v5752_v58  ;;  %v12610_v24 = vld [vmem:[#allocation42_spill] sm:$0xff] }
 0x3ae   : > { %v11235_v45 = vrot.slane %v4966_v17, %v11227_v9  ;;  %v11238_v21 = vrot.slane %v6110_v6, %v11227_v9  ;;  %v11240_v61 = vrot.slane %v4966_v17, %v4974_v62  ;;  %v5762_v5 = vpack.c.b16 %v5754_v42, %v5740_v18 }
 0x3af   : > { %v11243_v10 = vrot.slane %v5251_v13, %v11227_v9  ;;  %v11245_v47 = vrot.slane %v5251_v13, %v4974_v62  ;;  %v11247_v43 = vrot.slane %v5251_v13, %v5263_v8  ;;  %v11252_v35 = vrot.slane %v6109_v4, %v11227_v9  ;;  %v12613_v13 = vld [vmem:[#allocation22_spill] sm:$0xff]  ;;  %v12614_v8 = vld [vmem:[#allocation23_spill] sm:$0xff] }
 0x3b0   : > { %12597 = vst [vmem:[#allocation57_spill] sm:$0xff] %v11240_v61  ;;  %v5141_v31 = vadd.f32 %v10767_v25, %v11235_v45  ;;  %6002 = vmatmul.mubr.bf16.gmra.mrb[28].mxu1 %v5762_v5  ;;  %v5145_v49 = vadd.f32 %v12599_v40, %v11235_v45  ;;  %7720 = vmatmul.mubr.bf16.gmra.mrb[44].mxu0 %v5762_v5 }
 0x3b1   : > { %v5934_v48 = vadd.f32 %v10771_v12, %v11243_v10  ;;  %v5936_v50 = vadd.f32 %v10775_v41, %v11245_v47  ;;  %v5938_v55 = vadd.f32 %v12598_v39, %v11243_v10  ;;  %v5940_v34 = vadd.f32 %v12600_v23, %v11245_v47  ;;  %v12601_v12 = vld [vmem:[#allocation31_spill] sm:$0xff]  ;;  %v12602_v41 = vld [vmem:[#allocation32_spill] sm:$0xff] }
 0x3b2   : > { %v6322_v25 = vmul.f32 %v11252_v35, %v5141_v31  ;;  %v5151_v2 = vadd.f32 %v12601_v12, %v11235_v45  ;;  %v11270_v15 = vadd.f32 %v12602_v41, %v11243_v10  ;;  %v5155_v4 = vadd.f32 %v12603_v1, %v11235_v45  ;;  %v12619_v41 = vld [vmem:[#allocation49_spill] sm:$0xff] }
 0x3b3   : > { %v6258_v33 = vmul.f32 %v11238_v21, %v5934_v48  ;;  %v6130_v44 = vmul.f32 %v5934_v48, %v5141_v31  ;;  %v6194_v57 = vmul.f32 %v5936_v50, %v5934_v48  ;;  %v6131_v27 = vmul.f32 %v5938_v55, %v5145_v49  ;;  %v12615_v31 = vld [vmem:[#allocation25_spill] sm:$0xff] }
 0x3b4   : > { %6338 = vadd.xlane.f32.xlu0 %v6322_v25  ;;  %v11276_v11 = vadd.f32 %v12604_v52, %v11245_v47  ;;  %v6195_v46 = vmul.f32 %v5940_v34, %v5938_v55  ;;  %v5948_v6 = vadd.f32 %v12605_v36, %v11243_v10  ;;  %v11282_v56 = vadd.f32 %v12606_v30, %v11245_v47  ;;  %v12618_v25 = vld [vmem:[#allocation48_spill] sm:$0xff]  ;;  %v12620_v52 = vld [vmem:[#allocation50_spill] sm:$0xff] }
 0x3b5   : > { %6274 = vadd.xlane.f32.xlu1 %v6258_v33  ;;  %v6132_v20 = vmul.f32 %v11270_v15, %v5151_v2  ;;  %v11287_v26 = vadd.f32 %v12607_v63, %v11235_v45  ;;  %v11291_v19 = vadd.f32 %v12608_v3, %v11243_v10  ;;  %v11298_v7 = vadd.f32 %v12609_v54, %v11235_v45  ;;  %v12621_v30 = vld [vmem:[#allocation52_spill] sm:$0xff] }
 0x3b6   : > { %v6133_v53 = vmul.f32 %v5948_v6, %v5155_v4  ;;  %v11294_v37 = vmul.f32 %v11282_v56, %v5948_v6  ;;  %v11302_v60 = vmul.f32 %v11276_v11, %v11270_v15  ;;  %v6386_v16 = vmul.f32 %v11252_v35, %v5936_v50  ;;  %v12616_v50 = vld [vmem:[#allocation45_spill] sm:$0xff] }
 0x3b7   : > { %v11307_v14 = vadd.f32 %v12610_v24, %v11245_v47  ;;  %v11311_v32 = vadd.f32 %v12611_v22, %v11243_v10  ;;  %v6323_v17 = vmul.f32 %v11252_v35, %v5145_v49  ;;  %v11316_v18 = vadd.f32 %v12612_v51, %v11245_v47  ;;  %v12617_v49 = vld [vmem:[#allocation47_spill] sm:$0xff] }
 0x3b8   : > { %6146 = vadd.xlane.f32.xlu0 %v6130_v44  ;;  %v11320_v28 = vmul.f32 %v11291_v19, %v11287_v26  ;;  %v11328_v58 = vadd.f32 %v12613_v13, %v11235_v45  ;;  %v11332_v42 = vadd.f32 %v12614_v8, %v11243_v10  ;;  %v11340_v48 = vadd.f32 %v12615_v31, %v11235_v45  ;;  %v11417_v31 = vpop.f32.mrb[24].mxu0 }
 0x3b9   : > { %6210 = vadd.xlane.f32.xlu1 %v6194_v57  ;;  %v11324_v62 = vmul.f32 %v11311_v32, %v11298_v7  ;;  %v11336_v5 = vmul.f32 %v11316_v18, %v11311_v32  ;;  %v11344_v39 = vadd.f32 %v12616_v50, %v11245_v47  ;;  %v11348_v40 = vmul.f32 %v11307_v14, %v11291_v19 }
 0x3ba   : > { %v11352_v23 = vadd.f32 %v12617_v49, %v11243_v10  ;;  %v11356_v33 = vadd.f32 %v12618_v25, %v11245_v47  ;;  %v11364_v57 = vmul.f32 %v11332_v42, %v11328_v58  ;;  %v6259_v12 = vmul.f32 %v11238_v21, %v5938_v55  ;;  %v11420_v49 = vpop.f32.mrb[25].mxu0 }
 0x3bb   : > { %v11369_v1 = vadd.f32 %v12619_v41, %v11235_v45  ;;  %v11373_v36 = vadd.f32 %v12620_v52, %v11243_v10  ;;  %v11381_v63 = vadd.f32 %v12621_v30, %v11235_v45  ;;  %v11389_v55 = vmul.f32 %v11344_v39, %v11332_v42  ;;  %12625 = vst [vmem:[#allocation29_spill] sm:$0xff] %v11420_v49  ;;  %v11422_v25 = vpop.f32.mrb[26].mxu0 }
 0x3bc   : > { %6402 = vadd.xlane.f32.xlu0 %v6386_v16  ;;  %v11360_v44 = vmul.f32 %v11352_v23, %v11340_v48  ;;  %v6387_v54 = vmul.f32 %v11252_v35, %v5940_v34  ;;  %v12623_v16 = vld [vmem:[#allocation55_spill] sm:$0xff]  ;;  %v6325_v22 = vmul.f32 %v11252_v35, %v5155_v4  ;;  %v6324_v50 = vmul.f32 %v11252_v35, %v5151_v2 }
 0x3bd   : > { %6340 = vadd.xlane.f32.xlu1 %v6323_v17  ;;  %v11394_v24 = vadd.f32 %v12623_v16, %v11243_v10  ;;  %v12624_v17 = vld [vmem:[#allocation56_spill] sm:$0xff]  ;;  %v11403_v13 = vmul.f32 %v11373_v36, %v11369_v1  ;;  %v11428_v41 = vadd.f32 %v11198_v29, %v11235_v45  ;;  %v6261_v30 = vmul.f32 %v11238_v21, %v5948_v6 }
 0x3be   : > { %v11399_v51 = vadd.f32 %v12624_v17, %v11245_v47  ;;  %v11436_v2 = vadd.f32 %v11202_v59, %v11235_v45  ;;  %v6260_v16 = vmul.f32 %v11238_v21, %v11270_v15 }
 0x3bf   : > { %v11407_v8 = vmul.f32 %v11394_v24, %v11381_v63 }
 0x3c0   : > { %6148 = vadd.xlane.f32.xlu0 %v6131_v27  ;;  %v11377_v27 = vmul.f32 %v11356_v33, %v11352_v23  ;;  %v11411_v34 = vmul.f32 %v11399_v51, %v11394_v24 }
 0x3c1   : > { %6212 = vadd.xlane.f32.xlu1 %v6195_v46  ;;  %v12622_v46 = vld [vmem:[#allocation53_spill] sm:$0xff] }
 0x3c2   : > { %v11385_v3 = vadd.f32 %v12622_v46, %v11245_v47 }
 0x3c4   : > { %6276 = vadd.xlane.f32.xlu0 %v6259_v12  ;;  %v11415_v4 = vmul.f32 %v11385_v3, %v11373_v36  ;;  %v11424_v12 = vpop.f32.mrb[27].mxu0 }
 0x3c5   : > { %6404 = vadd.xlane.f32.xlu1 %v6387_v54  ;;  %12626 = vst [vmem:[#allocation27_spill] sm:$0xff] %v11424_v12 }
 0x3c8   : > { %6344 = vadd.xlane.f32.xlu0 %v6325_v22 }
 0x3c9   : > { %6342 = vadd.xlane.f32.xlu1 %v6324_v50 }
 0x3cc   : > { %6152 = vadd.xlane.f32.xlu0 %v6133_v53  ;;  %v5983_v52 = vpop.f32.mrb[20].mxu1 }
 0x3cd   : > { %6150 = vadd.xlane.f32.xlu1 %v6132_v20  ;;  %v11432_v46 = vadd.f32 %v5983_v52, %v11243_v10  ;;  %v5985_v54 = vpop.f32.mrb[21].mxu1  ;;  %v6389_v52 = vmul.f32 %v11252_v35, %v11282_v56  ;;  %v6263_v56 = vmul.f32 %v11238_v21, %v11311_v32  ;;  %v6393_v32 = vmul.f32 %v11252_v35, %v11356_v33 }
 0x3ce   : > { %v11441_v53 = vadd.f32 %v5985_v54, %v11245_v47  ;;  %v5987_v29 = vpop.f32.mrb[22].mxu1  ;;  %v6327_v54 = vmul.f32 %v11252_v35, %v11298_v7  ;;  %v6329_v7 = vmul.f32 %v11252_v35, %v11340_v48  ;;  %v6394_v48 = vmul.f32 %v11252_v35, %v11385_v3 }
 0x3cf   : > { %v11444_v20 = vadd.f32 %v5987_v29, %v11243_v10  ;;  %v5989_v6 = vpop.f32.mrb[23].mxu1  ;;  %v11448_v22 = vmul.f32 %v11432_v46, %v11428_v41  ;;  %v6268_v33 = vmul.f32 %v11238_v21, %v11432_v46 }
 0x3d0   : > { %6280 = vadd.xlane.f32.xlu0 %v6261_v30  ;;  %v11451_v59 = vadd.f32 %v5989_v6, %v11245_v47  ;;  %v11455_v15 = vmul.f32 %v11441_v53, %v11432_v46  ;;  %v6388_v30 = vmul.f32 %v11252_v35, %v11276_v11  ;;  %v6262_v11 = vmul.f32 %v11238_v21, %v11291_v19 }
 0x3d1   : > { %6278 = vadd.xlane.f32.xlu1 %v6260_v16  ;;  %v6141_v17 = vmul.f32 %v11444_v20, %v11436_v2  ;;  %v6326_v16 = vmul.f32 %v11252_v35, %v11287_v26  ;;  %v6391_v26 = vmul.f32 %v11252_v35, %v11316_v18  ;;  %v6328_v19 = vmul.f32 %v11252_v35, %v11328_v58 }
 0x3d2   : > { %v11461_v50 = vmul.f32 %v11451_v59, %v11444_v20  ;;  %v6392_v18 = vmul.f32 %v11252_v35, %v11344_v39  ;;  %v6267_v58 = vmul.f32 %v11238_v21, %v11394_v24  ;;  %v6333_v39 = vmul.f32 %v11252_v35, %v11436_v2 }
 0x3d3   : > { %v6397_v3 = vmul.f32 %v11252_v35, %v11451_v59  ;;  %v6396_v24 = vmul.f32 %v11252_v35, %v11441_v53 }
 0x3d4   : > { %6216 = vadd.xlane.f32.xlu0 %v11294_v37  ;;  %v6390_v37 = vmul.f32 %v11252_v35, %v11307_v14  ;;  %v6264_v14 = vmul.f32 %v11238_v21, %v11332_v42  ;;  %v6266_v42 = vmul.f32 %v11238_v21, %v11373_v36  ;;  %v5205_v36 = vadd.f32 %v11422_v25, %v11235_v45  ;;  %v7912_v25 = vld [vmem:[#allocation10 + $0x10] sm:$0xff]  }
 0x3d5   : > { %6214 = vadd.xlane.f32.xlu1 %v11302_v60  ;;  %v6265_v60 = vmul.f32 %v11238_v21, %v11352_v23  ;;  %v6269_v23 = vmul.f32 %v11238_v21, %v11444_v20 }
 0x3d8   : > { %6408 = vadd.xlane.f32.xlu0 %v6389_v52 }
 0x3d9   : > { %6406 = vadd.xlane.f32.xlu1 %v6388_v30 }
 0x3dc   : > { %6348 = vadd.xlane.f32.xlu0 %v6327_v54  ;;  %v7914_v54 = vld [vmem:[#allocation10 + $0x20] sm:$0xff]  }
 0x3dd   : > { %6346 = vadd.xlane.f32.xlu1 %v6326_v16 }
 0x3e0   : > { %6156 = vadd.xlane.f32.xlu0 %v11324_v62  ;;  %v6330_v62 = vmul.f32 %v11252_v35, %v11369_v1 }
 0x3e1   : > { %6154 = vadd.xlane.f32.xlu1 %v11320_v28  ;;  %v6331_v28 = vmul.f32 %v11252_v35, %v11381_v63 }
 0x3e4   : > { %6284 = vadd.xlane.f32.xlu0 %v6263_v56 }
 0x3e5   : > { %6282 = vadd.xlane.f32.xlu1 %v6262_v11 }
 0x3e8   : > { %6220 = vadd.xlane.f32.xlu0 %v11336_v5  ;;  %v6395_v5 = vmul.f32 %v11252_v35, %v11399_v51 }
 0x3e9   : > { %6218 = vadd.xlane.f32.xlu1 %v11348_v40  ;;  %v6332_v40 = vmul.f32 %v11252_v35, %v11428_v41 }
 0x3ec   : > { %6412 = vadd.xlane.f32.xlu0 %v6391_v26 }
 0x3ed   : > { %6410 = vadd.xlane.f32.xlu1 %v6390_v37  ;;  %v7915_v37 = vld [vmem:[#allocation10 + $0x28] sm:$0xff]  }
 0x3f0   : > { %6352 = vadd.xlane.f32.xlu0 %v6329_v7 }
 0x3f1   : > { %6350 = vadd.xlane.f32.xlu1 %v6328_v19 }
 0x3f4   : > { %6160 = vadd.xlane.f32.xlu0 %v11360_v44  ;;  %v7910_v44 = vld [vmem:[#allocation10] sm:$0xff]  }
 0x3f5   : > { %6158 = vadd.xlane.f32.xlu1 %v11364_v57  ;;  %7723 = vmatprep.subr.bf16.mxu1 %v7910_v44 }
 0x3f6   : > { %7724 = vmatpush3.bf16.msra.mxu1 %v7910_v44 }
 0x3f8   : > { %6288 = vadd.xlane.f32.xlu0 %v6265_v60 }
 0x3f9   : > { %6286 = vadd.xlane.f32.xlu1 %v6264_v14 }
 0x3fc   : > { %6224 = vadd.xlane.f32.xlu0 %v11377_v27 }
 0x3fd   : > { %6222 = vadd.xlane.f32.xlu1 %v11389_v55  ;;  %v5201_v55 = vadd.f32 %v11417_v31, %v11235_v45 }
 0x3ff   : > { %v6334_v53 = vmul.f32 %v11252_v35, %v5201_v55 }
 0x400   : > { %6416 = vadd.xlane.f32.xlu0 %v6393_v32 }
 0x401   : > { %6414 = vadd.xlane.f32.xlu1 %v6392_v18  ;;  %v7916_v18 = vld [vmem:[#allocation10 + $0x30] sm:$0xff]  }
 0x404   : > { %6356 = vadd.xlane.f32.xlu0 %v6331_v28  ;;  %v7917_v28 = vld [vmem:[#allocation10 + $0x38] sm:$0xff]  }
 0x405   : > { %6354 = vadd.xlane.f32.xlu1 %v6330_v62 }
 0x408   : > { %6164 = vadd.xlane.f32.xlu0 %v11407_v8  ;;  %v7911_v8 = vld [vmem:[#allocation10 + $0x8] sm:$0xff]  }
 0x409   : > { %6162 = vadd.xlane.f32.xlu1 %v11403_v13  ;;  %v6335_v13 = vmul.f32 %v11252_v35, %v5205_v36  ;;  %7725 = vmatprep.subr.bf16.mxu1 %v7911_v8 }
 0x40a   : > { %7726 = vmatpush3.bf16.msra.mxu1 %v7911_v8 }
 0x40b   : > { %7727 = vmatprep.subr.bf16.mxu1 %v7912_v25 }
 0x40c   : > { %6292 = vadd.xlane.f32.xlu0 %v6267_v58 }
 0x40d   : > { %6290 = vadd.xlane.f32.xlu1 %v6266_v42 }
 0x40e   : > { %7728 = vmatpush3.bf16.msra.mxu1 %v7912_v25 }
 0x410   : > { %6228 = vadd.xlane.f32.xlu0 %v11411_v34 }
 0x411   : > { %6226 = vadd.xlane.f32.xlu1 %v11415_v4 }
 0x414   : > { %6420 = vadd.xlane.f32.xlu0 %v6395_v5 }
 0x415   : > { %6418 = vadd.xlane.f32.xlu1 %v6394_v48 }
 0x418   : > { %6360 = vadd.xlane.f32.xlu0 %v6333_v39  ;;  %v5210_v57 = vpop.f32.mrb[28].mxu0 }
 0x419   : > { %6358 = vadd.xlane.f32.xlu1 %v6332_v40  ;;  %v11526_v1 = vpop.f32.mrb[29].mxu0  ;;  %v11561_v7 = vadd.f32 %v5210_v57, %v11235_v45 }
 0x41a   : > { %12627 = vst [vmem:[#allocation30_spill] sm:$0xff] %v11526_v1  ;;  %v5214_v27 = vpop.f32.mrb[30].mxu0 }
 0x41b   : > { %v11532_v63 = vpop.f32.mrb[31].mxu0  ;;  %v11557_v11 = vadd.f32 %v5214_v27, %v11235_v45  ;;  %v6336_v32 = vmul.f32 %v11252_v35, %v11561_v7 }
 0x41c   : > { %6168 = vadd.xlane.f32.xlu0 %v6141_v17  ;;  %12628 = vst [vmem:[#allocation31_spill] sm:$0xff] %v11532_v63  ;;  %v7913_v17 = vld [vmem:[#allocation10 + $0x18] sm:$0xff]  }
 0x41d   : > { %6166 = vadd.xlane.f32.xlu1 %v11448_v22  ;;  %7729 = vmatprep.subr.bf16.mxu1 %v7913_v17  ;;  %v6337_v14 = vmul.f32 %v11252_v35, %v11557_v11 }
 0x41e   : > { %7730 = vmatpush3.bf16.msra.mxu1 %v7913_v17 }
 0x41f   : > { %7731 = vmatprep.subr.bf16.mxu1 %v7914_v54 }
 0x420   : > { %6296 = vadd.xlane.f32.xlu0 %v6269_v23 }
 0x421   : > { %6294 = vadd.xlane.f32.xlu1 %v6268_v33 }
 0x422   : > { %7732 = vmatpush3.bf16.msra.mxu1 %v7914_v54 }
 0x423   : > { %7733 = vmatprep.subr.bf16.mxu1 %v7915_v37 }
 0x424   : > { %6232 = vadd.xlane.f32.xlu0 %v11461_v50  ;;  %v11543_v2 = vpop.f32.mrb[32].mxu0 }
 0x425   : > { %6230 = vadd.xlane.f32.xlu1 %v11455_v15  ;;  %v11547_v6 = vpop.f32.mrb[33].mxu0 }
 0x426   : > { %v11550_v15 = vpop.f32.mrb[34].mxu0  ;;  %7734 = vmatpush3.bf16.msra.mxu1 %v7915_v37 }
 0x427   : > { %v5993_v51 = vpop.f32.mrb[24].mxu1  ;;  %v11552_v52 = vpop.f32.mrb[35].mxu0  ;;  %7735 = vmatprep.subr.bf16.mxu1 %v7916_v18 }
 0x428   : > { %6424 = vadd.xlane.f32.xlu0 %v6397_v3  ;;  %v5994_v34 = vadd.f32 %v5993_v51, %v11243_v10  ;;  %v5995_v4 = vpop.f32.mrb[25].mxu1 }
 0x429   : > { %6422 = vadd.xlane.f32.xlu1 %v6396_v24  ;;  %v5996_v41 = vadd.f32 %v5995_v4, %v11245_v47  ;;  %v5997_v46 = vpop.f32.mrb[26].mxu1 }
 0x42a   : > { %v5998_v31 = vadd.f32 %v5997_v46, %v11243_v10  ;;  %v5999_v29 = vpop.f32.mrb[27].mxu1  ;;  %v6142_v20 = vmul.f32 %v5994_v34, %v5201_v55  ;;  %v6270_v56 = vmul.f32 %v11238_v21, %v5994_v34  ;;  %7736 = vmatpush3.bf16.msra.mxu1 %v7916_v18 }
 0x42b   : > { %v6000_v22 = vadd.f32 %v5999_v29, %v11245_v47  ;;  %v6206_v59 = vmul.f32 %v5996_v41, %v5994_v34  ;;  %v6398_v60 = vmul.f32 %v11252_v35, %v5996_v41  ;;  %7737 = vmatprep.subr.bf16.mxu1 %v7917_v28 }
 0x42c   : > { %6364 = vadd.xlane.f32.xlu0 %v6335_v13  ;;  %v6143_v50 = vmul.f32 %v5998_v31, %v5205_v36  ;;  %v6271_v16 = vmul.f32 %v11238_v21, %v5998_v31 }
 0x42d   : > { %6362 = vadd.xlane.f32.xlu1 %v6334_v53  ;;  %v6207_v30 = vmul.f32 %v6000_v22, %v5998_v31  ;;  %v6399_v26 = vmul.f32 %v11252_v35, %v6000_v22 }
 0x42e   : > { %7738 = vmatpush3.bf16.msra.mxu1 %v7917_v28 }
 0x430   : > { %6172 = vadd.xlane.f32.xlu0 %v6143_v50 }
 0x431   : > { %6170 = vadd.xlane.f32.xlu1 %v6142_v20  ;;  %v11568_v62 = vpop.f32.mrb[36].mxu0 }
 0x434   : > { %6300 = vadd.xlane.f32.xlu0 %v6271_v16 }
 0x435   : > { %6298 = vadd.xlane.f32.xlu1 %v6270_v56 }
 0x438   : > { %6236 = vadd.xlane.f32.xlu0 %v6207_v30  ;;  %v6454_v19 = vpop.xlane.xlu0 %6453 }
 0x439   : > { %6234 = vadd.xlane.f32.xlu1 %v6206_v59  ;;  %v6455_v40 = vmul.f32 0.088388346, %v6454_v19  ;;  %v11575_v19 = vpop.f32.mrb[37].mxu0 }
 0x43b   : > { %v11571_v55 = vrot.slane %v6455_v40, %v11227_v9 }
 0x43c   : > { %6428 = vadd.xlane.f32.xlu0 %v6399_v26 }
 0x43d   : > { %6426 = vadd.xlane.f32.xlu1 %v6398_v60  ;;  %v11577_v60 = vpop.f32.mrb[38].mxu0 }
 0x43e   : > { %12629 = vst [vmem:[#allocation32_spill] sm:$0xff] %v11577_v60  ;;  %v11581_v28 = vpop.f32.mrb[39].mxu0 }
 0x43f   : > { %12630 = vst [vmem:[#allocation34_spill] sm:$0xff] %v11581_v28 }
 0x440   : > { %6368 = vadd.xlane.f32.xlu0 %v6337_v14 }
 0x441   : > { %6366 = vadd.xlane.f32.xlu1 %v6336_v32  ;;  %v6339_v45 = vpop.xlane.xlu0 %6338 }
 0x442   : > { %v6275_v58 = vpop.xlane.xlu1 %6274  ;;  %v6370_v57 = vmul.f32 0.088388346, %v6339_v45 }
 0x443   : > { %v6306_v23 = vmul.f32 0.088388346, %v6275_v58 }
 0x445   : > { %v6147_v42 = vpop.xlane.xlu0 %6146 }
 0x446   : > { %v6211_v5 = vpop.xlane.xlu1 %6210  ;;  %v6178_v48 = vmul.f32 0.088388346, %v6147_v42 }
 0x447   : > { %v6242_v39 = vmul.f32 0.088388346, %v6211_v5 }
 0x449   : > { %v6456_v33 = vmax.f32 %v6178_v48, %v6242_v39  ;;  %v6403_v44 = vpop.xlane.xlu0 %6402 }
 0x44a   : > { %v6434_v36 = vmul.f32 0.088388346, %v6403_v44  ;;  %v6341_v27 = vpop.xlane.xlu1 %6340 }
 0x44b   : > { %v6472_v3 = vmax.f32 %v6456_v33, %v6306_v23  ;;  %v6371_v59 = vmul.f32 0.088388346, %v6341_v27 }
 0x44c   : > { %v6728_v24 = vmax.f32 %v6370_v57, %v6434_v36 }
 0x44d   : > { %v6488_v51 = vsub.f32 %v6178_v48, %v6472_v3  ;;  %v6536_v13 = vsub.f32 %v6242_v39, %v6472_v3  ;;  %v6584_v8 = vsub.f32 %v6306_v23, %v6472_v3  ;;  %v6149_v34 = vpop.xlane.xlu0 %6148 }
 0x44e   : > { %v6748_v4 = vmax.f32 %v6728_v24, %v11571_v55  ;;  %v6213_v25 = vpop.xlane.xlu1 %6212  ;;  %v6179_v9 = vmul.f32 0.088388346, %v6149_v34 }
 0x44f   : > { %v6504_v41 = vmul.f32 1.442695, %v6488_v51  ;;  %v6552_v46 = vmul.f32 1.442695, %v6536_v13  ;;  %v6600_v31 = vmul.f32 1.442695, %v6584_v8 }
 0x450   : > { %v6764_v29 = vsub.f32 %v6370_v57, %v6748_v4  ;;  %v6812_v53 = vsub.f32 %v6434_v36, %v6748_v4  ;;  %v6860_v20 = vsub.f32 %v11571_v55, %v6748_v4  ;;  %v6243_v22 = vmul.f32 0.088388346, %v6213_v25 }
 0x451   : > { %7926 = vpow2.f32 %v6504_v41  ;;  %v6277_v17 = vpop.xlane.xlu0 %6276 }
 0x452   : > { %7928 = vpow2.f32 %v6552_v46  ;;  %v6780_v50 = vmul.f32 1.442695, %v6764_v29  ;;  %v6828_v30 = vmul.f32 1.442695, %v6812_v53  ;;  %v6876_v54 = vmul.f32 1.442695, %v6860_v20  ;;  %v6405_v16 = vpop.xlane.xlu1 %6404 }
 0x453   : > { %7930 = vpow2.f32 %v6600_v31  ;;  %v6457_v56 = vmax.f32 %v6179_v9, %v6243_v22  ;;  %v6307_v26 = vmul.f32 0.088388346, %v6277_v17  ;;  %v6435_v37 = vmul.f32 0.088388346, %v6405_v16  ;;  %v12631_v46 = vld [vmem:[#allocation26_spill] sm:$0xff]  ;;  %v12632_v20 = vld [vmem:[#allocation28_spill] sm:$0xff] }
 0x454   : > { %7932 = vpow2.f32 %v6780_v50  ;;  %v11599_v31 = vadd.f32 %v12631_v46, %v11240_v61  ;;  %v12635_v16 = vld [vmem:[#allocation40_spill] sm:$0xff] }
 0x455   : > { %7934 = vpow2.f32 %v6828_v30  ;;  %v6473_v14 = vmax.f32 %v6457_v56, %v6307_v26  ;;  %v6729_v32 = vmax.f32 %v6371_v59, %v6435_v37  ;;  %v11579_v18 = vpop.xlane.xlu0 %6344  ;;  %v12634_v30 = vld [vmem:[#allocation36_spill] sm:$0xff]  ;;  %v11620_v56 = vadd.f32 %v12635_v16, %v11240_v61 }
 0x456   : > { %7936 = vpow2.f32 %v6876_v54  ;;  %v11583_v45 = vpop.xlane.xlu1 %6342  ;;  %v11616_v54 = vadd.f32 %v12634_v30, %v11240_v61 }
 0x457   : > { %v6489_v58 = vsub.f32 %v6179_v9, %v6473_v14  ;;  %v6537_v42 = vsub.f32 %v6243_v22, %v6473_v14  ;;  %v6585_v5 = vsub.f32 %v6307_v26, %v6473_v14  ;;  %v6749_v48 = vmax.f32 %v6729_v32, %v11571_v55  ;;  %12636 = vst [vmem:[#allocation35_spill] sm:$0xff] %v11620_v56  ;;  %v12639_v32 = vld [vmem:[#allocation24_spill] sm:$0xff] }
 0x458   : > { %v11605_v22 = vadd.f32 %v12632_v20, %v11240_v61  ;;  %v11651_v20 = vadd.f32 %v11204_v38, %v11240_v61  ;;  %v6373_v38 = vmul.f32 0.088388346, %v11579_v18 }
 0x459   : > { %v6506_v39 = vmul.f32 1.442695, %v6489_v58  ;;  %v6554_v40 = vmul.f32 1.442695, %v6537_v42  ;;  %v6602_v23 = vmul.f32 1.442695, %v6585_v5  ;;  %v6765_v33 = vsub.f32 %v6371_v59, %v6749_v48  ;;  %v6153_v44 = vpop.xlane.xlu0 %6152 }
 0x45a   : > { %v6813_v57 = vsub.f32 %v6435_v37, %v6749_v48  ;;  %v6861_v36 = vsub.f32 %v11571_v55, %v6749_v48  ;;  %v6151_v27 = vpop.xlane.xlu1 %6150  ;;  %v12633_v59 = vld [vmem:[#allocation33_spill] sm:$0xff]  ;;  %v12637_v37 = vld [vmem:[#allocation43_spill] sm:$0xff]  ;;  %v11630_v58 = vadd.f32 %v12639_v32, %v11240_v61  ;;  %v12641_v42 = vld [vmem:[#allocation46_spill] sm:$0xff]  ;;  %12648 = vst [vmem:[#allocation44_spill] sm:$0xff] %v11651_v20 }
 0x45b   : > { %v11587_v3 = vpop.eup %7926  ;;  %7938 = vpow2.f32 %v6506_v39  ;;  %v6782_v24 = vmul.f32 1.442695, %v6765_v33  ;;  %v11609_v9 = vadd.f32 %v12633_v59, %v11240_v61  ;;  %v11626_v14 = vadd.f32 %v12637_v37, %v11240_v61  ;;  %v12643_v39 = vld [vmem:[#allocation51_spill] sm:$0xff] }
 0x45c   : > { %v11589_v51 = vpop.eup %7928  ;;  %7940 = vpow2.f32 %v6554_v40  ;;  %v6830_v13 = vmul.f32 1.442695, %v6813_v57  ;;  %v6878_v8 = vmul.f32 1.442695, %v6861_v36  ;;  %12640 = vst [vmem:[#allocation38_spill] sm:$0xff] %v11630_v58  ;;  %v11634_v5 = vadd.f32 %v12641_v42, %v11240_v61 }
 0x45d   : > { %v11591_v34 = vpop.eup %7930  ;;  %v6632_v4 = vadd.f32 %v11589_v51, %v11587_v3  ;;  %7942 = vpow2.f32 %v6602_v23  ;;  %v6281_v25 = vpop.xlane.xlu0 %6280  ;;  %12638 = vst [vmem:[#allocation37_spill] sm:$0xff] %v11626_v14  ;;  %v11638_v40 = vadd.f32 %v12643_v39, %v11240_v61  ;;  %v6181_v33 = vmul.f32 0.088388346, %v6153_v44 }
 0x45e   : > { %v11595_v41 = vpop.eup %7932  ;;  %7944 = vpow2.f32 %v6782_v24  ;;  %v6279_v29 = vpop.xlane.xlu1 %6278  ;;  %12642 = vst [vmem:[#allocation20_spill] sm:$0xff] %v11634_v5  ;;  %v12645_v24 = vld [vmem:[#allocation54_spill] sm:$0xff]  ;;  %v6309_v59 = vmul.f32 0.088388346, %v6281_v25  ;;  %v11657_v37 = vadd.f32 %v11543_v2, %v11247_v43 }
 0x45f   : > { %v11601_v53 = vpop.eup %7934  ;;  %v6648_v17 = vadd.f32 %v11591_v34, %v6632_v4  ;;  %7946 = vpow2.f32 %v6830_v13  ;;  %12644 = vst [vmem:[#allocation39_spill] sm:$0xff] %v11638_v40  ;;  %v11643_v13 = vadd.f32 %v12645_v24, %v11240_v61  ;;  %v6180_v4 = vmul.f32 0.088388346, %v6151_v27 }
 0x460   : > { %v11612_v50 = vpop.eup %7936  ;;  %v6908_v26 = vadd.f32 %v11601_v53, %v11595_v41  ;;  %7948 = vpow2.f32 %v6878_v8  ;;  %v11647_v8 = vadd.f32 %v11200_v0, %v11240_v61  ;;  %v6308_v30 = vmul.f32 0.088388346, %v6279_v29 }
 0x461   : > { %7950 = vrcp.f32 %v6648_v17  ;;  %v6217_v48 = vpop.xlane.xlu0 %6216  ;;  %12646 = vst [vmem:[#allocation41_spill] sm:$0xff] %v11643_v13  ;;  %v11661_v0 = vadd.f32 %v11547_v6, %v11247_v43  ;;  %v11668_v29 = vadd.f32 %v11550_v15, %v11247_v43  ;;  %v11676_v6 = vadd.f32 %v11552_v52, %v11247_v43 }
 0x462   : > { %v6924_v23 = vadd.f32 %v11612_v50, %v6908_v26  ;;  %v6245_v57 = vmul.f32 0.088388346, %v6217_v48  ;;  %v6215_v36 = vpop.xlane.xlu1 %6214  ;;  %12647 = vst [vmem:[#allocation42_spill] sm:$0xff] %v11647_v8 }
 0x463   : > { %v6244_v46 = vmul.f32 0.088388346, %v6215_v36 }
 0x464   : > { %7952 = vrcp.f32 %v6924_v23  ;;  %v6459_v17 = vmax.f32 %v6181_v33, %v6245_v57 }
 0x465   : > { %v11653_v44 = vpop.eup %7938  ;;  %v6458_v16 = vmax.f32 %v6180_v4, %v6244_v46  ;;  %v6409_v26 = vpop.xlane.xlu0 %6408 }
 0x466   : > { %v11663_v27 = vpop.eup %7940  ;;  %v6475_v32 = vmax.f32 %v6459_v17, %v6309_v59  ;;  %v6437_v25 = vmul.f32 0.088388346, %v6409_v26  ;;  %v6407_v42 = vpop.xlane.xlu1 %6406 }
 0x467   : > { %v11670_v48 = vpop.eup %7942  ;;  %v6633_v2 = vadd.f32 %v11663_v27, %v11653_v44  ;;  %v6474_v39 = vmax.f32 %v6458_v16, %v6308_v30  ;;  %v6436_v23 = vmul.f32 0.088388346, %v6407_v42  ;;  %v6372_v42 = vmul.f32 0.088388346, %v11583_v45 }
 0x468   : > { %v11678_v36 = vpop.eup %7944  ;;  %v6491_v18 = vsub.f32 %v6181_v33, %v6475_v32  ;;  %v6539_v24 = vsub.f32 %v6245_v57, %v6475_v32  ;;  %v6587_v17 = vsub.f32 %v6309_v59, %v6475_v32  ;;  %v6731_v26 = vmax.f32 %v6373_v38, %v6437_v25 }
 0x469   : > { %v11680_v1 = vpop.eup %7946  ;;  %v6649_v15 = vadd.f32 %v11670_v48, %v6633_v2  ;;  %v6490_v63 = vsub.f32 %v6180_v4, %v6474_v39  ;;  %v6538_v49 = vsub.f32 %v6244_v46, %v6474_v39  ;;  %v6586_v12 = vsub.f32 %v6308_v30, %v6474_v39  ;;  %v6349_v61 = vpop.xlane.xlu0 %6348 }
 0x46a   : > { %v11683_v16 = vpop.eup %7948  ;;  %v6909_v52 = vadd.f32 %v11680_v1, %v11678_v36  ;;  %v6510_v8 = vmul.f32 1.442695, %v6491_v18  ;;  %v6558_v33 = vmul.f32 1.442695, %v6539_v24  ;;  %v6347_v57 = vpop.xlane.xlu1 %6346  ;;  %v6606_v32 = vmul.f32 1.442695, %v6587_v17 }
 0x46b   : > { %v7951_v59 = vpop.eup %7950  ;;  %7954 = vrcp.f32 %v6649_v15  ;;  %v6508_v20 = vmul.f32 1.442695, %v6490_v63  ;;  %v6556_v13 = vmul.f32 1.442695, %v6538_v49  ;;  %v6751_v46 = vmax.f32 %v6731_v26, %v11571_v55 }
 0x46c   : > { %v6925_v4 = vadd.f32 %v11683_v16, %v6909_v52  ;;  %7956 = vpow2.f32 %v6510_v8  ;;  %v6730_v30 = vmax.f32 %v6372_v42, %v6436_v23  ;;  %v6604_v2 = vmul.f32 1.442695, %v6586_v12 }
 0x46d   : > { %7958 = vpow2.f32 %v6558_v33  ;;  %v6680_v39 = vmul.f32 %v7951_v59, %v11587_v3  ;;  %v6696_v45 = vmul.f32 %v7951_v59, %v11589_v51  ;;  %v6157_v18 = vpop.xlane.xlu0 %6156  ;;  %v6767_v40 = vsub.f32 %v6373_v38, %v6751_v46 }
 0x46e   : > { %v7953_v24 = vpop.eup %7952  ;;  %7960 = vrcp.f32 %v6925_v4  ;;  %v6815_v15 = vsub.f32 %v6437_v25, %v6751_v46  ;;  %v6863_v63 = vsub.f32 %v11571_v55, %v6751_v46  ;;  %v6155_v49 = vpop.xlane.xlu1 %6154  ;;  %v6750_v8 = vmax.f32 %v6730_v30, %v11571_v55 }
 0x46f   : > { %7962 = vpow2.f32 %v6606_v32  ;;  %v6712_v17 = vmul.f32 %v7951_v59, %v11591_v34  ;;  %v6956_v26 = vmul.f32 %v7953_v24, %v11595_v41  ;;  %v6786_v12 = vmul.f32 1.442695, %v6767_v40  ;;  %v11700_v32 = vld [vmem:[%s12478_s2 + $0x2] ss:$0 sm:$0xff] }
 0x470   : > { %7964 = vpow2.f32 %v6508_v20  ;;  %v6834_v3 = vmul.f32 1.442695, %v6815_v15  ;;  %v6882_v52 = vmul.f32 1.442695, %v6863_v63  ;;  %v6766_v51 = vsub.f32 %v6372_v42, %v6750_v8 }
 0x471   : > { %7966 = vpow2.f32 %v6556_v13  ;;  %v6814_v33 = vsub.f32 %v6436_v23, %v6750_v8  ;;  %v6862_v38 = vsub.f32 %v11571_v55, %v6750_v8  ;;  %v6285_v25 = vpop.xlane.xlu0 %6284  ;;  %v6972_v34 = vmul.f32 %v7953_v24, %v11601_v53  ;;  %v11713_v53 = vpop.f32.mrb[40].mxu0 }
 0x472   : > { %7968 = vpow2.f32 %v6604_v2  ;;  %v6988_v41 = vmul.f32 %v7953_v24, %v11612_v50  ;;  %v7004_v40 = vmul.f32 %v6680_v39, %v11599_v31  ;;  %v6283_v20 = vpop.xlane.xlu1 %6282  ;;  %v6784_v13 = vmul.f32 1.442695, %v6766_v51  ;;  %12650 = vst [vmem:[#allocation22_spill] sm:$0xff] %v11713_v53  ;;  %v11834_v14 = vpop.f32.mrb[41].mxu0 }
 0x473   : > { %7970 = vpow2.f32 %v6786_v12  ;;  %v6832_v42 = vmul.f32 1.442695, %v6814_v33  ;;  %v11707_v23 = vadd.f32 %v11568_v62, %v11247_v43  ;;  %v11709_v59 = vmul.f32 0.088388346, %v6349_v61  ;;  %v11838_v60 = vpop.f32.mrb[42].mxu0 }
 0x474   : > { %7972 = vpow2.f32 %v6834_v3  ;;  %v7020_v4 = vmul.f32 %v6696_v45, %v11661_v0  ;;  %v7084_v46 = vmul.f32 %v6956_v26, %v11599_v31  ;;  %v6880_v30 = vmul.f32 1.442695, %v6862_v38  ;;  %12651 = vst [vmem:[#allocation23_spill] sm:$0xff] %v11838_v60 }
 0x475   : > { %12649 = vst [vmem:[#allocation21_spill] sm:$0xff] %v11707_v23  ;;  %v7955_v50 = vpop.eup %7954  ;;  %7974 = vpow2.f32 %v6882_v52  ;;  %v7052_v2 = vmul.f32 %v11700_v32, %v6712_v17  ;;  %v7100_v39 = vmul.f32 %v6972_v34, %v11661_v0  ;;  %v6221_v24 = vpop.xlane.xlu0 %6220  ;;  %v7132_v61 = vmul.f32 %v11700_v32, %v6988_v41 }
 0x476   : > { %v11717_v15 = vpop.eup %7956  ;;  %7976 = vpow2.f32 %v6784_v13  ;;  %v7036_v62 = vadd.f32 %v7020_v4, %v7004_v40  ;;  %v11720_v63 = vmul.f32 0.088388346, %v6347_v57  ;;  %v6219_v45 = vpop.xlane.xlu1 %6218  ;;  %v11724_v26 = vmul.f32 0.088388346, %v6157_v18 }
 0x477   : > { %v11722_v31 = vpop.eup %7958  ;;  %7978 = vpow2.f32 %v6832_v42  ;;  %v7116_v8 = vadd.f32 %v7100_v39, %v7084_v46  ;;  %v11726_v12 = vmul.f32 0.088388346, %v6155_v49  ;;  %v11730_v3 = vmul.f32 0.088388346, %v6285_v25 }
 0x478   : > { %v7961_v17 = vpop.eup %7960  ;;  %v6635_v0 = vadd.f32 %v11722_v31, %v11717_v15  ;;  %v11732_v52 = vmul.f32 0.088388346, %v6283_v20  ;;  %v6681_v57 = vmul.f32 %v7955_v50, %v11653_v44  ;;  %7980 = vpow2.f32 %v6880_v30 }
 0x479   : > { %v11735_v51 = vpop.eup %7962  ;;  %v6697_v33 = vmul.f32 %v7955_v50, %v11663_v27  ;;  %v6713_v18 = vmul.f32 %v7955_v50, %v11670_v48  ;;  %v6957_v49 = vmul.f32 %v7961_v17, %v11678_v36  ;;  %v6413_v38 = vpop.xlane.xlu0 %6412  ;;  %v7068_v25 = vadd.f32 %v7052_v2, %v7036_v62 }
 0x47a   : > { %v11740_v34 = vpop.eup %7964  ;;  %v6651_v41 = vadd.f32 %v11735_v51, %v6635_v0  ;;  %v6973_v40 = vmul.f32 %v7961_v17, %v11680_v1  ;;  %v6989_v20 = vmul.f32 %v7961_v17, %v11683_v16  ;;  %v6411_v44 = vpop.xlane.xlu1 %6410  ;;  %v7148_v42 = vadd.f32 %v7132_v61, %v7116_v8 }
 0x47b   : > { %v11745_v13 = vpop.eup %7966  ;;  %v7005_v27 = vmul.f32 %v6681_v57, %v11605_v22  ;;  %v7021_v48 = vmul.f32 %v6697_v33, %v11676_v6  ;;  %v7053_v36 = vmul.f32 %v11700_v32, %v6713_v18  ;;  %v7085_v1 = vmul.f32 %v6957_v49, %v11605_v22 }
 0x47c   : > { %v11750_v4 = vpop.eup %7968  ;;  %7982 = vrcp.f32 %v6651_v41  ;;  %v6634_v46 = vadd.f32 %v11745_v13, %v11740_v34  ;;  %v7101_v16 = vmul.f32 %v6973_v40, %v11676_v6  ;;  %v7133_v2 = vmul.f32 %v11700_v32, %v6989_v20 }
 0x47d   : > { %v11756_v50 = vpop.eup %7970  ;;  %v7037_v30 = vadd.f32 %v7021_v48, %v7005_v27  ;;  %v6247_v39 = vmul.f32 0.088388346, %v6221_v24  ;;  %v11759_v62 = vmul.f32 0.088388346, %v6219_v45  ;;  %v11761_v61 = vpop.xlane.xlu0 %6352  ;;  %v11766_v57 = vmul.f32 0.088388346, %v6413_v38 }
 0x47e   : > { %v11763_v8 = vpop.eup %7972  ;;  %v6650_v17 = vadd.f32 %v11750_v4, %v6634_v46  ;;  %v7117_v0 = vadd.f32 %v7101_v16, %v7085_v1  ;;  %v11768_v22 = vmul.f32 0.088388346, %v6411_v44  ;;  %v11770_v6 = vpop.xlane.xlu1 %6350  ;;  %v11788_v48 = vmul.f32 0.5, %v7068_v25 }
 0x47f   : > { %v11772_v33 = vpop.eup %7974  ;;  %v6911_v24 = vadd.f32 %v11763_v8, %v11756_v50  ;;  %v7069_v45 = vadd.f32 %v7053_v36, %v7037_v30  ;;  %v6461_v18 = vmax.f32 %v11724_v26, %v6247_v39  ;;  %v6460_v49 = vmax.f32 %v11726_v12, %v11759_v62 }
 0x480   : > { %v11779_v41 = vpop.eup %7976  ;;  %7984 = vrcp.f32 %v6650_v17  ;;  %v7149_v38 = vadd.f32 %v7133_v2, %v7117_v0  ;;  %v6733_v40 = vmax.f32 %v11709_v59, %v11766_v57  ;;  %v6732_v20 = vmax.f32 %v11720_v63, %v11768_v22 }
 0x481   : > { %v11785_v44 = vpop.eup %7978  ;;  %v6927_v27 = vadd.f32 %v11772_v33, %v6911_v24  ;;  %v6477_v36 = vmax.f32 %v6461_v18, %v11730_v3  ;;  %v11792_v46 = vmax.f32 %v6460_v49, %v11732_v52  ;;  %v11794_v1 = vpop.xlane.xlu0 %6160  ;;  %v11798_v30 = vmul.f32 0.25, %v7148_v42 }
 0x482   : > { %v6910_v16 = vadd.f32 %v11785_v44, %v11779_v41  ;;  %v11800_v2 = vmul.f32 0.5, %v7069_v45  ;;  %v11803_v17 = vmax.f32 %v6733_v40, %v11571_v55  ;;  %v11805_v0 = vpop.xlane.xlu1 %6158  ;;  %v11807_v25 = vpop.eup %7980  ;;  %v11812_v42 = vmul.f32 0.25, %v7149_v38 }
 0x483   : > { %7986 = vrcp.f32 %v6927_v27  ;;  %v6493_v24 = vsub.f32 %v11724_v26, %v6477_v36  ;;  %v6541_v18 = vsub.f32 %v6247_v39, %v6477_v36  ;;  %v6589_v49 = vsub.f32 %v11730_v3, %v6477_v36  ;;  %v6003_v53 = vpop.f32.mrb[28].mxu1 }
 0x484   : > { %v6926_v23 = vadd.f32 %v11807_v25, %v6910_v16  ;;  %v6492_v45 = vsub.f32 %v11726_v12, %v11792_v46  ;;  %v11817_v40 = vmax.f32 %v6732_v20, %v11571_v55  ;;  %v6004_v58 = vadd.f32 %v6003_v53, %v11243_v10  ;;  %v6005_v5 = vpop.f32.mrb[29].mxu1 }
 0x485   : > { %v6514_v27 = vmul.f32 1.442695, %v6493_v24  ;;  %v6540_v26 = vsub.f32 %v11759_v62, %v11792_v46  ;;  %v6588_v3 = vsub.f32 %v11732_v52, %v11792_v46  ;;  %v11824_v39 = vpop.xlane.xlu0 %6288  ;;  %v6006_v36 = vadd.f32 %v6005_v5, %v11245_v47  ;;  %v6007_v16 = vpop.f32.mrb[30].mxu1 }
 0x486   : > { %v7983_v38 = vpop.eup %7982  ;;  %7988 = vrcp.f32 %v6926_v23  ;;  %v6562_v12 = vmul.f32 1.442695, %v6541_v18  ;;  %v6769_v20 = vsub.f32 %v11709_v59, %v11803_v17  ;;  %v11829_v53 = vpop.xlane.xlu1 %6286  ;;  %v6008_v24 = vadd.f32 %v6007_v16, %v11243_v10 }
 0x487   : > { %v6009_v56 = vpop.f32.mrb[31].mxu1  ;;  %v6144_v62 = vmul.f32 %v6004_v58, %v11561_v7  ;;  %v6683_v52 = vmul.f32 %v7983_v38, %v11717_v15  ;;  %v6610_v46 = vmul.f32 1.442695, %v6589_v49  ;;  %v6208_v28 = vmul.f32 %v6006_v36, %v6004_v58  ;;  %v11846_v16 = vpop.f32.mrb[43].mxu0 }
 0x488   : > { %v6010_v5 = vadd.f32 %v6009_v56, %v11245_v47  ;;  %v6699_v23 = vmul.f32 %v7983_v38, %v11722_v31  ;;  %v6512_v18 = vmul.f32 1.442695, %v6492_v45  ;;  %v6145_v59 = vmul.f32 %v6008_v24, %v11557_v11  ;;  %12652 = vst [vmem:[#allocation25_spill] sm:$0xff] %v11846_v16 }
 0x489   : > { %6174 = vadd.xlane.f32.xlu1 %v6144_v62  ;;  %v6272_v10 = vmul.f32 %v11238_v21, %v6004_v58  ;;  %v6715_v7 = vmul.f32 %v7983_v38, %v11735_v51  ;;  %v7007_v15 = vmul.f32 %v6683_v52, %v11616_v54  ;;  %v11844_v49 = vpop.xlane.xlu0 %6224  ;;  %v6400_v31 = vmul.f32 %v11252_v35, %v6006_v36 }
 0x48a   : > { %v7985_v47 = vpop.eup %7984  ;;  %v6209_v56 = vmul.f32 %v6010_v5, %v6008_v24  ;;  %v7023_v45 = vmul.f32 %v6699_v23, %v11668_v29  ;;  %7990 = vpow2.f32 %v6514_v27  ;;  %v11850_v60 = vpop.xlane.xlu1 %6222  ;;  %6176 = vadd.xlane.f32.xlu0 %v6145_v59  ;;  %v6273_v11 = vmul.f32 %v11238_v21, %v6008_v24 }
 0x48b   : > { %v6682_v58 = vmul.f32 %v7985_v47, %v11740_v34  ;;  %v6698_v51 = vmul.f32 %v7985_v47, %v11745_v13  ;;  %v6714_v38 = vmul.f32 %v7985_v47, %v11750_v4  ;;  %v6401_v62 = vmul.f32 %v11252_v35, %v6010_v5 }
 0x48c   : > { %v7039_v52 = vadd.f32 %v7023_v45, %v7007_v15  ;;  %v7055_v16 = vmul.f32 %v11700_v32, %v6715_v7  ;;  %7992 = vpow2.f32 %v6562_v12  ;;  %v6560_v59 = vmul.f32 1.442695, %v6540_v26 }
 0x48d   : > { %v7987_v36 = vpop.eup %7986  ;;  %6238 = vadd.xlane.f32.xlu1 %v6208_v28  ;;  %v7006_v27 = vmul.f32 %v6682_v58, %v11609_v9  ;;  %v7022_v23 = vmul.f32 %v6698_v51, %v11657_v37  ;;  %v6608_v21 = vmul.f32 1.442695, %v6588_v3  ;;  %7994 = vpow2.f32 %v6610_v46  ;;  %v11863_v35 = vpop.xlane.xlu0 %6416 }
 0x48e   : > { %v6959_v34 = vmul.f32 %v7987_v36, %v11756_v50  ;;  %v6975_v13 = vmul.f32 %v7987_v36, %v11763_v8  ;;  %v6991_v4 = vmul.f32 %v7987_v36, %v11772_v33  ;;  %6240 = vadd.xlane.f32.xlu0 %v6209_v56  ;;  %v7054_v12 = vmul.f32 %v11700_v32, %v6714_v38  ;;  %v11870_v3 = vpop.xlane.xlu1 %6414 }
 0x48f   : > { %v7038_v24 = vadd.f32 %v7022_v23, %v7006_v27  ;;  %v7071_v28 = vadd.f32 %v7055_v16, %v7039_v52  ;;  %v6817_v5 = vsub.f32 %v11766_v57, %v11803_v17  ;;  %7996 = vpow2.f32 %v6512_v18 }
 0x490   : > { %v7989_v7 = vpop.eup %7988  ;;  %v7087_v26 = vmul.f32 %v6959_v34, %v11616_v54  ;;  %v7103_v50 = vmul.f32 %v6975_v13, %v11668_v29  ;;  %v6790_v8 = vmul.f32 1.442695, %v6769_v20  ;;  %v7135_v16 = vmul.f32 %v11700_v32, %v6991_v4 }
 0x491   : > { %6430 = vadd.xlane.f32.xlu1 %v6400_v31  ;;  %v6958_v33 = vmul.f32 %v7989_v7, %v11779_v41  ;;  %v6974_v46 = vmul.f32 %v7989_v7, %v11785_v44  ;;  %v6990_v15 = vmul.f32 %v7989_v7, %v11807_v25  ;;  %7998 = vpow2.f32 %v6560_v59  ;;  %v6357_v45 = vpop.xlane.xlu0 %6356 }
 0x492   : > { %v7119_v47 = vadd.f32 %v7103_v50, %v7087_v26  ;;  %v6838_v57 = vmul.f32 1.442695, %v6817_v5  ;;  %v6865_v54 = vsub.f32 %v11571_v55, %v11803_v17  ;;  %6432 = vadd.xlane.f32.xlu0 %v6401_v62  ;;  %v7070_v29 = vadd.f32 %v7054_v12, %v7038_v24  ;;  %v11891_v52 = vpop.xlane.xlu1 %6354 }
 0x493   : > { %v7086_v20 = vmul.f32 %v6958_v33, %v11609_v9  ;;  %v7102_v18 = vmul.f32 %v6974_v46, %v11657_v37  ;;  %v7134_v41 = vmul.f32 %v11700_v32, %v6990_v15  ;;  %8000 = vpow2.f32 %v6608_v21 }
 0x494   : > { %v11881_v56 = vpop.eup %7990  ;;  %v7151_v44 = vadd.f32 %v7135_v16, %v7119_v47  ;;  %v6886_v25 = vmul.f32 1.442695, %v6865_v54  ;;  %v6768_v31 = vsub.f32 %v11720_v63, %v11817_v40  ;;  %8002 = vpow2.f32 %v6790_v8  ;;  %v12653_v16 = vld [vmem:[#allocation32_spill] sm:$0xff] }
 0x495   : > { %6302 = vadd.xlane.f32.xlu1 %v6272_v10  ;;  %v7118_v58 = vadd.f32 %v7102_v18, %v7086_v20  ;;  %v6816_v17 = vsub.f32 %v11768_v22, %v11817_v40  ;;  %v6864_v9 = vsub.f32 %v11571_v55, %v11817_v40  ;;  %v7167_v51 = vmul.f32 0.5, %v7071_v28  ;;  %v6165_v12 = vpop.xlane.xlu0 %6164  ;;  %v12654_v20 = vld [vmem:[#allocation34_spill] sm:$0xff] }
 0x496   : > { %v11889_v37 = vpop.eup %7992  ;;  %v7183_v38 = vmul.f32 0.25, %v7151_v44  ;;  %8004 = vpow2.f32 %v6838_v57  ;;  %v6788_v62 = vmul.f32 1.442695, %v6768_v31  ;;  %6304 = vadd.xlane.f32.xlu0 %v6273_v11  ;;  %v7166_v22 = vmul.f32 0.5, %v7070_v29 }
 0x497   : > { %v7150_v63 = vadd.f32 %v7134_v41, %v7118_v58  ;;  %v6637_v10 = vadd.f32 %v11889_v37, %v11881_v56  ;;  %8006 = vpow2.f32 %v6886_v25  ;;  %v6836_v36 = vmul.f32 1.442695, %v6816_v17  ;;  %v11895_v27 = vpop.eup %7994 }
 0x498   : > { %v7199_v23 = vadd.f32 %v7183_v38, %v7167_v51  ;;  %8008 = vpow2.f32 %v6788_v62  ;;  %v6884_v40 = vmul.f32 1.442695, %v6864_v9  ;;  %v11899_v34 = vmul.f32 0.088388346, %v11761_v61 }
 0x499   : > { %v7182_v59 = vmul.f32 0.25, %v7150_v63  ;;  %v6653_v21 = vadd.f32 %v11895_v27, %v6637_v10  ;;  %8010 = vpow2.f32 %v6836_v36  ;;  %v11901_v11 = vpop.eup %7996  ;;  %v11904_v13 = vmul.f32 0.088388346, %v11770_v6  ;;  %v6293_v41 = vpop.xlane.xlu0 %6292 }
 0x49a   : > { %8012 = vpow2.f32 %v6884_v40  ;;  %v7196_v4 = vadd.f32 %v11798_v30, %v11788_v48  ;;  %v7197_v24 = vadd.f32 %v11812_v42, %v11800_v2  ;;  %v6185_v5 = vmul.f32 0.088388346, %v11794_v1  ;;  %v6163_v48 = vpop.xlane.xlu1 %6162 }
 0x49b   : > { %v7198_v28 = vadd.f32 %v7182_v59, %v7166_v22  ;;  %8014 = vrcp.f32 %v6653_v21  ;;  %v6184_v61 = vmul.f32 0.088388346, %v11805_v0  ;;  %v11912_v7 = vpop.eup %7998  ;;  %v6249_v50 = vmul.f32 0.088388346, %v11844_v49 }
 0x49c   : > { %v7212_v26 = vpack.c.bf16 %v7197_v24, %v7196_v4  ;;  %v6248_v6 = vmul.f32 0.088388346, %v11850_v60  ;;  %v11917_v8 = vmul.f32 0.088388346, %v11863_v35  ;;  %v6636_v2 = vadd.f32 %v11912_v7, %v11901_v11 }
 0x49d   : > { %v7213_v30 = vpack.c.bf16 %v7199_v23, %v7198_v28  ;;  %v6313_v42 = vmul.f32 0.088388346, %v11824_v39  ;;  %v11923_v1 = vmul.f32 0.088388346, %v11870_v3  ;;  %v11925_v0 = vpop.eup %8000  ;;  %v6312_v49 = vmul.f32 0.088388346, %v11829_v53 }
 0x49e   : > { %7739 = vmatprep.mubr.bf16.mxu1 %v7212_v26  ;;  %v6463_v33 = vmax.f32 %v6185_v5, %v6249_v50  ;;  %v6462_v60 = vmax.f32 %v6184_v61, %v6248_v6  ;;  %v6735_v35 = vmax.f32 %v11899_v34, %v11917_v8  ;;  %v11930_v46 = vpop.eup %8002  ;;  %v6652_v15 = vadd.f32 %v11925_v0, %v6636_v2  ;;  %v11960_v38 = vpop.xlane.xlu1 %6290 }
 0x49f   : > { %v6734_v39 = vmax.f32 %v11904_v13, %v11923_v1  ;;  %v11937_v3 = vadd.f32 %v11575_v19, %v11247_v43  ;;  %v11941_v47 = vadd.f32 %v12653_v16, %v11247_v43  ;;  %7740 = vmatmul.mubr.bf16.vlgmr.msra.gmra.mrb[32].mxu1 %v7213_v30  ;;  %v11945_v29 = vmul.f32 0.088388346, %v6357_v45 }
 0x4a0   : > { %v11943_v53 = vpop.eup %8004  ;;  %v6479_v57 = vmax.f32 %v6463_v33, %v6313_v42  ;;  %v6478_v54 = vmax.f32 %v6462_v60, %v6312_v49  ;;  %v11949_v18 = vadd.f32 %v12654_v20, %v11247_v43  ;;  %8016 = vrcp.f32 %v6652_v15 }
 0x4a1   : > { %v11951_v44 = vpop.eup %8006  ;;  %v6913_v19 = vadd.f32 %v11943_v53, %v11930_v46  ;;  %v6755_v25 = vmax.f32 %v6735_v35, %v11571_v55  ;;  %v11956_v31 = vmul.f32 0.088388346, %v6165_v12  ;;  %v6754_v36 = vmax.f32 %v6734_v39, %v11571_v55 }
 0x4a2   : > { %v11958_v58 = vpop.eup %8008  ;;  %v6495_v17 = vsub.f32 %v6185_v5, %v6479_v57  ;;  %v6543_v45 = vsub.f32 %v6249_v50, %v6479_v57  ;;  %v6591_v9 = vsub.f32 %v6313_v42, %v6479_v57  ;;  %v6494_v51 = vsub.f32 %v6184_v61, %v6478_v54  ;;  %v12655_v57 = vld [vmem:[#allocation37_spill] sm:$0xff] }
 0x4a3   : > { %v11962_v62 = vpop.eup %8010  ;;  %v6929_v63 = vadd.f32 %v11951_v44, %v6913_v19  ;;  %v6542_v10 = vsub.f32 %v6248_v6, %v6478_v54  ;;  %v11966_v22 = vmul.f32 0.088388346, %v6163_v48  ;;  %v6590_v4 = vsub.f32 %v6312_v49, %v6478_v54  ;;  %v6229_v6 = vpop.xlane.xlu0 %6228 }
 0x4a4   : > { %v11968_v23 = vpop.eup %8012  ;;  %v6912_v40 = vadd.f32 %v11962_v62, %v11958_v58  ;;  %v6518_v59 = vmul.f32 1.442695, %v6495_v17  ;;  %v6566_v21 = vmul.f32 1.442695, %v6543_v45  ;;  %v6614_v12 = vmul.f32 1.442695, %v6591_v9 }
 0x4a5   : > { %v8015_v24 = vpop.eup %8014  ;;  %8018 = vrcp.f32 %v6929_v63  ;;  %v6516_v28 = vmul.f32 1.442695, %v6494_v51  ;;  %v6771_v5 = vsub.f32 %v11899_v34, %v6755_v25  ;;  %v6564_v26 = vmul.f32 1.442695, %v6542_v10  ;;  %v6227_v34 = vpop.xlane.xlu1 %6226  ;;  %v12656_v51 = vld [vmem:[#allocation35_spill] sm:$0xff] }
 0x4a6   : > { %v6928_v61 = vadd.f32 %v11968_v23, %v6912_v40  ;;  %8020 = vpow2.f32 %v6518_v59  ;;  %v6819_v50 = vsub.f32 %v11917_v8, %v6755_v25  ;;  %v6867_v48 = vsub.f32 %v11571_v55, %v6755_v25 }
 0x4a7   : > { %8022 = vpow2.f32 %v6566_v21  ;;  %v6770_v30 = vsub.f32 %v11904_v13, %v6754_v36  ;;  %v6818_v2 = vsub.f32 %v11923_v1, %v6754_v36  ;;  %v6612_v42 = vmul.f32 1.442695, %v6590_v4  ;;  %v11990_v25 = vpop.xlane.xlu0 %6420 }
 0x4a8   : > { %8024 = vrcp.f32 %v6928_v61  ;;  %v6685_v49 = vmul.f32 %v8015_v24, %v11881_v56  ;;  %v11979_v33 = vmul.f32 0.088388346, %v6293_v41  ;;  %v6794_v60 = vmul.f32 1.442695, %v6771_v5 }
 0x4a9   : > { %8026 = vpow2.f32 %v6614_v12  ;;  %v6842_v35 = vmul.f32 1.442695, %v6819_v50  ;;  %v6866_v8 = vsub.f32 %v11571_v55, %v6754_v36  ;;  %v6890_v15 = vmul.f32 1.442695, %v6867_v48  ;;  %v11998_v10 = vpop.xlane.xlu1 %6418 }
 0x4aa   : > { %8028 = vpow2.f32 %v6516_v28  ;;  %v6792_v39 = vmul.f32 1.442695, %v6770_v30  ;;  %v6701_v16 = vmul.f32 %v8015_v24, %v11889_v37  ;;  %v8017_v13 = vpop.eup %8016  ;;  %v6840_v1 = vmul.f32 1.442695, %v6818_v2 }
 0x4ab   : > { %8030 = vpow2.f32 %v6564_v26  ;;  %v7009_v54 = vmul.f32 %v6685_v49, %v12655_v57  ;;  %v11984_v20 = vmul.f32 0.088388346, %v6229_v6  ;;  %v6684_v56 = vmul.f32 %v8017_v13, %v11901_v11  ;;  %v12021_v50 = vpop.xlane.xlu0 %6360  ;;  %v12023_v6 = vpop.f32.mrb[44].mxu0 }
 0x4ac   : > { %8032 = vpow2.f32 %v6612_v42  ;;  %v6700_v41 = vmul.f32 %v8017_v13, %v11912_v7  ;;  %v11988_v19 = vmul.f32 0.088388346, %v6227_v34  ;;  %v6716_v17 = vmul.f32 %v8017_v13, %v11925_v0  ;;  %v12030_v49 = vpop.f32.mrb[45].mxu0 }
 0x4ad   : > { %8034 = vpow2.f32 %v6794_v60  ;;  %v7025_v37 = vmul.f32 %v6701_v16, %v11949_v18  ;;  %v6465_v45 = vmax.f32 %v11956_v31, %v11984_v20  ;;  %v6888_v9 = vmul.f32 1.442695, %v6866_v8 }
 0x4ae   : > { %8036 = vpow2.f32 %v6842_v35  ;;  %v7008_v63 = vmul.f32 %v6684_v56, %v12656_v51  ;;  %v7024_v11 = vmul.f32 %v6700_v41, %v11937_v3  ;;  %v6717_v36 = vmul.f32 %v8015_v24, %v11895_v27 }
 0x4af   : > { %v8019_v7 = vpop.eup %8018  ;;  %8038 = vpow2.f32 %v6890_v15  ;;  %v7041_v40 = vadd.f32 %v7025_v37, %v7009_v54  ;;  %v12002_v0 = vmax.f32 %v6465_v45, %v11979_v33  ;;  %v12011_v5 = vmul.f32 0.088388346, %v11891_v52  ;;  %v12038_v15 = vpop.xlane.xlu1 %6358 }
 0x4b0   : > { %v12004_v59 = vpop.eup %8020  ;;  %8040 = vpow2.f32 %v6792_v39  ;;  %v7040_v21 = vadd.f32 %v7024_v11, %v7008_v63  ;;  %v6961_v4 = vmul.f32 %v8019_v7, %v11930_v46  ;;  %v6977_v12 = vmul.f32 %v8019_v7, %v11943_v53  ;;  %v12062_v11 = vpop.xlane.xlu0 %6168 }
 0x4b1   : > { %v12008_v28 = vpop.eup %8022  ;;  %8042 = vpow2.f32 %v6840_v1  ;;  %v7056_v27 = vmul.f32 %v11700_v32, %v6716_v17  ;;  %v6464_v24 = vmax.f32 %v11966_v22, %v11988_v19  ;;  %v6497_v53 = vsub.f32 %v11956_v31, %v12002_v0 }
 0x4b2   : > { %v8025_v61 = vpop.eup %8024  ;;  %v6639_v26 = vadd.f32 %v12008_v28, %v12004_v59  ;;  %8044 = vpow2.f32 %v6888_v9  ;;  %v7089_v46 = vmul.f32 %v6961_v4, %v12655_v57  ;;  %v7105_v42 = vmul.f32 %v6977_v12, %v11949_v18 }
 0x4b3   : > { %v12025_v52 = vpop.eup %8026  ;;  %v6960_v48 = vmul.f32 %v8025_v61, %v11958_v58  ;;  %v6976_v30 = vmul.f32 %v8025_v61, %v11962_v62  ;;  %v7072_v2 = vadd.f32 %v7056_v27, %v7040_v21  ;;  %v6992_v31 = vmul.f32 %v8025_v61, %v11968_v23  ;;  %v12040_v58 = vpop.f32.mrb[46].mxu0 }
 0x4b4   : > { %v12032_v34 = vpop.eup %8028  ;;  %v6655_v60 = vadd.f32 %v12025_v52, %v6639_v26  ;;  %v7057_v35 = vmul.f32 %v11700_v32, %v6717_v36  ;;  %v6314_v8 = vmul.f32 0.088388346, %v11960_v38  ;;  %v6993_v16 = vmul.f32 %v8019_v7, %v11951_v44  ;;  %v12047_v1 = vpop.f32.mrb[47].mxu0 }
 0x4b5   : > { %v12042_v62 = vpop.eup %8030  ;;  %v7088_v18 = vmul.f32 %v6960_v48, %v12656_v51  ;;  %v7104_v39 = vmul.f32 %v6976_v30, %v11937_v3  ;;  %v7121_v13 = vadd.f32 %v7105_v42, %v7089_v46  ;;  %v6522_v57 = vmul.f32 1.442695, %v6497_v53  ;;  %v6167_v27 = vpop.xlane.xlu1 %6166 }
 0x4b6   : > { %v12049_v23 = vpop.eup %8032  ;;  %8046 = vrcp.f32 %v6655_v60  ;;  %v6638_v38 = vadd.f32 %v12042_v62, %v12032_v34  ;;  %v6545_v54 = vsub.f32 %v11984_v20, %v12002_v0  ;;  %v7168_v17 = vmul.f32 0.5, %v7072_v2 }
 0x4b7   : > { %v12055_v56 = vpop.eup %8034  ;;  %v7120_v41 = vadd.f32 %v7104_v39, %v7088_v18  ;;  %v7073_v3 = vadd.f32 %v7057_v35, %v7041_v40  ;;  %v6480_v37 = vmax.f32 %v6464_v24, %v6314_v8  ;;  %v7136_v9 = vmul.f32 %v11700_v32, %v6992_v31  ;;  %v12088_v35 = vpop.xlane.xlu0 %6296 }
 0x4b8   : > { %v12057_v44 = vpop.eup %8036  ;;  %v6654_v45 = vadd.f32 %v12049_v23, %v6638_v38  ;;  %v6570_v51 = vmul.f32 1.442695, %v6545_v54  ;;  %v6443_v63 = vmul.f32 0.088388346, %v11990_v25  ;;  %v7137_v36 = vmul.f32 %v11700_v32, %v6993_v16 }
 0x4b9   : > { %v12064_v7 = vpop.eup %8038  ;;  %v6915_v20 = vadd.f32 %v12057_v44, %v12055_v56  ;;  %8048 = vpow2.f32 %v6522_v57  ;;  %v6593_v40 = vsub.f32 %v11979_v33, %v12002_v0  ;;  %v7152_v4 = vadd.f32 %v7136_v9, %v7120_v41  ;;  %v12093_v57 = vpop.xlane.xlu1 %6294 }
 0x4ba   : > { %v12071_v21 = vpop.eup %8040  ;;  %8050 = vrcp.f32 %v6654_v45  ;;  %v6496_v12 = vsub.f32 %v11966_v22, %v6480_v37  ;;  %v6544_v25 = vsub.f32 %v11988_v19, %v6480_v37  ;;  %v6592_v26 = vsub.f32 %v6314_v8, %v6480_v37 }
 0x4bb   : > { %v12075_v24 = vpop.eup %8042  ;;  %v6931_v61 = vadd.f32 %v12064_v7, %v6915_v20  ;;  %8052 = vpow2.f32 %v6570_v51  ;;  %v6737_v46 = vmax.f32 %v11945_v29, %v6443_v63  ;;  %v7153_v0 = vadd.f32 %v7137_v36, %v7121_v13 }
 0x4bc   : > { %v12079_v53 = vpop.eup %8044  ;;  %v6914_v33 = vadd.f32 %v12075_v24, %v12071_v21  ;;  %v6520_v48 = vmul.f32 1.442695, %v6496_v12  ;;  %v6568_v30 = vmul.f32 1.442695, %v6544_v25  ;;  %v6618_v22 = vmul.f32 1.442695, %v6593_v40 }
 0x4bd   : > { %8054 = vrcp.f32 %v6931_v61  ;;  %v6757_v19 = vmax.f32 %v6737_v46, %v11571_v55  ;;  %v6442_v2 = vmul.f32 0.088388346, %v11998_v10  ;;  %v7184_v60 = vmul.f32 0.25, %v7152_v4  ;;  %v6233_v4 = vpop.xlane.xlu0 %6232 }
 0x4be   : > { %v6930_v42 = vadd.f32 %v12079_v53, %v6914_v33  ;;  %v12086_v31 = vmul.f32 0.5, %v7073_v3  ;;  %8056 = vpow2.f32 %v6520_v48  ;;  %v6616_v8 = vmul.f32 1.442695, %v6592_v26  ;;  %v12658_v48 = vld [vmem:[#allocation38_spill] sm:$0xff] }
 0x4bf   : > { %8058 = vpow2.f32 %v6568_v30  ;;  %v6773_v18 = vsub.f32 %v11945_v29, %v6757_v19  ;;  %v6821_v39 = vsub.f32 %v6443_v63, %v6757_v19  ;;  %v7185_v13 = vmul.f32 0.25, %v7153_v0  ;;  %v12657_v63 = vld [vmem:[#allocation20_spill] sm:$0xff] }
 0x4c0   : > { %v8047_v16 = vpop.eup %8046  ;;  %8060 = vrcp.f32 %v6930_v42  ;;  %v6869_v38 = vsub.f32 %v11571_v55, %v6757_v19  ;;  %v6736_v10 = vmax.f32 %v12011_v5, %v6442_v2  ;;  %v12098_v3 = vmul.f32 0.088388346, %v12021_v50 }
 0x4c1   : > { %v6687_v54 = vmul.f32 %v8047_v16, %v12004_v59  ;;  %v6703_v41 = vmul.f32 %v8047_v16, %v12008_v28  ;;  %8062 = vpow2.f32 %v6618_v22  ;;  %v6719_v29 = vmul.f32 %v8047_v16, %v12025_v52  ;;  %v12659_v22 = vld [vmem:[#allocation21_spill] sm:$0xff] }
 0x4c2   : > { %v6798_v37 = vmul.f32 1.442695, %v6773_v18  ;;  %v6846_v45 = vmul.f32 1.442695, %v6821_v39  ;;  %v6756_v9 = vmax.f32 %v6736_v10, %v11571_v55  ;;  %8064 = vpow2.f32 %v6616_v8 }
 0x4c3   : > { %v12102_v51 = vpop.eup %8048  ;;  %v7011_v20 = vmul.f32 %v6687_v54, %v12657_v63  ;;  %v7027_v36 = vmul.f32 %v6703_v41, %v11941_v47  ;;  %v12106_v59 = vadd.f32 %v7184_v60, %v7168_v17  ;;  %v6894_v40 = vmul.f32 1.442695, %v6869_v38 }
 0x4c4   : > { %v8051_v28 = vpop.eup %8050  ;;  %8066 = vpow2.f32 %v6798_v37  ;;  %v6772_v50 = vsub.f32 %v12011_v5, %v6756_v9  ;;  %v12110_v52 = vmul.f32 0.088388346, %v12038_v15  ;;  %v6820_v46 = vsub.f32 %v6442_v2, %v6756_v9  ;;  %v6231_v5 = vpop.xlane.xlu1 %6230 }
 0x4c5   : > { %v12112_v12 = vpop.eup %8052  ;;  %v6686_v25 = vmul.f32 %v8051_v28, %v12032_v34  ;;  %v6702_v61 = vmul.f32 %v8051_v28, %v12042_v62  ;;  %v7043_v26 = vadd.f32 %v7027_v36, %v7011_v20  ;;  %v6718_v17 = vmul.f32 %v8051_v28, %v12049_v23 }
 0x4c6   : > { %8068 = vpow2.f32 %v6846_v45  ;;  %v12118_v33 = vmul.f32 0.088388346, %v12062_v11  ;;  %v12120_v0 = vmul.f32 0.088388346, %v6167_v27  ;;  %v7059_v34 = vmul.f32 %v11700_v32, %v6719_v29 }
 0x4c7   : > { %v8055_v15 = vpop.eup %8054  ;;  %v7010_v30 = vmul.f32 %v6686_v25, %v12658_v48  ;;  %v7026_v19 = vmul.f32 %v6702_v61, %v12659_v22  ;;  %v6868_v62 = vsub.f32 %v11571_v55, %v6756_v9  ;;  %v6641_v11 = vadd.f32 %v12112_v12, %v12102_v51 }
 0x4c8   : > { %v12126_v42 = vpop.eup %8056  ;;  %v6963_v23 = vmul.f32 %v8055_v15, %v12055_v56  ;;  %v6979_v2 = vmul.f32 %v8055_v15, %v12057_v44  ;;  %v6796_v27 = vmul.f32 1.442695, %v6772_v50  ;;  %v7075_v18 = vadd.f32 %v7059_v34, %v7043_v26  ;;  %v6425_v44 = vpop.xlane.xlu0 %6424 }
 0x4c9   : > { %v12132_v60 = vpop.eup %8058  ;;  %v7042_v8 = vadd.f32 %v7026_v19, %v7010_v30  ;;  %8070 = vpow2.f32 %v6894_v40  ;;  %v6844_v39 = vmul.f32 1.442695, %v6820_v46  ;;  %v7058_v38 = vmul.f32 %v11700_v32, %v6718_v17 }
 0x4ca   : > { %v8061_v16 = vpop.eup %8060  ;;  %v6995_v10 = vmul.f32 %v8055_v15, %v12064_v7  ;;  %v7091_v54 = vmul.f32 %v6963_v23, %v12657_v63  ;;  %v7107_v56 = vmul.f32 %v6979_v2, %v11941_v47  ;;  %v6892_v9 = vmul.f32 1.442695, %v6868_v62  ;;  %v6423_v63 = vpop.xlane.xlu1 %6422 }
 0x4cb   : > { %v12138_v41 = vpop.eup %8062  ;;  %v6962_v29 = vmul.f32 %v8061_v16, %v12071_v21  ;;  %v6978_v37 = vmul.f32 %v8061_v16, %v12075_v24  ;;  %v6994_v45 = vmul.f32 %v8061_v16, %v12079_v53  ;;  %v6640_v36 = vadd.f32 %v12132_v60, %v12126_v42 }
 0x4cc   : > { %v7123_v20 = vadd.f32 %v7107_v56, %v7091_v54  ;;  %8072 = vpow2.f32 %v6796_v27  ;;  %v7201_v7 = vadd.f32 %v7185_v13, %v12086_v31  ;;  %v12146_v28 = vpop.eup %8064  ;;  %v12150_v21 = vmul.f32 0.5, %v7075_v18  ;;  %v6365_v30 = vpop.xlane.xlu0 %6364 }
 0x4cd   : > { %v7090_v47 = vmul.f32 %v6962_v29, %v12658_v48  ;;  %v7106_v40 = vmul.f32 %v6978_v37, %v12659_v22  ;;  %v6657_v24 = vadd.f32 %v12138_v41, %v6641_v11  ;;  %v7139_v50 = vmul.f32 %v11700_v32, %v6995_v10 }
 0x4ce   : > { %v12153_v53 = vpop.eup %8066  ;;  %v6656_v25 = vadd.f32 %v12146_v28, %v6640_v36  ;;  %8074 = vpow2.f32 %v6844_v39  ;;  %v7214_v31 = vpack.c.bf16 %v7201_v7, %v12106_v59  ;;  %v7074_v13 = vadd.f32 %v7058_v38, %v7042_v8  ;;  %v6363_v11 = vpop.xlane.xlu1 %6362 }
 0x4cf   : > { %v7122_v61 = vadd.f32 %v7106_v40, %v7090_v47  ;;  %v7138_v26 = vmul.f32 %v11700_v32, %v6994_v45  ;;  %8076 = vpow2.f32 %v6892_v9  ;;  %v7155_v17 = vadd.f32 %v7139_v50, %v7123_v20 }
 0x4d0   : > { %v12159_v46 = vpop.eup %8068  ;;  %8078 = vrcp.f32 %v6656_v25  ;;  %7743 = vmatprep.mubr.bf16.mxu1 %v7214_v31  ;;  %v6253_v15 = vmul.f32 0.088388346, %v6233_v4  ;;  %v6252_v48 = vmul.f32 0.088388346, %v6231_v5  ;;  %v6445_v34 = vmul.f32 0.088388346, %v6425_v44  ;;  %v6173_v45 = vpop.xlane.xlu0 %6172 }
 0x4d1   : > { %v7154_v22 = vadd.f32 %v7138_v26, %v7122_v61  ;;  %v6917_v19 = vadd.f32 %v12159_v46, %v12153_v53  ;;  %v12163_v62 = vmul.f32 0.088388346, %v6423_v63  ;;  %v6317_v59 = vmul.f32 0.088388346, %v12088_v35 }
 0x4d2   : > { %v6316_v32 = vmul.f32 0.088388346, %v12093_v57  ;;  %v6467_v23 = vmax.f32 %v12118_v33, %v6253_v15  ;;  %v6466_v2 = vmax.f32 %v12120_v0, %v6252_v48  ;;  %v12171_v4 = vmul.f32 0.5, %v7074_v13 }
 0x4d3   : > { %v12169_v27 = vpop.eup %8070  ;;  %8080 = vrcp.f32 %v6657_v24  ;;  %v6739_v5 = vmax.f32 %v12098_v3, %v6445_v34  ;;  %v6738_v8 = vmax.f32 %v12110_v52, %v12163_v62  ;;  %v12176_v18 = vmul.f32 0.25, %v7155_v17 }
 0x4d4   : > { %v6933_v35 = vadd.f32 %v12169_v27, %v6917_v19  ;;  %v6483_v57 = vmax.f32 %v6467_v23, %v6317_v59  ;;  %v6482_v39 = vmax.f32 %v6466_v2, %v6316_v32  ;;  %v12179_v16 = vmul.f32 0.25, %v7154_v22 }
 0x4d5   : > { %v6759_v38 = vmax.f32 %v6739_v5, %v11571_v55  ;;  %v12182_v10 = vmul.f32 0.088388346, %v6365_v30  ;;  %v12184_v54 = vmul.f32 0.088388346, %v6363_v11  ;;  %v6758_v7 = vmax.f32 %v6738_v8, %v11571_v55 }
 0x4d6   : > { %v12186_v56 = vpop.eup %8072  ;;  %8082 = vrcp.f32 %v6933_v35  ;;  %v6499_v44 = vsub.f32 %v12118_v33, %v6483_v57  ;;  %v6547_v29 = vsub.f32 %v6253_v15, %v6483_v57  ;;  %v6595_v37 = vsub.f32 %v6317_v59, %v6483_v57  ;;  %v12661_v57 = vld [vmem:[#allocation39_spill] sm:$0xff] }
 0x4d7   : > { %v6498_v9 = vsub.f32 %v12120_v0, %v6482_v39  ;;  %v6546_v20 = vsub.f32 %v6252_v48, %v6482_v39  ;;  %v6594_v36 = vsub.f32 %v6316_v32, %v6482_v39  ;;  %v6775_v50 = vsub.f32 %v12098_v3, %v6759_v38  ;;  %v12660_v0 = vld [vmem:[#allocation22_spill] sm:$0xff]  ;;  %v6171_v48 = vpop.xlane.xlu1 %6170 }
 0x4d8   : > { %v12191_v63 = vpop.eup %8074  ;;  %v6526_v47 = vmul.f32 1.442695, %v6499_v44  ;;  %v6574_v40 = vmul.f32 1.442695, %v6547_v29  ;;  %v6622_v24 = vmul.f32 1.442695, %v6595_v37  ;;  %v6823_v31 = vsub.f32 %v6445_v34, %v6759_v38 }
 0x4d9   : > { %v12194_v25 = vpop.eup %8076  ;;  %v6916_v33 = vadd.f32 %v12191_v63, %v12186_v56  ;;  %v12198_v13 = vmul.f32 0.088388346, %v6173_v45  ;;  %v12202_v61 = vadd.f32 %v12660_v0, %v11247_v43  ;;  %v6524_v17 = vmul.f32 1.442695, %v6498_v9 }
 0x4da   : > { %v8079_v26 = vpop.eup %8078  ;;  %8084 = vpow2.f32 %v6526_v47  ;;  %v6871_v15 = vsub.f32 %v11571_v55, %v6759_v38  ;;  %v12207_v3 = vadd.f32 %v11834_v14, %v11247_v43  ;;  %v6572_v22 = vmul.f32 1.442695, %v6546_v20  ;;  %v6301_v14 = vpop.xlane.xlu0 %6300 }
 0x4db   : > { %v6932_v30 = vadd.f32 %v12194_v25, %v6916_v33  ;;  %8086 = vpow2.f32 %v6574_v40  ;;  %v6774_v19 = vsub.f32 %v12110_v52, %v6758_v7  ;;  %v6620_v34 = vmul.f32 1.442695, %v6594_v36  ;;  %v6299_v45 = vpop.xlane.xlu1 %6298  ;;  %v12663_v40 = vld [vmem:[#allocation41_spill] sm:$0xff] }
 0x4dc   : > { %8088 = vpow2.f32 %v6622_v24  ;;  %v6802_v59 = vmul.f32 1.442695, %v6775_v50  ;;  %v6688_v32 = vmul.f32 %v8079_v26, %v12126_v42  ;;  %v6850_v2 = vmul.f32 1.442695, %v6823_v31  ;;  %v12662_v42 = vld [vmem:[#allocation25_spill] sm:$0xff] }
 0x4dd   : > { %v8081_v23 = vpop.eup %8080  ;;  %8090 = vrcp.f32 %v6932_v30  ;;  %v6822_v11 = vsub.f32 %v12163_v62, %v6758_v7  ;;  %v6704_v5 = vmul.f32 %v8079_v26, %v12132_v60  ;;  %v6898_v8 = vmul.f32 1.442695, %v6871_v15 }
 0x4de   : > { %8092 = vpow2.f32 %v6524_v17  ;;  %v6870_v35 = vsub.f32 %v11571_v55, %v6758_v7  ;;  %v7012_v39 = vmul.f32 %v6688_v32, %v12661_v57  ;;  %v6800_v52 = vmul.f32 1.442695, %v6774_v19  ;;  %v6237_v33 = vpop.xlane.xlu0 %6236 }
 0x4df   : > { %8094 = vpow2.f32 %v6572_v22  ;;  %v7028_v38 = vmul.f32 %v6704_v5, %v12207_v3  ;;  %v6082_v44 = vadd.f32 %v12662_v42, %v11247_v43  ;;  %v6720_v62 = vmul.f32 %v8079_v26, %v12146_v28  ;;  %v12664_v22 = vld [vmem:[#allocation23_spill] sm:$0xff]  ;;  %v6235_v32 = vpop.xlane.xlu1 %6234 }
 0x4e0   : > { %v8083_v29 = vpop.eup %8082  ;;  %8096 = vpow2.f32 %v6620_v34  ;;  %v6689_v60 = vmul.f32 %v8081_v23, %v12102_v51  ;;  %v6705_v37 = vmul.f32 %v8081_v23, %v12112_v12  ;;  %v6848_v9 = vmul.f32 1.442695, %v6822_v11 }
 0x4e1   : > { %8098 = vpow2.f32 %v6802_v59  ;;  %v7044_v20 = vadd.f32 %v7028_v38, %v7012_v39  ;;  %v6965_v36 = vmul.f32 %v8083_v29, %v12153_v53  ;;  %v12223_v7 = vmul.f32 0.088388346, %v6171_v48  ;;  %v12233_v53 = vld [vmem:[%s12478_s2 + $0x2] ss:$0 sm:$0xff] }
 0x4e2   : > { %8100 = vpow2.f32 %v6850_v2  ;;  %v6981_v47 = vmul.f32 %v8083_v29, %v12159_v46  ;;  %v7013_v24 = vmul.f32 %v6689_v60, %v12663_v40  ;;  %v6896_v50 = vmul.f32 1.442695, %v6870_v35  ;;  %v6429_v42 = vpop.xlane.xlu0 %6428 }
 0x4e3   : > { %8102 = vpow2.f32 %v6898_v8  ;;  %v6721_v28 = vmul.f32 %v8081_v23, %v12138_v41  ;;  %v7029_v51 = vmul.f32 %v6705_v37, %v6082_v44  ;;  %v7060_v31 = vmul.f32 %v12233_v53, %v6720_v62 }
 0x4e4   : > { %v12228_v12 = vpop.eup %8084  ;;  %8104 = vpow2.f32 %v6800_v52  ;;  %v7093_v46 = vmul.f32 %v6965_v36, %v12663_v40  ;;  %v7109_v0 = vmul.f32 %v6981_v47, %v6082_v44  ;;  %v6997_v41 = vmul.f32 %v8083_v29, %v12169_v27 }
 0x4e5   : > { %v12237_v26 = vpop.eup %8086  ;;  %8106 = vpow2.f32 %v6848_v9  ;;  %v7045_v17 = vadd.f32 %v7029_v51, %v7013_v24  ;;  %v7202_v15 = vadd.f32 %v12179_v16, %v12171_v4  ;;  %v12248_v19 = vadd.f32 %v12664_v22, %v11247_v43  ;;  %v6427_v24 = vpop.xlane.xlu1 %6426 }
 0x4e6   : > { %v12242_v48 = vpop.eup %8088  ;;  %v6643_v30 = vadd.f32 %v12237_v26, %v12228_v12  ;;  %v7125_v34 = vadd.f32 %v7109_v0, %v7093_v46  ;;  %v7203_v59 = vadd.f32 %v12176_v18, %v12150_v21  ;;  %8108 = vpow2.f32 %v6896_v50 }
 0x4e7   : > { %v8091_v23 = vpop.eup %8090  ;;  %v7076_v27 = vadd.f32 %v7060_v31, %v7044_v20  ;;  %v7061_v2 = vmul.f32 %v12233_v53, %v6721_v28  ;;  %v6255_v4 = vmul.f32 0.088388346, %v6237_v33  ;;  %v7141_v21 = vmul.f32 %v12233_v53, %v6997_v41 }
 0x4e8   : > { %v12253_v16 = vpop.eup %8092  ;;  %v6659_v11 = vadd.f32 %v12242_v48, %v6643_v30  ;;  %v6964_v5 = vmul.f32 %v8091_v23, %v12186_v56  ;;  %v6980_v8 = vmul.f32 %v8091_v23, %v12191_v63  ;;  %v6996_v35 = vmul.f32 %v8091_v23, %v12194_v25 }
 0x4e9   : > { %v12259_v39 = vpop.eup %8094  ;;  %v7215_v18 = vpack.c.bf16 %v7203_v59, %v7202_v15  ;;  %v6319_v52 = vmul.f32 0.088388346, %v6301_v14  ;;  %v6469_v38 = vmax.f32 %v12198_v13, %v6255_v4  ;;  %v12271_v62 = vmul.f32 0.5, %v7076_v27 }
 0x4ea   : > { %v12263_v44 = vpop.eup %8096  ;;  %8110 = vrcp.f32 %v6659_v11  ;;  %v6642_v29 = vadd.f32 %v12259_v39, %v12253_v16  ;;  %v7092_v56 = vmul.f32 %v6964_v5, %v12661_v57  ;;  %v7108_v63 = vmul.f32 %v6980_v8, %v12207_v3 }
 0x4eb   : > { %v12269_v25 = vpop.eup %8098  ;;  %7744 = vmatmul.mubr.bf16.gmra.mrb[36].mxu1 %v7215_v18  ;;  %v6318_v60 = vmul.f32 0.088388346, %v6299_v45  ;;  %v6485_v14 = vmax.f32 %v6469_v38, %v6319_v52  ;;  %v6254_v37 = vmul.f32 0.088388346, %v6235_v32  ;;  %v7140_v47 = vmul.f32 %v12233_v53, %v6996_v35 }
 0x4ec   : > { %v12273_v9 = vpop.eup %8100  ;;  %v6658_v20 = vadd.f32 %v12263_v44, %v6642_v29  ;;  %v7124_v36 = vadd.f32 %v7108_v63, %v7092_v56  ;;  %v6447_v40 = vmul.f32 0.088388346, %v6429_v42  ;;  %v12289_v22 = vmul.f32 0.088388346, %v6427_v24 }
 0x4ed   : > { %v12277_v57 = vpop.eup %8102  ;;  %v6919_v3 = vadd.f32 %v12273_v9, %v12269_v25  ;;  %v6501_v50 = vsub.f32 %v12198_v13, %v6485_v14  ;;  %v6549_v28 = vsub.f32 %v6255_v4, %v6485_v14  ;;  %v6597_v45 = vsub.f32 %v6319_v52, %v6485_v14 }
 0x4ee   : > { %v12282_v51 = vpop.eup %8104  ;;  %8112 = vrcp.f32 %v6658_v20  ;;  %v7156_v33 = vadd.f32 %v7140_v47, %v7124_v36  ;;  %v6468_v31 = vmax.f32 %v12223_v7, %v6254_v37  ;;  %v6741_v46 = vmax.f32 %v12182_v10, %v6447_v40 }
 0x4ef   : > { %v12286_v0 = vpop.eup %8106  ;;  %v6935_v41 = vadd.f32 %v12277_v57, %v6919_v3  ;;  %v6530_v15 = vmul.f32 1.442695, %v6501_v50  ;;  %v6578_v30 = vmul.f32 1.442695, %v6549_v28  ;;  %v7077_v59 = vadd.f32 %v7061_v2, %v7045_v17 }
 0x4f0   : > { %v6918_v13 = vadd.f32 %v12286_v0, %v12282_v51  ;;  %v6484_v32 = vmax.f32 %v6468_v31, %v6318_v60  ;;  %v6761_v23 = vmax.f32 %v6741_v46, %v11571_v55  ;;  %v12294_v27 = vpop.eup %8108  ;;  %v7188_v4 = vmul.f32 0.25, %v7156_v33  ;;  %v12666_v46 = vld [vmem:[#allocation42_spill] sm:$0xff] }
 0x4f1   : > { %8114 = vrcp.f32 %v6935_v41  ;;  %v7157_v11 = vadd.f32 %v7141_v21, %v7125_v34  ;;  %v6626_v5 = vmul.f32 1.442695, %v6597_v45  ;;  %v6740_v17 = vmax.f32 %v12184_v54, %v12289_v22 }
 0x4f2   : > { %v6934_v8 = vadd.f32 %v12294_v27, %v6918_v13  ;;  %8116 = vpow2.f32 %v6530_v15  ;;  %v6500_v35 = vsub.f32 %v12223_v7, %v6484_v32  ;;  %v6548_v18 = vsub.f32 %v6254_v37, %v6484_v32  ;;  %v12665_v37 = vld [vmem:[#allocation44_spill] sm:$0xff] }
 0x4f3   : > { %8118 = vpow2.f32 %v6578_v30  ;;  %v6596_v52 = vsub.f32 %v6318_v60, %v6484_v32  ;;  %v6777_v38 = vsub.f32 %v12182_v10, %v6761_v23  ;;  %v6825_v56 = vsub.f32 %v6447_v40, %v6761_v23 }
 0x4f4   : > { %v8111_v2 = vpop.eup %8110  ;;  %8120 = vrcp.f32 %v6934_v8  ;;  %v6528_v42 = vmul.f32 1.442695, %v6500_v35  ;;  %v6576_v29 = vmul.f32 1.442695, %v6548_v18  ;;  %v12303_v63 = vmul.f32 0.5, %v7077_v59 }
 0x4f5   : > { %v6691_v34 = vmul.f32 %v8111_v2, %v12228_v12  ;;  %v6707_v21 = vmul.f32 %v8111_v2, %v12237_v26  ;;  %8122 = vpow2.f32 %v6626_v5  ;;  %v6624_v7 = vmul.f32 1.442695, %v6596_v52 }
 0x4f6   : > { %8124 = vpow2.f32 %v6528_v42  ;;  %v6806_v60 = vmul.f32 1.442695, %v6777_v38  ;;  %v6873_v10 = vsub.f32 %v11571_v55, %v6761_v23  ;;  %v6723_v14 = vmul.f32 %v8111_v2, %v12242_v48 }
 0x4f7   : > { %v7015_v20 = vmul.f32 %v6691_v34, %v12665_v37  ;;  %v7031_v36 = vmul.f32 %v6707_v21, %v12248_v19  ;;  %8126 = vpow2.f32 %v6576_v29  ;;  %v6854_v12 = vmul.f32 1.442695, %v6825_v56 }
 0x4f8   : > { %v8113_v47 = vpop.eup %8112  ;;  %8128 = vpow2.f32 %v6624_v7  ;;  %v6760_v26 = vmax.f32 %v6740_v17, %v11571_v55  ;;  %v12311_v40 = vadd.f32 %v7188_v4, %v12271_v62  ;;  %v7189_v28 = vmul.f32 0.25, %v7157_v11 }
 0x4f9   : > { %v6690_v24 = vmul.f32 %v8113_v47, %v12253_v16  ;;  %v6706_v3 = vmul.f32 %v8113_v47, %v12259_v39  ;;  %v6722_v50 = vmul.f32 %v8113_v47, %v12263_v44  ;;  %v7047_v48 = vadd.f32 %v7031_v36, %v7015_v20 }
 0x4fa   : > { %8130 = vpow2.f32 %v6806_v60  ;;  %v6902_v45 = vmul.f32 1.442695, %v6873_v10  ;;  %v6776_v33 = vsub.f32 %v12184_v54, %v6760_v26  ;;  %v7063_v62 = vmul.f32 %v12233_v53, %v6723_v14 }
 0x4fb   : > { %v8115_v31 = vpop.eup %8114  ;;  %v7014_v41 = vmul.f32 %v6690_v24, %v12666_v46  ;;  %v7030_v15 = vmul.f32 %v6706_v3, %v12202_v61  ;;  %v6824_v30 = vsub.f32 %v12289_v22, %v6760_v26  ;;  %8132 = vpow2.f32 %v6854_v12 }
 0x4fc   : > { %v12321_v16 = vpop.eup %8116  ;;  %v6967_v39 = vmul.f32 %v8115_v31, %v12269_v25  ;;  %v6983_v44 = vmul.f32 %v8115_v31, %v12273_v9  ;;  %v6999_v13 = vmul.f32 %v8115_v31, %v12277_v57  ;;  %v7062_v32 = vmul.f32 %v12233_v53, %v6722_v50 }
 0x4fd   : > { %v8119_v59 = vpop.eup %8118  ;;  %v7046_v54 = vadd.f32 %v7030_v15, %v7014_v41  ;;  %v6804_v23 = vmul.f32 1.442695, %v6776_v33  ;;  %v6872_v4 = vsub.f32 %v11571_v55, %v6760_v26  ;;  %8134 = vpow2.f32 %v6902_v45  ;;  %v12667_v15 = vld [vmem:[#allocation57_spill] sm:$0xff] }
 0x4fe   : > { %v8121_v11 = vpop.eup %8120  ;;  %v7095_v5 = vmul.f32 %v6967_v39, %v12665_v37  ;;  %v7111_v22 = vmul.f32 %v6983_v44, %v12248_v19  ;;  %v6645_v8 = vadd.f32 %v8119_v59, %v12321_v16  ;;  %v7079_v18 = vadd.f32 %v7063_v62, %v7047_v48 }
 0x4ff   : > { %v12331_v25 = vpop.eup %8122  ;;  %v6966_v9 = vmul.f32 %v8121_v11, %v12282_v51  ;;  %v6982_v57 = vmul.f32 %v8121_v11, %v12286_v0  ;;  %v6998_v35 = vmul.f32 %v8121_v11, %v12294_v27  ;;  %v7143_v17 = vmul.f32 %v12233_v53, %v6999_v13 }
 0x500   : > { %v8125_v52 = vpop.eup %8124  ;;  %v7127_v38 = vadd.f32 %v7111_v22, %v7095_v5  ;;  %v6661_v2 = vadd.f32 %v12331_v25, %v6645_v8  ;;  %v6852_v42 = vmul.f32 1.442695, %v6824_v30  ;;  %v7078_v29 = vadd.f32 %v7062_v32, %v7046_v54  ;;  %v12669_v5 = vld [vmem:[#allocation29_spill] sm:$0xff] }
 0x501   : > { %v8127_v19 = vpop.eup %8126  ;;  %v7094_v56 = vmul.f32 %v6966_v9, %v12666_v46  ;;  %v7110_v34 = vmul.f32 %v6982_v57, %v12202_v61  ;;  %8136 = vpow2.f32 %v6804_v23  ;;  %v6900_v21 = vmul.f32 1.442695, %v6872_v4 }
 0x502   : > { %v12340_v51 = vpop.eup %8128  ;;  %v7159_v0 = vadd.f32 %v7143_v17, %v7127_v38  ;;  %8138 = vrcp.f32 %v6661_v2  ;;  %v6644_v27 = vadd.f32 %v8127_v19, %v8125_v52  ;;  %v7142_v60 = vmul.f32 %v12233_v53, %v6998_v35 }
 0x503   : > { %v7126_v7 = vadd.f32 %v7110_v34, %v7094_v56  ;;  %8140 = vpow2.f32 %v6852_v42  ;;  %v7205_v10 = vadd.f32 %v7189_v28, %v12303_v63  ;;  %v7175_v37 = vmul.f32 0.5, %v7079_v18 }
 0x504   : > { %v8131_v14 = vpop.eup %8130  ;;  %v7191_v20 = vmul.f32 0.25, %v7159_v0  ;;  %v6660_v36 = vadd.f32 %v12340_v51, %v6644_v27  ;;  %8142 = vpow2.f32 %v6900_v21  ;;  %v7174_v24 = vmul.f32 0.5, %v7078_v29 }
 0x505   : > { %v7158_v47 = vadd.f32 %v7142_v60, %v7126_v7  ;;  %v7216_v61 = vpack.c.bf16 %v7205_v10, %v12311_v40  ;;  %v8133_v12 = vpop.eup %8132  ;;  %v6098_v28 = vadd.f32 %v12047_v1, %v11247_v43  ;;  %v12668_v40 = vld [vmem:[#allocation27_spill] sm:$0xff]  ;;  %v6095_v54 = vadd.f32 %v12030_v49, %v11247_v43  ;;  %v6367_v1 = vpop.xlane.xlu1 %6366 }
 0x506   : > { %8144 = vrcp.f32 %v6660_v36  ;;  %v7207_v26 = vadd.f32 %v7191_v20, %v7175_v37  ;;  %v6921_v50 = vadd.f32 %v8133_v12, %v8131_v14  ;;  %v5207_v62 = vadd.f32 %v12668_v40, %v12667_v15 }
 0x507   : > { %v7190_v3 = vmul.f32 0.25, %v7158_v47  ;;  %7747 = vmatprep.mubr.bf16.mxu1 %v7216_v61  ;;  %v8135_v48 = vpop.eup %8134  ;;  %v5203_v22 = vadd.f32 %v12669_v5, %v12667_v15 }
 0x508   : > { %v6937_v45 = vadd.f32 %v8135_v48, %v6921_v50 }
 0x509   : > { %v7206_v33 = vadd.f32 %v7190_v3, %v7174_v24 }
 0x50a   : > { %8146 = vrcp.f32 %v6937_v45 }
 0x50b   : > { %v8137_v63 = vpop.eup %8136  ;;  %v7217_v31 = vpack.c.bf16 %v7207_v26, %v7206_v33  ;;  %v6384_v26 = vmul.f32 0.088388346, %v6367_v1 }
 0x50c   : > { %v8139_v46 = vpop.eup %8138 }
 0x50d   : > { %v8141_v41 = vpop.eup %8140  ;;  %v6693_v30 = vmul.f32 %v8139_v46, %v12321_v16  ;;  %v6709_v39 = vmul.f32 %v8139_v46, %v8119_v59  ;;  %7748 = vmatmul.mubr.bf16.gmra.mrb[40].mxu1 %v7217_v31  ;;  %v6369_v16 = vpop.xlane.xlu0 %6368  ;;  %v6725_v18 = vmul.f32 %v8139_v46, %v12331_v25 }
 0x50e   : > { %v6920_v44 = vadd.f32 %v8141_v41, %v8137_v63  ;;  %v8143_v13 = vpop.eup %8142 }
 0x50f   : > { %v7017_v32 = vmul.f32 %v6693_v30, %v5207_v62  ;;  %v7033_v23 = vmul.f32 %v6709_v39, %v6098_v28  ;;  %v7065_v34 = vmul.f32 %v12233_v53, %v6725_v18 }
 0x510   : > { %v8145_v4 = vpop.eup %8144  ;;  %v6936_v11 = vadd.f32 %v8143_v13, %v6920_v44 }
 0x511   : > { %v6692_v8 = vmul.f32 %v8145_v4, %v8125_v52  ;;  %v6708_v9 = vmul.f32 %v8145_v4, %v8127_v19  ;;  %v7049_v57 = vadd.f32 %v7033_v23, %v7017_v32 }
 0x512   : > { %8148 = vrcp.f32 %v6936_v11 }
 0x513   : > { %v7016_v59 = vmul.f32 %v6692_v8, %v5203_v22  ;;  %v7032_v35 = vmul.f32 %v6708_v9, %v6095_v54  ;;  %v7081_v19 = vadd.f32 %v7065_v34, %v7049_v57 }
 0x514   : > { %v8147_v38 = vpop.eup %8146 }
 0x515   : > { %v7048_v17 = vadd.f32 %v7032_v35, %v7016_v59  ;;  %v6969_v2 = vmul.f32 %v8147_v38, %v8131_v14  ;;  %v6985_v42 = vmul.f32 %v8147_v38, %v8133_v12  ;;  %v7001_v29 = vmul.f32 %v8147_v38, %v8135_v48 }
 0x516   : > { %v6175_v49 = vpop.xlane.xlu1 %6174  ;;  %v6724_v14 = vmul.f32 %v8145_v4, %v12340_v51  ;;  %v7177_v61 = vmul.f32 0.5, %v7081_v19  ;;  %v6385_v48 = vmul.f32 0.088388346, %v6369_v16 }
 0x517   : > { %v6177_v56 = vpop.xlane.xlu0 %6176  ;;  %v7097_v0 = vmul.f32 %v6969_v2, %v5207_v62  ;;  %v7113_v27 = vmul.f32 %v6985_v42, %v6098_v28  ;;  %v7145_v7 = vmul.f32 %v12233_v53, %v7001_v29 }
 0x518   : > { %v7064_v51 = vmul.f32 %v12233_v53, %v6724_v14 }
 0x519   : > { %v7129_v21 = vadd.f32 %v7113_v27, %v7097_v0 }
 0x51a   : > { %v6239_v52 = vpop.xlane.xlu1 %6238  ;;  %v7080_v11 = vadd.f32 %v7064_v51, %v7048_v17 }
 0x51b   : > { %v6241_v10 = vpop.xlane.xlu0 %6240  ;;  %v7161_v37 = vadd.f32 %v7145_v7, %v7129_v21  ;;  %v6256_v45 = vmul.f32 0.088388346, %v6239_v52 }
 0x51c   : > { %v8149_v60 = vpop.eup %8148  ;;  %v6257_v62 = vmul.f32 0.088388346, %v6241_v10  ;;  %v7176_v7 = vmul.f32 0.5, %v7080_v11 }
 0x51d   : > { %v6968_v25 = vmul.f32 %v8149_v60, %v8137_v63  ;;  %v6984_v20 = vmul.f32 %v8149_v60, %v8141_v41  ;;  %v7000_v47 = vmul.f32 %v8149_v60, %v8143_v13  ;;  %v7193_v12 = vmul.f32 0.25, %v7161_v37 }
 0x51e   : > { %v6431_v36 = vpop.xlane.xlu1 %6430  ;;  %v6192_v41 = vmul.f32 0.088388346, %v6175_v49 }
 0x51f   : > { %v6448_v24 = vmul.f32 0.088388346, %v6431_v36  ;;  %v7096_v3 = vmul.f32 %v6968_v25, %v5203_v22  ;;  %v7112_v50 = vmul.f32 %v6984_v20, %v6095_v54  ;;  %v6433_v33 = vpop.xlane.xlu0 %6432  ;;  %v7209_v28 = vadd.f32 %v7193_v12, %v7177_v61 }
 0x520   : > { %v6449_v31 = vmul.f32 0.088388346, %v6433_v33  ;;  %v7144_v63 = vmul.f32 %v12233_v53, %v7000_v47  ;;  %v6193_v54 = vmul.f32 0.088388346, %v6177_v56  ;;  %v6470_v23 = vmax.f32 %v6192_v41, %v6256_v45 }
 0x521   : > { %v6742_v46 = vmax.f32 %v6384_v26, %v6448_v24  ;;  %v7128_v40 = vadd.f32 %v7112_v50, %v7096_v3 }
 0x522   : > { %v6303_v30 = vpop.xlane.xlu1 %6302  ;;  %v6743_v39 = vmax.f32 %v6385_v48, %v6449_v31  ;;  %v6471_v9 = vmax.f32 %v6193_v54, %v6257_v62 }
 0x523   : > { %v6762_v44 = vmax.f32 %v6742_v46, %v11571_v55  ;;  %v6320_v13 = vmul.f32 0.088388346, %v6303_v30  ;;  %v7160_v32 = vadd.f32 %v7144_v63, %v7128_v40  ;;  %v6305_v4 = vpop.xlane.xlu0 %6304 }
 0x524   : > { %v6763_v1 = vmax.f32 %v6743_v39, %v11571_v55  ;;  %v6321_v57 = vmul.f32 0.088388346, %v6305_v4 }
 0x525   : > { %v6778_v5 = vsub.f32 %v6384_v26, %v6762_v44  ;;  %v6826_v22 = vsub.f32 %v6448_v24, %v6762_v44  ;;  %v6874_v8 = vsub.f32 %v11571_v55, %v6762_v44  ;;  %v6486_v16 = vmax.f32 %v6470_v23, %v6320_v13  ;;  %v12670_v23 = vld [vmem:[#allocation31_spill] sm:$0xff] }
 0x526   : > { %v7192_v59 = vmul.f32 0.25, %v7160_v32  ;;  %v6779_v35 = vsub.f32 %v6385_v48, %v6763_v1  ;;  %v6827_v18 = vsub.f32 %v6449_v31, %v6763_v1  ;;  %v6875_v38 = vsub.f32 %v11571_v55, %v6763_v1 }
 0x527   : > { %v6808_v49 = vmul.f32 1.442695, %v6778_v5  ;;  %v6856_v2 = vmul.f32 1.442695, %v6826_v22  ;;  %v6904_v42 = vmul.f32 1.442695, %v6874_v8  ;;  %v6487_v29 = vmax.f32 %v6471_v9, %v6321_v57 }
 0x528   : > { %v6502_v56 = vsub.f32 %v6192_v41, %v6486_v16  ;;  %v6810_v17 = vmul.f32 1.442695, %v6779_v35  ;;  %v6858_v34 = vmul.f32 1.442695, %v6827_v18  ;;  %v6906_v0 = vmul.f32 1.442695, %v6875_v38 }
 0x529   : > { %8150 = vpow2.f32 %v6808_v49  ;;  %v6503_v27 = vsub.f32 %v6193_v54, %v6487_v29  ;;  %v6551_v52 = vsub.f32 %v6257_v62, %v6487_v29  ;;  %v6599_v19 = vsub.f32 %v6321_v57, %v6487_v29  ;;  %v12671_v5 = vld [vmem:[#allocation30_spill] sm:$0xff] }
 0x52a   : > { %8152 = vpow2.f32 %v6856_v2  ;;  %v6550_v21 = vsub.f32 %v6256_v45, %v6486_v16  ;;  %v6598_v37 = vsub.f32 %v6320_v13, %v6486_v16  ;;  %v7208_v25 = vadd.f32 %v7192_v59, %v7176_v7 }
 0x52b   : > { %8154 = vpow2.f32 %v6810_v17  ;;  %v6534_v60 = vmul.f32 1.442695, %v6503_v27  ;;  %v6582_v10 = vmul.f32 1.442695, %v6551_v52  ;;  %v6630_v55 = vmul.f32 1.442695, %v6599_v19 }
 0x52c   : > { %8156 = vpow2.f32 %v6858_v34  ;;  %v6532_v20 = vmul.f32 1.442695, %v6502_v56  ;;  %v6580_v36 = vmul.f32 1.442695, %v6550_v21  ;;  %v7218_v14 = vpack.c.bf16 %v7209_v28, %v7208_v25 }
 0x52d   : > { %8158 = vpow2.f32 %v6906_v0  ;;  %v6628_v47 = vmul.f32 1.442695, %v6598_v37  ;;  %v6106_v13 = vadd.f32 %v12040_v58, %v11247_v43  ;;  %v5217_v4 = vadd.f32 %v12670_v23, %v12667_v15 }
 0x52e   : > { %8160 = vpow2.f32 %v6904_v42  ;;  %7751 = vmatprep.mubr.bf16.mxu1 %v7218_v14  ;;  %v5213_v22 = vadd.f32 %v12671_v5, %v12667_v15  ;;  %v6103_v8 = vadd.f32 %v12023_v6, %v11247_v43 }
 0x52f   : > { %8162 = vpow2.f32 %v6534_v60 }
 0x530   : > { %8164 = vpow2.f32 %v6582_v10 }
 0x531   : > { %8166 = vpow2.f32 %v6630_v55 }
 0x532   : > { %8168 = vpow2.f32 %v6532_v20 }
 0x533   : > { %v8151_v61 = vpop.eup %8150  ;;  %8170 = vpow2.f32 %v6580_v36 }
 0x534   : > { %v8153_v12 = vpop.eup %8152  ;;  %8172 = vpow2.f32 %v6628_v47 }
 0x535   : > { %v8155_v26 = vpop.eup %8154  ;;  %v6922_v24 = vadd.f32 %v8153_v12, %v8151_v61 }
 0x536   : > { %v8157_v3 = vpop.eup %8156 }
 0x537   : > { %v8159_v50 = vpop.eup %8158  ;;  %v6923_v48 = vadd.f32 %v8157_v3, %v8155_v26 }
 0x538   : > { %v8161_v45 = vpop.eup %8160 }
 0x539   : > { %v8163_v33 = vpop.eup %8162  ;;  %v6939_v31 = vadd.f32 %v8159_v50, %v6923_v48  ;;  %v6938_v46 = vadd.f32 %v8161_v45, %v6922_v24  ;;  %v8183_v48 = vld [vmem:[%s8724_s19 + $0x8] sm:$0xff]  }
 0x53a   : > { %v8165_v40 = vpop.eup %8164 }
 0x53b   : > { %v8167_v28 = vpop.eup %8166  ;;  %8174 = vrcp.f32 %v6939_v31  ;;  %v6647_v63 = vadd.f32 %v8165_v40, %v8163_v33 }
 0x53c   : > { %v8169_v41 = vpop.eup %8168  ;;  %8176 = vrcp.f32 %v6938_v46  ;;  %v457_v46 = vunpack.c.h.bf16 %v8183_v48 }
 0x53d   : > { %v8171_v62 = vpop.eup %8170  ;;  %v6663_v30 = vadd.f32 %v8167_v28, %v6647_v63 }
 0x53e   : > { %v6646_v51 = vadd.f32 %v8171_v62, %v8169_v41  ;;  %v8173_v39 = vpop.eup %8172 }
 0x53f   : > { %8178 = vrcp.f32 %v6663_v30 }
 0x540   : > { %v6662_v44 = vadd.f32 %v8173_v39, %v6646_v51 }
 0x542   : > { %8180 = vrcp.f32 %v6662_v44 }
 0x545   : > { %v8175_v32 = vpop.eup %8174 }
 0x546   : > { %v8177_v54 = vpop.eup %8176  ;;  %v6971_v11 = vmul.f32 %v8175_v32, %v8155_v26  ;;  %v6987_v1 = vmul.f32 %v8175_v32, %v8157_v3  ;;  %v7003_v16 = vmul.f32 %v8175_v32, %v8159_v50 }
 0x547   : > { %v6970_v9 = vmul.f32 %v8177_v54, %v8151_v61  ;;  %v6986_v57 = vmul.f32 %v8177_v54, %v8153_v12  ;;  %v7002_v56 = vmul.f32 %v8177_v54, %v8161_v45  ;;  %v456_v45 = vunpack.c.l.bf16 %v8183_v48 }
 0x548   : > { %v7099_v59 = vmul.f32 %v6971_v11, %v5217_v4  ;;  %v7115_v35 = vmul.f32 %v6987_v1, %v6106_v13  ;;  %v7147_v27 = vmul.f32 %v12233_v53, %v7003_v16  ;;  %v8186_v1 = vld [vmem:[%s8724_s19 + $0x10] sm:$0xff]  }
 0x549   : > { %v8179_v18 = vpop.eup %8178  ;;  %v7098_v58 = vmul.f32 %v6970_v9, %v5213_v22  ;;  %v7114_v38 = vmul.f32 %v6986_v57, %v6103_v8  ;;  %v7146_v55 = vmul.f32 %v12233_v53, %v7002_v56  ;;  %v458_v5 = vunpack.c.l.bf16 %v8186_v1  ;;  %v8187_v56 = vld [vmem:[%s8724_s19 + $0x28] sm:$0xff]  }
 0x54a   : > { %v6695_v49 = vmul.f32 %v8179_v18, %v8163_v33  ;;  %v6711_v2 = vmul.f32 %v8179_v18, %v8165_v40  ;;  %v6727_v42 = vmul.f32 %v8179_v18, %v8167_v28  ;;  %v7131_v29 = vadd.f32 %v7115_v35, %v7099_v59  ;;  %v8184_v33 = vld [vmem:[%s8724_s19] sm:$0xff]  }
 0x54b   : > { %v7130_v17 = vadd.f32 %v7114_v38, %v7098_v58  ;;  %v454_v31 = vunpack.c.l.bf16 %v8184_v33  ;;  %v455_v28 = vunpack.c.h.bf16 %v8184_v33  ;;  %v459_v9 = vunpack.c.h.bf16 %v8186_v1 }
 0x54c   : > { %v8181_v34 = vpop.eup %8180  ;;  %v7019_v0 = vmul.f32 %v6695_v49, %v5217_v4  ;;  %v7035_v15 = vmul.f32 %v6711_v2, %v6106_v13  ;;  %v7067_v21 = vmul.f32 %v12233_v53, %v6727_v42  ;;  %v7163_v7 = vadd.f32 %v7147_v27, %v7131_v29  ;;  %v8185_v4 = vld [vmem:[%s8724_s19 + $0x18] sm:$0xff]  }
 0x54d   : > { %v6694_v43 = vmul.f32 %v8181_v34, %v8169_v41  ;;  %v6710_v6 = vmul.f32 %v8181_v34, %v8171_v62  ;;  %v6726_v52 = vmul.f32 %v8181_v34, %v8173_v39  ;;  %v7162_v36 = vadd.f32 %v7146_v55, %v7130_v17  ;;  %v8188_v34 = vld [vmem:[%s8724_s19 + $0x20] sm:$0xff]  }
 0x54e   : > { %v7051_v19 = vadd.f32 %v7035_v15, %v7019_v0  ;;  %v7195_v47 = vmul.f32 0.25, %v7163_v7  ;;  %v460_v11 = vunpack.c.l.bf16 %v8185_v4  ;;  %v464_v17 = vunpack.c.l.bf16 %v8187_v56 }
 0x54f   : > { %v7018_v60 = vmul.f32 %v6694_v43, %v5213_v22  ;;  %v7034_v10 = vmul.f32 %v6710_v6, %v6103_v8  ;;  %v7066_v20 = vmul.f32 %v12233_v53, %v6726_v52  ;;  %v7194_v24 = vmul.f32 0.25, %v7162_v36  ;;  %v12383_v53 = vld [vmem:[%s12484_s8] ss:$0 sm:$0xff]  ;;  %v8189_v36 = vld [vmem:[%s8724_s19 + $0x38] sm:$0xff]  }
 0x550   : > { %v7083_v37 = vadd.f32 %v7067_v21, %v7051_v19  ;;  %v461_v22 = vunpack.c.h.bf16 %v8185_v4  ;;  %v462_v0 = vunpack.c.l.bf16 %v8188_v34  ;;  %v465_v15 = vunpack.c.h.bf16 %v8187_v56 }
 0x551   : > { %v7050_v25 = vadd.f32 %v7034_v10, %v7018_v60  ;;  %v463_v43 = vunpack.c.h.bf16 %v8188_v34 }
 0x552   : > { %v7179_v14 = vmul.f32 0.5, %v7083_v37 }
 0x553   : > { %v7082_v61 = vadd.f32 %v7066_v20, %v7050_v25 }
 0x554   : > { %v7211_v12 = vadd.f32 %v7195_v47, %v7179_v14  ;;  %v468_v14 = vunpack.c.l.bf16 %v8189_v36  ;;  %v8190_v47 = vld [vmem:[%s8724_s19 + $0x30] sm:$0xff]  }
 0x555   : > { %v7178_v26 = vmul.f32 0.5, %v7082_v61  ;;  %v466_v61 = vunpack.c.l.bf16 %v8190_v47 }
 0x557   : > { %v7210_v3 = vadd.f32 %v7194_v24, %v7178_v26  ;;  %v467_v24 = vunpack.c.h.bf16 %v8190_v47 }
 0x559   : > { %v7219_v50 = vpack.c.bf16 %v7211_v12, %v7210_v3  ;;  %v469_v12 = vunpack.c.h.bf16 %v8189_v36 }
 0x55b   : > { %7752 = vmatmul.mubr.bf16.gmra.mrb[44].mxu1 %v7219_v50 }
 0x572   : > { %v7741_v40 = vpop.f32.mrb[32].mxu1 }
 0x573   : > { %v7383_v63 = vadd.f32 %v7741_v40, %v456_v45  ;;  %v7318_v41 = vpop.f32.mrb[33].mxu1 }
 0x574   : > { %v7381_v62 = vadd.f32 %v7318_v41, %v454_v31  ;;  %v7742_v30 = vpop.f32.mrb[34].mxu1 }
 0x575   : > { %v7406_v51 = vadd.f32 %v12383_v53, %v7383_v63  ;;  %v7384_v39 = vadd.f32 %v7742_v30, %v457_v46  ;;  %v7321_v44 = vpop.f32.mrb[35].mxu1 }
 0x576   : > { %v7404_v13 = vadd.f32 %v12383_v53, %v7381_v62  ;;  %v7382_v32 = vadd.f32 %v7321_v44, %v455_v28 }
 0x577   : > { %7422 = vst [vmem:[%s12387_s17 + $0x10] sm:$0xff] %v7406_v51  ;;  %v7407_v54 = vadd.f32 %v12383_v53, %v7384_v39 }
 0x578   : > { %7420 = vst [vmem:[%s12387_s17] sm:$0xff] %v7404_v13  ;;  %v7405_v23 = vadd.f32 %v12383_v53, %v7382_v32 }
 0x579   : > { %7423 = vst [vmem:[%s12387_s17 + $0x18] sm:$0xff] %v7407_v54 }
 0x57a   : > { %7421 = vst [vmem:[%s12387_s17 + $0x8] sm:$0xff] %v7405_v23 }
 0x5be   : > { %v7745_v8 = vpop.f32.mrb[36].mxu1 }
 0x5bf   : > { %v7387_v57 = vadd.f32 %v7745_v8, %v460_v11  ;;  %v7334_v16 = vpop.f32.mrb[37].mxu1 }
 0x5c0   : > { %v7385_v59 = vadd.f32 %v7334_v16, %v458_v5  ;;  %v7746_v35 = vpop.f32.mrb[38].mxu1 }
 0x5c1   : > { %v7410_v18 = vadd.f32 %v12383_v53, %v7387_v57  ;;  %v7388_v58 = vadd.f32 %v7746_v35, %v461_v22  ;;  %v7337_v38 = vpop.f32.mrb[39].mxu1 }
 0x5c2   : > { %v7408_v49 = vadd.f32 %v12383_v53, %v7385_v59  ;;  %v7386_v2 = vadd.f32 %v7337_v38, %v459_v9 }
 0x5c3   : > { %7426 = vst [vmem:[%s12387_s17 + $0x30] sm:$0xff] %v7410_v18  ;;  %v7411_v42 = vadd.f32 %v12383_v53, %v7388_v58 }
 0x5c4   : > { %7424 = vst [vmem:[%s12387_s17 + $0x20] sm:$0xff] %v7408_v49  ;;  %v7409_v29 = vadd.f32 %v12383_v53, %v7386_v2 }
 0x5c5   : > { %7427 = vst [vmem:[%s12387_s17 + $0x38] sm:$0xff] %v7411_v42 }
 0x5c6   : > { %7425 = vst [vmem:[%s12387_s17 + $0x28] sm:$0xff] %v7409_v29 }
 0x5e0   : > { %v7749_v27 = vpop.f32.mrb[40].mxu1 }
 0x5e1   : > { %v7391_v6 = vadd.f32 %v7749_v27, %v464_v17  ;;  %v7350_v52 = vpop.f32.mrb[41].mxu1 }
 0x5e2   : > { %v7389_v19 = vadd.f32 %v7350_v52, %v462_v0  ;;  %v7750_v21 = vpop.f32.mrb[42].mxu1 }
 0x5e3   : > { %v7414_v7 = vadd.f32 %v12383_v53, %v7391_v6  ;;  %v7392_v60 = vadd.f32 %v7750_v21, %v465_v15  ;;  %v7353_v10 = vpop.f32.mrb[43].mxu1 }
 0x5e4   : > { %v7412_v55 = vadd.f32 %v12383_v53, %v7389_v19  ;;  %v7390_v37 = vadd.f32 %v7353_v10, %v463_v43 }
 0x5e5   : > { %7430 = vst [vmem:[%s12387_s17 + $0x50] sm:$0xff] %v7414_v7  ;;  %v7415_v25 = vadd.f32 %v12383_v53, %v7392_v60 }
 0x5e6   : > { %7428 = vst [vmem:[%s12387_s17 + $0x40] sm:$0xff] %v7412_v55  ;;  %v7413_v20 = vadd.f32 %v12383_v53, %v7390_v37 }
 0x5e7   : > { %7431 = vst [vmem:[%s12387_s17 + $0x58] sm:$0xff] %v7415_v25 }
 0x5e8   : > { %7429 = vst [vmem:[%s12387_s17 + $0x48] sm:$0xff] %v7413_v20 }
 0x62e   : > { %v7753_v26 = vpop.f32.mrb[44].mxu1 }
 0x62f   : > { %v7395_v3 = vadd.f32 %v7753_v26, %v468_v14  ;;  %v7366_v50 = vpop.f32.mrb[45].mxu1 }
 0x630   : > { %v7393_v48 = vadd.f32 %v7366_v50, %v466_v61  ;;  %v7754_v45 = vpop.f32.mrb[46].mxu1 }
 0x631   : > { %v7418_v33 = vadd.f32 %v12383_v53, %v7395_v3  ;;  %v7396_v31 = vadd.f32 %v7754_v45, %v469_v12  ;;  %v7369_v46 = vpop.f32.mrb[47].mxu1 }
 0x632   : > { %v7416_v40 = vadd.f32 %v12383_v53, %v7393_v48  ;;  %v7394_v28 = vadd.f32 %v7369_v46, %v467_v24 }
 0x633   : > { %7434 = vst [vmem:[%s12387_s17 + $0x70] sm:$0xff] %v7418_v33  ;;  %v7419_v63 = vadd.f32 %v12383_v53, %v7396_v31 }
 0x634   : > { %7432 = vst [vmem:[%s12387_s17 + $0x60] sm:$0xff] %v7416_v40  ;;  %v7417_v41 = vadd.f32 %v12383_v53, %v7394_v28 }
 0x635   : > { %7435 = vst [vmem:[%s12387_s17 + $0x78] sm:$0xff] %v7419_v63 }
 0x636   : > { %7433 = vst [vmem:[%s12387_s17 + $0x68] sm:$0xff] %v7417_v41 }
 0x637   : > { %8348 = shalt.err (!%p8345_p3)
}
 0x638   : > { %s8349_s5 = scalar_lea.hbm %s12426_s16, 2048  ;;  %s8353_s25 = scalar_lea.hbm %s12485_s9, 4096 }
 0x639   : > { %p8350_p9 = scmp.ne.s32.totalorder %s12426_s16, %s8349_s5  ;;  %p8354_p7 = scmp.lt.u32.totalorder %s12426_s16, %s12485_s9 }
 0x63a   : > { %p8355_p12 = scmp.lt.u32.totalorder %s8353_s25, %s8349_s5  ;;  %p8357_p1 = scmp.lt.u32.totalorder %s8349_s5, %s12426_s16 }
 0x63b   : > { %p8351_p13 = pnand %p8350_p9, %p8625_p5 }
 0x63c   : > { %p8356_p2 = por %p8355_p12, %p8354_p7 }
 0x63d   : > { %p8352_p11 = pneg %p8351_p13 }
 0x63e   : > { %p8358_p4 = por %p8357_p1, %p8356_p2 }
 0x640   : > { %p8359_p0 = pnand %p8358_p4, %p8352_p11 }
 0x642   : > { %8362 = shalt.err (!%p8359_p0)
}
 0x643   : > { %s8428_s0 = smov 128   ;;  %s8429_s7 = smov 8  }
 0x644   : > { %7771 = dma.vmem_to_hbm [thread:$0]  (%p8625_p5), %s12428_s15, 2048, %s12426_s16, %s7437_s13, %s8428_s0, %s8428_s0, %s8429_s7  }
 0x645 PF: > { %s12672_s17 = sld [smem:[#allocation17_spill]]  ;;  %s12673_s3 = sld [smem:[#allocation18_spill]] }
 0x646   : > { %p12675_p6 = scmp.ge.s32.totalorder %s8413_s12, 2 }
 0x64b   : > { %s7465_s19 = sand.u32 1, %s12672_s17   ;;  %p12674_p8 = scmp.ne.s32.totalorder %s12673_s3, 0 }
 0x64c   : > { %s7466_s30 = scalar_lea.sflag [#allocation4], %s7465_s19 }
 0x64d   : > { %p7791_p10 = pnand %p12675_p6, %p12674_p8 }
 0x64f   : > { %8396 = dma.done.wait (!%p7791_p10), %s7466_s30, 2048  }
 0x650   : > { %8398 = vsyncadd (!%p7791_p10), %s7466_s30, 4294965248  ;;  %s12676_s29 = sld [smem:[#allocation19_spill]]  ;;  %p26_p3 = scmp.ge.s32.totalorder %s8611_s21, 4  }
 0x651   : > { %s12677_s30 = smov %s8405_s10  ;;  %s12678_s10 = smov %s8409_s11 }
 0x652   : > { %s12680_s12 = smov %s8611_s21  ;;  %28 = sbr.rel (!%p26_p3) target bundleno = 13 (0xd), region = 126 }
 0x656   : > { %s12679_s11 = smov %s12676_s29 }
 0x659   :  { %7471 = vsyncpa [#allocation3], 1 }
 0x65a   :  { %7473 = vsyncpa [#allocation3 + $0x1], 1 }
 0x65b   :  { %7474 = vsyncpa [#allocation6], 1 }
 0x65c   :  { %7476 = vsyncpa [#allocation6 + $0x1], 1 }
 0x65d   :  { %7477 = vsyncpa [#allocation9], 1 }
 0x65e   :  { %7478 = vsyncpa [#allocation4], 1 }
 0x65f   :  { %7480 = vsyncpa [#allocation4 + $0x1], 1 }

</bundles_post_ra>
